<compile_context>
chip_gen: v5e
topology: v5e:2x2
jax: 0.10.0
libtpu: 0.0.40
codegen_flags: <defaults>
</compile_context>

<pallas_src>
import jax
import jax.numpy as jnp
from jax.experimental import pallas as pl
from jax.experimental.pallas import tpu as pltpu

# ----------------------------------------------------------------------------
# Model hyper-parameters (consistent with the torch module).
# ----------------------------------------------------------------------------
N_DOF = 7
N_CTR_PTS_TOTAL = 15
N_PTS_FIXED_BEGIN = 3
N_PTS_FIXED_END = 2
N_CTR_PTS = N_CTR_PTS_TOTAL - N_PTS_FIXED_BEGIN - N_PTS_FIXED_END   # = 10
N_CTR_PTS_T = 20
HIDDEN = 2048
IN_DIM = 6 * N_DOF            # 42
IN_DIM_PAD = 128              # first-layer K padded to one lane tile
HEAD_PAD = 128                # head N padded to one lane tile
NUM_TRUNK = 5                 # fc[1..4] + q_est[0]
TN = 1024                     # trunk N tile: (2048, 1024) bf16 block = 4 MiB

# Synthetic (deterministic) stand-ins for the B-spline basis derivative values
# (bsp.ddN[0,0,0..2], bsp.dN[0,0,1], bsp_t.dN[0,0,1]).
QDD1 = 2.0
QDD2 = -3.0
QDD3 = 1.0
QD1 = 1.5
TD1 = 1.2

# Limits.q_dot7 (iiwa-14 joint velocity limits, rad/s) -- defined in-script.
Q_DOT_LIMITS = jnp.array(
    [1.4835298, 1.4835298, 1.7453293, 1.3089969, 2.2689280, 2.3561945, 2.3561945],
    dtype=jnp.float32,
)


def _round_up(v, m):
    return ((v + m - 1) // m) * m


# ----------------------------------------------------------------------------
# Kernel 1: first layer (42 -> 2048), single block, fused bias + tanh.
# ----------------------------------------------------------------------------
def _first_layer_kernel(x_ref, w_ref, b_ref, o_ref):
    z = jnp.dot(x_ref[...].astype(jnp.bfloat16), w_ref[...],
                preferred_element_type=jnp.float32)
    o_ref[...] = jnp.tanh(z + b_ref[...])


def first_layer(xp, w0, b0):
    BP = xp.shape[0]
    return pl.pallas_call(
        _first_layer_kernel,
        out_shape=jax.ShapeDtypeStruct((BP, HIDDEN), jnp.float32),
        grid_spec=pltpu.PrefetchScalarGridSpec(
            num_scalar_prefetch=0,
            grid=(1,),
            in_specs=[
                pl.BlockSpec((BP, IN_DIM_PAD), lambda i: (0, 0)),
                pl.BlockSpec((IN_DIM_PAD, HIDDEN), lambda i: (0, 0)),
                pl.BlockSpec((1, HIDDEN), lambda i: (0, 0)),
            ],
            out_specs=pl.BlockSpec((BP, HIDDEN), lambda i: (0, 0)),
        ),
        compiler_params=pltpu.CompilerParams(
            dimension_semantics=("arbitrary",)),
    )(xp, w0, b0)


# ----------------------------------------------------------------------------
# Kernel 2: fused trunk — five 2048x2048 tanh layers (fc[1..4] + q_est[0]).
# Activation stays resident in VMEM scratch; bf16 weight blocks stream.
# Outputs: y = fc output (feeds t_est), h = q_est[0] output (feeds q_est[1]).
# ----------------------------------------------------------------------------
def _trunk_kernel(a0_ref, w_ref, b_ref, y_ref, h_ref, act_ref, nxt_ref):
    lyr = pl.program_id(0)
    j = pl.program_id(1)
    n_l = pl.num_programs(0)
    n_j = pl.num_programs(1)

    # Load the (resident) input activation once, at the very first step.
    @pl.when(jnp.logical_and(lyr == 0, j == 0))
    def _():
        act_ref[...] = a0_ref[...]

    # Full-K matmul on the MXU: (BP, 2048) @ (2048, TN), f32 accumulation.
    a = act_ref[...].astype(jnp.bfloat16)
    z = jnp.tanh(
        jnp.dot(a, w_ref[0], preferred_element_type=jnp.float32) + b_ref[0])

    col = pl.multiple_of(j * TN, TN)
    nxt_ref[:, pl.ds(col, TN)] = z

    # Second-to-last trunk layer produces y (fc output), last produces h.
    @pl.when(lyr == n_l - 2)
    def _():
        y_ref[:, pl.ds(col, TN)] = z

    @pl.when(lyr == n_l - 1)
    def _():
        h_ref[:, pl.ds(col, TN)] = z

    # Layer boundary: promote the freshly computed activation.
    @pl.when(j == n_j - 1)
    def _():
        act_ref[...] = nxt_ref[...]


def trunk(a0, w_stack, b_stack):
    BP = a0.shape[0]
    n_layers = w_stack.shape[0]
    return pl.pallas_call(
        _trunk_kernel,
        out_shape=(jax.ShapeDtypeStruct((BP, HIDDEN), jnp.float32),
                   jax.ShapeDtypeStruct((BP, HIDDEN), jnp.float32)),
        grid_spec=pltpu.PrefetchScalarGridSpec(
            num_scalar_prefetch=0,
            grid=(n_layers, HIDDEN // TN),
            in_specs=[
                pl.BlockSpec((BP, HIDDEN), lambda l, j: (0, 0)),
                pl.BlockSpec((1, HIDDEN, TN), lambda l, j: (l, 0, j)),
                pl.BlockSpec((1, 1, TN), lambda l, j: (l, 0, j)),
            ],
            out_specs=[
                pl.BlockSpec((BP, HIDDEN), lambda l, j: (0, 0)),
                pl.BlockSpec((BP, HIDDEN), lambda l, j: (0, 0)),
            ],
            scratch_shapes=[pltpu.VMEM((BP, HIDDEN), jnp.float32),
                            pltpu.VMEM((BP, HIDDEN), jnp.float32)],
        ),
        # Carried activation state => both grid axes are sequential.
        compiler_params=pltpu.CompilerParams(
            dimension_semantics=("arbitrary", "arbitrary")),
    )(a0, w_stack, b_stack)


# ----------------------------------------------------------------------------
# Kernel 3: the two small heads, stacked: [q_est[1](h), t_est(y)] -> (2, BP, 128)
# ----------------------------------------------------------------------------
def _heads_kernel(a_ref, w_ref, b_ref, o_ref):
    z = jnp.dot(a_ref[0].astype(jnp.bfloat16), w_ref[0],
                preferred_element_type=jnp.float32) + b_ref[0]
    o_ref[0] = z


def heads(acts, wh, bh):
    BP = acts.shape[1]
    return pl.pallas_call(
        _heads_kernel,
        out_shape=jax.ShapeDtypeStruct((2, BP, HEAD_PAD), jnp.float32),
        grid_spec=pltpu.PrefetchScalarGridSpec(
            num_scalar_prefetch=0,
            grid=(2,),
            in_specs=[
                pl.BlockSpec((1, BP, HIDDEN), lambda i: (i, 0, 0)),
                pl.BlockSpec((1, HIDDEN, HEAD_PAD), lambda i: (i, 0, 0)),
                pl.BlockSpec((1, 1, HEAD_PAD), lambda i: (i, 0, 0)),
            ],
            out_specs=pl.BlockSpec((1, BP, HEAD_PAD), lambda i: (i, 0, 0)),
        ),
        compiler_params=pltpu.CompilerParams(
            dimension_semantics=("parallel",)),
    )(acts, wh, bh)


# ----------------------------------------------------------------------------
# Parameter init (deterministic; mirrors torch xavier_uniform_(gain=relu) and
# bias fill 0.01).  Weights are padded / stacked / cast to bf16 ONCE here.
# ----------------------------------------------------------------------------
def _xavier_uniform(key, fan_in, fan_out, gain):
    bound = gain * (6.0 / (fan_in + fan_out)) ** 0.5
    return jax.random.uniform(key, (fan_in, fan_out), jnp.float32,
                              minval=-bound, maxval=bound)


def init_params(key):
    gain = 2.0 ** 0.5  # calculate_gain('relu') -- the Tanh branch is never hit
    dims = ([(IN_DIM, HIDDEN)] + [(HIDDEN, HIDDEN)] * 4          # fc
            + [(HIDDEN, HIDDEN), (HIDDEN, N_DOF * N_CTR_PTS)]    # q_est
            + [(HIDDEN, N_CTR_PTS_T)])                           # t_est
    raw = []
    for fi, fo in dims:
        key, sub = jax.random.split(key)
        raw.append((_xavier_uniform(sub, fi, fo, gain),
                    jnp.full((fo,), 0.01, jnp.float32)))

    # Layer 0: 42 -> 2048, K padded to 128 lanes.
    w0 = (jnp.zeros((IN_DIM_PAD, HIDDEN), jnp.float32)
          .at[:IN_DIM, :].set(raw[0][0]).astype(jnp.bfloat16))
    b0 = raw[0][1].reshape(1, HIDDEN)

    # Trunk: fc[1..4] + q_est[0]  (five 2048x2048 tanh layers).
    w_trunk = jnp.stack([raw[i][0] for i in range(1, 6)]).astype(jnp.bfloat16)
    b_trunk = jnp.stack([raw[i][1] for i in range(1, 6)])[:, None, :]

    # Heads: [q_est[1] (2048->70), t_est (2048->20)], N padded to 128.
    wq1 = jnp.zeros((HIDDEN, HEAD_PAD), jnp.float32).at[:, :N_DOF * N_CTR_PTS].set(raw[6][0])
    wt = jnp.zeros((HIDDEN, HEAD_PAD), jnp.float32).at[:, :N_CTR_PTS_T].set(raw[7][0])
    wh = jnp.stack([wq1, wt]).astype(jnp.bfloat16)
    bq1 = jnp.zeros((HEAD_PAD,), jnp.float32).at[:N_DOF * N_CTR_PTS].set(raw[6][1])
    bt = jnp.zeros((HEAD_PAD,), jnp.float32).at[:N_CTR_PTS_T].set(raw[7][1])
    bh = jnp.stack([bq1, bt])[:, None, :]

    return {"w0": w0, "b0": b0,
            "w_trunk": w_trunk, "b_trunk": b_trunk,
            "w_heads": wh, "b_heads": bh}


# ----------------------------------------------------------------------------
# Boundary-condition math (plain JAX glue; matches NNPlanner.forward).
# ----------------------------------------------------------------------------
def _boundary_conditions(q_est, dt_est, q0, q_dot_0, q_ddot_0,
                         qd, q_dot_d, q_ddot_d, expected_time):
    B = q0.shape[0]
    # NOTE: as in the torch reference, expected_time == 0 (qd == q0) would give
    # inf/NaN here; left unguarded to preserve semantics.
    dtau_dt = jnp.exp(dt_est) / expected_time[:, None]

    # torch: reshape(B,7,10) then reshape(-1,10,7) on a contiguous buffer ==
    # a single reshape of the flat output.
    q = jnp.pi * q_est.reshape(B, N_CTR_PTS, N_DOF)

    s = jnp.linspace(0.0, 1.0, N_CTR_PTS + 2)[1:-1][None, :, None]

    q1 = q_dot_0 / dtau_dt[:, :1] / QD1 + q0
    qm1 = qd - q_dot_d / dtau_dt[:, -1:] / QD1
    q2 = ((q_ddot_0 / dtau_dt[:, :1]
           - QD1 * TD1 * (q1 - q0) * (dtau_dt[:, 1] - dtau_dt[:, 0])[:, None])
          / dtau_dt[:, :1]
          - QDD1 * q0 - QDD2 * q1) / QDD3
    # qm2 is computed in the torch reference but unused for n_pts_fixed_end=2.

    qb = q2[:, None, :] * (1.0 - s) + qm1[:, None, :] * s
    ctrl = jnp.concatenate(
        [q0[:, None, :], q1[:, None, :], q2[:, None, :],
         q + qb, qm1[:, None, :], qd[:, None, :]], axis=-2)
    return ctrl, dtau_dt[..., None]


# ----------------------------------------------------------------------------
# Forward pass (Pallas) and a pure-JAX reference using the same bf16 weights.
# ----------------------------------------------------------------------------
def nn_planner_forward(params, x):
    B = x.shape[0]
    q0, q_dot_0, q_ddot_0, qd, q_dot_d, q_ddot_d = jnp.split(x, 6, axis=1)
    expected_time = jnp.max(jnp.abs(qd - q0) / Q_DOT_LIMITS[None, :], axis=-1)

    BP = max(8, _round_up(B, 8))
    xp = jnp.zeros((BP, IN_DIM_PAD), jnp.float32).at[:B, :IN_DIM].set(x)

    a0 = first_layer(xp, params["w0"], params["b0"])             # (BP, 2048)
    y, h = trunk(a0, params["w_trunk"], params["b_trunk"])       # fc out, q_est[0] out
    head_out = heads(jnp.stack([h, y]), params["w_heads"], params["b_heads"])
    q_est = head_out[0, :B, :N_DOF * N_CTR_PTS]                  # (B, 70)
    dt_est = head_out[1, :B, :N_CTR_PTS_T]                       # (B, 20)

    return _boundary_conditions(q_est, dt_est, q0, q_dot_0, q_ddot_0,
                                qd, q_dot_d, q_ddot_d, expected_time)


def nn_planner_forward_ref(params, x):
    B = x.shape[0]
    q0, q_dot_0, q_ddot_0, qd, q_dot_d, q_ddot_d = jnp.split(x, 6, axis=1)
    expected_time = jnp.max(jnp.abs(qd - q0) / Q_DOT_LIMITS[None, :], axis=-1)

    BP = max(8, _round_up(B, 8))
    xp = jnp.zeros((BP, IN_DIM_PAD), jnp.float32).at[:B, :IN_DIM].set(x)

    def lin(a, w, b, tanh):
        z = jnp.dot(a.astype(jnp.bfloat16), w,
                    preferred_element_type=jnp.float32) + b
        return jnp.tanh(z) if tanh else z

    a = lin(xp, params["w0"], params["b0"], True)
    for i in range(params["w_trunk"].shape[0] - 1):
        a = lin(a, params["w_trunk"][i], params["b_trunk"][i], True)
    y = a
    h = lin(y, params["w_trunk"][-1], params["b_trunk"][-1], True)
    q_est = lin(h, params["w_heads"][0], params["b_heads"][0], False)[:B, :N_DOF * N_CTR_PTS]
    dt_est = lin(y, params["w_heads"][1], params["b_heads"][1], False)[:B, :N_CTR_PTS_T]
    return _boundary_conditions(q_est, dt_est, q0, q_dot_0, q_ddot_0,
                                qd, q_dot_d, q_ddot_d, expected_time)


# ----------------------------------------------------------------------------
if __name__ == "__main__":
    key = jax.random.PRNGKey(0)
    pkey, xkey = jax.random.split(key)
    params = init_params(pkey)

    batch = 2
    x = jax.random.normal(xkey, (batch, IN_DIM), dtype=jnp.float32)

    ctrl_pts, dtau_dt = jax.jit(nn_planner_forward)(params, x)
    jax.block_until_ready((ctrl_pts, dtau_dt))

    assert ctrl_pts.shape == (batch, N_CTR_PTS_TOTAL, N_DOF)
    assert dtau_dt.shape == (batch, N_CTR_PTS_T, 1)

    # Sanity check vs. a pure-JAX reference that uses the same bf16 weights.
    ref_ctrl, ref_dtau = jax.jit(nn_planner_forward_ref)(params, x)
    err_c = float(jnp.max(jnp.abs(ctrl_pts - ref_ctrl) / (1.0 + jnp.abs(ref_ctrl))))
    err_t = float(jnp.max(jnp.abs(dtau_dt - ref_dtau) / (1.0 + jnp.abs(ref_dtau))))
    assert err_c < 2e-2 and err_t < 2e-2, (err_c, err_t)

    print("KERNEL_OK")
</pallas_src>

<mosaic_0001>
module attributes {stable_mosaic.version = 11 : i64} {
  func.func @_trunk_kernel(%arg0: i32, %arg1: i32, %arg2: memref<8x2048xf32, #tpu.memory_space<vmem>>, %arg3: memref<1x2048x1024xbf16, #tpu.memory_space<vmem>>, %arg4: memref<1x1x1024xf32, #tpu.memory_space<vmem>>, %arg5: memref<8x2048xf32, #tpu.memory_space<vmem>>, %arg6: memref<8x2048xf32, #tpu.memory_space<vmem>>, %arg7: memref<8x2048xf32, #tpu.memory_space<vmem>>, %arg8: memref<8x2048xf32, #tpu.memory_space<vmem>>) attributes {dimension_semantics = [#tpu.dimension_semantics<arbitrary>, #tpu.dimension_semantics<arbitrary>], iteration_bounds = array<i64: 5, 2>, scalar_prefetch = 0 : i64, scratch_operands = 2 : i64, tpu.core_type = #tpu.core_type<tc>, window_params = [{pipeline_mode = #tpu.pipeline_mode<synchronous>, transform_indices = @transform_0, window_bounds = array<i64: 8, 2048>}, {transform_indices = @transform_1, window_bounds = array<i64: 1, 2048, 1024>}, {transform_indices = @transform_2, window_bounds = array<i64: 1, 1, 1024>}, {pipeline_mode = #tpu.pipeline_mode<synchronous>, transform_indices = @transform_3, window_bounds = array<i64: 8, 2048>}, {pipeline_mode = #tpu.pipeline_mode<synchronous>, transform_indices = @transform_4, window_bounds = array<i64: 8, 2048>}]} {
    %c0_i32 = arith.constant 0 : i32
    %0 = arith.cmpi eq, %arg0, %c0_i32 : i32
    %c0_i32_0 = arith.constant 0 : i32
    %1 = arith.cmpi eq, %arg1, %c0_i32_0 : i32
    %2 = arith.andi %0, %1 : i1
    %3 = arith.extui %2 : i1 to i32
    %c0_i32_1 = arith.constant 0 : i32
    %4 = arith.cmpi ne, %3, %c0_i32_1 : i32
    scf.if %4 {
      %c0_13 = arith.constant 0 : index
      %c0_14 = arith.constant 0 : index
      %28 = vector.load %arg2[%c0_13, %c0_14] : memref<8x2048xf32, #tpu.memory_space<vmem>>, vector<8x2048xf32>
      %c0_15 = arith.constant 0 : index
      %c0_16 = arith.constant 0 : index
      %29 = vector.load %arg7[%c0_15, %c0_16] : memref<8x2048xf32, #tpu.memory_space<vmem>>, vector<8x2048xf32>
      tpu.vector_store %arg7[%c0_15, %c0_16], %28 {strides = array<i32>} : memref<8x2048xf32, #tpu.memory_space<vmem>>, vector<8x2048xf32>,
    } else {
    }
    %c0 = arith.constant 0 : index
    %c0_2 = arith.constant 0 : index
    %5 = vector.load %arg7[%c0, %c0_2] : memref<8x2048xf32, #tpu.memory_space<vmem>>, vector<8x2048xf32>
    %6 = arith.truncf %5 : vector<8x2048xf32> to vector<8x2048xbf16>
    %c0_3 = arith.constant 0 : index
    %c0_4 = arith.constant 0 : index
    %c0_5 = arith.constant 0 : index
    %7 = vector.load %arg3[%c0_3, %c0_4, %c0_5] : memref<1x2048x1024xbf16, #tpu.memory_space<vmem>>, vector<1x2048x1024xbf16>
    %8 = vector.shape_cast %7 : vector<1x2048x1024xbf16> to vector<2048x1024xbf16>
    %cst = arith.constant dense<0.000000e+00> : vector<8x1024xf32>
    %9 = tpu.matmul %6, %8, %cst {dimension_numbers = #tpu.dot_dimension_numbers<[1], [0], [0], [1], [0, 0, 1, 1], [], []>} : vector<8x2048xbf16>, vector<2048x1024xbf16>, vector<8x1024xf32> -> vector<8x1024xf32>
    %c0_6 = arith.constant 0 : index
    %c0_7 = arith.constant 0 : index
    %c0_8 = arith.constant 0 : index
    %10 = vector.load %arg4[%c0_6, %c0_7, %c0_8] : memref<1x1x1024xf32, #tpu.memory_space<vmem>>, vector<1x1x1024xf32>
    %11 = vector.shape_cast %10 : vector<1x1x1024xf32> to vector<1x1024xf32>
    %12 = vector.broadcast %11 : vector<1x1024xf32> to vector<8x1024xf32>
    %13 = arith.addf %9, %12 : vector<8x1024xf32>
    %14 = math.tanh %13 : vector<8x1024xf32>
    %c1024_i32 = arith.constant 1024 : i32
    %15 = arith.muli %arg1, %c1024_i32 : i32
    %16 = tpu.assume_multiple %15, 1024 : i32
    %c0_9 = arith.constant 0 : index
    %17 = arith.index_cast %16 : i32 to index
    %18 = vector.load %arg8[%c0_9, %17] : memref<8x2048xf32, #tpu.memory_space<vmem>>, vector<8x1024xf32>
    tpu.vector_store %arg8[%c0_9, %17], %14 {strides = array<i32>} : memref<8x2048xf32, #tpu.memory_space<vmem>>, vector<8x1024xf32>,
    %c3_i32 = arith.constant 3 : i32
    %19 = arith.cmpi eq, %arg0, %c3_i32 : i32
    %20 = arith.extui %19 : i1 to i32
    %c0_i32_10 = arith.constant 0 : i32
    %21 = arith.cmpi ne, %20, %c0_i32_10 : i32
    scf.if %21 {
      %c0_13 = arith.constant 0 : index
      %28 = arith.index_cast %16 : i32 to index
      %29 = vector.load %arg5[%c0_13, %28] : memref<8x2048xf32, #tpu.memory_space<vmem>>, vector<8x1024xf32>
      tpu.vector_store %arg5[%c0_13, %28], %14 {strides = array<i32>} : memref<8x2048xf32, #tpu.memory_space<vmem>>, vector<8x1024xf32>,
    } else {
    }
    %c4_i32 = arith.constant 4 : i32
    %22 = arith.cmpi eq, %arg0, %c4_i32 : i32
    %23 = arith.extui %22 : i1 to i32
    %c0_i32_11 = arith.constant 0 : i32
    %24 = arith.cmpi ne, %23, %c0_i32_11 : i32
    scf.if %24 {
      %c0_13 = arith.constant 0 : index
      %28 = arith.index_cast %16 : i32 to index
      %29 = vector.load %arg6[%c0_13, %28] : memref<8x2048xf32, #tpu.memory_space<vmem>>, vector<8x1024xf32>
      tpu.vector_store %arg6[%c0_13, %28], %14 {strides = array<i32>} : memref<8x2048xf32, #tpu.memory_space<vmem>>, vector<8x1024xf32>,
    } else {
    }
    %c1_i32 = arith.constant 1 : i32
    %25 = arith.cmpi eq, %arg1, %c1_i32 : i32
    %26 = arith.extui %25 : i1 to i32
    %c0_i32_12 = arith.constant 0 : i32
    %27 = arith.cmpi ne, %26, %c0_i32_12 : i32
    scf.if %27 {
      %c0_13 = arith.constant 0 : index
      %c0_14 = arith.constant 0 : index
      %28 = vector.load %arg8[%c0_13, %c0_14] : memref<8x2048xf32, #tpu.memory_space<vmem>>, vector<8x2048xf32>
      %c0_15 = arith.constant 0 : index
      %c0_16 = arith.constant 0 : index
      %29 = vector.load %arg7[%c0_15, %c0_16] : memref<8x2048xf32, #tpu.memory_space<vmem>>, vector<8x2048xf32>
      tpu.vector_store %arg7[%c0_15, %c0_16], %28 {strides = array<i32>} : memref<8x2048xf32, #tpu.memory_space<vmem>>, vector<8x2048xf32>,
    } else {
    }
    return
  }
  func.func @transform_0(%arg0: i32, %arg1: i32) -> (i32, i32) {
    %c0_i32 = arith.constant 0 : i32
    %c0_i32_0 = arith.constant 0 : i32
    %c0_i32_1 = arith.constant 0 : i32
    return %c0_i32, %c0_i32_0 : i32, i32
  }
  func.func @transform_1(%arg0: i32, %arg1: i32) -> (i32, i32, i32) {
    %c0_i32 = arith.constant 0 : i32
    %c0_i32_0 = arith.constant 0 : i32
    return %arg0, %c0_i32, %arg1 : i32, i32, i32
  }
  func.func @transform_2(%arg0: i32, %arg1: i32) -> (i32, i32, i32) {
    %c0_i32 = arith.constant 0 : i32
    %c0_i32_0 = arith.constant 0 : i32
    return %arg0, %c0_i32, %arg1 : i32, i32, i32
  }
  func.func @transform_3(%arg0: i32, %arg1: i32) -> (i32, i32) {
    %c0_i32 = arith.constant 0 : i32
    %c0_i32_0 = arith.constant 0 : i32
    %c0_i32_1 = arith.constant 0 : i32
    return %c0_i32, %c0_i32_0 : i32, i32
  }
  func.func @transform_4(%arg0: i32, %arg1: i32) -> (i32, i32) {
    %c0_i32 = arith.constant 0 : i32
    %c0_i32_0 = arith.constant 0 : i32
    %c0_i32_1 = arith.constant 0 : i32
    return %c0_i32, %c0_i32_0 : i32, i32
  }
}

module attributes {stable_mosaic.version = 11 : i64} {
  func.func @_first_layer_kernel(%arg0: i32, %arg1: memref<8x128xf32, #tpu.memory_space<vmem>>, %arg2: memref<128x2048xbf16, #tpu.memory_space<vmem>>, %arg3: memref<1x2048xf32, #tpu.memory_space<vmem>>, %arg4: memref<8x2048xf32, #tpu.memory_space<vmem>>) attributes {dimension_semantics = [#tpu.dimension_semantics<arbitrary>], iteration_bounds = array<i64: 1>, scalar_prefetch = 0 : i64, scratch_operands = 0 : i64, tpu.core_type = #tpu.core_type<tc>, window_params = [{pipeline_mode = #tpu.pipeline_mode<synchronous>, transform_indices = @transform_0, window_bounds = array<i64: 8, 128>}, {pipeline_mode = #tpu.pipeline_mode<synchronous>, transform_indices = @transform_1, window_bounds = array<i64: 128, 2048>}, {pipeline_mode = #tpu.pipeline_mode<synchronous>, transform_indices = @transform_2, window_bounds = array<i64: 1, 2048>}, {pipeline_mode = #tpu.pipeline_mode<synchronous>, transform_indices = @transform_3, window_bounds = array<i64: 8, 2048>}]} {
    %c0 = arith.constant 0 : index
    %c0_0 = arith.constant 0 : index
    %0 = vector.load %arg1[%c0, %c0_0] : memref<8x128xf32, #tpu.memory_space<vmem>>, vector<8x128xf32>
    %1 = arith.truncf %0 : vector<8x128xf32> to vector<8x128xbf16>
    %c0_1 = arith.constant 0 : index
    %c0_2 = arith.constant 0 : index
    %2 = vector.load %arg2[%c0_1, %c0_2] : memref<128x2048xbf16, #tpu.memory_space<vmem>>, vector<128x2048xbf16>
    %cst = arith.constant dense<0.000000e+00> : vector<8x2048xf32>
    %3 = tpu.matmul %1, %2, %cst {dimension_numbers = #tpu.dot_dimension_numbers<[1], [0], [0], [1], [0, 0, 1, 1], [], []>} : vector<8x128xbf16>, vector<128x2048xbf16>, vector<8x2048xf32> -> vector<8x2048xf32>
    %c0_3 = arith.constant 0 : index
    %c0_4 = arith.constant 0 : index
    %4 = vector.load %arg3[%c0_3, %c0_4] : memref<1x2048xf32, #tpu.memory_space<vmem>>, vector<1x2048xf32>
    %5 = vector.broadcast %4 : vector<1x2048xf32> to vector<8x2048xf32>
    %6 = arith.addf %3, %5 : vector<8x2048xf32>
    %7 = math.tanh %6 : vector<8x2048xf32>
    %c0_5 = arith.constant 0 : index
    %c0_6 = arith.constant 0 : index
    %8 = vector.load %arg4[%c0_5, %c0_6] : memref<8x2048xf32, #tpu.memory_space<vmem>>, vector<8x2048xf32>
    tpu.vector_store %arg4[%c0_5, %c0_6], %7 {strides = array<i32>} : memref<8x2048xf32, #tpu.memory_space<vmem>>, vector<8x2048xf32>,
    return
  }
  func.func @transform_0(%arg0: i32) -> (i32, i32) {
    %c0_i32 = arith.constant 0 : i32
    %c0_i32_0 = arith.constant 0 : i32
    %c0_i32_1 = arith.constant 0 : i32
    return %c0_i32, %c0_i32_0 : i32, i32
  }
  func.func @transform_1(%arg0: i32) -> (i32, i32) {
    %c0_i32 = arith.constant 0 : i32
    %c0_i32_0 = arith.constant 0 : i32
    %c0_i32_1 = arith.constant 0 : i32
    return %c0_i32, %c0_i32_0 : i32, i32
  }
  func.func @transform_2(%arg0: i32) -> (i32, i32) {
    %c0_i32 = arith.constant 0 : i32
    %c0_i32_0 = arith.constant 0 : i32
    %c0_i32_1 = arith.constant 0 : i32
    return %c0_i32, %c0_i32_0 : i32, i32
  }
  func.func @transform_3(%arg0: i32) -> (i32, i32) {
    %c0_i32 = arith.constant 0 : i32
    %c0_i32_0 = arith.constant 0 : i32
    %c0_i32_1 = arith.constant 0 : i32
    return %c0_i32, %c0_i32_0 : i32, i32
  }
}

module attributes {stable_mosaic.version = 11 : i64} {
  func.func @_heads_kernel(%arg0: i32, %arg1: memref<1x8x2048xf32, #tpu.memory_space<vmem>>, %arg2: memref<1x2048x128xbf16, #tpu.memory_space<vmem>>, %arg3: memref<1x1x128xf32, #tpu.memory_space<vmem>>, %arg4: memref<1x8x128xf32, #tpu.memory_space<vmem>>) attributes {dimension_semantics = [#tpu.dimension_semantics<parallel>], iteration_bounds = array<i64: 2>, scalar_prefetch = 0 : i64, scratch_operands = 0 : i64, tpu.core_type = #tpu.core_type<tc>, window_params = [{transform_indices = @transform_0, window_bounds = array<i64: 1, 8, 2048>}, {transform_indices = @transform_1, window_bounds = array<i64: 1, 2048, 128>}, {transform_indices = @transform_2, window_bounds = array<i64: 1, 1, 128>}, {transform_indices = @transform_3, window_bounds = array<i64: 1, 8, 128>}]} {
    %c0 = arith.constant 0 : index
    %c0_0 = arith.constant 0 : index
    %c0_1 = arith.constant 0 : index
    %0 = vector.load %arg1[%c0, %c0_0, %c0_1] : memref<1x8x2048xf32, #tpu.memory_space<vmem>>, vector<1x8x2048xf32>
    %1 = vector.shape_cast %0 : vector<1x8x2048xf32> to vector<8x2048xf32>
    %2 = arith.truncf %1 : vector<8x2048xf32> to vector<8x2048xbf16>
    %c0_2 = arith.constant 0 : index
    %c0_3 = arith.constant 0 : index
    %c0_4 = arith.constant 0 : index
    %3 = vector.load %arg2[%c0_2, %c0_3, %c0_4] : memref<1x2048x128xbf16, #tpu.memory_space<vmem>>, vector<1x2048x128xbf16>
    %4 = vector.shape_cast %3 : vector<1x2048x128xbf16> to vector<2048x128xbf16>
    %cst = arith.constant dense<0.000000e+00> : vector<8x128xf32>
    %5 = tpu.matmul %2, %4, %cst {dimension_numbers = #tpu.dot_dimension_numbers<[1], [0], [0], [1], [0, 0, 1, 1], [], []>} : vector<8x2048xbf16>, vector<2048x128xbf16>, vector<8x128xf32> -> vector<8x128xf32>
    %c0_5 = arith.constant 0 : index
    %c0_6 = arith.constant 0 : index
    %c0_7 = arith.constant 0 : index
    %6 = vector.load %arg3[%c0_5, %c0_6, %c0_7] : memref<1x1x128xf32, #tpu.memory_space<vmem>>, vector<1x1x128xf32>
    %7 = vector.shape_cast %6 : vector<1x1x128xf32> to vector<1x128xf32>
    %8 = vector.broadcast %7 : vector<1x128xf32> to vector<8x128xf32>
    %9 = arith.addf %5, %8 : vector<8x128xf32>
    %c0_8 = arith.constant 0 : index
    %c0_9 = arith.constant 0 : index
    %c0_10 = arith.constant 0 : index
    %10 = vector.load %arg4[%c0_8, %c0_9, %c0_10] : memref<1x8x128xf32, #tpu.memory_space<vmem>>, vector<1x8x128xf32>
    %11 = vector.shape_cast %10 : vector<1x8x128xf32> to vector<8x128xf32>
    %12 = vector.shape_cast %9 : vector<8x128xf32> to vector<1x8x128xf32>
    tpu.vector_store %arg4[%c0_8, %c0_9, %c0_10], %12 {strides = array<i32>} : memref<1x8x128xf32, #tpu.memory_space<vmem>>, vector<1x8x128xf32>,
    return
  }
  func.func @transform_0(%arg0: i32) -> (i32, i32, i32) {
    %c0_i32 = arith.constant 0 : i32
    %c0_i32_0 = arith.constant 0 : i32
    %c0_i32_1 = arith.constant 0 : i32
    return %arg0, %c0_i32, %c0_i32_0 : i32, i32, i32
  }
  func.func @transform_1(%arg0: i32) -> (i32, i32, i32) {
    %c0_i32 = arith.constant 0 : i32
    %c0_i32_0 = arith.constant 0 : i32
    %c0_i32_1 = arith.constant 0 : i32
    return %arg0, %c0_i32, %c0_i32_0 : i32, i32, i32
  }
  func.func @transform_2(%arg0: i32) -> (i32, i32, i32) {
    %c0_i32 = arith.constant 0 : i32
    %c0_i32_0 = arith.constant 0 : i32
    %c0_i32_1 = arith.constant 0 : i32
    return %arg0, %c0_i32, %c0_i32_0 : i32, i32, i32
  }
  func.func @transform_3(%arg0: i32) -> (i32, i32, i32) {
    %c0_i32 = arith.constant 0 : i32
    %c0_i32_0 = arith.constant 0 : i32
    %c0_i32_1 = arith.constant 0 : i32
    return %arg0, %c0_i32, %c0_i32_0 : i32, i32, i32
  }
}

</mosaic_0001>

<bundles_post_ra>
// kernel: nn_planner_forward.3
= control target key start
LH: loop header
LB: loop body
LE: loop exit
PB: predicated region body
PF: predicated region fallthrough
CT: control target
= control target key end

     0   :  { %8 = vsyncpa [#allocation3], 0  ;;  %s1923_s0 = inlined_call_operand.vmem [shape: f32[8,128], index: 0, kind: input, shape index: {}]   ;;  %s1924_s1 = inlined_call_operand.hbm [shape: bf16[128,2048], index: 1, kind: input, shape index: {}]   ;;  %s1925_s2 = inlined_call_operand.hbm [shape: f32[1,2048], index: 2, kind: input, shape index: {}]   ;;  %s1926_s3 = inlined_call_operand.vmem [shape: f32[8,2048], index: 3, kind: output, shape index: {}]  }
   0x1   :  { %s16_s14 = sshll.u32 %s1924_s1, 4  ;;  %s17_s14 = int_to_ptr.hbm [resolvable:$true] %s16_s14 }
   0x2   :  { %9 = vsyncpa [#allocation5], 0  ;;  %s1824_s15 = smov [#allocation2]   ;;  %s30_s19 = sshll.u32 %s1925_s2, 4  ;;  %s31_s19 = int_to_ptr.hbm [resolvable:$true] %s30_s19 }
   0x3   :  { %s18_s16 = sshll.u32 %s1824_s15, 4  ;;  %s1825_s20 = smov 1024   ;;  %s19_s16 = int_to_ptr.vmem [resolvable:$true] %s18_s16 }
   0x4   :  { %s1826_s21 = smov 64   ;;  %s1827_s22 = smov [#allocation4]  }
   0x5   :  { %24 = dma.hbm_to_vmem [thread:$0]  %s17_s14, 16384, %s19_s16, [#allocation3], %s1825_s20, %s1825_s20, %s1826_s21  }
   0x6   :  { %s32_s23 = sshll.u32 %s1827_s22, 4  ;;  %s33_s23 = int_to_ptr.vmem [resolvable:$true] %s32_s23 }
   0x7   :  { %35 = dma.hbm_to_vmem [thread:$0]  %s31_s19, 256, %s33_s23, [#allocation5]  }
   0x8   :  { %1820 = dma.done.wait [#allocation3], 16384  }
   0x9   :  { %1821 = vsyncadd [#allocation3], 4294950912 }
   0xa   :  { %1822 = dma.done.wait [#allocation5], 256  }
   0xb   :  { %1823 = vsyncadd [#allocation5], 4294967040  ;;  %v1546_v0 = vld [vmem:[#allocation2 + $0x380] sm:$0xf]  ;;  %v1720_v2 = vld [vmem:[#allocation2 + $0x384] sm:$0xf] }
   0xc   :  { %v1728_v1 = vld [vmem:[#allocation2 + $0x3bc] sm:$0xf0]  ;;  %v1548_v4 = vld [vmem:[#allocation2 + $0x3c0] sm:$0xf0]  ;;  %v1554_v5 = vld [vmem:[#allocation2 + $0x388] sm:$0xf] }
   0xd   :  { %v1547_v3 = vor.u32 %v1728_v1, %v1546_v0  ;;  %v1729_v6 = vld [vmem:[#allocation2 + $0x3c4] sm:$0xf0]  ;;  %v1551_v7 = vor.u32 %v1720_v2, %v1548_v4  ;;  %v1721_v9 = vld [vmem:[#allocation2 + $0x38c] sm:$0xf]  ;;  %v1482_v11 = vld [vmem:[#allocation2 + $0x300] sm:$0xf] }
   0xe   :  { %v1555_v8 = vor.u32 %v1729_v6, %v1554_v5  ;;  %v1556_v10 = vld [vmem:[#allocation2 + $0x3c8] sm:$0xf0]  ;;  %v1712_v13 = vld [vmem:[#allocation2 + $0x33c] sm:$0xf0]  ;;  %v1704_v14 = vld [vmem:[#allocation2 + $0x304] sm:$0xf] }
   0xf   :  { %850 = vmatpush.bf16.msra.mxu0 %v1547_v3  ;;  %v1559_v12 = vor.u32 %v1721_v9, %v1556_v10  ;;  %v1484_v15 = vld [vmem:[#allocation2 + $0x340] sm:$0xf0]  ;;  %863 = vmatpush.bf16.msra.mxu1 %v1551_v7  ;;  %v1483_v16 = vor.u32 %v1712_v13, %v1482_v11  ;;  %v1490_v18 = vld [vmem:[#allocation2 + $0x308] sm:$0xf]  ;;  %v1705_v20 = vld [vmem:[#allocation2 + $0x30c] sm:$0xf] }
  0x10   :  { %876 = vmatpush.bf16.msra.mxu2 %v1555_v8  ;;  %v1487_v17 = vor.u32 %v1704_v14, %v1484_v15  ;;  %v1713_v19 = vld [vmem:[#allocation2 + $0x344] sm:$0xf0]  ;;  %v1492_v22 = vld [vmem:[#allocation2 + $0x348] sm:$0xf0]  ;;  %v1418_v23 = vld [vmem:[#allocation2 + $0x280] sm:$0xf] }
  0x11   :  { %889 = vmatpush.bf16.msra.mxu3 %v1559_v12  ;;  %v1491_v21 = vor.u32 %v1713_v19, %v1490_v18  ;;  %v1696_v24 = vld [vmem:[#allocation2 + $0x2bc] sm:$0xf0]  ;;  %v1495_v25 = vor.u32 %v1705_v20, %v1492_v22  ;;  %v1688_v26 = vld [vmem:[#allocation2 + $0x284] sm:$0xf]  ;;  %v1426_v28 = vld [vmem:[#allocation2 + $0x288] sm:$0xf] }
  0x12   :  { %v1420_v27 = vld [vmem:[#allocation2 + $0x2c0] sm:$0xf0]  ;;  %v1419_v29 = vor.u32 %v1696_v24, %v1418_v23  ;;  %v1697_v30 = vld [vmem:[#allocation2 + $0x2c4] sm:$0xf0]  ;;  %v1689_v31 = vld [vmem:[#allocation2 + $0x28c] sm:$0xf] }
  0x13   :  { %851 = vmatpush.bf16.msra.mxu0 %v1483_v16  ;;  %v1428_v32 = vld [vmem:[#allocation2 + $0x2c8] sm:$0xf0]  ;;  %864 = vmatpush.bf16.msra.mxu1 %v1487_v17  ;;  %v1423_v33 = vor.u32 %v1688_v26, %v1420_v27  ;;  %v1427_v34 = vor.u32 %v1697_v30, %v1426_v28  ;;  %v1354_v35 = vld [vmem:[#allocation2 + $0x200] sm:$0xf]  ;;  %v1672_v37 = vld [vmem:[#allocation2 + $0x204] sm:$0xf] }
  0x14   :  { %877 = vmatpush.bf16.msra.mxu2 %v1491_v21  ;;  %v1680_v36 = vld [vmem:[#allocation2 + $0x23c] sm:$0xf0]  ;;  %v1431_v38 = vor.u32 %v1689_v31, %v1428_v32  ;;  %v1356_v39 = vld [vmem:[#allocation2 + $0x240] sm:$0xf0]  ;;  %v1362_v40 = vld [vmem:[#allocation2 + $0x208] sm:$0xf] }
  0x15   :  { %890 = vmatpush.bf16.msra.mxu3 %v1495_v25  ;;  %v1681_v41 = vld [vmem:[#allocation2 + $0x244] sm:$0xf0]  ;;  %v1673_v42 = vld [vmem:[#allocation2 + $0x20c] sm:$0xf]  ;;  %v1355_v44 = vor.u32 %v1680_v36, %v1354_v35  ;;  %v1359_v45 = vor.u32 %v1672_v37, %v1356_v39  ;;  %v1290_v47 = vld [vmem:[#allocation2 + $0x180] sm:$0xf] }
  0x16   :  { %v1364_v43 = vld [vmem:[#allocation2 + $0x248] sm:$0xf0]  ;;  %v1363_v46 = vor.u32 %v1681_v41, %v1362_v40  ;;  %v1664_v48 = vld [vmem:[#allocation2 + $0x1bc] sm:$0xf0]  ;;  %v1656_v49 = vld [vmem:[#allocation2 + $0x184] sm:$0xf] }
  0x17   :  { %852 = vmatpush.bf16.msra.mxu0 %v1419_v29  ;;  %865 = vmatpush.bf16.msra.mxu1 %v1423_v33  ;;  %v1367_v50 = vor.u32 %v1673_v42, %v1364_v43  ;;  %v1292_v51 = vld [vmem:[#allocation2 + $0x1c0] sm:$0xf0]  ;;  %v1298_v52 = vld [vmem:[#allocation2 + $0x188] sm:$0xf]  ;;  %v1657_v54 = vld [vmem:[#allocation2 + $0x18c] sm:$0xf]  ;;  %v1291_v56 = vor.u32 %v1664_v48, %v1290_v47 }
  0x18   :  { %878 = vmatpush.bf16.msra.mxu2 %v1427_v34  ;;  %v1665_v53 = vld [vmem:[#allocation2 + $0x1c4] sm:$0xf0]  ;;  %v1300_v55 = vld [vmem:[#allocation2 + $0x1c8] sm:$0xf0]  ;;  %v1295_v57 = vor.u32 %v1656_v49, %v1292_v51  ;;  %v1226_v59 = vld [vmem:[#allocation2 + $0x100] sm:$0xf] }
  0x19   :  { %891 = vmatpush.bf16.msra.mxu3 %v1431_v38  ;;  %v1299_v58 = vor.u32 %v1665_v53, %v1298_v52  ;;  %v1648_v60 = vld [vmem:[#allocation2 + $0x13c] sm:$0xf0]  ;;  %v1640_v61 = vld [vmem:[#allocation2 + $0x104] sm:$0xf]  ;;  %v1303_v62 = vor.u32 %v1657_v54, %v1300_v55  ;;  %v1234_v0 = vld [vmem:[#allocation2 + $0x108] sm:$0xf] }
  0x1a   :  { %v1228_v63 = vld [vmem:[#allocation2 + $0x140] sm:$0xf0]  ;;  %v1649_v1 = vld [vmem:[#allocation2 + $0x144] sm:$0xf0]  ;;  %v1641_v2 = vld [vmem:[#allocation2 + $0x10c] sm:$0xf]  ;;  %v1227_v4 = vor.u32 %v1648_v60, %v1226_v59 }
  0x1b   :  { %853 = vmatpush.bf16.msra.mxu0 %v1355_v44  ;;  %866 = vmatpush.bf16.msra.mxu1 %v1359_v45  ;;  %v1236_v3 = vld [vmem:[#allocation2 + $0x148] sm:$0xf0]  ;;  %v1231_v5 = vor.u32 %v1640_v61, %v1228_v63  ;;  %v1235_v6 = vor.u32 %v1649_v1, %v1234_v0  ;;  %v1162_v7 = vld [vmem:[#allocation2 + $0x80] sm:$0xf]  ;;  %v1624_v9 = vld [vmem:[#allocation2 + $0x84] sm:$0xf] }
  0x1c   :  { %879 = vmatpush.bf16.msra.mxu2 %v1363_v46  ;;  %v1632_v8 = vld [vmem:[#allocation2 + $0xbc] sm:$0xf0]  ;;  %v1239_v10 = vor.u32 %v1641_v2, %v1236_v3  ;;  %v1164_v11 = vld [vmem:[#allocation2 + $0xc0] sm:$0xf0]  ;;  %v1170_v12 = vld [vmem:[#allocation2 + $0x88] sm:$0xf] }
  0x1d   :  { %892 = vmatpush.bf16.msra.mxu3 %v1367_v50  ;;  %v1633_v13 = vld [vmem:[#allocation2 + $0xc4] sm:$0xf0]  ;;  %v1625_v14 = vld [vmem:[#allocation2 + $0x8c] sm:$0xf]  ;;  %v1163_v16 = vor.u32 %v1632_v8, %v1162_v7  ;;  %v1098_v17 = vld [vmem:[#allocation2] sm:$0xf]  ;;  %v1167_v19 = vor.u32 %v1624_v9, %v1164_v11 }
  0x1e   :  { %v1172_v15 = vld [vmem:[#allocation2 + $0xc8] sm:$0xf0]  ;;  %v1616_v18 = vld [vmem:[#allocation2 + $0x3c] sm:$0xf0]  ;;  %v1171_v20 = vor.u32 %v1633_v13, %v1170_v12  ;;  %v1608_v21 = vld [vmem:[#allocation2 + $0x4] sm:$0xf] }
  0x1f   :  { %854 = vmatpush.bf16.msra.mxu0 %v1291_v56  ;;  %867 = vmatpush.bf16.msra.mxu1 %v1295_v57  ;;  %v1100_v22 = vld [vmem:[#allocation2 + $0x40] sm:$0xf0]  ;;  %v1106_v23 = vld [vmem:[#allocation2 + $0x8] sm:$0xf]  ;;  %v1175_v24 = vor.u32 %v1625_v14, %v1172_v15  ;;  %v1609_v26 = vld [vmem:[#allocation2 + $0xc] sm:$0xf]  ;;  %v1099_v31 = vor.u32 %v1616_v18, %v1098_v17 }
  0x20   :  { %880 = vmatpush.bf16.msra.mxu2 %v1299_v58  ;;  %v1617_v25 = vld [vmem:[#allocation2 + $0x44] sm:$0xf0]  ;;  %v1108_v27 = vld [vmem:[#allocation2 + $0x48] sm:$0xf0]  ;;  %v1562_v28 = vld [vmem:[#allocation2 + $0x390] sm:$0xf]  ;;  %v1103_v35 = vor.u32 %v1608_v21, %v1100_v22 }
  0x21   :  { %893 = vmatpush.bf16.msra.mxu3 %v1303_v62  ;;  %v1730_v29 = vld [vmem:[#allocation2 + $0x3cc] sm:$0xf0]  ;;  %v1722_v30 = vld [vmem:[#allocation2 + $0x394] sm:$0xf]  ;;  %v1570_v33 = vld [vmem:[#allocation2 + $0x398] sm:$0xf]  ;;  %v1107_v36 = vor.u32 %v1617_v25, %v1106_v23  ;;  %v1111_v39 = vor.u32 %v1609_v26, %v1108_v27 }
  0x22   :  { %v1564_v32 = vld [vmem:[#allocation2 + $0x3d0] sm:$0xf0]  ;;  %v1731_v34 = vld [vmem:[#allocation2 + $0x3d4] sm:$0xf0]  ;;  %v1723_v37 = vld [vmem:[#allocation2 + $0x39c] sm:$0xf]  ;;  %v1563_v40 = vor.u32 %v1730_v29, %v1562_v28 }
  0x23   :  { %855 = vmatpush.bf16.msra.mxu0 %v1227_v4  ;;  %868 = vmatpush.bf16.msra.mxu1 %v1231_v5  ;;  %v1572_v38 = vld [vmem:[#allocation2 + $0x3d8] sm:$0xf0]  ;;  %v1567_v41 = vor.u32 %v1722_v30, %v1564_v32  ;;  %v1571_v42 = vor.u32 %v1731_v34, %v1570_v33  ;;  %v1498_v43 = vld [vmem:[#allocation2 + $0x310] sm:$0xf]  ;;  %v1706_v45 = vld [vmem:[#allocation2 + $0x314] sm:$0xf] }
  0x24   :  { %881 = vmatpush.bf16.msra.mxu2 %v1235_v6  ;;  %v1714_v44 = vld [vmem:[#allocation2 + $0x34c] sm:$0xf0]  ;;  %v1575_v46 = vor.u32 %v1723_v37, %v1572_v38  ;;  %v1500_v47 = vld [vmem:[#allocation2 + $0x350] sm:$0xf0]  ;;  %v1506_v48 = vld [vmem:[#allocation2 + $0x318] sm:$0xf] }
  0x25   :  { %894 = vmatpush.bf16.msra.mxu3 %v1239_v10  ;;  %v1715_v49 = vld [vmem:[#allocation2 + $0x354] sm:$0xf0]  ;;  %v1707_v50 = vld [vmem:[#allocation2 + $0x31c] sm:$0xf]  ;;  %v1499_v52 = vor.u32 %v1714_v44, %v1498_v43  ;;  %v1503_v53 = vor.u32 %v1706_v45, %v1500_v47  ;;  %v1434_v55 = vld [vmem:[#allocation2 + $0x290] sm:$0xf] }
  0x26   :  { %v1508_v51 = vld [vmem:[#allocation2 + $0x358] sm:$0xf0]  ;;  %v1507_v54 = vor.u32 %v1715_v49, %v1506_v48  ;;  %v1698_v56 = vld [vmem:[#allocation2 + $0x2cc] sm:$0xf0]  ;;  %v1690_v57 = vld [vmem:[#allocation2 + $0x294] sm:$0xf] }
  0x27   :  { %856 = vmatpush.bf16.msra.mxu0 %v1163_v16  ;;  %869 = vmatpush.bf16.msra.mxu1 %v1167_v19  ;;  %v1511_v58 = vor.u32 %v1707_v50, %v1508_v51  ;;  %v1436_v59 = vld [vmem:[#allocation2 + $0x2d0] sm:$0xf0]  ;;  %v1442_v60 = vld [vmem:[#allocation2 + $0x298] sm:$0xf]  ;;  %v1691_v62 = vld [vmem:[#allocation2 + $0x29c] sm:$0xf]  ;;  %v1435_v0 = vor.u32 %v1698_v56, %v1434_v55 }
  0x28   :  { %882 = vmatpush.bf16.msra.mxu2 %v1171_v20  ;;  %v1699_v61 = vld [vmem:[#allocation2 + $0x2d4] sm:$0xf0]  ;;  %v1444_v63 = vld [vmem:[#allocation2 + $0x2d8] sm:$0xf0]  ;;  %v44_v1 = vld [vmem:[%s1923_s0] sm:$0xff]  ;;  %v1439_v2 = vor.u32 %v1690_v57, %v1436_v59 }
  0x29   :  { %895 = vmatpush.bf16.msra.mxu3 %v1175_v24  ;;  %v1443_v3 = vor.u32 %v1699_v61, %v1442_v60  ;;  %v1370_v4 = vld [vmem:[#allocation2 + $0x210] sm:$0xf]  ;;  %v1674_v6 = vld [vmem:[#allocation2 + $0x214] sm:$0xf]  ;;  %v1857_v7 = vpack.c.bf16 %v44_v1, %v44_v1  ;;  %v1447_v8 = vor.u32 %v1691_v62, %v1444_v63  ;;  %v1378_v10 = vld [vmem:[#allocation2 + $0x218] sm:$0xf] }
  0x2a   :  { %v1682_v5 = vld [vmem:[#allocation2 + $0x24c] sm:$0xf0]  ;;  %v1372_v9 = vld [vmem:[#allocation2 + $0x250] sm:$0xf0]  ;;  %v1683_v11 = vld [vmem:[#allocation2 + $0x254] sm:$0xf0] }
  0x2b   :  { %857 = vmatpush.bf16.msra.mxu0 %v1099_v31  ;;  %870 = vmatpush.bf16.msra.mxu1 %v1103_v35  ;;  %v1675_v12 = vld [vmem:[#allocation2 + $0x21c] sm:$0xf]  ;;  %v1371_v14 = vor.u32 %v1682_v5, %v1370_v4  ;;  %v1375_v15 = vor.u32 %v1674_v6, %v1372_v9  ;;  %v1379_v16 = vor.u32 %v1683_v11, %v1378_v10  ;;  %v1306_v17 = vld [vmem:[#allocation2 + $0x190] sm:$0xf]  ;;  %v1658_v19 = vld [vmem:[#allocation2 + $0x194] sm:$0xf] }
  0x2c   :  { %883 = vmatpush.bf16.msra.mxu2 %v1107_v36  ;;  %v1380_v13 = vld [vmem:[#allocation2 + $0x258] sm:$0xf0]  ;;  %v1666_v18 = vld [vmem:[#allocation2 + $0x1cc] sm:$0xf0]  ;;  %v1308_v21 = vld [vmem:[#allocation2 + $0x1d0] sm:$0xf0] }
  0x2d   :  { %896 = vmatpush.bf16.msra.mxu3 %v1111_v39  ;;  %v1383_v20 = vor.u32 %v1675_v12, %v1380_v13  ;;  %v1314_v22 = vld [vmem:[#allocation2 + $0x198] sm:$0xf]  ;;  %v1659_v24 = vld [vmem:[#allocation2 + $0x19c] sm:$0xf]  ;;  %v1307_v26 = vor.u32 %v1666_v18, %v1306_v17  ;;  %v1311_v27 = vor.u32 %v1658_v19, %v1308_v21  ;;  %v1242_v29 = vld [vmem:[#allocation2 + $0x110] sm:$0xf] }
  0x2e   :  { %871 = vmatmul.bf16.vlgmr.msra.gmra.mxu1 %v1857_v7  ;;  %v1667_v23 = vld [vmem:[#allocation2 + $0x1d4] sm:$0xf0]  ;;  %858 = vmatmul.bf16.vlgmr.msra.gmra.mxu0 %v1857_v7  ;;  %v1316_v25 = vld [vmem:[#allocation2 + $0x1d8] sm:$0xf0]  ;;  %v1650_v30 = vld [vmem:[#allocation2 + $0x14c] sm:$0xf0] }
  0x2f   :  { %902 = vmatpush.bf16.msrb.mxu0 %v1563_v40  ;;  %915 = vmatpush.bf16.msrb.mxu1 %v1567_v41  ;;  %v1315_v28 = vor.u32 %v1667_v23, %v1314_v22  ;;  %v1642_v31 = vld [vmem:[#allocation2 + $0x114] sm:$0xf]  ;;  %v1319_v32 = vor.u32 %v1659_v24, %v1316_v25  ;;  %v1250_v34 = vld [vmem:[#allocation2 + $0x118] sm:$0xf]  ;;  %v1643_v36 = vld [vmem:[#allocation2 + $0x11c] sm:$0xf]  ;;  %v1243_v38 = vor.u32 %v1650_v30, %v1242_v29 }
  0x30   :  { %928 = vmatpush.bf16.msrb.mxu2 %v1571_v42  ;;  %897 = vmatmul.bf16.vlgmr.msra.gmra.mxu3 %v1857_v7  ;;  %v1244_v33 = vld [vmem:[#allocation2 + $0x150] sm:$0xf0]  ;;  %v1651_v35 = vld [vmem:[#allocation2 + $0x154] sm:$0xf0]  ;;  %v1252_v37 = vld [vmem:[#allocation2 + $0x158] sm:$0xf0] }
  0x31   :  { %941 = vmatpush.bf16.msrb.mxu3 %v1575_v46  ;;  %884 = vmatmul.bf16.vlgmr.msra.gmra.mxu2 %v1857_v7  ;;  %v1247_v39 = vor.u32 %v1642_v31, %v1244_v33  ;;  %v1251_v40 = vor.u32 %v1651_v35, %v1250_v34  ;;  %v1178_v41 = vld [vmem:[#allocation2 + $0x90] sm:$0xf]  ;;  %v1626_v43 = vld [vmem:[#allocation2 + $0x94] sm:$0xf]  ;;  %v1255_v44 = vor.u32 %v1643_v36, %v1252_v37  ;;  %v1186_v46 = vld [vmem:[#allocation2 + $0x98] sm:$0xf] }
  0x32   :  { %v1634_v42 = vld [vmem:[#allocation2 + $0xcc] sm:$0xf0]  ;;  %v1180_v45 = vld [vmem:[#allocation2 + $0xd0] sm:$0xf0]  ;;  %v1635_v47 = vld [vmem:[#allocation2 + $0xd4] sm:$0xf0] }
  0x33   :  { %903 = vmatpush.bf16.msrb.mxu0 %v1499_v52  ;;  %916 = vmatpush.bf16.msrb.mxu1 %v1503_v53  ;;  %v1627_v48 = vld [vmem:[#allocation2 + $0x9c] sm:$0xf]  ;;  %v1179_v50 = vor.u32 %v1634_v42, %v1178_v41  ;;  %v1114_v51 = vld [vmem:[#allocation2 + $0x10] sm:$0xf]  ;;  %v1183_v53 = vor.u32 %v1626_v43, %v1180_v45  ;;  %v1610_v55 = vld [vmem:[#allocation2 + $0x14] sm:$0xf] }
  0x34   :  { %929 = vmatpush.bf16.msrb.mxu2 %v1507_v54  ;;  %v1188_v49 = vld [vmem:[#allocation2 + $0xd8] sm:$0xf0]  ;;  %v1618_v52 = vld [vmem:[#allocation2 + $0x4c] sm:$0xf0]  ;;  %v1187_v54 = vor.u32 %v1635_v47, %v1186_v46  ;;  %v1116_v56 = vld [vmem:[#allocation2 + $0x50] sm:$0xf0] }
  0x35   :  { %942 = vmatpush.bf16.msrb.mxu3 %v1511_v58  ;;  %v1122_v57 = vld [vmem:[#allocation2 + $0x18] sm:$0xf]  ;;  %v1191_v58 = vor.u32 %v1627_v48, %v1188_v49  ;;  %v1611_v60 = vld [vmem:[#allocation2 + $0x1c] sm:$0xf]  ;;  %v1578_v62 = vld [vmem:[#allocation2 + $0x3a0] sm:$0xf]  ;;  %v1115_v1 = vor.u32 %v1618_v52, %v1114_v51  ;;  %v1119_v5 = vor.u32 %v1610_v55, %v1116_v56 }
  0x36   :  { %v1619_v59 = vld [vmem:[#allocation2 + $0x54] sm:$0xf0]  ;;  %v1124_v61 = vld [vmem:[#allocation2 + $0x58] sm:$0xf0]  ;;  %v1732_v63 = vld [vmem:[#allocation2 + $0x3dc] sm:$0xf0] }
  0x37   :  { %904 = vmatpush.bf16.msrb.mxu0 %v1435_v0  ;;  %917 = vmatpush.bf16.msrb.mxu1 %v1439_v2  ;;  %v1724_v0 = vld [vmem:[#allocation2 + $0x3a4] sm:$0xf]  ;;  %v1733_v4 = vld [vmem:[#allocation2 + $0x3e4] sm:$0xf0]  ;;  %v1123_v6 = vor.u32 %v1619_v59, %v1122_v57  ;;  %v1588_v9 = vld [vmem:[#allocation2 + $0x3e8] sm:$0xf0]  ;;  %v1127_v10 = vor.u32 %v1611_v60, %v1124_v61  ;;  %v1579_v11 = vor.u32 %v1732_v63, %v1578_v62 }
  0x38   :  { %930 = vmatpush.bf16.msrb.mxu2 %v1443_v3  ;;  %v1580_v2 = vld [vmem:[#allocation2 + $0x3e0] sm:$0xf0]  ;;  %v1586_v3 = vld [vmem:[#allocation2 + $0x3a8] sm:$0xf]  ;;  %v1709_v21 = vld [vmem:[#allocation2 + $0x32c] sm:$0xf] }
  0x39   :  { %943 = vmatpush.bf16.msrb.mxu3 %v1447_v8  ;;  %v1725_v8 = vld [vmem:[#allocation2 + $0x3ac] sm:$0xf]  ;;  %v1583_v12 = vor.u32 %v1724_v0, %v1580_v2  ;;  %v1587_v13 = vor.u32 %v1733_v4, %v1586_v3  ;;  %v1516_v18 = vld [vmem:[#allocation2 + $0x360] sm:$0xf0]  ;;  %v1522_v19 = vld [vmem:[#allocation2 + $0x328] sm:$0xf] }
  0x3a   :  { %v1591_v17 = vor.u32 %v1725_v8, %v1588_v9  ;;  %v1524_v22 = vld [vmem:[#allocation2 + $0x368] sm:$0xf0]  ;;  %v1452_v30 = vld [vmem:[#allocation2 + $0x2e0] sm:$0xf0]  ;;  %v1458_v31 = vld [vmem:[#allocation2 + $0x2a8] sm:$0xf] }
  0x3b   :  { %905 = vmatpush.bf16.msrb.mxu0 %v1371_v14  ;;  %918 = vmatpush.bf16.msrb.mxu1 %v1375_v15  ;;  %v1514_v14 = vld [vmem:[#allocation2 + $0x320] sm:$0xf]  ;;  %v1527_v29 = vor.u32 %v1709_v21, %v1524_v22  ;;  %v1693_v33 = vld [vmem:[#allocation2 + $0x2ac] sm:$0xf]  ;;  %v1388_v42 = vld [vmem:[#allocation2 + $0x260] sm:$0xf0] }
  0x3c   :  { %931 = vmatpush.bf16.msrb.mxu2 %v1379_v16  ;;  %v1716_v15 = vld [vmem:[#allocation2 + $0x35c] sm:$0xf0]  ;;  %v1708_v16 = vld [vmem:[#allocation2 + $0x324] sm:$0xf]  ;;  %v1460_v34 = vld [vmem:[#allocation2 + $0x2e8] sm:$0xf0] }
  0x3d   :  { %944 = vmatpush.bf16.msrb.mxu3 %v1383_v20  ;;  %v1717_v20 = vld [vmem:[#allocation2 + $0x364] sm:$0xf0]  ;;  %v1515_v23 = vor.u32 %v1716_v15, %v1514_v14  ;;  %v1519_v24 = vor.u32 %v1708_v16, %v1516_v18  ;;  %v1463_v41 = vor.u32 %v1693_v33, %v1460_v34  ;;  %v1677_v45 = vld [vmem:[#allocation2 + $0x22c] sm:$0xf]  ;;  %v1668_v51 = vld [vmem:[#allocation2 + $0x1dc] sm:$0xf0] }
  0x3e   :  { %v1523_v25 = vor.u32 %v1717_v20, %v1522_v19  ;;  %v1394_v43 = vld [vmem:[#allocation2 + $0x228] sm:$0xf]  ;;  %v1396_v46 = vld [vmem:[#allocation2 + $0x268] sm:$0xf0]  ;;  %v1660_v52 = vld [vmem:[#allocation2 + $0x1a4] sm:$0xf] }
  0x3f   :  { %906 = vmatpush.bf16.msrb.mxu0 %v1307_v26  ;;  %919 = vmatpush.bf16.msrb.mxu1 %v1311_v27  ;;  %v1450_v26 = vld [vmem:[#allocation2 + $0x2a0] sm:$0xf]  ;;  %v1330_v55 = vld [vmem:[#allocation2 + $0x1a8] sm:$0xf]  ;;  %v1661_v57 = vld [vmem:[#allocation2 + $0x1ac] sm:$0xf] }
  0x40   :  { %932 = vmatpush.bf16.msrb.mxu2 %v1315_v28  ;;  %v1700_v27 = vld [vmem:[#allocation2 + $0x2dc] sm:$0xf0]  ;;  %v1692_v28 = vld [vmem:[#allocation2 + $0x2a4] sm:$0xf]  ;;  %v1669_v56 = vld [vmem:[#allocation2 + $0x1e4] sm:$0xf0] }
  0x41   :  { %945 = vmatpush.bf16.msrb.mxu3 %v1319_v32  ;;  %v1701_v32 = vld [vmem:[#allocation2 + $0x2e4] sm:$0xf0]  ;;  %v1451_v35 = vor.u32 %v1700_v27, %v1450_v26  ;;  %v1455_v36 = vor.u32 %v1692_v28, %v1452_v30  ;;  %v1331_v61 = vor.u32 %v1669_v56, %v1330_v55  ;;  %v1258_v62 = vld [vmem:[#allocation2 + $0x120] sm:$0xf]  ;;  %v1644_v0 = vld [vmem:[#allocation2 + $0x124] sm:$0xf] }
  0x42   :  { %v1459_v37 = vor.u32 %v1701_v32, %v1458_v31  ;;  %v1652_v63 = vld [vmem:[#allocation2 + $0x15c] sm:$0xf0]  ;;  %v1260_v2 = vld [vmem:[#allocation2 + $0x160] sm:$0xf0]  ;;  %v1266_v3 = vld [vmem:[#allocation2 + $0x128] sm:$0xf] }
  0x43   :  { %907 = vmatpush.bf16.msrb.mxu0 %v1243_v38  ;;  %920 = vmatpush.bf16.msrb.mxu1 %v1247_v39  ;;  %v1386_v38 = vld [vmem:[#allocation2 + $0x220] sm:$0xf]  ;;  %v1653_v4 = vld [vmem:[#allocation2 + $0x164] sm:$0xf0]  ;;  %v1259_v8 = vor.u32 %v1652_v63, %v1258_v62  ;;  %v1263_v9 = vor.u32 %v1644_v0, %v1260_v2  ;;  %v1196_v15 = vld [vmem:[#allocation2 + $0xe0] sm:$0xf0] }
  0x44   :  { %933 = vmatpush.bf16.msrb.mxu2 %v1251_v40  ;;  %v1684_v39 = vld [vmem:[#allocation2 + $0x25c] sm:$0xf0]  ;;  %v1676_v40 = vld [vmem:[#allocation2 + $0x224] sm:$0xf]  ;;  %v1202_v16 = vld [vmem:[#allocation2 + $0xa8] sm:$0xf] }
  0x45   :  { %946 = vmatpush.bf16.msrb.mxu3 %v1255_v44  ;;  %v1685_v44 = vld [vmem:[#allocation2 + $0x264] sm:$0xf0]  ;;  %v1387_v47 = vor.u32 %v1684_v39, %v1386_v38  ;;  %v1391_v48 = vor.u32 %v1676_v40, %v1388_v42  ;;  %v1629_v18 = vld [vmem:[#allocation2 + $0xac] sm:$0xf]  ;;  %v1130_v21 = vld [vmem:[#allocation2 + $0x20] sm:$0xf] }
  0x46   :  { %v1395_v49 = vor.u32 %v1685_v44, %v1394_v43  ;;  %v1204_v19 = vld [vmem:[#allocation2 + $0xe8] sm:$0xf0]  ;;  %v1620_v22 = vld [vmem:[#allocation2 + $0x5c] sm:$0xf0]  ;;  %v1132_v26 = vld [vmem:[#allocation2 + $0x60] sm:$0xf0] }
  0x47   :  { %908 = vmatpush.bf16.msrb.mxu0 %v1179_v50  ;;  %921 = vmatpush.bf16.msrb.mxu1 %v1183_v53  ;;  %v1322_v50 = vld [vmem:[#allocation2 + $0x1a0] sm:$0xf]  ;;  %v1399_v53 = vor.u32 %v1677_v45, %v1396_v46  ;;  %v1138_v27 = vld [vmem:[#allocation2 + $0x28] sm:$0xf]  ;;  %v1207_v28 = vor.u32 %v1629_v18, %v1204_v19  ;;  %v1613_v30 = vld [vmem:[#allocation2 + $0x2c] sm:$0xf] }
  0x48   :  { %934 = vmatpush.bf16.msrb.mxu2 %v1187_v54  ;;  %v1324_v54 = vld [vmem:[#allocation2 + $0x1e0] sm:$0xf0]  ;;  %v1323_v59 = vor.u32 %v1668_v51, %v1322_v50  ;;  %v1140_v31 = vld [vmem:[#allocation2 + $0x68] sm:$0xf0]  ;;  %v1594_v32 = vld [vmem:[#allocation2 + $0x3b0] sm:$0xf] }
  0x49   :  { %947 = vmatpush.bf16.msrb.mxu3 %v1191_v58  ;;  %v1332_v58 = vld [vmem:[#allocation2 + $0x1e8] sm:$0xf0]  ;;  %v1327_v60 = vor.u32 %v1660_v52, %v1324_v54  ;;  %v1734_v33 = vld [vmem:[#allocation2 + $0x3ec] sm:$0xf0]  ;;  %v1726_v34 = vld [vmem:[#allocation2 + $0x3b4] sm:$0xf]  ;;  %v1143_v43 = vor.u32 %v1613_v30, %v1140_v31 }
  0x4a   :  { %v1735_v38 = vld [vmem:[#allocation2 + $0x3f4] sm:$0xf0]  ;;  %v1604_v42 = vld [vmem:[#allocation2 + $0x3f8] sm:$0xf0]  ;;  %v1595_v44 = vor.u32 %v1734_v33, %v1594_v32  ;;  %v1532_v51 = vld [vmem:[#allocation2 + $0x370] sm:$0xf0] }
  0x4b   :  { %909 = vmatpush.bf16.msrb.mxu0 %v1115_v1  ;;  %922 = vmatpush.bf16.msrb.mxu1 %v1119_v5  ;;  %v1335_v1 = vor.u32 %v1661_v57, %v1332_v58  ;;  %v1645_v5 = vld [vmem:[#allocation2 + $0x12c] sm:$0xf]  ;;  %v1538_v52 = vld [vmem:[#allocation2 + $0x338] sm:$0xf]  ;;  %v1711_v54 = vld [vmem:[#allocation2 + $0x33c] sm:$0xf] }
  0x4c   :  { %935 = vmatpush.bf16.msrb.mxu2 %v1123_v6  ;;  %v1268_v6 = vld [vmem:[#allocation2 + $0x168] sm:$0xf0]  ;;  %v1540_v55 = vld [vmem:[#allocation2 + $0x378] sm:$0xf0]  ;;  %v1468_v63 = vld [vmem:[#allocation2 + $0x2f0] sm:$0xf0] }
  0x4d   :  { %948 = vmatpush.bf16.msrb.mxu3 %v1127_v10  ;;  %v1267_v10 = vor.u32 %v1653_v4, %v1266_v3  ;;  %v1271_v14 = vor.u32 %v1645_v5, %v1268_v6  ;;  %v1543_v62 = vor.u32 %v1711_v54, %v1540_v55  ;;  %v1474_v0 = vld [vmem:[#allocation2 + $0x2b8] sm:$0xf]  ;;  %v1695_v2 = vld [vmem:[#allocation2 + $0x2bc] sm:$0xf]  ;;  %v1274_v32 = vld [vmem:[#allocation2 + $0x130] sm:$0xf] }
  0x4e   :  { %910 = vmatmul.bf16.vlgmr.msrb.gmra.mxu0 %v1857_v7  ;;  %923 = vmatmul.bf16.vlgmr.msrb.gmra.mxu1 %v1857_v7  ;;  %v1476_v3 = vld [vmem:[#allocation2 + $0x2f8] sm:$0xf0]  ;;  %v1654_v33 = vld [vmem:[#allocation2 + $0x16c] sm:$0xf0] }
  0x4f   :  { %954 = vmatpush.bf16.msra.mxu0 %v1579_v11  ;;  %967 = vmatpush.bf16.msra.mxu1 %v1583_v12  ;;  %v1194_v11 = vld [vmem:[#allocation2 + $0xa0] sm:$0xf] }
  0x50   :  { %980 = vmatpush.bf16.msra.mxu2 %v1587_v13  ;;  %949 = vmatmul.bf16.vlgmr.msrb.gmra.mxu3 %v1857_v7  ;;  %v1636_v12 = vld [vmem:[#allocation2 + $0xdc] sm:$0xf0]  ;;  %v1628_v13 = vld [vmem:[#allocation2 + $0xa4] sm:$0xf] }
  0x51   :  { %993 = vmatpush.bf16.msra.mxu3 %v1591_v17  ;;  %936 = vmatmul.bf16.vlgmr.msrb.gmra.mxu2 %v1857_v7  ;;  %v1637_v17 = vld [vmem:[#allocation2 + $0xe4] sm:$0xf0]  ;;  %v1195_v20 = vor.u32 %v1636_v12, %v1194_v11  ;;  %v1479_v11 = vor.u32 %v1695_v2, %v1476_v3  ;;  %v1404_v12 = vld [vmem:[#allocation2 + $0x270] sm:$0xf0] }
  0x53   :  { %955 = vmatpush.bf16.msra.mxu0 %v1515_v23  ;;  %968 = vmatpush.bf16.msra.mxu1 %v1519_v24  ;;  %v1199_v23 = vor.u32 %v1628_v13, %v1196_v15  ;;  %v1203_v24 = vor.u32 %v1637_v17, %v1202_v16  ;;  %v1410_v13 = vld [vmem:[#allocation2 + $0x238] sm:$0xf]  ;;  %v1679_v15 = vld [vmem:[#allocation2 + $0x23c] sm:$0xf] }
  0x54   :  { %981 = vmatpush.bf16.msra.mxu2 %v1523_v25  ;;  %v1612_v25 = vld [vmem:[#allocation2 + $0x24] sm:$0xf]  ;;  %v1412_v16 = vld [vmem:[#allocation2 + $0x278] sm:$0xf0] }
  0x55   :  { %994 = vmatpush.bf16.msra.mxu3 %v1527_v29  ;;  %v1621_v29 = vld [vmem:[#allocation2 + $0x64] sm:$0xf0]  ;;  %v1135_v39 = vor.u32 %v1612_v25, %v1132_v26  ;;  %v1346_v25 = vld [vmem:[#allocation2 + $0x1b8] sm:$0xf] }
  0x56   :  { %v1139_v40 = vor.u32 %v1621_v29, %v1138_v27  ;;  %v1671_v26 = vld [vmem:[#allocation2 + $0x1f4] sm:$0xf0]  ;;  %v1663_v27 = vld [vmem:[#allocation2 + $0x1bc] sm:$0xf] }
  0x57   :  { %956 = vmatpush.bf16.msra.mxu0 %v1451_v35  ;;  %969 = vmatpush.bf16.msra.mxu1 %v1455_v36  ;;  %v1131_v35 = vor.u32 %v1620_v22, %v1130_v21  ;;  %v1596_v36 = vld [vmem:[#allocation2 + $0x3f0] sm:$0xf0]  ;;  %v1670_v21 = vld [vmem:[#allocation2 + $0x1ec] sm:$0xf0]  ;;  %v1347_v31 = vor.u32 %v1671_v26, %v1346_v25 }
  0x58   :  { %982 = vmatpush.bf16.msra.mxu2 %v1459_v37  ;;  %v1602_v37 = vld [vmem:[#allocation2 + $0x3b8] sm:$0xf]  ;;  %v1599_v45 = vor.u32 %v1726_v34, %v1596_v36  ;;  %v1662_v22 = vld [vmem:[#allocation2 + $0x1b4] sm:$0xf] }
  0x59   :  { %995 = vmatpush.bf16.msra.mxu3 %v1463_v41  ;;  %v1727_v41 = vld [vmem:[#allocation2 + $0x3bc] sm:$0xf]  ;;  %v1603_v46 = vor.u32 %v1735_v38, %v1602_v37  ;;  %v1646_v34 = vld [vmem:[#allocation2 + $0x134] sm:$0xf]  ;;  %v1282_v37 = vld [vmem:[#allocation2 + $0x138] sm:$0xf] }
  0x5a   :  { %v1607_v50 = vor.u32 %v1727_v41, %v1604_v42  ;;  %v1276_v36 = vld [vmem:[#allocation2 + $0x170] sm:$0xf0]  ;;  %v1655_v38 = vld [vmem:[#allocation2 + $0x174] sm:$0xf0]  ;;  %v1275_v41 = vor.u32 %v1654_v33, %v1274_v32 }
  0x5b   :  { %957 = vmatpush.bf16.msra.mxu0 %v1387_v47  ;;  %970 = vmatpush.bf16.msra.mxu1 %v1391_v48  ;;  %v1530_v47 = vld [vmem:[#allocation2 + $0x330] sm:$0xf]  ;;  %v1279_v42 = vor.u32 %v1646_v34, %v1276_v36 }
  0x5c   :  { %983 = vmatpush.bf16.msra.mxu2 %v1395_v49  ;;  %v1718_v48 = vld [vmem:[#allocation2 + $0x36c] sm:$0xf0]  ;;  %v1710_v49 = vld [vmem:[#allocation2 + $0x334] sm:$0xf] }
  0x5d   :  { %996 = vmatpush.bf16.msra.mxu3 %v1399_v53  ;;  %v1719_v53 = vld [vmem:[#allocation2 + $0x374] sm:$0xf0]  ;;  %v1531_v56 = vor.u32 %v1718_v48, %v1530_v47  ;;  %v1535_v57 = vor.u32 %v1710_v49, %v1532_v51  ;;  %v1212_v48 = vld [vmem:[#allocation2 + $0xf0] sm:$0xf0]  ;;  %v1631_v51 = vld [vmem:[#allocation2 + $0xbc] sm:$0xf] }
  0x5e   :  { %v1539_v58 = vor.u32 %v1719_v53, %v1538_v52  ;;  %v1218_v49 = vld [vmem:[#allocation2 + $0xb8] sm:$0xf]  ;;  %v1220_v52 = vld [vmem:[#allocation2 + $0xf8] sm:$0xf0] }
  0x5f   :  { %958 = vmatpush.bf16.msra.mxu0 %v1323_v59  ;;  %971 = vmatpush.bf16.msra.mxu1 %v1327_v60  ;;  %v1466_v59 = vld [vmem:[#allocation2 + $0x2b0] sm:$0xf] }
  0x60   :  { %984 = vmatpush.bf16.msra.mxu2 %v1331_v61  ;;  %v1702_v60 = vld [vmem:[#allocation2 + $0x2ec] sm:$0xf0]  ;;  %v1694_v61 = vld [vmem:[#allocation2 + $0x2b4] sm:$0xf] }
  0x61   :  { %997 = vmatpush.bf16.msra.mxu3 %v1335_v1  ;;  %v1703_v1 = vld [vmem:[#allocation2 + $0x2f4] sm:$0xf0]  ;;  %v1467_v4 = vor.u32 %v1702_v60, %v1466_v59  ;;  %v1471_v5 = vor.u32 %v1694_v61, %v1468_v63  ;;  %v1223_v59 = vor.u32 %v1631_v51, %v1220_v52  ;;  %v1148_v60 = vld [vmem:[#allocation2 + $0x70] sm:$0xf0]  ;;  %v1615_v63 = vld [vmem:[#allocation2 + $0x3c] sm:$0xf] }
  0x62   :  { %v1475_v6 = vor.u32 %v1703_v1, %v1474_v0  ;;  %v1154_v61 = vld [vmem:[#allocation2 + $0x38] sm:$0xf]  ;;  %v1156_v0 = vld [vmem:[#allocation2 + $0x78] sm:$0xf0] }
  0x63   :  { %959 = vmatpush.bf16.msra.mxu0 %v1259_v8  ;;  %972 = vmatpush.bf16.msra.mxu1 %v1263_v9  ;;  %v1402_v8 = vld [vmem:[#allocation2 + $0x230] sm:$0xf] }
  0x64   :  { %985 = vmatpush.bf16.msra.mxu2 %v1267_v10  ;;  %v1686_v9 = vld [vmem:[#allocation2 + $0x26c] sm:$0xf0]  ;;  %v1678_v10 = vld [vmem:[#allocation2 + $0x234] sm:$0xf] }
  0x65   :  { %998 = vmatpush.bf16.msra.mxu3 %v1271_v14  ;;  %v1687_v14 = vld [vmem:[#allocation2 + $0x274] sm:$0xf0]  ;;  %v1403_v17 = vor.u32 %v1686_v9, %v1402_v8  ;;  %v1407_v18 = vor.u32 %v1678_v10, %v1404_v12 }
  0x66   :  { %v1411_v19 = vor.u32 %v1687_v14, %v1410_v13 }
  0x67   :  { %960 = vmatpush.bf16.msra.mxu0 %v1195_v20  ;;  %973 = vmatpush.bf16.msra.mxu1 %v1199_v23  ;;  %v1338_v20 = vld [vmem:[#allocation2 + $0x1b0] sm:$0xf]  ;;  %v1415_v23 = vor.u32 %v1679_v15, %v1412_v16 }
  0x68   :  { %986 = vmatpush.bf16.msra.mxu2 %v1203_v24  ;;  %v1340_v24 = vld [vmem:[#allocation2 + $0x1f0] sm:$0xf0]  ;;  %v1339_v29 = vor.u32 %v1670_v21, %v1338_v20 }
  0x69   :  { %999 = vmatpush.bf16.msra.mxu3 %v1207_v28  ;;  %v1348_v28 = vld [vmem:[#allocation2 + $0x1f8] sm:$0xf0]  ;;  %v1343_v30 = vor.u32 %v1662_v22, %v1340_v24 }
  0x6b   :  { %961 = vmatpush.bf16.msra.mxu0 %v1131_v35  ;;  %974 = vmatpush.bf16.msra.mxu1 %v1135_v39  ;;  %v1351_v35 = vor.u32 %v1663_v27, %v1348_v28  ;;  %v1647_v39 = vld [vmem:[#allocation2 + $0x13c] sm:$0xf] }
  0x6c   :  { %987 = vmatpush.bf16.msra.mxu2 %v1139_v40  ;;  %v1284_v40 = vld [vmem:[#allocation2 + $0x178] sm:$0xf0] }
  0x6d   :  { %1000 = vmatpush.bf16.msra.mxu3 %v1143_v43  ;;  %v1283_v43 = vor.u32 %v1655_v38, %v1282_v37  ;;  %v1287_v47 = vor.u32 %v1647_v39, %v1284_v40 }
  0x6e   :  { %962 = vmatmul.bf16.vlgmr.msra.gmra.mxu0 %v1857_v7  ;;  %975 = vmatmul.bf16.vlgmr.msra.gmra.mxu1 %v1857_v7 }
  0x6f   :  { %1006 = vmatpush.bf16.msrb.mxu0 %v1595_v44  ;;  %1019 = vmatpush.bf16.msrb.mxu1 %v1599_v45  ;;  %v1210_v44 = vld [vmem:[#allocation2 + $0xb0] sm:$0xf] }
  0x70   :  { %1032 = vmatpush.bf16.msrb.mxu2 %v1603_v46  ;;  %1001 = vmatmul.bf16.vlgmr.msra.gmra.mxu3 %v1857_v7  ;;  %v1638_v45 = vld [vmem:[#allocation2 + $0xec] sm:$0xf0]  ;;  %v1630_v46 = vld [vmem:[#allocation2 + $0xb4] sm:$0xf] }
  0x71   :  { %1045 = vmatpush.bf16.msrb.mxu3 %v1607_v50  ;;  %988 = vmatmul.bf16.vlgmr.msra.gmra.mxu2 %v1857_v7  ;;  %v1639_v50 = vld [vmem:[#allocation2 + $0xf4] sm:$0xf0]  ;;  %v1211_v53 = vor.u32 %v1638_v45, %v1210_v44  ;;  %v1215_v54 = vor.u32 %v1630_v46, %v1212_v48  ;;  %v175_v46 = vld [vmem:[#allocation4 + $0x8] sm:$0xff] }
  0x72   :  { %v1219_v55 = vor.u32 %v1639_v50, %v1218_v49  ;;  %v187_v48 = vperm.slane %v175_v46, 1 }
  0x73   :  { %1007 = vmatpush.bf16.msrb.mxu0 %v1531_v56  ;;  %1020 = vmatpush.bf16.msrb.mxu1 %v1535_v57  ;;  %v1146_v56 = vld [vmem:[#allocation2 + $0x30] sm:$0xf] }
  0x74   :  { %1033 = vmatpush.bf16.msrb.mxu2 %v1539_v58  ;;  %v1622_v57 = vld [vmem:[#allocation2 + $0x6c] sm:$0xf0]  ;;  %v1614_v58 = vld [vmem:[#allocation2 + $0x34] sm:$0xf] }
  0x75   :  { %1046 = vmatpush.bf16.msrb.mxu3 %v1543_v62  ;;  %v1623_v62 = vld [vmem:[#allocation2 + $0x74] sm:$0xf0]  ;;  %v1147_v1 = vor.u32 %v1622_v57, %v1146_v56  ;;  %v1151_v2 = vor.u32 %v1614_v58, %v1148_v60 }
  0x76   :  { %v1155_v3 = vor.u32 %v1623_v62, %v1154_v61 }
  0x77   :  { %1008 = vmatpush.bf16.msrb.mxu0 %v1467_v4  ;;  %1021 = vmatpush.bf16.msrb.mxu1 %v1471_v5  ;;  %v1159_v4 = vor.u32 %v1615_v63, %v1156_v0  ;;  %v174_v5 = vld [vmem:[#allocation4] sm:$0xff] }
  0x78   :  { %1034 = vmatpush.bf16.msrb.mxu2 %v1475_v6  ;;  %v179_v6 = vperm.slane %v174_v5, 1  ;;  %v178_v8 = vperm.slane %v174_v5, 0  ;;  %v180_v12 = vperm.slane %v174_v5, 2  ;;  %v181_v13 = vperm.slane %v174_v5, 3 }
  0x79   :  { %1047 = vmatpush.bf16.msrb.mxu3 %v1479_v11  ;;  %v182_v26 = vperm.slane %v174_v5, 4  ;;  %v183_v27 = vperm.slane %v174_v5, 5  ;;  %v184_v32 = vperm.slane %v174_v5, 6  ;;  %v185_v33 = vperm.slane %v174_v5, 7 }
  0x7b   :  { %1009 = vmatpush.bf16.msrb.mxu0 %v1403_v17  ;;  %1022 = vmatpush.bf16.msrb.mxu1 %v1407_v18 }
  0x7c   :  { %1035 = vmatpush.bf16.msrb.mxu2 %v1411_v19 }
  0x7d   :  { %1048 = vmatpush.bf16.msrb.mxu3 %v1415_v23 }
  0x7f   :  { %1010 = vmatpush.bf16.msrb.mxu0 %v1339_v29  ;;  %1023 = vmatpush.bf16.msrb.mxu1 %v1343_v30 }
  0x80   :  { %1036 = vmatpush.bf16.msrb.mxu2 %v1347_v31 }
  0x81   :  { %1049 = vmatpush.bf16.msrb.mxu3 %v1351_v35 }
  0x83   :  { %1011 = vmatpush.bf16.msrb.mxu0 %v1275_v41  ;;  %1024 = vmatpush.bf16.msrb.mxu1 %v1279_v42 }
  0x84   :  { %1037 = vmatpush.bf16.msrb.mxu2 %v1283_v43 }
  0x85   :  { %1050 = vmatpush.bf16.msrb.mxu3 %v1287_v47  ;;  %v186_v47 = vperm.slane %v175_v46, 0 }
  0x87   :  { %1012 = vmatpush.bf16.msrb.mxu0 %v1211_v53  ;;  %1025 = vmatpush.bf16.msrb.mxu1 %v1215_v54  ;;  %v188_v53 = vperm.slane %v175_v46, 2  ;;  %v189_v54 = vperm.slane %v175_v46, 3 }
  0x88   :  { %1038 = vmatpush.bf16.msrb.mxu2 %v1219_v55 }
  0x89   :  { %1051 = vmatpush.bf16.msrb.mxu3 %v1223_v59 }
  0x8b   :  { %1013 = vmatpush.bf16.msrb.mxu0 %v1147_v1  ;;  %1026 = vmatpush.bf16.msrb.mxu1 %v1151_v2 }
  0x8c   :  { %1039 = vmatpush.bf16.msrb.mxu2 %v1155_v3  ;;  %v190_v3 = vperm.slane %v175_v46, 4 }
  0x8d   :  { %1052 = vmatpush.bf16.msrb.mxu3 %v1159_v4  ;;  %v191_v4 = vperm.slane %v175_v46, 5 }
  0x8e   :  { %1014 = vmatmul.bf16.vlgmr.msrb.gmra.mxu0 %v1857_v7  ;;  %1027 = vmatmul.bf16.vlgmr.msrb.gmra.mxu1 %v1857_v7 }
  0x8f   :  { %1040 = vmatmul.bf16.vlgmr.msrb.gmra.mxu2 %v1857_v7 }
  0x90   :  { %1053 = vmatmul.bf16.vlgmr.msrb.gmra.mxu3 %v1857_v7 }
  0xab   :  { %v872_v9 = vpop.f32.mrf.mxu1  ;;  %v859_v11 = vpop.f32.mrf.mxu0 }
  0xac   :  { %v873_v10 = vadd.f32 %v872_v9, %v179_v6  ;;  %v860_v14 = vadd.f32 %v859_v11, %v178_v8  ;;  %v193_v11 = vperm.slane %v175_v46, 7 }
  0xae   :  { %1740 = vtanh.f32 %v873_v10  ;;  %v192_v10 = vperm.slane %v175_v46, 6 }
  0xaf   :  { %1742 = vtanh.f32 %v860_v14 }
  0xb3   :  { %v898_v16 = vpop.f32.mrf.mxu3  ;;  %v874_v19 = vpop.f32.mrf.mxu1 }
  0xb4   :  { %v885_v15 = vpop.f32.mrf.mxu2  ;;  %v899_v18 = vadd.f32 %v898_v16, %v181_v13  ;;  %v1741_v20 = vpop.eup %1740 }
  0xb5   :  { %v886_v17 = vadd.f32 %v885_v15, %v180_v12  ;;  %1075 = vst [vmem:[%s1926_s3 + $0x8] sm:$0xff] %v1741_v20  ;;  %v861_v7 = vpop.f32.mrf.mxu0  ;;  %v1743_v21 = vpop.eup %1742 }
  0xb6   :  { %1074 = vst [vmem:[%s1926_s3] sm:$0xff] %v1743_v21 }
  0xb7   :  { %1744 = vtanh.f32 %v886_v17 }
  0xb8   :  { %1746 = vtanh.f32 %v899_v18 }
  0xbb   :  { %v900_v23 = vpop.f32.mrf.mxu3 }
  0xbc   :  { %v887_v22 = vpop.f32.mrf.mxu2 }
  0xbd   :  { %v1745_v24 = vpop.eup %1744 }
  0xbe   :  { %v1747_v25 = vpop.eup %1746  ;;  %1076 = vst [vmem:[%s1926_s3 + $0x10] sm:$0xff] %v1745_v24 }
  0xbf   :  { %1077 = vst [vmem:[%s1926_s3 + $0x18] sm:$0xff] %v1747_v25 }
  0xcb   :  { %v911_v28 = vpop.f32.mrf.mxu0  ;;  %v924_v30 = vpop.f32.mrf.mxu1 }
  0xcc   :  { %v912_v29 = vadd.f32 %v911_v28, %v182_v26  ;;  %v925_v31 = vadd.f32 %v924_v30, %v183_v27 }
  0xce   :  { %1748 = vtanh.f32 %v912_v29 }
  0xcf   :  { %1750 = vtanh.f32 %v925_v31 }
  0xd3   :  { %v950_v36 = vpop.f32.mrf.mxu3  ;;  %v913_v38 = vpop.f32.mrf.mxu0 }
  0xd4   :  { %v937_v34 = vpop.f32.mrf.mxu2  ;;  %v951_v37 = vadd.f32 %v950_v36, %v185_v33  ;;  %v1749_v39 = vpop.eup %1748 }
  0xd5   :  { %v938_v35 = vadd.f32 %v937_v34, %v184_v32  ;;  %v926_v40 = vpop.f32.mrf.mxu1  ;;  %v1751_v41 = vpop.eup %1750  ;;  %1078 = vst [vmem:[%s1926_s3 + $0x20] sm:$0xff] %v1749_v39 }
  0xd6   :  { %1079 = vst [vmem:[%s1926_s3 + $0x28] sm:$0xff] %v1751_v41 }
  0xd7   :  { %1752 = vtanh.f32 %v938_v35 }
  0xd8   :  { %1754 = vtanh.f32 %v951_v37 }
  0xdb   :  { %v952_v44 = vpop.f32.mrf.mxu3 }
  0xdc   :  { %v939_v42 = vpop.f32.mrf.mxu2 }
  0xdd   :  { %v1753_v43 = vpop.eup %1752 }
  0xde   :  { %v1755_v45 = vpop.eup %1754  ;;  %1080 = vst [vmem:[%s1926_s3 + $0x30] sm:$0xff] %v1753_v43 }
  0xdf   :  { %1081 = vst [vmem:[%s1926_s3 + $0x38] sm:$0xff] %v1755_v45 }
  0xeb   :  { %v963_v49 = vpop.f32.mrf.mxu0  ;;  %v976_v51 = vpop.f32.mrf.mxu1 }
  0xec   :  { %v964_v50 = vadd.f32 %v963_v49, %v186_v47  ;;  %v977_v52 = vadd.f32 %v976_v51, %v187_v48 }
  0xee   :  { %1756 = vtanh.f32 %v964_v50 }
  0xef   :  { %1758 = vtanh.f32 %v977_v52 }
  0xf3   :  { %v1002_v57 = vpop.f32.mrf.mxu3  ;;  %v965_v59 = vpop.f32.mrf.mxu0 }
  0xf4   :  { %v989_v55 = vpop.f32.mrf.mxu2  ;;  %v1003_v58 = vadd.f32 %v1002_v57, %v189_v54  ;;  %v1757_v60 = vpop.eup %1756 }
  0xf5   :  { %v990_v56 = vadd.f32 %v989_v55, %v188_v53  ;;  %v978_v61 = vpop.f32.mrf.mxu1  ;;  %v1759_v62 = vpop.eup %1758  ;;  %1082 = vst [vmem:[%s1926_s3 + $0x40] sm:$0xff] %v1757_v60 }
  0xf6   :  { %1083 = vst [vmem:[%s1926_s3 + $0x48] sm:$0xff] %v1759_v62 }
  0xf7   :  { %1760 = vtanh.f32 %v990_v56 }
  0xf8   :  { %1762 = vtanh.f32 %v1003_v58 }
  0xfb   :  { %v1004_v1 = vpop.f32.mrf.mxu3 }
  0xfc   :  { %v991_v63 = vpop.f32.mrf.mxu2 }
  0xfd   :  { %v1761_v0 = vpop.eup %1760 }
  0xfe   :  { %v1763_v2 = vpop.eup %1762  ;;  %1084 = vst [vmem:[%s1926_s3 + $0x50] sm:$0xff] %v1761_v0 }
  0xff   :  { %1085 = vst [vmem:[%s1926_s3 + $0x58] sm:$0xff] %v1763_v2 }
 0x10b   :  { %v1015_v5 = vpop.f32.mrf.mxu0  ;;  %v1028_v8 = vpop.f32.mrf.mxu1 }
 0x10c   :  { %v1016_v6 = vadd.f32 %v1015_v5, %v190_v3  ;;  %v1029_v9 = vadd.f32 %v1028_v8, %v191_v4 }
 0x10e   :  { %1764 = vtanh.f32 %v1016_v6 }
 0x10f   :  { %1766 = vtanh.f32 %v1029_v9 }
 0x112   :  { %v1041_v12 = vpop.f32.mrf.mxu2 }
 0x113   :  { %v1042_v13 = vadd.f32 %v1041_v12, %v192_v10  ;;  %v1054_v14 = vpop.f32.mrf.mxu3  ;;  %v1017_v15 = vpop.f32.mrf.mxu0 }
 0x114   :  { %v1765_v16 = vpop.eup %1764  ;;  %v1055_v17 = vadd.f32 %v1054_v14, %v193_v11  ;;  %v1030_v18 = vpop.f32.mrf.mxu1 }
 0x115   :  { %v1767_v19 = vpop.eup %1766  ;;  %1086 = vst [vmem:[%s1926_s3 + $0x60] sm:$0xff] %v1765_v16  ;;  %1768 = vtanh.f32 %v1042_v13 }
 0x116   :  { %1087 = vst [vmem:[%s1926_s3 + $0x68] sm:$0xff] %v1767_v19  ;;  %1770 = vtanh.f32 %v1055_v17 }
 0x11a   :  { %v1043_v20 = vpop.f32.mrf.mxu2 }
 0x11b   :  { %v1769_v7 = vpop.eup %1768  ;;  %v1056_v21 = vpop.f32.mrf.mxu3 }
 0x11c   :  { %v1771_v22 = vpop.eup %1770  ;;  %1088 = vst [vmem:[%s1926_s3 + $0x70] sm:$0xff] %v1769_v7 }
 0x11d   :  { %1089 = vst [vmem:[%s1926_s3 + $0x78] sm:$0xff] %v1771_v22 }
 0x11e   :  { %1094 = vsyncpa [#allocation3], 1 }
 0x11f   :  { %1095 = vsyncpa [#allocation5], 1 }

// kernel: nn_planner_forward.5
= control target key start
LH: loop header
LB: loop body
LE: loop exit
PB: predicated region body
PF: predicated region fallthrough
CT: control target
= control target key end

     0   :  { %8 = vsyncpa [#allocation3], 0  ;;  %s2724_s0 = inlined_call_operand.vmem [shape: f32[2,8,2048], index: 0, kind: input, shape index: {}]   ;;  %s2725_s1 = inlined_call_operand.hbm [shape: bf16[2,2048,128], index: 1, kind: input, shape index: {}]   ;;  %s2726_s2 = inlined_call_operand.hbm [shape: f32[2,1,128], index: 2, kind: input, shape index: {}]   ;;  %s2727_s3 = inlined_call_operand.vmem [shape: f32[2,8,128], index: 3, kind: output, shape index: {}]  }
   0x1   :  { %10 = vsyncpa [#allocation3 + $0x1], 0 }
   0x2   :  { %11 = vsyncpa [#allocation5], 0 }
   0x3   :  { %13 = vsyncpa [#allocation5 + $0x1], 0  ;;  %s2435_s12 = smov 0   ;;  %s2437_s13 = smov 0  }
   0x4   :  { %s2439_s14 = smov 0   ;;  %s2441_s15 = smov 0  }
   0x5 LB: > { %s2454_s16 = sadd.s32 4294967295, %s2411_s15   ;;  %s2457_s17 = sadd.s32 1, %s2411_s15   ;;  %s2411_s15 = sphi %s2441_s15, %s2735_s15   ;;  %s2407_s14 = sphi %s2439_s14, %s2734_s14   ;;  %s2403_s13 = sphi %s2437_s13, %s2733_s13   ;;  %s2399_s12 = sphi %s2435_s12, %s2732_s12  }
   0x6   : > { %s49_s18 = ssub.s32 %s2411_s15, %s2457_s17  ;;  %s52_s19 = sadd.s32 1, %s2407_s14 }
   0x7   : > { %p50_p0 = scmp.eq.s32.totalorder %s49_s18, 0  ;;  %p59_p1 = scmp.ne.s32.totalorder %s2407_s14, %s2403_s13 }
   0x8   : > { %p60_p2 = scmp.eq.s32.totalorder %s2411_s15, 0  ;;  %p65_p3 = scmp.ne.s32.totalorder %s2403_s13, %s2399_s12 }
   0x9   : > { %s2467_s20 = scalar_select %p50_p0, %s2407_s14, %s52_s19  }
   0xa   : > { %p2469_p4 = por %p60_p2, %p59_p1  ;;  %p66_p5 = scmp.eq.s32.totalorder %s2454_s16, 0 }
   0xb   : > { %p2277_p6 = scmp.lt.s32.totalorder %s2411_s15, 2  ;;  %s2480_s23 = sand.u32 1, %s2407_s14  }
   0xc   : > { %p2475_p7 = por %p66_p5, %p65_p3  ;;  %s1614_s24 = sshll.u32 %s2480_s23, 10 }
   0xd   : > { %s2136_s25 = sshll.u32 %s2411_s15, 10  ;;  %s153_s29 = scalar_lea.vmem [#allocation2], %s1614_s24 }
   0xe   : > { %s158_s28 = scalar_lea.hbm %s2725_s1, %s2136_s25  ;;  %s161_s30 = sshll.u32 %s153_s29, 4  ;;  %s162_s30 = int_to_ptr.vmem [resolvable:$true] %s161_s30 }
   0xf   : > { %s159_s4 = sshll.u32 %s158_s28, 4  ;;  %p2489_p8 = pnand %p2277_p6, %p2469_p4  ;;  %s160_s4 = int_to_ptr.hbm [resolvable:$true] %s159_s4 }
  0x10   : > { %p1617_p9 = scmp.ge.s32.totalorder %s2411_s15, 1  ;;  %s150_s6 = scalar_lea.sflag [#allocation3], %s2480_s23 }
  0x11   : > { %s2313_s7 = sshra.s32 %s160_s4, 4  ;;  %p2317_p11 = pneg %p2489_p8  ;;  %s2314_s7 = int_to_ptr.hbm [resolvable:$true] %s2313_s7 }
  0x12   : > { %s2315_s8 = scalar_lea.hbm %s2314_s7, 1024  ;;  %s2320_s11 = scalar_lea.hbm %s2725_s1, 2048 }
  0x13   : > { %p2316_p10 = scmp.ne.s32.totalorder %s2314_s7, %s2315_s8  ;;  %p2321_p0 = scmp.lt.s32.totalorder %s2314_s7, %s2725_s1 }
  0x14   : > { %p2322_p1 = scmp.lt.s32.totalorder %s2320_s11, %s2315_s8 }
  0x15   : > { %p2318_p12 = pnand %p2317_p11, %p2316_p10 }
  0x16   : > { %p2323_p2 = por %p2322_p1, %p2321_p0 }
  0x17   : > { %p2319_p13 = pneg %p2318_p12 }
  0x19   : > { %p2324_p3 = pnand %p2323_p2, %p2319_p13 }
  0x1b   : > { %2327 = shalt.err (!%p2324_p3)
}
  0x1c   : > { %s2413_s19 = smov 64   ;;  %s2414_s21 = smov 4  }
  0x1d   : > { %2273 = dma.hbm_to_vmem [thread:$0]  (!%p2489_p8), %s160_s4, 16384, %s162_s30, %s150_s6, %s2413_s19, %s2413_s19, %s2414_s21  }
  0x1e   : > { %p186_p4 = scmp.lt.s32.totalorder %s2411_s15, 3  ;;  %s177_s26 = scalar_lea.hbm %s2726_s2, %s2411_s15 }
  0x1f   : > { %s179_s28 = sshll.u32 %s177_s26, 4  ;;  %s174_s29 = scalar_lea.vmem [#allocation4], %s2480_s23  ;;  %s180_s28 = int_to_ptr.hbm [resolvable:$true] %s179_s28 }
  0x20   : > { %p2515_p5 = pnand %p1617_p9, %p186_p4  ;;  %s181_s7 = sshll.u32 %s174_s29, 4  ;;  %s182_s7 = int_to_ptr.vmem [resolvable:$true] %s181_s7 }
  0x21   : > { %s172_s8 = scalar_lea.sflag [#allocation5], %s2480_s23  ;;  %s2343_s9 = sshra.s32 %s180_s28, 4  ;;  %s2344_s9 = int_to_ptr.hbm [resolvable:$true] %s2343_s9 }
  0x22   : > { %s2345_s10 = scalar_lea.hbm %s2344_s9, 1  ;;  %s2350_s4 = scalar_lea.hbm %s2726_s2, 2 }
  0x23   : > { %p2346_p6 = scmp.ne.s32.totalorder %s2344_s9, %s2345_s10  ;;  %p2351_p9 = scmp.lt.s32.totalorder %s2344_s9, %s2726_s2 }
  0x24   : > { %p2352_p13 = scmp.lt.s32.totalorder %s2350_s4, %s2345_s10 }
  0x25   : > { %p2348_p10 = pnand %p2346_p6, %p2317_p11 }
  0x26   : > { %p2353_p0 = por %p2352_p13, %p2351_p9 }
  0x27   : > { %p2349_p12 = pneg %p2348_p10 }
  0x29   : > { %p2354_p1 = pnand %p2353_p0, %p2349_p12 }
  0x2b   : > { %2357 = shalt.err (!%p2354_p1)
}
  0x2c   : > { %2276 = dma.hbm_to_vmem [thread:$0]  (!%p2489_p8), %s180_s28, 16, %s182_s7, %s172_s8  }
  0x2d   : > { %190 = sbr.rel (%p2515_p5) target bundleno = 324 (0x144), region = 32  ;;  %s2535_s23 = sand.u32 (!%p2515_p5), 1, %s2403_s13  }
  0x2e   : > { %s1618_s12 = sshll.u32 (!%p2515_p5), %s2535_s23, 10  ;;  %s193_s18 = scalar_lea.sflag (!%p2515_p5), [#allocation3], %s2535_s23 }
  0x2f   : > { %s2539_s19 = scalar_lea.vmem (!%p2515_p5), [#allocation2], %s1618_s12 }
  0x32   : > { %2390 = dma.done.wait (%p2475_p7), %s193_s18, 16384  }
  0x33   : > { %2392 = vsyncadd (%p2475_p7), %s193_s18, 4294950912  ;;  %s203_s5 = scalar_lea.sflag [#allocation5], %s2535_s23  ;;  %s205_s21 = scalar_lea.vmem [#allocation4], %s2535_s23 }
  0x34   : > { %2394 = dma.done.wait (%p2475_p7), %s203_s5, 16  }
  0x35   : > { %2396 = vsyncadd (%p2475_p7), %s203_s5, 4294967280  ;;  %v2145_v0 = vld [vmem:[%s2539_s19 + $0x38] sm:$0xff]  ;;  %v2144_v4 = vld [vmem:[%s2539_s19 + $0x30] sm:$0xff]  ;;  %p237_p7 = scmp.lt.s32.totalorder %s2454_s16, 1 }
  0x36   : > { %v2153_v1 = vld [vmem:[%s2539_s19 + $0x78] sm:$0xff]  ;;  %1306 = vmatpush.bf16.msra.mxu0 %v2145_v0  ;;  %v2152_v5 = vld [vmem:[%s2539_s19 + $0x70] sm:$0xff]  ;;  %v2143_v8 = vld [vmem:[%s2539_s19 + $0x28] sm:$0xff] }
  0x37   : > { %v2161_v2 = vld [vmem:[%s2539_s19 + $0xb8] sm:$0xff]  ;;  %1319 = vmatpush.bf16.msra.mxu1 %v2153_v1  ;;  %v2160_v6 = vld [vmem:[%s2539_s19 + $0xb0] sm:$0xff]  ;;  %v2151_v9 = vld [vmem:[%s2539_s19 + $0x68] sm:$0xff]  ;;  %s2737_s16 = smov (!%p237_p7, %s2454_s16), 1 }
  0x38   : > { %v2169_v3 = vld [vmem:[%s2539_s19 + $0xf8] sm:$0xff]  ;;  %1332 = vmatpush.bf16.msra.mxu2 %v2161_v2  ;;  %v2168_v7 = vld [vmem:[%s2539_s19 + $0xf0] sm:$0xff]  ;;  %v2159_v10 = vld [vmem:[%s2539_s19 + $0xa8] sm:$0xff]  ;;  %s2137_s22 = sshll.u32 %s2737_s16, 7  ;;  %s1621_s27 = sshll.u32 %s2737_s16, 3 }
  0x39   : > { %1345 = vmatpush.bf16.msra.mxu3 %v2169_v3  ;;  %v2167_v11 = vld [vmem:[%s2539_s19 + $0xe8] sm:$0xff]  ;;  %v2142_v12 = vld [vmem:[%s2539_s19 + $0x20] sm:$0xff]  ;;  %v2141_v16 = vld [vmem:[%s2539_s19 + $0x18] sm:$0xff]  ;;  %s2587_s26 = scalar_lea.vmem %s2724_s0, %s2137_s22  ;;  %s245_s7 = scalar_lea.vmem %s2727_s3, %s1621_s27 }
  0x3a   : > { %1307 = vmatpush.bf16.msra.mxu0 %v2144_v4  ;;  %v2150_v13 = vld [vmem:[%s2539_s19 + $0x60] sm:$0xff]  ;;  %v2149_v17 = vld [vmem:[%s2539_s19 + $0x58] sm:$0xff]  ;;  %v2140_v20 = vld [vmem:[%s2539_s19 + $0x10] sm:$0xff] }
  0x3b   : > { %1320 = vmatpush.bf16.msra.mxu1 %v2152_v5  ;;  %v2158_v14 = vld [vmem:[%s2539_s19 + $0xa0] sm:$0xff]  ;;  %v2157_v18 = vld [vmem:[%s2539_s19 + $0x98] sm:$0xff]  ;;  %v2148_v21 = vld [vmem:[%s2539_s19 + $0x50] sm:$0xff] }
  0x3c   : > { %1333 = vmatpush.bf16.msra.mxu2 %v2160_v6  ;;  %v2166_v15 = vld [vmem:[%s2539_s19 + $0xe0] sm:$0xff]  ;;  %v2165_v19 = vld [vmem:[%s2539_s19 + $0xd8] sm:$0xff]  ;;  %v2156_v22 = vld [vmem:[%s2539_s19 + $0x90] sm:$0xff] }
  0x3d   : > { %1346 = vmatpush.bf16.msra.mxu3 %v2168_v7  ;;  %v2164_v23 = vld [vmem:[%s2539_s19 + $0xd0] sm:$0xff]  ;;  %v2139_v24 = vld [vmem:[%s2539_s19 + $0x8] sm:$0xff]  ;;  %v2138_v28 = vld [vmem:[%s2539_s19] sm:$0xff] }
  0x3e   : > { %1308 = vmatpush.bf16.msra.mxu0 %v2143_v8  ;;  %v2147_v25 = vld [vmem:[%s2539_s19 + $0x48] sm:$0xff]  ;;  %v2146_v29 = vld [vmem:[%s2539_s19 + $0x40] sm:$0xff]  ;;  %v2177_v32 = vld [vmem:[%s2539_s19 + $0x138] sm:$0xff] }
  0x3f   : > { %1321 = vmatpush.bf16.msra.mxu1 %v2151_v9  ;;  %v2155_v26 = vld [vmem:[%s2539_s19 + $0x88] sm:$0xff]  ;;  %v2154_v30 = vld [vmem:[%s2539_s19 + $0x80] sm:$0xff]  ;;  %v248_v33 = vld [vmem:[%s2587_s26 + $0x10] sm:$0xff] }
  0x40   : > { %1334 = vmatpush.bf16.msra.mxu2 %v2159_v10  ;;  %v2163_v27 = vld [vmem:[%s2539_s19 + $0xc8] sm:$0xff]  ;;  %v2162_v31 = vld [vmem:[%s2539_s19 + $0xc0] sm:$0xff]  ;;  %v2185_v35 = vld [vmem:[%s2539_s19 + $0x178] sm:$0xff]  ;;  %v264_v40 = vpack.c.bf16 %v248_v33, %v248_v33 }
  0x41   : > { %1347 = vmatpush.bf16.msra.mxu3 %v2167_v11  ;;  %v246_v34 = vld [vmem:[%s2587_s26] sm:$0xff]  ;;  %v249_v36 = vld [vmem:[%s2587_s26 + $0x18] sm:$0xff]  ;;  %v247_v37 = vld [vmem:[%s2587_s26 + $0x8] sm:$0xff] }
  0x42   : > { %1309 = vmatpush.bf16.msra.mxu0 %v2142_v12  ;;  %v2193_v38 = vld [vmem:[%s2539_s19 + $0x1b8] sm:$0xff]  ;;  %v262_v41 = vpack.c.bf16 %v246_v34, %v246_v34  ;;  %v265_v42 = vpack.c.bf16 %v249_v36, %v249_v36  ;;  %v263_v43 = vpack.c.bf16 %v247_v37, %v247_v37  ;;  %v2176_v44 = vld [vmem:[%s2539_s19 + $0x130] sm:$0xff]  ;;  %v2175_v48 = vld [vmem:[%s2539_s19 + $0x128] sm:$0xff] }
  0x43   : > { %1322 = vmatpush.bf16.msra.mxu1 %v2150_v13  ;;  %v2201_v39 = vld [vmem:[%s2539_s19 + $0x1f8] sm:$0xff]  ;;  %v2184_v45 = vld [vmem:[%s2539_s19 + $0x170] sm:$0xff]  ;;  %v2183_v49 = vld [vmem:[%s2539_s19 + $0x168] sm:$0xff] }
  0x44   : > { %1335 = vmatpush.bf16.msra.mxu2 %v2158_v14  ;;  %v2192_v46 = vld [vmem:[%s2539_s19 + $0x1b0] sm:$0xff]  ;;  %v2191_v50 = vld [vmem:[%s2539_s19 + $0x1a8] sm:$0xff]  ;;  %v2174_v52 = vld [vmem:[%s2539_s19 + $0x120] sm:$0xff] }
  0x45   : > { %1348 = vmatpush.bf16.msra.mxu3 %v2166_v15  ;;  %v2200_v47 = vld [vmem:[%s2539_s19 + $0x1f0] sm:$0xff]  ;;  %v2199_v51 = vld [vmem:[%s2539_s19 + $0x1e8] sm:$0xff]  ;;  %v2182_v53 = vld [vmem:[%s2539_s19 + $0x160] sm:$0xff] }
  0x46   : > { %1310 = vmatpush.bf16.msra.mxu0 %v2141_v16  ;;  %v2190_v54 = vld [vmem:[%s2539_s19 + $0x1a0] sm:$0xff]  ;;  %v2173_v56 = vld [vmem:[%s2539_s19 + $0x118] sm:$0xff]  ;;  %v2172_v60 = vld [vmem:[%s2539_s19 + $0x110] sm:$0xff] }
  0x47   : > { %1323 = vmatpush.bf16.msra.mxu1 %v2149_v17  ;;  %v2198_v55 = vld [vmem:[%s2539_s19 + $0x1e0] sm:$0xff]  ;;  %v2181_v57 = vld [vmem:[%s2539_s19 + $0x158] sm:$0xff]  ;;  %v2180_v61 = vld [vmem:[%s2539_s19 + $0x150] sm:$0xff] }
  0x48   : > { %1336 = vmatpush.bf16.msra.mxu2 %v2157_v18  ;;  %v2189_v58 = vld [vmem:[%s2539_s19 + $0x198] sm:$0xff]  ;;  %v2188_v62 = vld [vmem:[%s2539_s19 + $0x190] sm:$0xff]  ;;  %v2171_v0 = vld [vmem:[%s2539_s19 + $0x108] sm:$0xff] }
  0x49   : > { %1349 = vmatpush.bf16.msra.mxu3 %v2165_v19  ;;  %v2197_v59 = vld [vmem:[%s2539_s19 + $0x1d8] sm:$0xff]  ;;  %v2196_v63 = vld [vmem:[%s2539_s19 + $0x1d0] sm:$0xff]  ;;  %v2179_v1 = vld [vmem:[%s2539_s19 + $0x148] sm:$0xff] }
  0x4a   : > { %1311 = vmatpush.bf16.msra.mxu0 %v2140_v20  ;;  %v2187_v2 = vld [vmem:[%s2539_s19 + $0x188] sm:$0xff]  ;;  %v2170_v4 = vld [vmem:[%s2539_s19 + $0x100] sm:$0xff]  ;;  %v2209_v8 = vld [vmem:[%s2539_s19 + $0x238] sm:$0xff] }
  0x4b   : > { %1324 = vmatpush.bf16.msra.mxu1 %v2148_v21  ;;  %v2195_v3 = vld [vmem:[%s2539_s19 + $0x1c8] sm:$0xff]  ;;  %v2178_v5 = vld [vmem:[%s2539_s19 + $0x140] sm:$0xff]  ;;  %v252_v9 = vld [vmem:[%s2587_s26 + $0x30] sm:$0xff] }
  0x4c   : > { %1337 = vmatpush.bf16.msra.mxu2 %v2156_v22  ;;  %v2186_v6 = vld [vmem:[%s2539_s19 + $0x180] sm:$0xff]  ;;  %v2217_v11 = vld [vmem:[%s2539_s19 + $0x278] sm:$0xff]  ;;  %v251_v13 = vld [vmem:[%s2587_s26 + $0x28] sm:$0xff]  ;;  %v268_v16 = vpack.c.bf16 %v252_v9, %v252_v9 }
  0x4d   : > { %1350 = vmatpush.bf16.msra.mxu3 %v2164_v23  ;;  %v2194_v7 = vld [vmem:[%s2539_s19 + $0x1c0] sm:$0xff]  ;;  %v253_v12 = vld [vmem:[%s2587_s26 + $0x38] sm:$0xff]  ;;  %v267_v19 = vpack.c.bf16 %v251_v13, %v251_v13  ;;  %v2208_v20 = vld [vmem:[%s2539_s19 + $0x230] sm:$0xff] }
  0x4e   : > { %1312 = vmatpush.bf16.msra.mxu0 %v2139_v24  ;;  %v250_v10 = vld [vmem:[%s2587_s26 + $0x20] sm:$0xff]  ;;  %v2225_v14 = vld [vmem:[%s2539_s19 + $0x2b8] sm:$0xff]  ;;  %v269_v18 = vpack.c.bf16 %v253_v12, %v253_v12  ;;  %v2216_v21 = vld [vmem:[%s2539_s19 + $0x270] sm:$0xff] }
  0x4f   : > { %1325 = vmatpush.bf16.msra.mxu1 %v2147_v25  ;;  %v2233_v15 = vld [vmem:[%s2539_s19 + $0x2f8] sm:$0xff]  ;;  %v266_v17 = vpack.c.bf16 %v250_v10, %v250_v10  ;;  %v2224_v22 = vld [vmem:[%s2539_s19 + $0x2b0] sm:$0xff]  ;;  %v2207_v24 = vld [vmem:[%s2539_s19 + $0x228] sm:$0xff] }
  0x50   : > { %1338 = vmatpush.bf16.msra.mxu2 %v2155_v26  ;;  %v2232_v23 = vld [vmem:[%s2539_s19 + $0x2f0] sm:$0xff]  ;;  %v2215_v25 = vld [vmem:[%s2539_s19 + $0x268] sm:$0xff]  ;;  %v2213_v33 = vld [vmem:[%s2539_s19 + $0x258] sm:$0xff] }
  0x51   : > { %1351 = vmatpush.bf16.msra.mxu3 %v2163_v27  ;;  %v2223_v26 = vld [vmem:[%s2539_s19 + $0x2a8] sm:$0xff]  ;;  %v2221_v34 = vld [vmem:[%s2539_s19 + $0x298] sm:$0xff]  ;;  %v2204_v36 = vld [vmem:[%s2539_s19 + $0x210] sm:$0xff] }
  0x52   : > { %1313 = vmatpush.bf16.msra.mxu0 %v2138_v28  ;;  %v2231_v27 = vld [vmem:[%s2539_s19 + $0x2e8] sm:$0xff]  ;;  %v2206_v28 = vld [vmem:[%s2539_s19 + $0x220] sm:$0xff]  ;;  %v2212_v37 = vld [vmem:[%s2539_s19 + $0x250] sm:$0xff] }
  0x53   : > { %1326 = vmatpush.bf16.msra.mxu1 %v2146_v29  ;;  %v2214_v29 = vld [vmem:[%s2539_s19 + $0x260] sm:$0xff]  ;;  %v2245_v9 = vld [vmem:[%s2539_s19 + $0x358] sm:$0xff]  ;;  %v2236_v12 = vld [vmem:[%s2539_s19 + $0x310] sm:$0xff] }
  0x54   : > { %1339 = vmatpush.bf16.msra.mxu2 %v2154_v30  ;;  %v2222_v30 = vld [vmem:[%s2539_s19 + $0x2a0] sm:$0xff]  ;;  %v2253_v10 = vld [vmem:[%s2539_s19 + $0x398] sm:$0xff]  ;;  %v2244_v13 = vld [vmem:[%s2539_s19 + $0x350] sm:$0xff] }
  0x55   : > { %1352 = vmatpush.bf16.msra.mxu3 %v2162_v31  ;;  %1314 = vmatmul.bf16.vlgmr.msra.gmra.mxu0 %v262_v41  ;;  %v2230_v31 = vld [vmem:[%s2539_s19 + $0x2e0] sm:$0xff]  ;;  %v2211_v41 = vld [vmem:[%s2539_s19 + $0x248] sm:$0xff] }
  0x56   : > { %1358 = vmatpush.bf16.msrb.mxu0 %v2177_v32  ;;  %1327 = vmatmul.bf16.vlgmr.msra.gmra.mxu1 %v263_v43  ;;  %v2205_v32 = vld [vmem:[%s2539_s19 + $0x218] sm:$0xff]  ;;  %v2227_v43 = vld [vmem:[%s2539_s19 + $0x2c8] sm:$0xff] }
  0x57   : > { %1371 = vmatpush.bf16.msrb.mxu1 %v2185_v35  ;;  %1340 = vmatmul.bf16.vlgmr.msra.gmra.mxu2 %v264_v40  ;;  %v2229_v35 = vld [vmem:[%s2539_s19 + $0x2d8] sm:$0xff]  ;;  %v2203_v40 = vld [vmem:[%s2539_s19 + $0x208] sm:$0xff] }
  0x58   : > { %1384 = vmatpush.bf16.msrb.mxu2 %v2193_v38  ;;  %1353 = vmatmul.bf16.vlgmr.msra.gmra.mxu3 %v265_v42  ;;  %v2220_v38 = vld [vmem:[%s2539_s19 + $0x290] sm:$0xff]  ;;  %v2219_v42 = vld [vmem:[%s2539_s19 + $0x288] sm:$0xff] }
  0x59   : > { %1397 = vmatpush.bf16.msrb.mxu3 %v2201_v39  ;;  %v2228_v39 = vld [vmem:[%s2539_s19 + $0x2d0] sm:$0xff] }
  0x5a   : > { %1359 = vmatpush.bf16.msrb.mxu0 %v2176_v44  ;;  %v2202_v44 = vld [vmem:[%s2539_s19 + $0x200] sm:$0xff] }
  0x5b   : > { %1372 = vmatpush.bf16.msrb.mxu1 %v2184_v45  ;;  %v2210_v45 = vld [vmem:[%s2539_s19 + $0x240] sm:$0xff] }
  0x5c   : > { %1385 = vmatpush.bf16.msrb.mxu2 %v2192_v46  ;;  %v2218_v46 = vld [vmem:[%s2539_s19 + $0x280] sm:$0xff] }
  0x5d   : > { %1398 = vmatpush.bf16.msrb.mxu3 %v2200_v47  ;;  %v2226_v47 = vld [vmem:[%s2539_s19 + $0x2c0] sm:$0xff] }
  0x5e   : > { %1360 = vmatpush.bf16.msrb.mxu0 %v2175_v48  ;;  %v2241_v48 = vld [vmem:[%s2539_s19 + $0x338] sm:$0xff] }
  0x5f   : > { %1373 = vmatpush.bf16.msrb.mxu1 %v2183_v49  ;;  %v254_v49 = vld [vmem:[%s2587_s26 + $0x40] sm:$0xff] }
  0x60   : > { %1386 = vmatpush.bf16.msrb.mxu2 %v2191_v50  ;;  %v256_v50 = vld [vmem:[%s2587_s26 + $0x50] sm:$0xff] }
  0x61   : > { %1399 = vmatpush.bf16.msrb.mxu3 %v2199_v51  ;;  %v2249_v51 = vld [vmem:[%s2539_s19 + $0x378] sm:$0xff] }
  0x62   : > { %1361 = vmatpush.bf16.msrb.mxu0 %v2174_v52  ;;  %v255_v52 = vld [vmem:[%s2587_s26 + $0x48] sm:$0xff] }
  0x63   : > { %1374 = vmatpush.bf16.msrb.mxu1 %v2182_v53  ;;  %v257_v53 = vld [vmem:[%s2587_s26 + $0x58] sm:$0xff] }
  0x64   : > { %1387 = vmatpush.bf16.msrb.mxu2 %v2190_v54  ;;  %v2257_v54 = vld [vmem:[%s2539_s19 + $0x3b8] sm:$0xff] }
  0x65   : > { %1400 = vmatpush.bf16.msrb.mxu3 %v2198_v55  ;;  %v2265_v55 = vld [vmem:[%s2539_s19 + $0x3f8] sm:$0xff] }
  0x66   : > { %1362 = vmatpush.bf16.msrb.mxu0 %v2173_v56  ;;  %v270_v56 = vpack.c.bf16 %v254_v49, %v254_v49 }
  0x67   : > { %1375 = vmatpush.bf16.msrb.mxu1 %v2181_v57  ;;  %v272_v57 = vpack.c.bf16 %v256_v50, %v256_v50 }
  0x68   : > { %1388 = vmatpush.bf16.msrb.mxu2 %v2189_v58  ;;  %v271_v58 = vpack.c.bf16 %v255_v52, %v255_v52 }
  0x69   : > { %1401 = vmatpush.bf16.msrb.mxu3 %v2197_v59  ;;  %v273_v59 = vpack.c.bf16 %v257_v53, %v257_v53 }
  0x6a   : > { %1363 = vmatpush.bf16.msrb.mxu0 %v2172_v60  ;;  %v2240_v60 = vld [vmem:[%s2539_s19 + $0x330] sm:$0xff] }
  0x6b   : > { %1376 = vmatpush.bf16.msrb.mxu1 %v2180_v61  ;;  %v2248_v61 = vld [vmem:[%s2539_s19 + $0x370] sm:$0xff] }
  0x6c   : > { %1389 = vmatpush.bf16.msrb.mxu2 %v2188_v62  ;;  %v2256_v62 = vld [vmem:[%s2539_s19 + $0x3b0] sm:$0xff] }
  0x6d   : > { %1402 = vmatpush.bf16.msrb.mxu3 %v2196_v63  ;;  %v2264_v63 = vld [vmem:[%s2539_s19 + $0x3f0] sm:$0xff] }
  0x6e   : > { %1364 = vmatpush.bf16.msrb.mxu0 %v2171_v0  ;;  %v2239_v0 = vld [vmem:[%s2539_s19 + $0x328] sm:$0xff] }
  0x6f   : > { %1377 = vmatpush.bf16.msrb.mxu1 %v2179_v1  ;;  %v2247_v1 = vld [vmem:[%s2539_s19 + $0x368] sm:$0xff] }
  0x70   : > { %1390 = vmatpush.bf16.msrb.mxu2 %v2187_v2  ;;  %v2255_v2 = vld [vmem:[%s2539_s19 + $0x3a8] sm:$0xff] }
  0x71   : > { %1403 = vmatpush.bf16.msrb.mxu3 %v2195_v3  ;;  %v2263_v3 = vld [vmem:[%s2539_s19 + $0x3e8] sm:$0xff] }
  0x72   : > { %1365 = vmatpush.bf16.msrb.mxu0 %v2170_v4  ;;  %v2238_v4 = vld [vmem:[%s2539_s19 + $0x320] sm:$0xff] }
  0x73   : > { %1378 = vmatpush.bf16.msrb.mxu1 %v2178_v5  ;;  %v2246_v5 = vld [vmem:[%s2539_s19 + $0x360] sm:$0xff] }
  0x74   : > { %1391 = vmatpush.bf16.msrb.mxu2 %v2186_v6  ;;  %v2254_v6 = vld [vmem:[%s2539_s19 + $0x3a0] sm:$0xff] }
  0x75   : > { %1404 = vmatpush.bf16.msrb.mxu3 %v2194_v7  ;;  %1366 = vmatmul.bf16.vlgmr.msrb.gmra.mxu0 %v266_v17  ;;  %v2262_v7 = vld [vmem:[%s2539_s19 + $0x3e0] sm:$0xff]  ;;  %v2243_v17 = vld [vmem:[%s2539_s19 + $0x348] sm:$0xff] }
  0x76   : > { %1410 = vmatpush.bf16.msra.mxu0 %v2209_v8  ;;  %1379 = vmatmul.bf16.vlgmr.msrb.gmra.mxu1 %v267_v19  ;;  %v2237_v8 = vld [vmem:[%s2539_s19 + $0x318] sm:$0xff]  ;;  %v2259_v19 = vld [vmem:[%s2539_s19 + $0x3c8] sm:$0xff] }
  0x77   : > { %1423 = vmatpush.bf16.msra.mxu1 %v2217_v11  ;;  %1392 = vmatmul.bf16.vlgmr.msrb.gmra.mxu2 %v268_v16  ;;  %v2261_v11 = vld [vmem:[%s2539_s19 + $0x3d8] sm:$0xff]  ;;  %v2235_v16 = vld [vmem:[%s2539_s19 + $0x308] sm:$0xff] }
  0x78   : > { %1436 = vmatpush.bf16.msra.mxu2 %v2225_v14  ;;  %1405 = vmatmul.bf16.vlgmr.msrb.gmra.mxu3 %v269_v18  ;;  %v2252_v14 = vld [vmem:[%s2539_s19 + $0x390] sm:$0xff]  ;;  %v2251_v18 = vld [vmem:[%s2539_s19 + $0x388] sm:$0xff] }
  0x79   : > { %1449 = vmatpush.bf16.msra.mxu3 %v2233_v15  ;;  %v2260_v15 = vld [vmem:[%s2539_s19 + $0x3d0] sm:$0xff] }
  0x7a   : > { %1411 = vmatpush.bf16.msra.mxu0 %v2208_v20  ;;  %v2234_v20 = vld [vmem:[%s2539_s19 + $0x300] sm:$0xff] }
  0x7b   : > { %1424 = vmatpush.bf16.msra.mxu1 %v2216_v21  ;;  %v2242_v21 = vld [vmem:[%s2539_s19 + $0x340] sm:$0xff] }
  0x7c   : > { %1437 = vmatpush.bf16.msra.mxu2 %v2224_v22  ;;  %v2250_v22 = vld [vmem:[%s2539_s19 + $0x380] sm:$0xff] }
  0x7d   : > { %1450 = vmatpush.bf16.msra.mxu3 %v2232_v23  ;;  %v258_v23 = vld [vmem:[%s2587_s26 + $0x60] sm:$0xff] }
  0x7e   : > { %1412 = vmatpush.bf16.msra.mxu0 %v2207_v24  ;;  %v259_v24 = vld [vmem:[%s2587_s26 + $0x68] sm:$0xff] }
  0x7f   : > { %1425 = vmatpush.bf16.msra.mxu1 %v2215_v25  ;;  %v2258_v25 = vld [vmem:[%s2539_s19 + $0x3c0] sm:$0xff] }
  0x80   : > { %1438 = vmatpush.bf16.msra.mxu2 %v2223_v26  ;;  %v260_v26 = vld [vmem:[%s2587_s26 + $0x70] sm:$0xff] }
  0x81   : > { %1451 = vmatpush.bf16.msra.mxu3 %v2231_v27  ;;  %v261_v27 = vld [vmem:[%s2587_s26 + $0x78] sm:$0xff] }
  0x82   : > { %1413 = vmatpush.bf16.msra.mxu0 %v2206_v28  ;;  %v274_v28 = vpack.c.bf16 %v258_v23, %v258_v23 }
  0x83   : > { %1426 = vmatpush.bf16.msra.mxu1 %v2214_v29  ;;  %v275_v29 = vpack.c.bf16 %v259_v24, %v259_v24 }
  0x84   : > { %1439 = vmatpush.bf16.msra.mxu2 %v2222_v30  ;;  %v276_v30 = vpack.c.bf16 %v260_v26, %v260_v26 }
  0x85   : > { %1452 = vmatpush.bf16.msra.mxu3 %v2230_v31  ;;  %v277_v31 = vpack.c.bf16 %v261_v27, %v261_v27 }
  0x86   : > { %1414 = vmatpush.bf16.msra.mxu0 %v2205_v32  ;;  %v2312_v32 = vld [vmem:[%s205_s21] ss:$0 sm:$0xff] }
  0x87   : > { %1427 = vmatpush.bf16.msra.mxu1 %v2213_v33 }
  0x88   : > { %1440 = vmatpush.bf16.msra.mxu2 %v2221_v34 }
  0x89   : > { %1453 = vmatpush.bf16.msra.mxu3 %v2229_v35 }
  0x8a   : > { %1415 = vmatpush.bf16.msra.mxu0 %v2204_v36 }
  0x8b   : > { %1428 = vmatpush.bf16.msra.mxu1 %v2212_v37 }
  0x8c   : > { %1441 = vmatpush.bf16.msra.mxu2 %v2220_v38 }
  0x8d   : > { %1454 = vmatpush.bf16.msra.mxu3 %v2228_v39 }
  0x8e   : > { %1416 = vmatpush.bf16.msra.mxu0 %v2203_v40 }
  0x8f   : > { %1429 = vmatpush.bf16.msra.mxu1 %v2211_v41 }
  0x90   : > { %1442 = vmatpush.bf16.msra.mxu2 %v2219_v42 }
  0x91   : > { %1455 = vmatpush.bf16.msra.mxu3 %v2227_v43 }
  0x92   : > { %1417 = vmatpush.bf16.msra.mxu0 %v2202_v44 }
  0x93   : > { %1430 = vmatpush.bf16.msra.mxu1 %v2210_v45 }
  0x94   : > { %1443 = vmatpush.bf16.msra.mxu2 %v2218_v46 }
  0x95   : > { %1456 = vmatpush.bf16.msra.mxu3 %v2226_v47  ;;  %1418 = vmatmul.bf16.vlgmr.msra.gmra.mxu0 %v270_v56 }
  0x96   : > { %1462 = vmatpush.bf16.msrb.mxu0 %v2241_v48  ;;  %1431 = vmatmul.bf16.vlgmr.msra.gmra.mxu1 %v271_v58 }
  0x97   : > { %1475 = vmatpush.bf16.msrb.mxu1 %v2249_v51  ;;  %1444 = vmatmul.bf16.vlgmr.msra.gmra.mxu2 %v272_v57 }
  0x98   : > { %1488 = vmatpush.bf16.msrb.mxu2 %v2257_v54  ;;  %1457 = vmatmul.bf16.vlgmr.msra.gmra.mxu3 %v273_v59 }
  0x99   : > { %1501 = vmatpush.bf16.msrb.mxu3 %v2265_v55 }
  0x9a   : > { %1463 = vmatpush.bf16.msrb.mxu0 %v2240_v60 }
  0x9b   : > { %1476 = vmatpush.bf16.msrb.mxu1 %v2248_v61 }
  0x9c   : > { %1489 = vmatpush.bf16.msrb.mxu2 %v2256_v62 }
  0x9d   : > { %1502 = vmatpush.bf16.msrb.mxu3 %v2264_v63 }
  0x9e   : > { %1464 = vmatpush.bf16.msrb.mxu0 %v2239_v0 }
  0x9f   : > { %1477 = vmatpush.bf16.msrb.mxu1 %v2247_v1 }
  0xa0   : > { %1490 = vmatpush.bf16.msrb.mxu2 %v2255_v2 }
  0xa1   : > { %1503 = vmatpush.bf16.msrb.mxu3 %v2263_v3 }
  0xa2   : > { %1465 = vmatpush.bf16.msrb.mxu0 %v2238_v4 }
  0xa3   : > { %1478 = vmatpush.bf16.msrb.mxu1 %v2246_v5 }
  0xa4   : > { %1491 = vmatpush.bf16.msrb.mxu2 %v2254_v6 }
  0xa5   : > { %1504 = vmatpush.bf16.msrb.mxu3 %v2262_v7 }
  0xa6   : > { %1466 = vmatpush.bf16.msrb.mxu0 %v2237_v8 }
  0xa7   : > { %1479 = vmatpush.bf16.msrb.mxu1 %v2245_v9 }
  0xa8   : > { %1492 = vmatpush.bf16.msrb.mxu2 %v2253_v10 }
  0xa9   : > { %1505 = vmatpush.bf16.msrb.mxu3 %v2261_v11 }
  0xaa   : > { %1467 = vmatpush.bf16.msrb.mxu0 %v2236_v12 }
  0xab   : > { %1480 = vmatpush.bf16.msrb.mxu1 %v2244_v13 }
  0xac   : > { %1493 = vmatpush.bf16.msrb.mxu2 %v2252_v14 }
  0xad   : > { %1506 = vmatpush.bf16.msrb.mxu3 %v2260_v15 }
  0xae   : > { %1468 = vmatpush.bf16.msrb.mxu0 %v2235_v16 }
  0xaf   : > { %1481 = vmatpush.bf16.msrb.mxu1 %v2243_v17 }
  0xb0   : > { %1494 = vmatpush.bf16.msrb.mxu2 %v2251_v18 }
  0xb1   : > { %1507 = vmatpush.bf16.msrb.mxu3 %v2259_v19 }
  0xb2   : > { %1469 = vmatpush.bf16.msrb.mxu0 %v2234_v20 }
  0xb3   : > { %1482 = vmatpush.bf16.msrb.mxu1 %v2242_v21 }
  0xb4   : > { %1495 = vmatpush.bf16.msrb.mxu2 %v2250_v22 }
  0xb5   : > { %1508 = vmatpush.bf16.msrb.mxu3 %v2258_v25  ;;  %1470 = vmatmul.bf16.vlgmr.msrb.gmra.mxu0 %v274_v28 }
  0xb6   : > { %1483 = vmatmul.bf16.vlgmr.msrb.gmra.mxu1 %v275_v29 }
  0xb7   : > { %1496 = vmatmul.bf16.vlgmr.msrb.gmra.mxu2 %v276_v30 }
  0xb8   : > { %1509 = vmatmul.bf16.vlgmr.msrb.gmra.mxu3 %v277_v31 }
  0xd2   : > { %v1315_v33 = vpop.f32.mrf.mxu0 }
  0xd3   : > { %v1316_v34 = vadd.f32 %v2312_v32, %v1315_v33  ;;  %v1328_v35 = vpop.f32.mrf.mxu1 }
  0xd5   : > { %v1329_v36 = vadd.f32 %v1328_v35, %v1316_v34 }
  0xda   : > { %v1341_v37 = vpop.f32.mrf.mxu2  ;;  %v1317_v40 = vpop.f32.mrf.mxu0 }
  0xdb   : > { %v1342_v38 = vadd.f32 %v1341_v37, %v1329_v36  ;;  %v1354_v39 = vpop.f32.mrf.mxu3  ;;  %v1330_v42 = vpop.f32.mrf.mxu1 }
  0xdd   : > { %v1355_v41 = vadd.f32 %v1354_v39, %v1342_v38 }
  0xe2   : > { %v1343_v43 = vpop.f32.mrf.mxu2 }
  0xe3   : > { %v1356_v44 = vpop.f32.mrf.mxu3 }
  0xf2   : > { %v1367_v45 = vpop.f32.mrf.mxu0 }
  0xf3   : > { %v1380_v46 = vpop.f32.mrf.mxu1  ;;  %v1368_v55 = vadd.f32 %v1367_v45, %v1355_v41 }
  0xf5   : > { %v1381_v59 = vadd.f32 %v1380_v46, %v1368_v55 }
  0xfa   : > { %v1393_v47 = vpop.f32.mrf.mxu2  ;;  %v1369_v49 = vpop.f32.mrf.mxu0 }
  0xfb   : > { %v1406_v48 = vpop.f32.mrf.mxu3  ;;  %v1382_v50 = vpop.f32.mrf.mxu1  ;;  %v1394_v61 = vadd.f32 %v1393_v47, %v1381_v59 }
  0xfd   : > { %v1407_v0 = vadd.f32 %v1406_v48, %v1394_v61 }
 0x102   : > { %v1395_v51 = vpop.f32.mrf.mxu2 }
 0x103   : > { %v1408_v52 = vpop.f32.mrf.mxu3 }
 0x112   : > { %v1419_v53 = vpop.f32.mrf.mxu0 }
 0x113   : > { %v1432_v54 = vpop.f32.mrf.mxu1  ;;  %v1420_v1 = vadd.f32 %v1419_v53, %v1407_v0 }
 0x115   : > { %v1433_v2 = vadd.f32 %v1432_v54, %v1420_v1 }
 0x11a   : > { %v1445_v56 = vpop.f32.mrf.mxu2  ;;  %v1421_v58 = vpop.f32.mrf.mxu0 }
 0x11b   : > { %v1458_v57 = vpop.f32.mrf.mxu3  ;;  %v1434_v60 = vpop.f32.mrf.mxu1  ;;  %v1446_v3 = vadd.f32 %v1445_v56, %v1433_v2 }
 0x11d   : > { %v1459_v4 = vadd.f32 %v1458_v57, %v1446_v3 }
 0x122   : > { %v1447_v62 = vpop.f32.mrf.mxu2 }
 0x123   : > { %v1460_v63 = vpop.f32.mrf.mxu3 }
 0x132   : > { %v1471_v5 = vpop.f32.mrf.mxu0 }
 0x133   : > { %v1484_v6 = vpop.f32.mrf.mxu1  ;;  %v1472_v7 = vadd.f32 %v1471_v5, %v1459_v4 }
 0x135   : > { %v1485_v8 = vadd.f32 %v1484_v6, %v1472_v7 }
 0x13a   : > { %v1497_v9 = vpop.f32.mrf.mxu2  ;;  %v1473_v12 = vpop.f32.mrf.mxu0 }
 0x13b   : > { %v1510_v10 = vpop.f32.mrf.mxu3  ;;  %v1498_v11 = vadd.f32 %v1497_v9, %v1485_v8  ;;  %v1486_v13 = vpop.f32.mrf.mxu1 }
 0x13d   : > { %v1511_v14 = vadd.f32 %v1510_v10, %v1498_v11 }
 0x13f   : > { %1514 = vst [vmem:[%s245_s7] sm:$0xff] %v1511_v14 }
 0x142   : > { %v1499_v15 = vpop.f32.mrf.mxu2 }
 0x143   : > { %v1512_v16 = vpop.f32.mrf.mxu3 }
 0x144 PF: > { %p16_p8 = scmp.ge.s32.totalorder %s2457_s17, 4   ;;  %s2732_s12 = smov %s2403_s13 }
 0x145   : > { %s2733_s13 = smov %s2407_s14  ;;  %s2734_s14 = smov %s2467_s20 }
 0x146   : > { %s2735_s15 = smov %s2457_s17  ;;  %18 = sbr.rel (!%p16_p8) target bundleno = 5 (0x5), region = 88 }
 0x14b   :  { %1534 = vsyncpa [#allocation3], 1 }
 0x14c   :  { %1536 = vsyncpa [#allocation3 + $0x1], 1 }
 0x14d   :  { %1537 = vsyncpa [#allocation5], 1 }
 0x14e   :  { %1539 = vsyncpa [#allocation5 + $0x1], 1 }

// kernel: nn_planner_forward.4
= control target key start
LH: loop header
LB: loop body
LE: loop exit
PB: predicated region body
PF: predicated region fallthrough
CT: control target
= control target key end

     0   :  { %s16399_s0 = inlined_call_operand.vmem [shape: f32[8,2048], index: 0, kind: input, shape index: {}]   ;;  %s16400_s1 = inlined_call_operand.hbm [shape: bf16[5,2048,2048], index: 1, kind: input, shape index: {}]   ;;  %s16401_s2 = inlined_call_operand.hbm [shape: f32[5,1,2048], index: 2, kind: input, shape index: {}]   ;;  %s16402_s3 = inlined_call_operand.vmem [shape: f32[8,2048], index: 3, kind: output, shape index: {0}]   ;;  %s16403_s4 = inlined_call_operand.vmem [shape: f32[8,2048], index: 4, kind: output, shape index: {1}]  }
   0x1   :  { %16407 = sst [smem:[#allocation13_spill]] %s16400_s1 }
   0x2   :  { %10 = vsyncpa [#allocation5], 0 }
   0x3   :  { %12 = vsyncpa [#allocation5 + $0x1], 0 }
   0x4   :  { %13 = vsyncpa [#allocation7], 0 }
   0x5   :  { %15 = vsyncpa [#allocation7 + $0x1], 0  ;;  %s13738_s15 = smov 0   ;;  %s13740_s16 = smov 0  }
   0x6   :  { %s13742_s17 = smov 0   ;;  %s13744_s18 = smov 0  }
   0x7   :  { %s13746_s19 = smov 0   ;;  %s13748_s20 = smov 0  }
   0x8   :  { %s13750_s21 = smov 0   ;;  %s13752_s22 = smov 0  }
   0x9 LB: > { %16408 = sst [smem:[#allocation10_spill]] %s13700_s20  ;;  %s8336_s23 = sadd.s32 4294967295, %s13708_s22   ;;  %s13708_s22 = sphi %s13752_s22, %s21_s22   ;;  %s13704_s21 = sphi %s13750_s21, %s16422_s21   ;;  %s13700_s20 = sphi %s13748_s20, %s16416_s20   ;;  %s13696_s19 = sphi %s13746_s19, %s16421_s19   ;;  %s13692_s18 = sphi %s13744_s18, %s16415_s18   ;;  %s13688_s17 = sphi %s13742_s17, %s16420_s17   ;;  %s13684_s16 = sphi %s13740_s16, %s16419_s16   ;;  %s13680_s15 = sphi %s13738_s15, %s16418_s15  }
   0xa   : > { %s30_s24 = sadd.s32 1, %s13700_s20  ;;  %s33_s25 = sadd.s32 1, %s13704_s21 }
   0xb   : > { %p31_p0 = scmp.ge.s32.totalorder %s30_s24, 2  ;;  %s63_s26 = sadd.s32 1, %s13688_s17 }
   0xc   : > { %p70_p1 = scmp.ne.s32.totalorder %s13688_s17, %s13684_s16  ;;  %p71_p2 = scmp.eq.s32.totalorder %s13708_s22, 0 }
   0xd   : > { %s16424_s24 = smov (%p31_p0, %s30_s24), 0  ;;  %s16426_s25 = smov (!%p31_p0, %s33_s25), %s13704_s21 }
   0xe   : > { %16409 = sst [smem:[#allocation11_spill]] %s16424_s24  ;;  %s59_s27 = ssub.s32 %s13700_s20, %s16424_s24 }
   0xf   : > { %p35_p3 = scmp.ge.s32.totalorder %s16426_s25, 5  ;;  %p76_p4 = scmp.ne.s32.totalorder %s13684_s16, %s13680_s15 }
  0x10   : > { %p13789_p5 = por %p71_p2, %p70_p1  ;;  %p77_p6 = scmp.eq.s32.totalorder %s8336_s23, 0 }
  0x11   : > { %s16428_s25 = smov (%p35_p3, %s16426_s25), 0  ;;  %p13489_p8 = scmp.lt.s32.totalorder %s13708_s22, 10 }
  0x12   : > { %16411 = sst [smem:[#allocation12_spill]] %s16428_s25  ;;  %p13795_p7 = por %p77_p6, %p76_p4 }
  0x13   : > { %s58_s30 = ssub.s32 %s13704_s21, %s16428_s25  ;;  %s13803_s6 = sand.u32 1, %s13688_s17  }
  0x14   : > { %s60_s5 = sor.u32 %s59_s27, %s58_s30  ;;  %s8339_s7 = sshll.u32 %s13803_s6, 13 }
  0x15   : > { %p61_p9 = scmp.eq.s32.totalorder %s60_s5, 0  ;;  %s8340_s8 = sshll.u32 %s13700_s20, 3 }
  0x16   : > { %s8341_s10 = sshll.u32 %s13704_s21, 12  ;;  %s177_s12 = scalar_lea.vmem [#allocation4], %s8339_s7 }
  0x17   : > { %s13808_s9 = scalar_select %p61_p9, %s13688_s17, %s63_s26  }
  0x18   : > { %s182_s11 = sadd.s32 %s8341_s10, %s8340_s8  ;;  %s187_s13 = sshll.u32 %s177_s12, 4  ;;  %s188_s13 = int_to_ptr.vmem [resolvable:$true] %s187_s13 }
  0x19   : > { %s8342_s14 = sshll.u32 %s182_s11, 2  ;;  %s16413_s1 = sld [smem:[#allocation13_spill]] }
  0x1a   : > { %p13818_p10 = pnand %p13489_p8, %p13789_p5  ;;  %s174_s5 = scalar_lea.sflag [#allocation5], %s13803_s6 }
  0x1b   : > { %s13710_s10 = smov 1024   ;;  %s13711_s7 = smov 512  }
  0x1c   : > { %s13712_s11 = smov 32   ;;  %p8346_p11 = scmp.ge.s32.totalorder %s13708_s22, 1 }
  0x1d   : > { %p216_p12 = scmp.lt.s32.totalorder %s13708_s22, 11  ;;  %s8343_s12 = sshll.u32 %s13803_s6, 3 }
  0x1e   : > { %s8345_s28 = sshll.u32 %s13704_s21, 4  ;;  %s198_s20 = scalar_lea.sflag [#allocation7], %s13803_s6 }
  0x1f   : > { %s184_s27 = scalar_lea.hbm %s16413_s1, %s8342_s14  ;;  %p217_p13 = pnand %p8346_p11, %p216_p12 }
  0x20   : > { %s185_s26 = sshll.u32 %s184_s27, 4  ;;  %s201_s14 = scalar_lea.vmem [#allocation6], %s8343_s12  ;;  %s186_s26 = int_to_ptr.hbm [resolvable:$true] %s185_s26 }
  0x21   : > { %13485 = dma.hbm_to_vmem [thread:$0]  (!%p13818_p10), %s186_s26, 131072, %s188_s13, %s174_s5, %s13710_s10, %s13711_s7, %s13712_s11  }
  0x22   : > { %s211_s15 = sshll.u32 %s201_s14, 4  ;;  %s206_s23 = sadd.s32 %s8345_s28, %s8340_s8  ;;  %s212_s15 = int_to_ptr.vmem [resolvable:$true] %s211_s15 }
  0x23   : > { %s207_s27 = scalar_lea.hbm %s16401_s2, %s206_s23  ;;  %220 = sbr.rel (%p217_p13) target bundleno = 2128 (0x850), region = 32 }
  0x24   : > { %s209_s24 = sshll.u32 %s207_s27, 4  ;;  %s222_s13 = sand.u32 (!%p217_p13), 1, %s13684_s16   ;;  %s210_s24 = int_to_ptr.hbm [resolvable:$true] %s209_s24 }
  0x25   : > { %13488 = dma.hbm_to_vmem [thread:$0]  (!%p13818_p10), %s210_s24, 128, %s212_s15, %s198_s20  }
  0x26   : > { %s8347_s26 = sshll.u32 (!%p217_p13), %s222_s13, 13  ;;  %s223_s5 = scalar_lea.sflag (!%p217_p13), [#allocation5], %s222_s13 }
  0x27   : > { %s13836_s10 = scalar_lea.vmem (!%p217_p13), [#allocation4], %s8347_s26 }
  0x28   : > { %13671 = dma.done.wait (%p13795_p7), %s223_s5, 131072  }
  0x29   : > { %13673 = vsyncadd (%p13795_p7), %s223_s5, 4294836224  ;;  %s8348_s1 = sshll.u32 %s222_s13, 3  ;;  %s233_s25 = scalar_lea.sflag [#allocation7], %s222_s13 }
  0x2a   : > { %s13842_s8 = scalar_lea.vmem [#allocation6], %s8348_s1 }
  0x2b   : > { %13675 = dma.done.wait (%p13795_p7), %s233_s25, 128  }
  0x2c   : > { %13677 = vsyncadd (%p13795_p7), %s233_s25, 4294967168  ;;  %p264_p0 = scmp.eq.s32.totalorder %s13696_s19, 0  ;;  %p265_p1 = scmp.eq.s32.totalorder %s13692_s18, 0 }
  0x2e   : > { %p266_p2 = pnand %p265_p1, %p264_p0 }
  0x30   : > { %269 = sbr.rel (%p266_p2) target bundleno = 70 (0x46), region = 44 }
  0x35   : > { %v270_v0 = vld [vmem:[%s16399_s0] sm:$0xff]  ;;  %v271_v1 = vld [vmem:[%s16399_s0 + $0x8] sm:$0xff]  ;;  %v272_v2 = vld [vmem:[%s16399_s0 + $0x10] sm:$0xff] }
  0x36   : > { %286 = vst [vmem:[#allocation2 + $0x30] sm:$0xff] %v270_v0  ;;  %v273_v3 = vld [vmem:[%s16399_s0 + $0x18] sm:$0xff]  ;;  %v274_v4 = vld [vmem:[%s16399_s0 + $0x20] sm:$0xff]  ;;  %v275_v5 = vld [vmem:[%s16399_s0 + $0x28] sm:$0xff] }
  0x37   : > { %287 = vst [vmem:[#allocation2] sm:$0xff] %v271_v1  ;;  %v276_v6 = vld [vmem:[%s16399_s0 + $0x30] sm:$0xff]  ;;  %v277_v7 = vld [vmem:[%s16399_s0 + $0x38] sm:$0xff]  ;;  %v278_v8 = vld [vmem:[%s16399_s0 + $0x40] sm:$0xff] }
  0x38   : > { %288 = vst [vmem:[#allocation2 + $0x58] sm:$0xff] %v272_v2  ;;  %v279_v9 = vld [vmem:[%s16399_s0 + $0x48] sm:$0xff]  ;;  %v280_v10 = vld [vmem:[%s16399_s0 + $0x50] sm:$0xff]  ;;  %v281_v11 = vld [vmem:[%s16399_s0 + $0x58] sm:$0xff] }
  0x39   : > { %289 = vst [vmem:[#allocation2 + $0x18] sm:$0xff] %v273_v3  ;;  %v282_v12 = vld [vmem:[%s16399_s0 + $0x60] sm:$0xff]  ;;  %v283_v13 = vld [vmem:[%s16399_s0 + $0x68] sm:$0xff]  ;;  %v284_v14 = vld [vmem:[%s16399_s0 + $0x70] sm:$0xff] }
  0x3a   : > { %290 = vst [vmem:[#allocation2 + $0x50] sm:$0xff] %v274_v4  ;;  %v285_v15 = vld [vmem:[%s16399_s0 + $0x78] sm:$0xff] }
  0x3b   : > { %291 = vst [vmem:[#allocation2 + $0x68] sm:$0xff] %v275_v5 }
  0x3c   : > { %292 = vst [vmem:[#allocation2 + $0x8] sm:$0xff] %v276_v6 }
  0x3d   : > { %293 = vst [vmem:[#allocation2 + $0x48] sm:$0xff] %v277_v7 }
  0x3e   : > { %294 = vst [vmem:[#allocation2 + $0x40] sm:$0xff] %v278_v8 }
  0x3f   : > { %295 = vst [vmem:[#allocation2 + $0x20] sm:$0xff] %v279_v9 }
  0x40   : > { %296 = vst [vmem:[#allocation2 + $0x10] sm:$0xff] %v280_v10 }
  0x41   : > { %297 = vst [vmem:[#allocation2 + $0x38] sm:$0xff] %v281_v11 }
  0x42   : > { %298 = vst [vmem:[#allocation2 + $0x60] sm:$0xff] %v282_v12 }
  0x43   : > { %299 = vst [vmem:[#allocation2 + $0x70] sm:$0xff] %v283_v13 }
  0x44   : > { %300 = vst [vmem:[#allocation2 + $0x78] sm:$0xff] %v284_v14 }
  0x45   : > { %301 = vst [vmem:[#allocation2 + $0x28] sm:$0xff] %v285_v15 }
  0x46 PF: > { %v8575_v16 = vld [vmem:[%s13836_s10 + $0x1c0] sm:$0xf]  ;;  %s12445_s26 = sshll.u32 %s13692_s18, 10  ;;  %p12447_p3 = scmp.ne.s32.totalorder %s13696_s19, 3 }
  0x47   : > { %v12514_v17 = vld [vmem:[%s13836_s10 + $0x1dc] sm:$0xf0]  ;;  %s8169_s5 = sshra.s32 %s12445_s26, 7 }
  0x48   : > { %v8831_v18 = vld [vmem:[%s13836_s10 + $0x3c0] sm:$0xf]  ;;  %v8576_v19 = vor.u32 %v12514_v17, %v8575_v16  ;;  %s14563_s1 = sshll.u32 %s8169_s5, 3 }
  0x49   : > { %v12578_v20 = vld [vmem:[%s13836_s10 + $0x3dc] sm:$0xf0]  ;;  %s14592_s25 = scalar_lea.vmem [#allocation3], %s14563_s1  ;;  %s8186_s20 = scalar_lea.vmem (!%p12447_p3), %s16402_s3, %s14563_s1 }
  0x4a   : > { %v9087_v21 = vld [vmem:[%s13836_s10 + $0x5c0] sm:$0xf]  ;;  %v8832_v23 = vor.u32 %v12578_v20, %v8831_v18  ;;  %6496 = vmatpush.bf16.msra.mxu0 %v8576_v19 }
  0x4b   : > { %v12642_v22 = vld [vmem:[%s13836_s10 + $0x5dc] sm:$0xf0] }
  0x4c   : > { %v9088_v24 = vor.u32 %v12642_v22, %v9087_v21  ;;  %v9343_v25 = vld [vmem:[%s13836_s10 + $0x7c0] sm:$0xf]  ;;  %6509 = vmatpush.bf16.msra.mxu1 %v8832_v23 }
  0x4d   : > { %v12706_v26 = vld [vmem:[%s13836_s10 + $0x7dc] sm:$0xf0] }
  0x4e   : > { %v8543_v27 = vld [vmem:[%s13836_s10 + $0x180] sm:$0xf]  ;;  %v9344_v28 = vor.u32 %v12706_v26, %v9343_v25  ;;  %6522 = vmatpush.bf16.msra.mxu2 %v9088_v24 }
  0x4f   : > { %v12506_v29 = vld [vmem:[%s13836_s10 + $0x19c] sm:$0xf0] }
  0x50   : > { %v8799_v30 = vld [vmem:[%s13836_s10 + $0x380] sm:$0xf]  ;;  %v8544_v32 = vor.u32 %v12506_v29, %v8543_v27  ;;  %6535 = vmatpush.bf16.msra.mxu3 %v9344_v28 }
  0x51   : > { %v12570_v31 = vld [vmem:[%s13836_s10 + $0x39c] sm:$0xf0] }
  0x52   : > { %v8800_v33 = vor.u32 %v12570_v31, %v8799_v30  ;;  %v9055_v34 = vld [vmem:[%s13836_s10 + $0x580] sm:$0xf]  ;;  %6497 = vmatpush.bf16.msra.mxu0 %v8544_v32 }
  0x53   : > { %v12634_v35 = vld [vmem:[%s13836_s10 + $0x59c] sm:$0xf0] }
  0x54   : > { %v9311_v36 = vld [vmem:[%s13836_s10 + $0x780] sm:$0xf]  ;;  %v9056_v37 = vor.u32 %v12634_v35, %v9055_v34  ;;  %6510 = vmatpush.bf16.msra.mxu1 %v8800_v33 }
  0x55   : > { %v12698_v38 = vld [vmem:[%s13836_s10 + $0x79c] sm:$0xf0] }
  0x56   : > { %v8511_v39 = vld [vmem:[%s13836_s10 + $0x140] sm:$0xf]  ;;  %v9312_v41 = vor.u32 %v12698_v38, %v9311_v36  ;;  %6523 = vmatpush.bf16.msra.mxu2 %v9056_v37 }
  0x57   : > { %v12498_v40 = vld [vmem:[%s13836_s10 + $0x15c] sm:$0xf0] }
  0x58   : > { %v8767_v42 = vld [vmem:[%s13836_s10 + $0x340] sm:$0xf]  ;;  %v8512_v45 = vor.u32 %v12498_v40, %v8511_v39  ;;  %6536 = vmatpush.bf16.msra.mxu3 %v9312_v41 }
  0x59   : > { %v12562_v43 = vld [vmem:[%s13836_s10 + $0x35c] sm:$0xf0] }
  0x5a   : > { %v9023_v44 = vld [vmem:[%s13836_s10 + $0x540] sm:$0xf]  ;;  %v8768_v49 = vor.u32 %v12562_v43, %v8767_v42  ;;  %6498 = vmatpush.bf16.msra.mxu0 %v8512_v45 }
  0x5b   : > { %v12626_v46 = vld [vmem:[%s13836_s10 + $0x55c] sm:$0xf0] }
  0x5c   : > { %v9279_v47 = vld [vmem:[%s13836_s10 + $0x740] sm:$0xf]  ;;  %v9024_v50 = vor.u32 %v12626_v46, %v9023_v44  ;;  %6511 = vmatpush.bf16.msra.mxu1 %v8768_v49 }
  0x5d   : > { %v12690_v48 = vld [vmem:[%s13836_s10 + $0x75c] sm:$0xf0] }
  0x5e   : > { %v8479_v51 = vld [vmem:[%s13836_s10 + $0x100] sm:$0xf]  ;;  %v9280_v54 = vor.u32 %v12690_v48, %v9279_v47  ;;  %6524 = vmatpush.bf16.msra.mxu2 %v9024_v50 }
  0x5f   : > { %v12490_v52 = vld [vmem:[%s13836_s10 + $0x11c] sm:$0xf0] }
  0x60   : > { %v8735_v53 = vld [vmem:[%s13836_s10 + $0x300] sm:$0xf]  ;;  %v8480_v60 = vor.u32 %v12490_v52, %v8479_v51  ;;  %6537 = vmatpush.bf16.msra.mxu3 %v9280_v54 }
  0x61   : > { %v12554_v55 = vld [vmem:[%s13836_s10 + $0x31c] sm:$0xf0] }
  0x62   : > { %v8991_v56 = vld [vmem:[%s13836_s10 + $0x500] sm:$0xf]  ;;  %v8736_v61 = vor.u32 %v12554_v55, %v8735_v53  ;;  %6499 = vmatpush.bf16.msra.mxu0 %v8480_v60 }
  0x63   : > { %v12618_v57 = vld [vmem:[%s13836_s10 + $0x51c] sm:$0xf0] }
  0x64   : > { %v9247_v58 = vld [vmem:[%s13836_s10 + $0x700] sm:$0xf]  ;;  %v8992_v62 = vor.u32 %v12618_v57, %v8991_v56  ;;  %6512 = vmatpush.bf16.msra.mxu1 %v8736_v61 }
  0x65   : > { %v12682_v59 = vld [vmem:[%s13836_s10 + $0x71c] sm:$0xf0] }
  0x66   : > { %v8447_v63 = vld [vmem:[%s13836_s10 + $0xc0] sm:$0xf]  ;;  %v9248_v2 = vor.u32 %v12682_v59, %v9247_v58  ;;  %6525 = vmatpush.bf16.msra.mxu2 %v8992_v62 }
  0x67   : > { %v12482_v0 = vld [vmem:[%s13836_s10 + $0xdc] sm:$0xf0] }
  0x68   : > { %v8703_v1 = vld [vmem:[%s13836_s10 + $0x2c0] sm:$0xf]  ;;  %v8448_v8 = vor.u32 %v12482_v0, %v8447_v63  ;;  %6538 = vmatpush.bf16.msra.mxu3 %v9248_v2 }
  0x69   : > { %v12546_v3 = vld [vmem:[%s13836_s10 + $0x2dc] sm:$0xf0] }
  0x6a   : > { %v8959_v4 = vld [vmem:[%s13836_s10 + $0x4c0] sm:$0xf]  ;;  %v8704_v9 = vor.u32 %v12546_v3, %v8703_v1  ;;  %6500 = vmatpush.bf16.msra.mxu0 %v8448_v8 }
  0x6b   : > { %v12610_v5 = vld [vmem:[%s13836_s10 + $0x4dc] sm:$0xf0] }
  0x6c   : > { %v9215_v6 = vld [vmem:[%s13836_s10 + $0x6c0] sm:$0xf]  ;;  %v8960_v10 = vor.u32 %v12610_v5, %v8959_v4  ;;  %6513 = vmatpush.bf16.msra.mxu1 %v8704_v9 }
  0x6d   : > { %v12674_v7 = vld [vmem:[%s13836_s10 + $0x6dc] sm:$0xf0] }
  0x6e   : > { %v8415_v11 = vld [vmem:[%s13836_s10 + $0x80] sm:$0xf]  ;;  %v9216_v14 = vor.u32 %v12674_v7, %v9215_v6  ;;  %6526 = vmatpush.bf16.msra.mxu2 %v8960_v10 }
  0x6f   : > { %v12474_v12 = vld [vmem:[%s13836_s10 + $0x9c] sm:$0xf0] }
  0x70   : > { %v8671_v13 = vld [vmem:[%s13836_s10 + $0x280] sm:$0xf]  ;;  %v8416_v20 = vor.u32 %v12474_v12, %v8415_v11  ;;  %6539 = vmatpush.bf16.msra.mxu3 %v9216_v14 }
  0x71   : > { %v12538_v15 = vld [vmem:[%s13836_s10 + $0x29c] sm:$0xf0] }
  0x72   : > { %v8927_v16 = vld [vmem:[%s13836_s10 + $0x480] sm:$0xf]  ;;  %v8672_v21 = vor.u32 %v12538_v15, %v8671_v13  ;;  %6501 = vmatpush.bf16.msra.mxu0 %v8416_v20  ;;  %v302_v20 = vld [vmem:[#allocation2 + $0x30] sm:$0xff] }
  0x73   : > { %v12602_v17 = vld [vmem:[%s13836_s10 + $0x49c] sm:$0xf0] }
  0x74   : > { %v9183_v18 = vld [vmem:[%s13836_s10 + $0x680] sm:$0xf]  ;;  %v8928_v22 = vor.u32 %v12602_v17, %v8927_v16  ;;  %6514 = vmatpush.bf16.msra.mxu1 %v8672_v21 }
  0x75   : > { %v12666_v19 = vld [vmem:[%s13836_s10 + $0x69c] sm:$0xf0] }
  0x76   : > { %v8383_v23 = vld [vmem:[%s13836_s10 + $0x40] sm:$0xf]  ;;  %v9184_v26 = vor.u32 %v12666_v19, %v9183_v18  ;;  %6527 = vmatpush.bf16.msra.mxu2 %v8928_v22  ;;  %v304_v19 = vld [vmem:[#allocation2 + $0x58] sm:$0xff] }
  0x77   : > { %v12466_v24 = vld [vmem:[%s13836_s10 + $0x5c] sm:$0xf0] }
  0x78   : > { %v8639_v25 = vld [vmem:[%s13836_s10 + $0x240] sm:$0xf]  ;;  %v8384_v32 = vor.u32 %v12466_v24, %v8383_v23  ;;  %6540 = vmatpush.bf16.msra.mxu3 %v9184_v26  ;;  %v13989_v24 = vpack.c.bf16 %v304_v19, %v304_v19  ;;  %v305_v26 = vld [vmem:[#allocation2 + $0x18] sm:$0xff] }
  0x79   : > { %v12530_v27 = vld [vmem:[%s13836_s10 + $0x25c] sm:$0xf0] }
  0x7a   : > { %v8895_v28 = vld [vmem:[%s13836_s10 + $0x440] sm:$0xf]  ;;  %v8640_v35 = vor.u32 %v12530_v27, %v8639_v25  ;;  %6502 = vmatpush.bf16.msra.mxu0 %v8384_v32  ;;  %v13991_v25 = vpack.c.bf16 %v302_v20, %v302_v20 }
  0x7b   : > { %v12594_v29 = vld [vmem:[%s13836_s10 + $0x45c] sm:$0xf0] }
  0x7c   : > { %v9151_v30 = vld [vmem:[%s13836_s10 + $0x640] sm:$0xf]  ;;  %v8896_v36 = vor.u32 %v12594_v29, %v8895_v28  ;;  %6515 = vmatpush.bf16.msra.mxu1 %v8640_v35 }
  0x7d   : > { %v12658_v31 = vld [vmem:[%s13836_s10 + $0x65c] sm:$0xf0] }
  0x7e   : > { %v8351_v33 = vld [vmem:[%s13836_s10] sm:$0xf]  ;;  %v9152_v40 = vor.u32 %v12658_v31, %v9151_v30  ;;  %6528 = vmatpush.bf16.msra.mxu2 %v8896_v36  ;;  %v13996_v31 = vpack.c.bf16 %v305_v26, %v305_v26 }
  0x7f   : > { %v12458_v34 = vld [vmem:[%s13836_s10 + $0x1c] sm:$0xf0] }
  0x80   : > { %v8607_v37 = vld [vmem:[%s13836_s10 + $0x200] sm:$0xf]  ;;  %v8352_v47 = vor.u32 %v12458_v34, %v8351_v33  ;;  %6541 = vmatpush.bf16.msra.mxu3 %v9152_v40 }
  0x81   : > { %v12522_v38 = vld [vmem:[%s13836_s10 + $0x21c] sm:$0xf0] }
  0x82   : > { %v8863_v39 = vld [vmem:[%s13836_s10 + $0x400] sm:$0xf]  ;;  %v8608_v51 = vor.u32 %v12522_v38, %v8607_v37  ;;  %6503 = vmatpush.bf16.msra.mxu0 %v8352_v47 }
  0x83   : > { %v12586_v41 = vld [vmem:[%s13836_s10 + $0x41c] sm:$0xf0] }
  0x84   : > { %v9119_v42 = vld [vmem:[%s13836_s10 + $0x600] sm:$0xf]  ;;  %v8864_v52 = vor.u32 %v12586_v41, %v8863_v39  ;;  %6516 = vmatpush.bf16.msra.mxu1 %v8608_v51 }
  0x85   : > { %v12650_v43 = vld [vmem:[%s13836_s10 + $0x61c] sm:$0xf0]  ;;  %6504 = vmatmul.bf16.vlgmr.msra.gmra.mxu0 %v13991_v25 }
  0x86   : > { %v9599_v44 = vld [vmem:[%s13836_s10 + $0x9c0] sm:$0xf]  ;;  %v9120_v55 = vor.u32 %v12650_v43, %v9119_v42  ;;  %6529 = vmatpush.bf16.msra.mxu2 %v8864_v52 }
  0x87   : > { %v12770_v45 = vld [vmem:[%s13836_s10 + $0x9dc] sm:$0xf0] }
  0x88   : > { %v9855_v46 = vld [vmem:[%s13836_s10 + $0xbc0] sm:$0xf]  ;;  %v9600_v56 = vor.u32 %v12770_v45, %v9599_v44  ;;  %6542 = vmatpush.bf16.msra.mxu3 %v9120_v55 }
  0x89   : > { %v12834_v48 = vld [vmem:[%s13836_s10 + $0xbdc] sm:$0xf0]  ;;  %6530 = vmatmul.bf16.vlgmr.msra.gmra.mxu2 %v13989_v24 }
  0x8a   : > { %v10111_v49 = vld [vmem:[%s13836_s10 + $0xdc0] sm:$0xf]  ;;  %v9856_v57 = vor.u32 %v12834_v48, %v9855_v46  ;;  %6548 = vmatpush.bf16.msrb.mxu0 %v9600_v56 }
  0x8b   : > { %v12898_v50 = vld [vmem:[%s13836_s10 + $0xddc] sm:$0xf0]  ;;  %6543 = vmatmul.bf16.vlgmr.msra.gmra.mxu3 %v13996_v31 }
  0x8c   : > { %v10367_v53 = vld [vmem:[%s13836_s10 + $0xfc0] sm:$0xf]  ;;  %v10112_v58 = vor.u32 %v12898_v50, %v10111_v49  ;;  %6561 = vmatpush.bf16.msrb.mxu1 %v9856_v57 }
  0x8d   : > { %v12962_v54 = vld [vmem:[%s13836_s10 + $0xfdc] sm:$0xf0] }
  0x8e   : > { %v9567_v59 = vld [vmem:[%s13836_s10 + $0x980] sm:$0xf]  ;;  %v10368_v62 = vor.u32 %v12962_v54, %v10367_v53  ;;  %6574 = vmatpush.bf16.msrb.mxu2 %v10112_v58 }
  0x8f   : > { %v12762_v60 = vld [vmem:[%s13836_s10 + $0x99c] sm:$0xf0] }
  0x90   : > { %v9823_v61 = vld [vmem:[%s13836_s10 + $0xb80] sm:$0xf]  ;;  %v9568_v4 = vor.u32 %v12762_v60, %v9567_v59  ;;  %6587 = vmatpush.bf16.msrb.mxu3 %v10368_v62 }
  0x91   : > { %v12826_v63 = vld [vmem:[%s13836_s10 + $0xb9c] sm:$0xf0] }
  0x92   : > { %v10079_v0 = vld [vmem:[%s13836_s10 + $0xd80] sm:$0xf]  ;;  %v9824_v6 = vor.u32 %v12826_v63, %v9823_v61  ;;  %6549 = vmatpush.bf16.msrb.mxu0 %v9568_v4 }
  0x93   : > { %v12890_v1 = vld [vmem:[%s13836_s10 + $0xd9c] sm:$0xf0] }
  0x94   : > { %v10335_v2 = vld [vmem:[%s13836_s10 + $0xf80] sm:$0xf]  ;;  %v10080_v7 = vor.u32 %v12890_v1, %v10079_v0  ;;  %6562 = vmatpush.bf16.msrb.mxu1 %v9824_v6 }
  0x95   : > { %v12954_v3 = vld [vmem:[%s13836_s10 + $0xf9c] sm:$0xf0] }
  0x96   : > { %v9535_v5 = vld [vmem:[%s13836_s10 + $0x940] sm:$0xf]  ;;  %v10336_v11 = vor.u32 %v12954_v3, %v10335_v2  ;;  %6575 = vmatpush.bf16.msrb.mxu2 %v10080_v7 }
  0x97   : > { %v12754_v8 = vld [vmem:[%s13836_s10 + $0x95c] sm:$0xf0] }
  0x98   : > { %v9791_v9 = vld [vmem:[%s13836_s10 + $0xb40] sm:$0xf]  ;;  %v9536_v16 = vor.u32 %v12754_v8, %v9535_v5  ;;  %6588 = vmatpush.bf16.msrb.mxu3 %v10336_v11 }
  0x99   : > { %v12818_v10 = vld [vmem:[%s13836_s10 + $0xb5c] sm:$0xf0] }
  0x9a   : > { %v10047_v12 = vld [vmem:[%s13836_s10 + $0xd40] sm:$0xf]  ;;  %v9792_v17 = vor.u32 %v12818_v10, %v9791_v9  ;;  %6550 = vmatpush.bf16.msrb.mxu0 %v9536_v16 }
  0x9b   : > { %v12882_v13 = vld [vmem:[%s13836_s10 + $0xd5c] sm:$0xf0] }
  0x9c   : > { %v10303_v14 = vld [vmem:[%s13836_s10 + $0xf40] sm:$0xf]  ;;  %v10048_v21 = vor.u32 %v12882_v13, %v10047_v12  ;;  %6563 = vmatpush.bf16.msrb.mxu1 %v9792_v17 }
  0x9d   : > { %v12946_v15 = vld [vmem:[%s13836_s10 + $0xf5c] sm:$0xf0] }
  0x9e   : > { %v9503_v18 = vld [vmem:[%s13836_s10 + $0x900] sm:$0xf]  ;;  %v10304_v27 = vor.u32 %v12946_v15, %v10303_v14  ;;  %6576 = vmatpush.bf16.msrb.mxu2 %v10048_v21 }
  0x9f   : > { %v12746_v22 = vld [vmem:[%s13836_s10 + $0x91c] sm:$0xf0] }
  0xa0   : > { %v9759_v23 = vld [vmem:[%s13836_s10 + $0xb00] sm:$0xf]  ;;  %v9504_v34 = vor.u32 %v12746_v22, %v9503_v18  ;;  %6589 = vmatpush.bf16.msrb.mxu3 %v10304_v27 }
  0xa1   : > { %v12810_v28 = vld [vmem:[%s13836_s10 + $0xb1c] sm:$0xf0] }
  0xa2   : > { %v10015_v29 = vld [vmem:[%s13836_s10 + $0xd00] sm:$0xf]  ;;  %v9760_v36 = vor.u32 %v12810_v28, %v9759_v23  ;;  %6551 = vmatpush.bf16.msrb.mxu0 %v9504_v34  ;;  %v308_v34 = vld [vmem:[#allocation2 + $0x8] sm:$0xff] }
  0xa3   : > { %v12874_v30 = vld [vmem:[%s13836_s10 + $0xd1c] sm:$0xf0] }
  0xa4   : > { %v10271_v32 = vld [vmem:[%s13836_s10 + $0xf00] sm:$0xf]  ;;  %v10016_v37 = vor.u32 %v12874_v30, %v10015_v29  ;;  %6564 = vmatpush.bf16.msrb.mxu1 %v9760_v36 }
  0xa5   : > { %v12938_v33 = vld [vmem:[%s13836_s10 + $0xf1c] sm:$0xf0] }
  0xa6   : > { %v303_v35 = vld [vmem:[#allocation2] sm:$0xff]  ;;  %v10272_v42 = vor.u32 %v12938_v33, %v10271_v32  ;;  %6577 = vmatpush.bf16.msrb.mxu2 %v10016_v37 }
  0xa7   : > { %v9471_v38 = vld [vmem:[%s13836_s10 + $0x8c0] sm:$0xf]  ;;  %v14006_v41 = vpack.c.bf16 %v303_v35, %v303_v35 }
  0xa8   : > { %v12738_v39 = vld [vmem:[%s13836_s10 + $0x8dc] sm:$0xf0]  ;;  %6590 = vmatpush.bf16.msrb.mxu3 %v10272_v42 }
  0xa9   : > { %v9727_v40 = vld [vmem:[%s13836_s10 + $0xac0] sm:$0xf]  ;;  %6517 = vmatmul.bf16.vlgmr.msra.gmra.mxu1 %v14006_v41  ;;  %v9472_v48 = vor.u32 %v12738_v39, %v9471_v38  ;;  %v306_v38 = vld [vmem:[#allocation2 + $0x50] sm:$0xff]  ;;  %v309_v39 = vld [vmem:[#allocation2 + $0x48] sm:$0xff] }
  0xaa   : > { %v12802_v43 = vld [vmem:[%s13836_s10 + $0xadc] sm:$0xf0] }
  0xab   : > { %v9983_v44 = vld [vmem:[%s13836_s10 + $0xcc0] sm:$0xf]  ;;  %v9728_v49 = vor.u32 %v12802_v43, %v9727_v40  ;;  %6552 = vmatpush.bf16.msrb.mxu0 %v9472_v48 }
  0xac   : > { %v12866_v45 = vld [vmem:[%s13836_s10 + $0xcdc] sm:$0xf0] }
  0xad   : > { %v10239_v46 = vld [vmem:[%s13836_s10 + $0xec0] sm:$0xf]  ;;  %v9984_v50 = vor.u32 %v12866_v45, %v9983_v44  ;;  %6565 = vmatpush.bf16.msrb.mxu1 %v9728_v49  ;;  %v307_v45 = vld [vmem:[#allocation2 + $0x68] sm:$0xff] }
  0xae   : > { %v12930_v47 = vld [vmem:[%s13836_s10 + $0xedc] sm:$0xf0] }
  0xaf   : > { %v9439_v51 = vld [vmem:[%s13836_s10 + $0x880] sm:$0xf]  ;;  %v10240_v54 = vor.u32 %v12930_v47, %v10239_v46  ;;  %6578 = vmatpush.bf16.msrb.mxu2 %v9984_v50  ;;  %v14052_v50 = vpack.c.bf16 %v308_v34, %v308_v34 }
  0xb0   : > { %v12730_v52 = vld [vmem:[%s13836_s10 + $0x89c] sm:$0xf0] }
  0xb1   : > { %v9695_v53 = vld [vmem:[%s13836_s10 + $0xa80] sm:$0xf]  ;;  %v9440_v60 = vor.u32 %v12730_v52, %v9439_v51  ;;  %6591 = vmatpush.bf16.msrb.mxu3 %v10240_v54  ;;  %v14058_v54 = vpack.c.bf16 %v309_v39, %v309_v39 }
  0xb2   : > { %v12794_v55 = vld [vmem:[%s13836_s10 + $0xa9c] sm:$0xf0] }
  0xb3   : > { %v9951_v56 = vld [vmem:[%s13836_s10 + $0xc80] sm:$0xf]  ;;  %v9696_v61 = vor.u32 %v12794_v55, %v9695_v53  ;;  %6553 = vmatpush.bf16.msrb.mxu0 %v9440_v60  ;;  %v14056_v53 = vpack.c.bf16 %v306_v38, %v306_v38 }
  0xb4   : > { %v12858_v57 = vld [vmem:[%s13836_s10 + $0xc9c] sm:$0xf0] }
  0xb5   : > { %v10207_v58 = vld [vmem:[%s13836_s10 + $0xe80] sm:$0xf]  ;;  %v9952_v62 = vor.u32 %v12858_v57, %v9951_v56  ;;  %6566 = vmatpush.bf16.msrb.mxu1 %v9696_v61  ;;  %v14060_v56 = vpack.c.bf16 %v307_v45, %v307_v45 }
  0xb6   : > { %v12922_v59 = vld [vmem:[%s13836_s10 + $0xe9c] sm:$0xf0] }
  0xb7   : > { %v9407_v63 = vld [vmem:[%s13836_s10 + $0x840] sm:$0xf]  ;;  %v10208_v2 = vor.u32 %v12922_v59, %v10207_v58  ;;  %6579 = vmatpush.bf16.msrb.mxu2 %v9952_v62 }
  0xb8   : > { %v12722_v0 = vld [vmem:[%s13836_s10 + $0x85c] sm:$0xf0] }
  0xb9   : > { %v9663_v1 = vld [vmem:[%s13836_s10 + $0xa40] sm:$0xf]  ;;  %v9408_v8 = vor.u32 %v12722_v0, %v9407_v63  ;;  %6592 = vmatpush.bf16.msrb.mxu3 %v10208_v2 }
  0xba   : > { %v12786_v3 = vld [vmem:[%s13836_s10 + $0xa5c] sm:$0xf0] }
  0xbb   : > { %v9919_v4 = vld [vmem:[%s13836_s10 + $0xc40] sm:$0xf]  ;;  %v9664_v11 = vor.u32 %v12786_v3, %v9663_v1  ;;  %6554 = vmatpush.bf16.msrb.mxu0 %v9408_v8 }
  0xbc   : > { %v12850_v5 = vld [vmem:[%s13836_s10 + $0xc5c] sm:$0xf0] }
  0xbd   : > { %v10175_v6 = vld [vmem:[%s13836_s10 + $0xe40] sm:$0xf]  ;;  %v9920_v12 = vor.u32 %v12850_v5, %v9919_v4  ;;  %6567 = vmatpush.bf16.msrb.mxu1 %v9664_v11 }
  0xbe   : > { %v12914_v7 = vld [vmem:[%s13836_s10 + $0xe5c] sm:$0xf0] }
  0xbf   : > { %v9375_v9 = vld [vmem:[%s13836_s10 + $0x800] sm:$0xf]  ;;  %v10176_v16 = vor.u32 %v12914_v7, %v10175_v6  ;;  %6580 = vmatpush.bf16.msrb.mxu2 %v9920_v12 }
  0xc0   : > { %v12714_v10 = vld [vmem:[%s13836_s10 + $0x81c] sm:$0xf0] }
  0xc1   : > { %v9631_v13 = vld [vmem:[%s13836_s10 + $0xa00] sm:$0xf]  ;;  %v9376_v23 = vor.u32 %v12714_v10, %v9375_v9  ;;  %6593 = vmatpush.bf16.msrb.mxu3 %v10176_v16 }
  0xc2   : > { %v12778_v14 = vld [vmem:[%s13836_s10 + $0xa1c] sm:$0xf0] }
  0xc3   : > { %v9887_v15 = vld [vmem:[%s13836_s10 + $0xc00] sm:$0xf]  ;;  %v9632_v29 = vor.u32 %v12778_v14, %v9631_v13  ;;  %6555 = vmatpush.bf16.msrb.mxu0 %v9376_v23 }
  0xc4   : > { %v12842_v17 = vld [vmem:[%s13836_s10 + $0xc1c] sm:$0xf0] }
  0xc5   : > { %v10143_v18 = vld [vmem:[%s13836_s10 + $0xe00] sm:$0xf]  ;;  %v9888_v30 = vor.u32 %v12842_v17, %v9887_v15  ;;  %6568 = vmatpush.bf16.msrb.mxu1 %v9632_v29 }
  0xc6   : > { %v12906_v19 = vld [vmem:[%s13836_s10 + $0xe1c] sm:$0xf0]  ;;  %6556 = vmatmul.bf16.vlgmr.msrb.gmra.mxu0 %v14056_v53 }
  0xc7   : > { %v10623_v20 = vld [vmem:[%s13836_s10 + $0x11c0] sm:$0xf]  ;;  %v10144_v35 = vor.u32 %v12906_v19, %v10143_v18  ;;  %6581 = vmatpush.bf16.msrb.mxu2 %v9888_v30 }
  0xc8   : > { %v13026_v21 = vld [vmem:[%s13836_s10 + $0x11dc] sm:$0xf0]  ;;  %6569 = vmatmul.bf16.vlgmr.msrb.gmra.mxu1 %v14060_v56 }
  0xc9   : > { %v10879_v22 = vld [vmem:[%s13836_s10 + $0x13c0] sm:$0xf]  ;;  %v10624_v36 = vor.u32 %v13026_v21, %v10623_v20  ;;  %6594 = vmatpush.bf16.msrb.mxu3 %v10144_v35 }
  0xca   : > { %v13090_v26 = vld [vmem:[%s13836_s10 + $0x13dc] sm:$0xf0]  ;;  %6582 = vmatmul.bf16.vlgmr.msrb.gmra.mxu2 %v14052_v50 }
  0xcb   : > { %v11135_v27 = vld [vmem:[%s13836_s10 + $0x15c0] sm:$0xf]  ;;  %v10880_v40 = vor.u32 %v13090_v26, %v10879_v22  ;;  %6600 = vmatpush.bf16.msra.mxu0 %v10624_v36 }
  0xcc   : > { %v13154_v28 = vld [vmem:[%s13836_s10 + $0x15dc] sm:$0xf0]  ;;  %6595 = vmatmul.bf16.vlgmr.msrb.gmra.mxu3 %v14058_v54 }
  0xcd   : > { %v11391_v32 = vld [vmem:[%s13836_s10 + $0x17c0] sm:$0xf]  ;;  %v11136_v42 = vor.u32 %v13154_v28, %v11135_v27  ;;  %6613 = vmatpush.bf16.msra.mxu1 %v10880_v40 }
  0xce   : > { %v13218_v33 = vld [vmem:[%s13836_s10 + $0x17dc] sm:$0xf0] }
  0xcf   : > { %v10591_v37 = vld [vmem:[%s13836_s10 + $0x1180] sm:$0xf]  ;;  %v11392_v46 = vor.u32 %v13218_v33, %v11391_v32  ;;  %6626 = vmatpush.bf16.msra.mxu2 %v11136_v42 }
  0xd0   : > { %v13018_v43 = vld [vmem:[%s13836_s10 + $0x119c] sm:$0xf0] }
  0xd1   : > { %v10847_v44 = vld [vmem:[%s13836_s10 + $0x1380] sm:$0xf]  ;;  %v10592_v55 = vor.u32 %v13018_v43, %v10591_v37  ;;  %6639 = vmatpush.bf16.msra.mxu3 %v11392_v46 }
  0xd2   : > { %v13082_v47 = vld [vmem:[%s13836_s10 + $0x139c] sm:$0xf0] }
  0xd3   : > { %v11103_v48 = vld [vmem:[%s13836_s10 + $0x1580] sm:$0xf]  ;;  %v10848_v57 = vor.u32 %v13082_v47, %v10847_v44  ;;  %6601 = vmatpush.bf16.msra.mxu0 %v10592_v55 }
  0xd4   : > { %v13146_v49 = vld [vmem:[%s13836_s10 + $0x159c] sm:$0xf0] }
  0xd5   : > { %v11359_v51 = vld [vmem:[%s13836_s10 + $0x1780] sm:$0xf]  ;;  %v11104_v58 = vor.u32 %v13146_v49, %v11103_v48  ;;  %6614 = vmatpush.bf16.msra.mxu1 %v10848_v57 }
  0xd6   : > { %v13210_v52 = vld [vmem:[%s13836_s10 + $0x179c] sm:$0xf0] }
  0xd7   : > { %v10559_v59 = vld [vmem:[%s13836_s10 + $0x1140] sm:$0xf]  ;;  %v11360_v62 = vor.u32 %v13210_v52, %v11359_v51  ;;  %6627 = vmatpush.bf16.msra.mxu2 %v11104_v58 }
  0xd8   : > { %v13010_v60 = vld [vmem:[%s13836_s10 + $0x115c] sm:$0xf0] }
  0xd9   : > { %v10815_v61 = vld [vmem:[%s13836_s10 + $0x1340] sm:$0xf]  ;;  %v10560_v4 = vor.u32 %v13010_v60, %v10559_v59  ;;  %6640 = vmatpush.bf16.msra.mxu3 %v11360_v62 }
  0xda   : > { %v13074_v63 = vld [vmem:[%s13836_s10 + $0x135c] sm:$0xf0] }
  0xdb   : > { %v11071_v0 = vld [vmem:[%s13836_s10 + $0x1540] sm:$0xf]  ;;  %v10816_v5 = vor.u32 %v13074_v63, %v10815_v61  ;;  %6602 = vmatpush.bf16.msra.mxu0 %v10560_v4 }
  0xdc   : > { %v13138_v1 = vld [vmem:[%s13836_s10 + $0x155c] sm:$0xf0] }
  0xdd   : > { %v11327_v2 = vld [vmem:[%s13836_s10 + $0x1740] sm:$0xf]  ;;  %v11072_v6 = vor.u32 %v13138_v1, %v11071_v0  ;;  %6615 = vmatpush.bf16.msra.mxu1 %v10816_v5 }
  0xde   : > { %v13202_v3 = vld [vmem:[%s13836_s10 + $0x175c] sm:$0xf0] }
  0xdf   : > { %v10527_v7 = vld [vmem:[%s13836_s10 + $0x1100] sm:$0xf]  ;;  %v11328_v10 = vor.u32 %v13202_v3, %v11327_v2  ;;  %6628 = vmatpush.bf16.msra.mxu2 %v11072_v6 }
  0xe0   : > { %v13002_v8 = vld [vmem:[%s13836_s10 + $0x111c] sm:$0xf0] }
  0xe1   : > { %v10783_v9 = vld [vmem:[%s13836_s10 + $0x1300] sm:$0xf]  ;;  %v10528_v16 = vor.u32 %v13002_v8, %v10527_v7  ;;  %6641 = vmatpush.bf16.msra.mxu3 %v11328_v10 }
  0xe2   : > { %v13066_v11 = vld [vmem:[%s13836_s10 + $0x131c] sm:$0xf0] }
  0xe3   : > { %v11039_v12 = vld [vmem:[%s13836_s10 + $0x1500] sm:$0xf]  ;;  %v10784_v17 = vor.u32 %v13066_v11, %v10783_v9  ;;  %6603 = vmatpush.bf16.msra.mxu0 %v10528_v16 }
  0xe4   : > { %v13130_v13 = vld [vmem:[%s13836_s10 + $0x151c] sm:$0xf0] }
  0xe5   : > { %v11295_v14 = vld [vmem:[%s13836_s10 + $0x1700] sm:$0xf]  ;;  %v11040_v18 = vor.u32 %v13130_v13, %v11039_v12  ;;  %6616 = vmatpush.bf16.msra.mxu1 %v10784_v17 }
  0xe6   : > { %v13194_v15 = vld [vmem:[%s13836_s10 + $0x171c] sm:$0xf0] }
  0xe7   : > { %v10495_v19 = vld [vmem:[%s13836_s10 + $0x10c0] sm:$0xf]  ;;  %v11296_v22 = vor.u32 %v13194_v15, %v11295_v14  ;;  %6629 = vmatpush.bf16.msra.mxu2 %v11040_v18 }
  0xe8   : > { %v12994_v20 = vld [vmem:[%s13836_s10 + $0x10dc] sm:$0xf0] }
  0xe9   : > { %v10751_v21 = vld [vmem:[%s13836_s10 + $0x12c0] sm:$0xf]  ;;  %v10496_v30 = vor.u32 %v12994_v20, %v10495_v19  ;;  %6642 = vmatpush.bf16.msra.mxu3 %v11296_v22  ;;  %v312_v22 = vld [vmem:[#allocation2 + $0x10] sm:$0xff] }
  0xea   : > { %v13058_v23 = vld [vmem:[%s13836_s10 + $0x12dc] sm:$0xf0] }
  0xeb   : > { %v11007_v26 = vld [vmem:[%s13836_s10 + $0x14c0] sm:$0xf]  ;;  %v10752_v32 = vor.u32 %v13058_v23, %v10751_v21  ;;  %6604 = vmatpush.bf16.msra.mxu0 %v10496_v30 }
  0xec   : > { %v13122_v27 = vld [vmem:[%s13836_s10 + $0x14dc] sm:$0xf0] }
  0xed   : > { %v11263_v28 = vld [vmem:[%s13836_s10 + $0x16c0] sm:$0xf]  ;;  %v11008_v33 = vor.u32 %v13122_v27, %v11007_v26  ;;  %6617 = vmatpush.bf16.msra.mxu1 %v10752_v32  ;;  %v313_v26 = vld [vmem:[#allocation2 + $0x38] sm:$0xff] }
  0xee   : > { %v13186_v29 = vld [vmem:[%s13836_s10 + $0x16dc] sm:$0xf0] }
  0xef   : > { %v10463_v34 = vld [vmem:[%s13836_s10 + $0x1080] sm:$0xf]  ;;  %v11264_v37 = vor.u32 %v13186_v29, %v11263_v28  ;;  %6630 = vmatpush.bf16.msra.mxu2 %v11008_v33 }
  0xf0   : > { %v12986_v35 = vld [vmem:[%s13836_s10 + $0x109c] sm:$0xf0] }
  0xf1   : > { %v10719_v36 = vld [vmem:[%s13836_s10 + $0x1280] sm:$0xf]  ;;  %v10464_v44 = vor.u32 %v12986_v35, %v10463_v34  ;;  %6643 = vmatpush.bf16.msra.mxu3 %v11264_v37 }
  0xf2   : > { %v13050_v38 = vld [vmem:[%s13836_s10 + $0x129c] sm:$0xf0] }
  0xf3   : > { %v10975_v39 = vld [vmem:[%s13836_s10 + $0x1480] sm:$0xf]  ;;  %v10720_v45 = vor.u32 %v13050_v38, %v10719_v36  ;;  %6605 = vmatpush.bf16.msra.mxu0 %v10464_v44  ;;  %v14130_v38 = vpack.c.bf16 %v312_v22, %v312_v22 }
  0xf4   : > { %v13114_v40 = vld [vmem:[%s13836_s10 + $0x149c] sm:$0xf0] }
  0xf5   : > { %v11231_v42 = vld [vmem:[%s13836_s10 + $0x1680] sm:$0xf]  ;;  %v10976_v46 = vor.u32 %v13114_v40, %v10975_v39  ;;  %6618 = vmatpush.bf16.msra.mxu1 %v10720_v45 }
  0xf6   : > { %v13178_v43 = vld [vmem:[%s13836_s10 + $0x169c] sm:$0xf0] }
  0xf7   : > { %v10431_v47 = vld [vmem:[%s13836_s10 + $0x1040] sm:$0xf]  ;;  %v11232_v51 = vor.u32 %v13178_v43, %v11231_v42  ;;  %6631 = vmatpush.bf16.msra.mxu2 %v10976_v46  ;;  %v14136_v43 = vpack.c.bf16 %v313_v26, %v313_v26 }
  0xf8   : > { %v12978_v48 = vld [vmem:[%s13836_s10 + $0x105c] sm:$0xf0] }
  0xf9   : > { %v10687_v49 = vld [vmem:[%s13836_s10 + $0x1240] sm:$0xf]  ;;  %v10432_v60 = vor.u32 %v12978_v48, %v10431_v47  ;;  %6644 = vmatpush.bf16.msra.mxu3 %v11232_v51 }
  0xfa   : > { %v13042_v52 = vld [vmem:[%s13836_s10 + $0x125c] sm:$0xf0] }
  0xfb   : > { %v10943_v55 = vld [vmem:[%s13836_s10 + $0x1440] sm:$0xf]  ;;  %v10688_v63 = vor.u32 %v13042_v52, %v10687_v49  ;;  %6606 = vmatpush.bf16.msra.mxu0 %v10432_v60 }
  0xfc   : > { %v13106_v57 = vld [vmem:[%s13836_s10 + $0x145c] sm:$0xf0] }
  0xfd   : > { %v11199_v58 = vld [vmem:[%s13836_s10 + $0x1640] sm:$0xf]  ;;  %v10944_v0 = vor.u32 %v13106_v57, %v10943_v55  ;;  %6619 = vmatpush.bf16.msra.mxu1 %v10688_v63 }
  0xfe   : > { %v13170_v59 = vld [vmem:[%s13836_s10 + $0x165c] sm:$0xf0] }
  0xff   : > { %v10399_v61 = vld [vmem:[%s13836_s10 + $0x1000] sm:$0xf]  ;;  %v11200_v4 = vor.u32 %v13170_v59, %v11199_v58  ;;  %6632 = vmatpush.bf16.msra.mxu2 %v10944_v0 }
 0x100   : > { %v12970_v62 = vld [vmem:[%s13836_s10 + $0x101c] sm:$0xf0] }
 0x101   : > { %v10655_v1 = vld [vmem:[%s13836_s10 + $0x1200] sm:$0xf]  ;;  %v10400_v11 = vor.u32 %v12970_v62, %v10399_v61  ;;  %6645 = vmatpush.bf16.msra.mxu3 %v11200_v4 }
 0x102   : > { %v13034_v2 = vld [vmem:[%s13836_s10 + $0x121c] sm:$0xf0] }
 0x103   : > { %v10911_v3 = vld [vmem:[%s13836_s10 + $0x1400] sm:$0xf]  ;;  %v10656_v15 = vor.u32 %v13034_v2, %v10655_v1  ;;  %6607 = vmatpush.bf16.msra.mxu0 %v10400_v11 }
 0x104   : > { %v13098_v5 = vld [vmem:[%s13836_s10 + $0x141c] sm:$0xf0] }
 0x105   : > { %v11167_v6 = vld [vmem:[%s13836_s10 + $0x1600] sm:$0xf]  ;;  %v10912_v16 = vor.u32 %v13098_v5, %v10911_v3  ;;  %6620 = vmatpush.bf16.msra.mxu1 %v10656_v15 }
 0x106   : > { %v13162_v7 = vld [vmem:[%s13836_s10 + $0x161c] sm:$0xf0] }
 0x107   : > { %v11647_v8 = vld [vmem:[%s13836_s10 + $0x19c0] sm:$0xf]  ;;  %v11168_v20 = vor.u32 %v13162_v7, %v11167_v6  ;;  %6633 = vmatpush.bf16.msra.mxu2 %v10912_v16 }
 0x108   : > { %v13282_v9 = vld [vmem:[%s13836_s10 + $0x19dc] sm:$0xf0] }
 0x109   : > { %v11903_v10 = vld [vmem:[%s13836_s10 + $0x1bc0] sm:$0xf]  ;;  %v11648_v21 = vor.u32 %v13282_v9, %v11647_v8  ;;  %6646 = vmatpush.bf16.msra.mxu3 %v11168_v20 }
 0x10a   : > { %v13346_v12 = vld [vmem:[%s13836_s10 + $0x1bdc] sm:$0xf0]  ;;  %6634 = vmatmul.bf16.vlgmr.msra.gmra.mxu2 %v14130_v38 }
 0x10b   : > { %v12159_v13 = vld [vmem:[%s13836_s10 + $0x1dc0] sm:$0xf]  ;;  %v11904_v27 = vor.u32 %v13346_v12, %v11903_v10  ;;  %6652 = vmatpush.bf16.msrb.mxu0 %v11648_v21 }
 0x10c   : > { %v13410_v14 = vld [vmem:[%s13836_s10 + $0x1ddc] sm:$0xf0]  ;;  %6647 = vmatmul.bf16.vlgmr.msra.gmra.mxu3 %v14136_v43 }
 0x10d   : > { %v12415_v17 = vld [vmem:[%s13836_s10 + $0x1fc0] sm:$0xf]  ;;  %v12160_v28 = vor.u32 %v13410_v14, %v12159_v13  ;;  %6665 = vmatpush.bf16.msrb.mxu1 %v11904_v27 }
 0x10e   : > { %v13474_v18 = vld [vmem:[%s13836_s10 + $0x1fdc] sm:$0xf0] }
 0x10f   : > { %v310_v19 = vld [vmem:[#allocation2 + $0x40] sm:$0xff]  ;;  %v12416_v33 = vor.u32 %v13474_v18, %v12415_v17  ;;  %6678 = vmatpush.bf16.msrb.mxu2 %v12160_v28 }
 0x110   : > { %v311_v23 = vld [vmem:[#allocation2 + $0x20] sm:$0xff]  ;;  %v14125_v34 = vpack.c.bf16 %v310_v19, %v310_v19 }
 0x111   : > { %v11615_v29 = vld [vmem:[%s13836_s10 + $0x1980] sm:$0xf]  ;;  %v14132_v39 = vpack.c.bf16 %v311_v23, %v311_v23  ;;  %6691 = vmatpush.bf16.msrb.mxu3 %v12416_v33 }
 0x112   : > { %v13274_v30 = vld [vmem:[%s13836_s10 + $0x199c] sm:$0xf0]  ;;  %6608 = vmatmul.bf16.vlgmr.msra.gmra.mxu0 %v14125_v34 }
 0x113   : > { %v11871_v32 = vld [vmem:[%s13836_s10 + $0x1b80] sm:$0xf]  ;;  %v11616_v44 = vor.u32 %v13274_v30, %v11615_v29  ;;  %6621 = vmatmul.bf16.vlgmr.msra.gmra.mxu1 %v14132_v39 }
 0x114   : > { %v13338_v35 = vld [vmem:[%s13836_s10 + $0x1b9c] sm:$0xf0] }
 0x115   : > { %v12127_v36 = vld [vmem:[%s13836_s10 + $0x1d80] sm:$0xf]  ;;  %v11872_v45 = vor.u32 %v13338_v35, %v11871_v32  ;;  %6653 = vmatpush.bf16.msrb.mxu0 %v11616_v44 }
 0x116   : > { %v13402_v37 = vld [vmem:[%s13836_s10 + $0x1d9c] sm:$0xf0] }
 0x117   : > { %v12383_v40 = vld [vmem:[%s13836_s10 + $0x1f80] sm:$0xf]  ;;  %v12128_v46 = vor.u32 %v13402_v37, %v12127_v36  ;;  %6666 = vmatpush.bf16.msrb.mxu1 %v11872_v45 }
 0x118   : > { %v13466_v42 = vld [vmem:[%s13836_s10 + $0x1f9c] sm:$0xf0] }
 0x119   : > { %v11583_v47 = vld [vmem:[%s13836_s10 + $0x1940] sm:$0xf]  ;;  %v12384_v51 = vor.u32 %v13466_v42, %v12383_v40  ;;  %6679 = vmatpush.bf16.msrb.mxu2 %v12128_v46 }
 0x11a   : > { %v13266_v48 = vld [vmem:[%s13836_s10 + $0x195c] sm:$0xf0] }
 0x11b   : > { %v11839_v49 = vld [vmem:[%s13836_s10 + $0x1b40] sm:$0xf]  ;;  %v11584_v60 = vor.u32 %v13266_v48, %v11583_v47  ;;  %6692 = vmatpush.bf16.msrb.mxu3 %v12384_v51 }
 0x11c   : > { %v13330_v52 = vld [vmem:[%s13836_s10 + $0x1b5c] sm:$0xf0] }
 0x11d   : > { %v12095_v55 = vld [vmem:[%s13836_s10 + $0x1d40] sm:$0xf]  ;;  %v11840_v61 = vor.u32 %v13330_v52, %v11839_v49  ;;  %6654 = vmatpush.bf16.msrb.mxu0 %v11584_v60 }
 0x11e   : > { %v13394_v57 = vld [vmem:[%s13836_s10 + $0x1d5c] sm:$0xf0] }
 0x11f   : > { %v12351_v58 = vld [vmem:[%s13836_s10 + $0x1f40] sm:$0xf]  ;;  %v12096_v62 = vor.u32 %v13394_v57, %v12095_v55  ;;  %6667 = vmatpush.bf16.msrb.mxu1 %v11840_v61 }
 0x120   : > { %v13458_v59 = vld [vmem:[%s13836_s10 + $0x1f5c] sm:$0xf0] }
 0x121   : > { %v11551_v63 = vld [vmem:[%s13836_s10 + $0x1900] sm:$0xf]  ;;  %v12352_v2 = vor.u32 %v13458_v59, %v12351_v58  ;;  %6680 = vmatpush.bf16.msrb.mxu2 %v12096_v62 }
 0x122   : > { %v13258_v0 = vld [vmem:[%s13836_s10 + $0x191c] sm:$0xf0] }
 0x123   : > { %v11807_v1 = vld [vmem:[%s13836_s10 + $0x1b00] sm:$0xf]  ;;  %v11552_v8 = vor.u32 %v13258_v0, %v11551_v63  ;;  %6693 = vmatpush.bf16.msrb.mxu3 %v12352_v2 }
 0x124   : > { %v13322_v3 = vld [vmem:[%s13836_s10 + $0x1b1c] sm:$0xf0] }
 0x125   : > { %v12063_v4 = vld [vmem:[%s13836_s10 + $0x1d00] sm:$0xf]  ;;  %v11808_v9 = vor.u32 %v13322_v3, %v11807_v1  ;;  %6655 = vmatpush.bf16.msrb.mxu0 %v11552_v8  ;;  %v8833_v8 = vld [vmem:[%s13836_s10 + $0x3e0] sm:$0xf0] }
 0x126   : > { %v13386_v5 = vld [vmem:[%s13836_s10 + $0x1d1c] sm:$0xf0] }
 0x127   : > { %v12319_v6 = vld [vmem:[%s13836_s10 + $0x1f00] sm:$0xf]  ;;  %v12064_v10 = vor.u32 %v13386_v5, %v12063_v4  ;;  %6668 = vmatpush.bf16.msrb.mxu1 %v11808_v9  ;;  %v12510_v4 = vld [vmem:[%s13836_s10 + $0x1c4] sm:$0xf] }
 0x128   : > { %v13450_v7 = vld [vmem:[%s13836_s10 + $0x1f1c] sm:$0xf0]  ;;  %v8577_v5 = vld [vmem:[%s13836_s10 + $0x1e0] sm:$0xf0] }
 0x129   : > { %v11519_v11 = vld [vmem:[%s13836_s10 + $0x18c0] sm:$0xf]  ;;  %v12320_v14 = vor.u32 %v13450_v7, %v12319_v6  ;;  %6681 = vmatpush.bf16.msrb.mxu2 %v12064_v10  ;;  %v12574_v6 = vld [vmem:[%s13836_s10 + $0x3c4] sm:$0xf] }
 0x12a   : > { %v13250_v12 = vld [vmem:[%s13836_s10 + $0x18dc] sm:$0xf0]  ;;  %v12638_v9 = vld [vmem:[%s13836_s10 + $0x5c4] sm:$0xf] }
 0x12b   : > { %v11775_v13 = vld [vmem:[%s13836_s10 + $0x1ac0] sm:$0xf]  ;;  %v11520_v20 = vor.u32 %v13250_v12, %v11519_v11  ;;  %6694 = vmatpush.bf16.msrb.mxu3 %v12320_v14  ;;  %v9089_v10 = vld [vmem:[%s13836_s10 + $0x5e0] sm:$0xf0] }
 0x12c   : > { %v13314_v15 = vld [vmem:[%s13836_s10 + $0x1adc] sm:$0xf0]  ;;  %v9345_v14 = vld [vmem:[%s13836_s10 + $0x7e0] sm:$0xf0] }
 0x12d   : > { %v12031_v16 = vld [vmem:[%s13836_s10 + $0x1cc0] sm:$0xf]  ;;  %v11776_v21 = vor.u32 %v13314_v15, %v11775_v13  ;;  %6656 = vmatpush.bf16.msrb.mxu0 %v11520_v20  ;;  %v12702_v13 = vld [vmem:[%s13836_s10 + $0x7c4] sm:$0xf]  ;;  %v317_v20 = vld [vmem:[#allocation2 + $0x28] sm:$0xff] }
 0x12e   : > { %v13378_v17 = vld [vmem:[%s13836_s10 + $0x1cdc] sm:$0xf0] }
 0x12f   : > { %v12287_v18 = vld [vmem:[%s13836_s10 + $0x1ec0] sm:$0xf]  ;;  %v12032_v22 = vor.u32 %v13378_v17, %v12031_v16  ;;  %6669 = vmatpush.bf16.msrb.mxu1 %v11776_v21  ;;  %v8580_v17 = vor.u32 %v12510_v4, %v8577_v5  ;;  %v8836_v21 = vor.u32 %v12574_v6, %v8833_v8  ;;  %v12614_v4 = vld [vmem:[%s13836_s10 + $0x504] sm:$0xf] }
 0x130   : > { %v13442_v19 = vld [vmem:[%s13836_s10 + $0x1edc] sm:$0xf0]  ;;  %v8993_v5 = vld [vmem:[%s13836_s10 + $0x520] sm:$0xf0] }
 0x131   : > { %v11487_v23 = vld [vmem:[%s13836_s10 + $0x1880] sm:$0xf]  ;;  %v12288_v28 = vor.u32 %v13442_v19, %v12287_v18  ;;  %6682 = vmatpush.bf16.msrb.mxu2 %v12032_v22  ;;  %v316_v18 = vld [vmem:[#allocation2 + $0x78] sm:$0xff]  ;;  %v315_v19 = vld [vmem:[#allocation2 + $0x70] sm:$0xff]  ;;  %v9092_v22 = vor.u32 %v12638_v9, %v9089_v10  ;;  %v8996_v10 = vor.u32 %v12614_v4, %v8993_v5 }
 0x132   : > { %v13242_v26 = vld [vmem:[%s13836_s10 + $0x189c] sm:$0xf0]  ;;  %v12678_v6 = vld [vmem:[%s13836_s10 + $0x704] sm:$0xf] }
 0x133   : > { %v11743_v27 = vld [vmem:[%s13836_s10 + $0x1a80] sm:$0xf]  ;;  %v11488_v36 = vor.u32 %v13242_v26, %v11487_v23  ;;  %6695 = vmatpush.bf16.msrb.mxu3 %v12288_v28  ;;  %v12502_v23 = vld [vmem:[%s13836_s10 + $0x184] sm:$0xf]  ;;  %v9348_v28 = vor.u32 %v12702_v13, %v9345_v14 }
 0x134   : > { %v13306_v29 = vld [vmem:[%s13836_s10 + $0x1a9c] sm:$0xf0]  ;;  %v8545_v26 = vld [vmem:[%s13836_s10 + $0x1a0] sm:$0xf0] }
 0x135   : > { %v11999_v30 = vld [vmem:[%s13836_s10 + $0x1c80] sm:$0xf]  ;;  %v11744_v37 = vor.u32 %v13306_v29, %v11743_v27  ;;  %6657 = vmatpush.bf16.msrb.mxu0 %v11488_v36  ;;  %v12566_v27 = vld [vmem:[%s13836_s10 + $0x384] sm:$0xf]  ;;  %v14208_v36 = vpack.c.bf16 %v315_v19, %v315_v19 }
 0x136   : > { %v13370_v32 = vld [vmem:[%s13836_s10 + $0x1c9c] sm:$0xf0]  ;;  %v12542_v13 = vld [vmem:[%s13836_s10 + $0x2c4] sm:$0xf] }
 0x137   : > { %v12255_v33 = vld [vmem:[%s13836_s10 + $0x1e80] sm:$0xf]  ;;  %v12000_v40 = vor.u32 %v13370_v32, %v11999_v30  ;;  %6670 = vmatpush.bf16.msrb.mxu1 %v11744_v37  ;;  %v8801_v30 = vld [vmem:[%s13836_s10 + $0x3a0] sm:$0xf0] }
 0x138   : > { %v13434_v35 = vld [vmem:[%s13836_s10 + $0x1e9c] sm:$0xf0]  ;;  %v12630_v32 = vld [vmem:[%s13836_s10 + $0x584] sm:$0xf] }
 0x139   : > { %v11455_v42 = vld [vmem:[%s13836_s10 + $0x1840] sm:$0xf]  ;;  %v12256_v46 = vor.u32 %v13434_v35, %v12255_v33  ;;  %6683 = vmatpush.bf16.msrb.mxu2 %v12000_v40  ;;  %v9057_v33 = vld [vmem:[%s13836_s10 + $0x5a0] sm:$0xf0]  ;;  %v14206_v35 = vpack.c.bf16 %v316_v18, %v316_v18 }
 0x13a   : > { %v13234_v44 = vld [vmem:[%s13836_s10 + $0x185c] sm:$0xf0]  ;;  %v12694_v37 = vld [vmem:[%s13836_s10 + $0x784] sm:$0xf] }
 0x13b   : > { %v11711_v45 = vld [vmem:[%s13836_s10 + $0x1a40] sm:$0xf]  ;;  %v11456_v55 = vor.u32 %v13234_v44, %v11455_v42  ;;  %6696 = vmatpush.bf16.msrb.mxu3 %v12256_v46  ;;  %v9313_v40 = vld [vmem:[%s13836_s10 + $0x7a0] sm:$0xf0]  ;;  %v14212_v42 = vpack.c.bf16 %v317_v20, %v317_v20  ;;  %v8548_v44 = vor.u32 %v12502_v23, %v8545_v26  ;;  %v9060_v46 = vor.u32 %v12630_v32, %v9057_v33 }
 0x13c   : > { %v13298_v47 = vld [vmem:[%s13836_s10 + $0x1a5c] sm:$0xf0]  ;;  %v12670_v18 = vld [vmem:[%s13836_s10 + $0x6c4] sm:$0xf] }
 0x13d   : > { %v11967_v48 = vld [vmem:[%s13836_s10 + $0x1c40] sm:$0xf]  ;;  %v11712_v59 = vor.u32 %v13298_v47, %v11711_v45  ;;  %6658 = vmatpush.bf16.msrb.mxu0 %v11456_v55  ;;  %v8804_v45 = vor.u32 %v12566_v27, %v8801_v30  ;;  %v12494_v47 = vld [vmem:[%s13836_s10 + $0x144] sm:$0xf] }
 0x13e   : > { %v13362_v49 = vld [vmem:[%s13836_s10 + $0x1c5c] sm:$0xf0]  ;;  %v12622_v55 = vld [vmem:[%s13836_s10 + $0x544] sm:$0xf] }
 0x13f   : > { %v12223_v51 = vld [vmem:[%s13836_s10 + $0x1e40] sm:$0xf]  ;;  %v11968_v60 = vor.u32 %v13362_v49, %v11967_v48  ;;  %6671 = vmatpush.bf16.msrb.mxu1 %v11712_v59  ;;  %v8513_v48 = vld [vmem:[%s13836_s10 + $0x160] sm:$0xf0] }
 0x140   : > { %v13426_v52 = vld [vmem:[%s13836_s10 + $0x1e5c] sm:$0xf0]  ;;  %v12558_v49 = vld [vmem:[%s13836_s10 + $0x344] sm:$0xf] }
 0x141   : > { %v11423_v57 = vld [vmem:[%s13836_s10 + $0x1800] sm:$0xf]  ;;  %v12224_v0 = vor.u32 %v13426_v52, %v12223_v51  ;;  %6684 = vmatpush.bf16.msrb.mxu2 %v11968_v60  ;;  %v9316_v51 = vor.u32 %v12694_v37, %v9313_v40  ;;  %v8769_v52 = vld [vmem:[%s13836_s10 + $0x360] sm:$0xf0]  ;;  %v8516_v60 = vor.u32 %v12494_v47, %v8513_v48 }
 0x142   : > { %v13226_v58 = vld [vmem:[%s13836_s10 + $0x181c] sm:$0xf0]  ;;  %v9281_v59 = vld [vmem:[%s13836_s10 + $0x760] sm:$0xf0] }
 0x143   : > { %v11679_v61 = vld [vmem:[%s13836_s10 + $0x1a00] sm:$0xf]  ;;  %v11424_v7 = vor.u32 %v13226_v58, %v11423_v57  ;;  %6697 = vmatpush.bf16.msrb.mxu3 %v12224_v0  ;;  %v9025_v57 = vld [vmem:[%s13836_s10 + $0x560] sm:$0xf0] }
 0x144   : > { %v13290_v62 = vld [vmem:[%s13836_s10 + $0x1a1c] sm:$0xf0]  ;;  %v12686_v58 = vld [vmem:[%s13836_s10 + $0x744] sm:$0xf] }
 0x145   : > { %v11935_v63 = vld [vmem:[%s13836_s10 + $0x1c00] sm:$0xf]  ;;  %v11680_v11 = vor.u32 %v13290_v62, %v11679_v61  ;;  %6659 = vmatpush.bf16.msrb.mxu0 %v11424_v7  ;;  %v8772_v61 = vor.u32 %v12558_v49, %v8769_v52  ;;  %v9028_v62 = vor.u32 %v12622_v55, %v9025_v57  ;;  %v8481_v0 = vld [vmem:[%s13836_s10 + $0x120] sm:$0xf0] }
 0x146   : > { %v13354_v1 = vld [vmem:[%s13836_s10 + $0x1c1c] sm:$0xf0]  ;;  %v9249_v7 = vld [vmem:[%s13836_s10 + $0x720] sm:$0xf0] }
 0x147   : > { %v12191_v2 = vld [vmem:[%s13836_s10 + $0x1e00] sm:$0xf]  ;;  %v11936_v12 = vor.u32 %v13354_v1, %v11935_v63  ;;  %6672 = vmatpush.bf16.msrb.mxu1 %v11680_v11  ;;  %v12486_v63 = vld [vmem:[%s13836_s10 + $0x104] sm:$0xf]  ;;  %v9252_v14 = vor.u32 %v12678_v6, %v9249_v7 }
 0x148   : > { %v13418_v3 = vld [vmem:[%s13836_s10 + $0x1e1c] sm:$0xf0]  ;;  %v12550_v1 = vld [vmem:[%s13836_s10 + $0x304] sm:$0xf]  ;;  %v8484_v8 = vor.u32 %v12486_v63, %v8481_v0 }
 0x149   : > { %v314_v15 = vld [vmem:[#allocation2 + $0x60] sm:$0xff]  ;;  %v12192_v16 = vor.u32 %v13418_v3, %v12191_v2  ;;  %6685 = vmatpush.bf16.msrb.mxu2 %v11936_v12  ;;  %6704 = vmatpush.bf16.msra.mxu0 %v8580_v17  ;;  %v9284_v2 = vor.u32 %v12686_v58, %v9281_v59 }
 0x14a   : > { %v14201_v29 = vpack.c.bf16 %v314_v15, %v314_v15  ;;  %6673 = vmatmul.bf16.vlgmr.msrb.gmra.mxu1 %v14208_v36  ;;  %v8737_v3 = vld [vmem:[%s13836_s10 + $0x320] sm:$0xf0] }
 0x14b   : > { %6698 = vmatpush.bf16.msrb.mxu3 %v12192_v16  ;;  %6717 = vmatpush.bf16.msra.mxu1 %v8836_v21  ;;  %v8740_v9 = vor.u32 %v12550_v1, %v8737_v3  ;;  %v12478_v11 = vld [vmem:[%s13836_s10 + $0xc4] sm:$0xf] }
 0x14c   : > { %6660 = vmatmul.bf16.vlgmr.msrb.gmra.mxu0 %v14201_v29  ;;  %6686 = vmatmul.bf16.vlgmr.msrb.gmra.mxu2 %v14206_v35  ;;  %v8449_v12 = vld [vmem:[%s13836_s10 + $0xe0] sm:$0xf0] }
 0x14d   : > { %6730 = vmatpush.bf16.msra.mxu2 %v9092_v22  ;;  %6705 = vmatpush.bf16.msra.mxu0 %v8548_v44  ;;  %v8705_v15 = vld [vmem:[%s13836_s10 + $0x2e0] sm:$0xf0]  ;;  %v8452_v20 = vor.u32 %v12478_v11, %v8449_v12 }
 0x14e   : > { %6699 = vmatmul.bf16.vlgmr.msrb.gmra.mxu3 %v14212_v42  ;;  %v12606_v16 = vld [vmem:[%s13836_s10 + $0x4c4] sm:$0xf]  ;;  %v8708_v21 = vor.u32 %v12542_v13, %v8705_v15 }
 0x14f   : > { %6743 = vmatpush.bf16.msra.mxu3 %v9348_v28  ;;  %6718 = vmatpush.bf16.msra.mxu1 %v8804_v45  ;;  %v8961_v17 = vld [vmem:[%s13836_s10 + $0x4e0] sm:$0xf0] }
 0x150   : > { %v9217_v19 = vld [vmem:[%s13836_s10 + $0x6e0] sm:$0xf0]  ;;  %v8964_v22 = vor.u32 %v12606_v16, %v8961_v17 }
 0x151   : > { %6731 = vmatpush.bf16.msra.mxu2 %v9060_v46  ;;  %6706 = vmatpush.bf16.msra.mxu0 %v8516_v60  ;;  %v12470_v23 = vld [vmem:[%s13836_s10 + $0x84] sm:$0xf]  ;;  %v9220_v28 = vor.u32 %v12670_v18, %v9217_v19 }
 0x152   : > { %v8417_v26 = vld [vmem:[%s13836_s10 + $0xa0] sm:$0xf0] }
 0x153   : > { %6744 = vmatpush.bf16.msra.mxu3 %v9316_v51  ;;  %6719 = vmatpush.bf16.msra.mxu1 %v8772_v61  ;;  %v12534_v27 = vld [vmem:[%s13836_s10 + $0x284] sm:$0xf]  ;;  %v8420_v44 = vor.u32 %v12470_v23, %v8417_v26 }
 0x154   : > { %v8673_v30 = vld [vmem:[%s13836_s10 + $0x2a0] sm:$0xf0] }
 0x155   : > { %6732 = vmatpush.bf16.msra.mxu2 %v9028_v62  ;;  %6707 = vmatpush.bf16.msra.mxu0 %v8484_v8  ;;  %v12598_v32 = vld [vmem:[%s13836_s10 + $0x484] sm:$0xf]  ;;  %v8676_v45 = vor.u32 %v12534_v27, %v8673_v30 }
 0x156   : > { %v8929_v33 = vld [vmem:[%s13836_s10 + $0x4a0] sm:$0xf0] }
 0x157   : > { %6745 = vmatpush.bf16.msra.mxu3 %v9284_v2  ;;  %6720 = vmatpush.bf16.msra.mxu1 %v8740_v9  ;;  %v12662_v37 = vld [vmem:[%s13836_s10 + $0x684] sm:$0xf]  ;;  %v8932_v46 = vor.u32 %v12598_v32, %v8929_v33 }
 0x158   : > { %v9185_v40 = vld [vmem:[%s13836_s10 + $0x6a0] sm:$0xf0] }
 0x159   : > { %6733 = vmatpush.bf16.msra.mxu2 %v8996_v10  ;;  %6708 = vmatpush.bf16.msra.mxu0 %v8452_v20  ;;  %v12462_v47 = vld [vmem:[%s13836_s10 + $0x44] sm:$0xf]  ;;  %v9188_v51 = vor.u32 %v12662_v37, %v9185_v40 }
 0x15a   : > { %v8385_v48 = vld [vmem:[%s13836_s10 + $0x60] sm:$0xf0] }
 0x15b   : > { %6746 = vmatpush.bf16.msra.mxu3 %v9252_v14  ;;  %6721 = vmatpush.bf16.msra.mxu1 %v8708_v21  ;;  %v12526_v49 = vld [vmem:[%s13836_s10 + $0x244] sm:$0xf]  ;;  %v8388_v60 = vor.u32 %v12462_v47, %v8385_v48 }
 0x15c   : > { %v8641_v52 = vld [vmem:[%s13836_s10 + $0x260] sm:$0xf0] }
 0x15d   : > { %6734 = vmatpush.bf16.msra.mxu2 %v8964_v22  ;;  %v12590_v55 = vld [vmem:[%s13836_s10 + $0x444] sm:$0xf]  ;;  %6709 = vmatpush.bf16.msra.mxu0 %v8420_v44  ;;  %v8644_v63 = vor.u32 %v12526_v49, %v8641_v52 }
 0x15e   : > { %v8897_v57 = vld [vmem:[%s13836_s10 + $0x460] sm:$0xf0] }
 0x15f   : > { %6747 = vmatpush.bf16.msra.mxu3 %v9220_v28  ;;  %v12654_v58 = vld [vmem:[%s13836_s10 + $0x644] sm:$0xf]  ;;  %6722 = vmatpush.bf16.msra.mxu1 %v8676_v45  ;;  %v8900_v0 = vor.u32 %v12590_v55, %v8897_v57 }
 0x160   : > { %v9153_v59 = vld [vmem:[%s13836_s10 + $0x660] sm:$0xf0] }
 0x161   : > { %v12454_v61 = vld [vmem:[%s13836_s10 + $0x4] sm:$0xf]  ;;  %6735 = vmatpush.bf16.msra.mxu2 %v8932_v46  ;;  %v9156_v4 = vor.u32 %v12654_v58, %v9153_v59  ;;  %6710 = vmatpush.bf16.msra.mxu0 %v8388_v60 }
 0x162   : > { %v8353_v62 = vld [vmem:[%s13836_s10 + $0x20] sm:$0xf0] }
 0x163   : > { %v12518_v1 = vld [vmem:[%s13836_s10 + $0x204] sm:$0xf]  ;;  %6748 = vmatpush.bf16.msra.mxu3 %v9188_v51  ;;  %v8356_v11 = vor.u32 %v12454_v61, %v8353_v62  ;;  %6723 = vmatpush.bf16.msra.mxu1 %v8644_v63 }
 0x164   : > { %v8609_v2 = vld [vmem:[%s13836_s10 + $0x220] sm:$0xf0] }
 0x165   : > { %v12582_v3 = vld [vmem:[%s13836_s10 + $0x404] sm:$0xf]  ;;  %6736 = vmatpush.bf16.msra.mxu2 %v8900_v0  ;;  %v8612_v15 = vor.u32 %v12518_v1, %v8609_v2  ;;  %6711 = vmatpush.bf16.msra.mxu0 %v8356_v11 }
 0x166   : > { %v8865_v5 = vld [vmem:[%s13836_s10 + $0x420] sm:$0xf0] }
 0x167   : > { %v12646_v6 = vld [vmem:[%s13836_s10 + $0x604] sm:$0xf]  ;;  %v8868_v16 = vor.u32 %v12582_v3, %v8865_v5  ;;  %6749 = vmatpush.bf16.msra.mxu3 %v9156_v4  ;;  %6724 = vmatpush.bf16.msra.mxu1 %v8612_v15 }
 0x168   : > { %v9121_v7 = vld [vmem:[%s13836_s10 + $0x620] sm:$0xf0]  ;;  %6712 = vmatmul.bf16.vlgmr.msra.gmra.mxu0 %v13991_v25 }
 0x169   : > { %v12766_v8 = vld [vmem:[%s13836_s10 + $0x9c4] sm:$0xf]  ;;  %v9124_v19 = vor.u32 %v12646_v6, %v9121_v7  ;;  %6737 = vmatpush.bf16.msra.mxu2 %v8868_v16 }
 0x16a   : > { %v9601_v9 = vld [vmem:[%s13836_s10 + $0x9e0] sm:$0xf0]  ;;  %6725 = vmatmul.bf16.vlgmr.msra.gmra.mxu1 %v14006_v41 }
 0x16b   : > { %v12830_v10 = vld [vmem:[%s13836_s10 + $0xbc4] sm:$0xf]  ;;  %v9604_v20 = vor.u32 %v12766_v8, %v9601_v9  ;;  %6750 = vmatpush.bf16.msra.mxu3 %v9124_v19 }
 0x16c   : > { %v9857_v12 = vld [vmem:[%s13836_s10 + $0xbe0] sm:$0xf0]  ;;  %6738 = vmatmul.bf16.vlgmr.msra.gmra.mxu2 %v13989_v24 }
 0x16d   : > { %v12894_v13 = vld [vmem:[%s13836_s10 + $0xdc4] sm:$0xf]  ;;  %v9860_v21 = vor.u32 %v12830_v10, %v9857_v12  ;;  %6756 = vmatpush.bf16.msrb.mxu0 %v9604_v20 }
 0x16e   : > { %v10113_v14 = vld [vmem:[%s13836_s10 + $0xde0] sm:$0xf0]  ;;  %6751 = vmatmul.bf16.vlgmr.msra.gmra.mxu3 %v13996_v31 }
 0x16f   : > { %v12958_v17 = vld [vmem:[%s13836_s10 + $0xfc4] sm:$0xf]  ;;  %v10116_v22 = vor.u32 %v12894_v13, %v10113_v14  ;;  %6769 = vmatpush.bf16.msrb.mxu1 %v9860_v21  ;;  %v14310_v21 = vpop.f32.mrf.mxu0 }
 0x170   : > { %v10369_v18 = vld [vmem:[%s13836_s10 + $0xfe0] sm:$0xf0] }
 0x171   : > { %v12758_v23 = vld [vmem:[%s13836_s10 + $0x984] sm:$0xf]  ;;  %v10372_v28 = vor.u32 %v12958_v17, %v10369_v18  ;;  %6782 = vmatpush.bf16.msrb.mxu2 %v10116_v22 }
 0x172   : > { %v9569_v26 = vld [vmem:[%s13836_s10 + $0x9a0] sm:$0xf0] }
 0x173   : > { %v12822_v27 = vld [vmem:[%s13836_s10 + $0xb84] sm:$0xf]  ;;  %v9572_v44 = vor.u32 %v12758_v23, %v9569_v26  ;;  %6795 = vmatpush.bf16.msrb.mxu3 %v10372_v28 }
 0x174   : > { %v9825_v30 = vld [vmem:[%s13836_s10 + $0xba0] sm:$0xf0] }
 0x175   : > { %v12886_v32 = vld [vmem:[%s13836_s10 + $0xd84] sm:$0xf]  ;;  %v9828_v45 = vor.u32 %v12822_v27, %v9825_v30  ;;  %6757 = vmatpush.bf16.msrb.mxu0 %v9572_v44 }
 0x176   : > { %v10081_v33 = vld [vmem:[%s13836_s10 + $0xda0] sm:$0xf0] }
 0x177   : > { %v12950_v37 = vld [vmem:[%s13836_s10 + $0xf84] sm:$0xf]  ;;  %v10084_v46 = vor.u32 %v12886_v32, %v10081_v33  ;;  %6770 = vmatpush.bf16.msrb.mxu1 %v9828_v45 }
 0x178   : > { %v10337_v40 = vld [vmem:[%s13836_s10 + $0xfa0] sm:$0xf0] }
 0x179   : > { %v12750_v47 = vld [vmem:[%s13836_s10 + $0x944] sm:$0xf]  ;;  %v10340_v51 = vor.u32 %v12950_v37, %v10337_v40  ;;  %6783 = vmatpush.bf16.msrb.mxu2 %v10084_v46  ;;  %v14320_v46 = vpop.f32.mrf.mxu1 }
 0x17a   : > { %v9537_v48 = vld [vmem:[%s13836_s10 + $0x960] sm:$0xf0] }
 0x17b   : > { %v12814_v49 = vld [vmem:[%s13836_s10 + $0xb44] sm:$0xf]  ;;  %v9540_v60 = vor.u32 %v12750_v47, %v9537_v48  ;;  %6796 = vmatpush.bf16.msrb.mxu3 %v10340_v51 }
 0x17c   : > { %v9793_v52 = vld [vmem:[%s13836_s10 + $0xb60] sm:$0xf0] }
 0x17d   : > { %v12878_v55 = vld [vmem:[%s13836_s10 + $0xd44] sm:$0xf]  ;;  %v9796_v61 = vor.u32 %v12814_v49, %v9793_v52  ;;  %6758 = vmatpush.bf16.msrb.mxu0 %v9540_v60  ;;  %v14328_v60 = vpop.f32.mrf.mxu2 }
 0x17e   : > { %v10049_v57 = vld [vmem:[%s13836_s10 + $0xd60] sm:$0xf0] }
 0x17f   : > { %v12942_v58 = vld [vmem:[%s13836_s10 + $0xf44] sm:$0xf]  ;;  %v10052_v62 = vor.u32 %v12878_v55, %v10049_v57  ;;  %6771 = vmatpush.bf16.msrb.mxu1 %v9796_v61 }
 0x180   : > { %v10305_v59 = vld [vmem:[%s13836_s10 + $0xf60] sm:$0xf0] }
 0x181   : > { %v12742_v63 = vld [vmem:[%s13836_s10 + $0x904] sm:$0xf]  ;;  %v10308_v2 = vor.u32 %v12942_v58, %v10305_v59  ;;  %6784 = vmatpush.bf16.msrb.mxu2 %v10052_v62 }
 0x182   : > { %v9505_v0 = vld [vmem:[%s13836_s10 + $0x920] sm:$0xf0] }
 0x183   : > { %v12806_v1 = vld [vmem:[%s13836_s10 + $0xb04] sm:$0xf]  ;;  %v9508_v8 = vor.u32 %v12742_v63, %v9505_v0  ;;  %6797 = vmatpush.bf16.msrb.mxu3 %v10308_v2  ;;  %v14332_v63 = vpop.f32.mrf.mxu3 }
 0x184   : > { %v9761_v3 = vld [vmem:[%s13836_s10 + $0xb20] sm:$0xf0] }
 0x185   : > { %v12870_v4 = vld [vmem:[%s13836_s10 + $0xd04] sm:$0xf]  ;;  %v9764_v9 = vor.u32 %v12806_v1, %v9761_v3  ;;  %6759 = vmatpush.bf16.msrb.mxu0 %v9508_v8  ;;  %v6507_v3 = vpop.f32.mrf.mxu0 }
 0x186   : > { %v10017_v5 = vld [vmem:[%s13836_s10 + $0xd20] sm:$0xf0] }
 0x187   : > { %v12934_v6 = vld [vmem:[%s13836_s10 + $0xf04] sm:$0xf]  ;;  %v10020_v10 = vor.u32 %v12870_v4, %v10017_v5  ;;  %6772 = vmatpush.bf16.msrb.mxu1 %v9764_v9 }
 0x188   : > { %v10273_v7 = vld [vmem:[%s13836_s10 + $0xf20] sm:$0xf0] }
 0x189   : > { %v12734_v11 = vld [vmem:[%s13836_s10 + $0x8c4] sm:$0xf]  ;;  %v10276_v14 = vor.u32 %v12934_v6, %v10273_v7  ;;  %6785 = vmatpush.bf16.msrb.mxu2 %v10020_v10 }
 0x18a   : > { %v9473_v12 = vld [vmem:[%s13836_s10 + $0x8e0] sm:$0xf0] }
 0x18b   : > { %v12798_v13 = vld [vmem:[%s13836_s10 + $0xac4] sm:$0xf]  ;;  %v9476_v20 = vor.u32 %v12734_v11, %v9473_v12  ;;  %6798 = vmatpush.bf16.msrb.mxu3 %v10276_v14 }
 0x18c   : > { %v9729_v15 = vld [vmem:[%s13836_s10 + $0xae0] sm:$0xf0] }
 0x18d   : > { %v12862_v16 = vld [vmem:[%s13836_s10 + $0xcc4] sm:$0xf]  ;;  %v9732_v22 = vor.u32 %v12798_v13, %v9729_v15  ;;  %6760 = vmatpush.bf16.msrb.mxu0 %v9476_v20  ;;  %v6520_v20 = vpop.f32.mrf.mxu1 }
 0x18e   : > { %v9985_v17 = vld [vmem:[%s13836_s10 + $0xce0] sm:$0xf0] }
 0x18f   : > { %v12926_v18 = vld [vmem:[%s13836_s10 + $0xec4] sm:$0xf]  ;;  %v9988_v23 = vor.u32 %v12862_v16, %v9985_v17  ;;  %6773 = vmatpush.bf16.msrb.mxu1 %v9732_v22 }
 0x190   : > { %v10241_v19 = vld [vmem:[%s13836_s10 + $0xee0] sm:$0xf0] }
 0x191   : > { %v12726_v26 = vld [vmem:[%s13836_s10 + $0x884] sm:$0xf]  ;;  %v10244_v30 = vor.u32 %v12926_v18, %v10241_v19  ;;  %6786 = vmatpush.bf16.msrb.mxu2 %v9988_v23 }
 0x192   : > { %v9441_v27 = vld [vmem:[%s13836_s10 + $0x8a0] sm:$0xf0] }
 0x193   : > { %v12790_v28 = vld [vmem:[%s13836_s10 + $0xa84] sm:$0xf]  ;;  %v9444_v45 = vor.u32 %v12726_v26, %v9441_v27  ;;  %6799 = vmatpush.bf16.msrb.mxu3 %v10244_v30 }
 0x194   : > { %v9697_v32 = vld [vmem:[%s13836_s10 + $0xaa0] sm:$0xf0] }
 0x195   : > { %v12854_v33 = vld [vmem:[%s13836_s10 + $0xc84] sm:$0xf]  ;;  %v9700_v47 = vor.u32 %v12790_v28, %v9697_v32  ;;  %6761 = vmatpush.bf16.msrb.mxu0 %v9444_v45  ;;  %v6533_v32 = vpop.f32.mrf.mxu2 }
 0x196   : > { %v9953_v37 = vld [vmem:[%s13836_s10 + $0xca0] sm:$0xf0]  ;;  %v14383_v32 = vpop.f32.mrf.mxu1 }
 0x197   : > { %v12918_v40 = vld [vmem:[%s13836_s10 + $0xe84] sm:$0xf]  ;;  %v9956_v48 = vor.u32 %v12854_v33, %v9953_v37  ;;  %6774 = vmatpush.bf16.msrb.mxu1 %v9700_v47  ;;  %v6546_v47 = vpop.f32.mrf.mxu3 }
 0x198   : > { %v10209_v44 = vld [vmem:[%s13836_s10 + $0xea0] sm:$0xf0] }
 0x199   : > { %v12718_v49 = vld [vmem:[%s13836_s10 + $0x844] sm:$0xf]  ;;  %v10212_v55 = vor.u32 %v12918_v40, %v10209_v44  ;;  %6787 = vmatpush.bf16.msrb.mxu2 %v9956_v48 }
 0x19a   : > { %v9409_v51 = vld [vmem:[%s13836_s10 + $0x860] sm:$0xf0] }
 0x19b   : > { %v12782_v52 = vld [vmem:[%s13836_s10 + $0xa44] sm:$0xf]  ;;  %v9412_v0 = vor.u32 %v12718_v49, %v9409_v51  ;;  %6800 = vmatpush.bf16.msrb.mxu3 %v10212_v55 }
 0x19c   : > { %v9665_v57 = vld [vmem:[%s13836_s10 + $0xa60] sm:$0xf0] }
 0x19d   : > { %v12846_v58 = vld [vmem:[%s13836_s10 + $0xc44] sm:$0xf]  ;;  %v9668_v4 = vor.u32 %v12782_v52, %v9665_v57  ;;  %6762 = vmatpush.bf16.msrb.mxu0 %v9412_v0 }
 0x19e   : > { %v9921_v59 = vld [vmem:[%s13836_s10 + $0xc60] sm:$0xf0] }
 0x19f   : > { %v12910_v61 = vld [vmem:[%s13836_s10 + $0xe44] sm:$0xf]  ;;  %v9924_v5 = vor.u32 %v12846_v58, %v9921_v59  ;;  %6775 = vmatpush.bf16.msrb.mxu1 %v9668_v4 }
 0x1a0   : > { %v10177_v62 = vld [vmem:[%s13836_s10 + $0xe60] sm:$0xf0] }
 0x1a1   : > { %v12710_v1 = vld [vmem:[%s13836_s10 + $0x804] sm:$0xf]  ;;  %v10180_v9 = vor.u32 %v12910_v61, %v10177_v62  ;;  %6788 = vmatpush.bf16.msrb.mxu2 %v9924_v5 }
 0x1a2   : > { %v9377_v2 = vld [vmem:[%s13836_s10 + $0x820] sm:$0xf0] }
 0x1a3   : > { %v12774_v6 = vld [vmem:[%s13836_s10 + $0xa04] sm:$0xf]  ;;  %v9380_v16 = vor.u32 %v12710_v1, %v9377_v2  ;;  %6801 = vmatpush.bf16.msrb.mxu3 %v10180_v9 }
 0x1a4   : > { %v9633_v7 = vld [vmem:[%s13836_s10 + $0xa20] sm:$0xf0] }
 0x1a5   : > { %v12838_v8 = vld [vmem:[%s13836_s10 + $0xc04] sm:$0xf]  ;;  %v9636_v22 = vor.u32 %v12774_v6, %v9633_v7  ;;  %6763 = vmatpush.bf16.msrb.mxu0 %v9380_v16 }
 0x1a6   : > { %v9889_v10 = vld [vmem:[%s13836_s10 + $0xc20] sm:$0xf0] }
 0x1a7   : > { %v12902_v11 = vld [vmem:[%s13836_s10 + $0xe04] sm:$0xf]  ;;  %v9892_v23 = vor.u32 %v12838_v8, %v9889_v10  ;;  %6776 = vmatpush.bf16.msrb.mxu1 %v9636_v22  ;;  %v14378_v22 = vpop.f32.mrf.mxu0 }
 0x1a8   : > { %v10145_v12 = vld [vmem:[%s13836_s10 + $0xe20] sm:$0xf0]  ;;  %6764 = vmatmul.bf16.vlgmr.msrb.gmra.mxu0 %v14056_v53 }
 0x1a9   : > { %v13022_v13 = vld [vmem:[%s13836_s10 + $0x11c4] sm:$0xf]  ;;  %v10148_v28 = vor.u32 %v12902_v11, %v10145_v12  ;;  %6789 = vmatpush.bf16.msrb.mxu2 %v9892_v23 }
 0x1aa   : > { %v10625_v14 = vld [vmem:[%s13836_s10 + $0x11e0] sm:$0xf0]  ;;  %6777 = vmatmul.bf16.vlgmr.msrb.gmra.mxu1 %v14060_v56 }
 0x1ab   : > { %v13086_v15 = vld [vmem:[%s13836_s10 + $0x13c4] sm:$0xf]  ;;  %v10628_v30 = vor.u32 %v13022_v13, %v10625_v14  ;;  %6802 = vmatpush.bf16.msrb.mxu3 %v10148_v28 }
 0x1ac   : > { %v10881_v17 = vld [vmem:[%s13836_s10 + $0x13e0] sm:$0xf0]  ;;  %6790 = vmatmul.bf16.vlgmr.msrb.gmra.mxu2 %v14052_v50 }
 0x1ad   : > { %v13150_v18 = vld [vmem:[%s13836_s10 + $0x15c4] sm:$0xf]  ;;  %v10884_v33 = vor.u32 %v13086_v15, %v10881_v17  ;;  %6808 = vmatpush.bf16.msra.mxu0 %v10628_v30 }
 0x1ae   : > { %v11137_v19 = vld [vmem:[%s13836_s10 + $0x15e0] sm:$0xf0]  ;;  %6803 = vmatmul.bf16.vlgmr.msrb.gmra.mxu3 %v14058_v54 }
 0x1af   : > { %v13214_v26 = vld [vmem:[%s13836_s10 + $0x17c4] sm:$0xf]  ;;  %v11140_v37 = vor.u32 %v13150_v18, %v11137_v19  ;;  %6821 = vmatpush.bf16.msra.mxu1 %v10884_v33 }
 0x1b0   : > { %v11393_v27 = vld [vmem:[%s13836_s10 + $0x17e0] sm:$0xf0] }
 0x1b1   : > { %v13014_v40 = vld [vmem:[%s13836_s10 + $0x1184] sm:$0xf]  ;;  %v11396_v48 = vor.u32 %v13214_v26, %v11393_v27  ;;  %6834 = vmatpush.bf16.msra.mxu2 %v11140_v37 }
 0x1b2   : > { %v10593_v44 = vld [vmem:[%s13836_s10 + $0x11a0] sm:$0xf0] }
 0x1b3   : > { %v13078_v45 = vld [vmem:[%s13836_s10 + $0x1384] sm:$0xf]  ;;  %v10596_v58 = vor.u32 %v13014_v40, %v10593_v44  ;;  %6847 = vmatpush.bf16.msra.mxu3 %v11396_v48 }
 0x1b4   : > { %v10849_v49 = vld [vmem:[%s13836_s10 + $0x13a0] sm:$0xf0] }
 0x1b5   : > { %v13142_v51 = vld [vmem:[%s13836_s10 + $0x1584] sm:$0xf]  ;;  %v10852_v59 = vor.u32 %v13078_v45, %v10849_v49  ;;  %6809 = vmatpush.bf16.msra.mxu0 %v10596_v58  ;;  %v14393_v58 = vpop.f32.mrf.mxu2 }
 0x1b6   : > { %v11105_v52 = vld [vmem:[%s13836_s10 + $0x15a0] sm:$0xf0] }
 0x1b7   : > { %v13206_v55 = vld [vmem:[%s13836_s10 + $0x1784] sm:$0xf]  ;;  %v11108_v61 = vor.u32 %v13142_v51, %v11105_v52  ;;  %6822 = vmatpush.bf16.msra.mxu1 %v10852_v59 }
 0x1b8   : > { %v11361_v57 = vld [vmem:[%s13836_s10 + $0x17a0] sm:$0xf0] }
 0x1b9   : > { %v13006_v62 = vld [vmem:[%s13836_s10 + $0x1144] sm:$0xf]  ;;  %v11364_v2 = vor.u32 %v13206_v55, %v11361_v57  ;;  %6835 = vmatpush.bf16.msra.mxu2 %v11108_v61 }
 0x1ba   : > { %v10561_v0 = vld [vmem:[%s13836_s10 + $0x1160] sm:$0xf0] }
 0x1bb   : > { %v13070_v1 = vld [vmem:[%s13836_s10 + $0x1344] sm:$0xf]  ;;  %v10564_v8 = vor.u32 %v13006_v62, %v10561_v0  ;;  %6848 = vmatpush.bf16.msra.mxu3 %v11364_v2 }
 0x1bc   : > { %v10817_v3 = vld [vmem:[%s13836_s10 + $0x1360] sm:$0xf0] }
 0x1bd   : > { %v13134_v4 = vld [vmem:[%s13836_s10 + $0x1544] sm:$0xf]  ;;  %v10820_v9 = vor.u32 %v13070_v1, %v10817_v3  ;;  %6810 = vmatpush.bf16.msra.mxu0 %v10564_v8  ;;  %v14398_v1 = vpop.f32.mrf.mxu3 }
 0x1be   : > { %v11073_v5 = vld [vmem:[%s13836_s10 + $0x1560] sm:$0xf0] }
 0x1bf   : > { %v13198_v6 = vld [vmem:[%s13836_s10 + $0x1744] sm:$0xf]  ;;  %v11076_v10 = vor.u32 %v13134_v4, %v11073_v5  ;;  %6823 = vmatpush.bf16.msra.mxu1 %v10820_v9 }
 0x1c0   : > { %v11329_v7 = vld [vmem:[%s13836_s10 + $0x1760] sm:$0xf0] }
 0x1c1   : > { %v12998_v11 = vld [vmem:[%s13836_s10 + $0x1104] sm:$0xf]  ;;  %v11332_v14 = vor.u32 %v13198_v6, %v11329_v7  ;;  %6836 = vmatpush.bf16.msra.mxu2 %v11076_v10  ;;  %v6559_v6 = vpop.f32.mrf.mxu0 }
 0x1c2   : > { %v10529_v12 = vld [vmem:[%s13836_s10 + $0x1120] sm:$0xf0] }
 0x1c3   : > { %v13062_v13 = vld [vmem:[%s13836_s10 + $0x1304] sm:$0xf]  ;;  %v10532_v20 = vor.u32 %v12998_v11, %v10529_v12  ;;  %6849 = vmatpush.bf16.msra.mxu3 %v11332_v14  ;;  %v6572_v12 = vpop.f32.mrf.mxu1 }
 0x1c4   : > { %v10785_v15 = vld [vmem:[%s13836_s10 + $0x1320] sm:$0xf0] }
 0x1c5   : > { %v13126_v16 = vld [vmem:[%s13836_s10 + $0x1504] sm:$0xf]  ;;  %v10788_v23 = vor.u32 %v13062_v13, %v10785_v15  ;;  %6811 = vmatpush.bf16.msra.mxu0 %v10532_v20 }
 0x1c6   : > { %v11041_v17 = vld [vmem:[%s13836_s10 + $0x1520] sm:$0xf0] }
 0x1c7   : > { %v13190_v18 = vld [vmem:[%s13836_s10 + $0x1704] sm:$0xf]  ;;  %v11044_v26 = vor.u32 %v13126_v16, %v11041_v17  ;;  %6824 = vmatpush.bf16.msra.mxu1 %v10788_v23 }
 0x1c8   : > { %v11297_v19 = vld [vmem:[%s13836_s10 + $0x1720] sm:$0xf0] }
 0x1c9   : > { %v12990_v27 = vld [vmem:[%s13836_s10 + $0x10c4] sm:$0xf]  ;;  %v11300_v33 = vor.u32 %v13190_v18, %v11297_v19  ;;  %6837 = vmatpush.bf16.msra.mxu2 %v11044_v26 }
 0x1ca   : > { %v10497_v28 = vld [vmem:[%s13836_s10 + $0x10e0] sm:$0xf0] }
 0x1cb   : > { %v13054_v30 = vld [vmem:[%s13836_s10 + $0x12c4] sm:$0xf]  ;;  %v10500_v48 = vor.u32 %v12990_v27, %v10497_v28  ;;  %6850 = vmatpush.bf16.msra.mxu3 %v11300_v33 }
 0x1cc   : > { %v10753_v37 = vld [vmem:[%s13836_s10 + $0x12e0] sm:$0xf0] }
 0x1cd   : > { %v13118_v40 = vld [vmem:[%s13836_s10 + $0x14c4] sm:$0xf]  ;;  %v10756_v49 = vor.u32 %v13054_v30, %v10753_v37  ;;  %6812 = vmatpush.bf16.msra.mxu0 %v10500_v48 }
 0x1ce   : > { %v11009_v44 = vld [vmem:[%s13836_s10 + $0x14e0] sm:$0xf0] }
 0x1cf   : > { %v13182_v45 = vld [vmem:[%s13836_s10 + $0x16c4] sm:$0xf]  ;;  %v11012_v51 = vor.u32 %v13118_v40, %v11009_v44  ;;  %6825 = vmatpush.bf16.msra.mxu1 %v10756_v49  ;;  %v6585_v40 = vpop.f32.mrf.mxu2  ;;  %v6598_v49 = vpop.f32.mrf.mxu3 }
 0x1d0   : > { %v11265_v47 = vld [vmem:[%s13836_s10 + $0x16e0] sm:$0xf0] }
 0x1d1   : > { %v12982_v52 = vld [vmem:[%s13836_s10 + $0x1084] sm:$0xf]  ;;  %v11268_v59 = vor.u32 %v13182_v45, %v11265_v47  ;;  %6838 = vmatpush.bf16.msra.mxu2 %v11012_v51 }
 0x1d2   : > { %v10465_v55 = vld [vmem:[%s13836_s10 + $0x10a0] sm:$0xf0] }
 0x1d3   : > { %v13046_v57 = vld [vmem:[%s13836_s10 + $0x1284] sm:$0xf]  ;;  %v10468_v5 = vor.u32 %v12982_v52, %v10465_v55  ;;  %6851 = vmatpush.bf16.msra.mxu3 %v11268_v59 }
 0x1d4   : > { %v10721_v61 = vld [vmem:[%s13836_s10 + $0x12a0] sm:$0xf0] }
 0x1d5   : > { %v13110_v62 = vld [vmem:[%s13836_s10 + $0x1484] sm:$0xf]  ;;  %v10724_v7 = vor.u32 %v13046_v57, %v10721_v61  ;;  %6813 = vmatpush.bf16.msra.mxu0 %v10468_v5 }
 0x1d6   : > { %v10977_v0 = vld [vmem:[%s13836_s10 + $0x14a0] sm:$0xf0] }
 0x1d7   : > { %v13174_v2 = vld [vmem:[%s13836_s10 + $0x1684] sm:$0xf]  ;;  %v10980_v8 = vor.u32 %v13110_v62, %v10977_v0  ;;  %6826 = vmatpush.bf16.msra.mxu1 %v10724_v7 }
 0x1d8   : > { %v11233_v3 = vld [vmem:[%s13836_s10 + $0x16a0] sm:$0xf0] }
 0x1d9   : > { %v14403_v4 = vld [vmem:[%s13842_s8] sm:$0xff]  ;;  %v11236_v13 = vor.u32 %v13174_v2, %v11233_v3  ;;  %6839 = vmatpush.bf16.msra.mxu2 %v10980_v8 }
 0x1da   : > { %v12974_v9 = vld [vmem:[%s13836_s10 + $0x1044] sm:$0xf]  ;;  %v1360_v19 = vperm.slane %v14403_v4, 0 }
 0x1db   : > { %v10433_v10 = vld [vmem:[%s13836_s10 + $0x1060] sm:$0xf0]  ;;  %6852 = vmatpush.bf16.msra.mxu3 %v11236_v13 }
 0x1dc   : > { %v13038_v11 = vld [vmem:[%s13836_s10 + $0x1244] sm:$0xf]  ;;  %v10436_v20 = vor.u32 %v12974_v9, %v10433_v10  ;;  %v6506_v8 = vadd.f32 %v14310_v21, %v1360_v19 }
 0x1dd   : > { %v10689_v14 = vld [vmem:[%s13836_s10 + $0x1260] sm:$0xf0] }
 0x1de   : > { %v13102_v15 = vld [vmem:[%s13836_s10 + $0x1444] sm:$0xf]  ;;  %v10692_v27 = vor.u32 %v13038_v11, %v10689_v14  ;;  %6814 = vmatpush.bf16.msra.mxu0 %v10436_v20  ;;  %v6519_v19 = vadd.f32 %v14320_v46, %v6506_v8 }
 0x1df   : > { %v10945_v16 = vld [vmem:[%s13836_s10 + $0x1460] sm:$0xf0] }
 0x1e0   : > { %v13166_v17 = vld [vmem:[%s13836_s10 + $0x1644] sm:$0xf]  ;;  %v10948_v28 = vor.u32 %v13102_v15, %v10945_v16  ;;  %6827 = vmatpush.bf16.msra.mxu1 %v10692_v27 }
 0x1e1   : > { %v11201_v18 = vld [vmem:[%s13836_s10 + $0x1660] sm:$0xf0] }
 0x1e2   : > { %v12966_v23 = vld [vmem:[%s13836_s10 + $0x1004] sm:$0xf]  ;;  %v11204_v44 = vor.u32 %v13166_v17, %v11201_v18  ;;  %6840 = vmatpush.bf16.msra.mxu2 %v10948_v28 }
 0x1e3   : > { %v10401_v26 = vld [vmem:[%s13836_s10 + $0x1020] sm:$0xf0] }
 0x1e4   : > { %v13030_v30 = vld [vmem:[%s13836_s10 + $0x1204] sm:$0xf]  ;;  %v10404_v57 = vor.u32 %v12966_v23, %v10401_v26  ;;  %6853 = vmatpush.bf16.msra.mxu3 %v11204_v44 }
 0x1e5   : > { %v10657_v33 = vld [vmem:[%s13836_s10 + $0x1220] sm:$0xf0] }
 0x1e6   : > { %v13094_v37 = vld [vmem:[%s13836_s10 + $0x1404] sm:$0xf]  ;;  %v10660_v0 = vor.u32 %v13030_v30, %v10657_v33  ;;  %6815 = vmatpush.bf16.msra.mxu0 %v10404_v57 }
 0x1e7   : > { %v10913_v45 = vld [vmem:[%s13836_s10 + $0x1420] sm:$0xf0] }
 0x1e8   : > { %v13158_v47 = vld [vmem:[%s13836_s10 + $0x1604] sm:$0xf]  ;;  %v10916_v2 = vor.u32 %v13094_v37, %v10913_v45  ;;  %6828 = vmatpush.bf16.msra.mxu1 %v10660_v0 }
 0x1e9   : > { %v11169_v48 = vld [vmem:[%s13836_s10 + $0x1620] sm:$0xf0]  ;;  %6816 = vmatmul.bf16.vlgmr.msra.gmra.mxu0 %v14125_v34 }
 0x1ea   : > { %v13278_v51 = vld [vmem:[%s13836_s10 + $0x19c4] sm:$0xf]  ;;  %v11172_v6 = vor.u32 %v13158_v47, %v11169_v48  ;;  %6841 = vmatpush.bf16.msra.mxu2 %v10916_v2  ;;  %v6532_v48 = vadd.f32 %v14328_v60, %v6519_v19  ;;  %v14459_v2 = vpop.f32.mrf.mxu0 }
 0x1eb   : > { %v11649_v52 = vld [vmem:[%s13836_s10 + $0x19e0] sm:$0xf0]  ;;  %6829 = vmatmul.bf16.vlgmr.msra.gmra.mxu1 %v14132_v39 }
 0x1ec   : > { %v13342_v55 = vld [vmem:[%s13836_s10 + $0x1bc4] sm:$0xf]  ;;  %v11652_v7 = vor.u32 %v13278_v51, %v11649_v52  ;;  %6854 = vmatpush.bf16.msra.mxu3 %v11172_v6  ;;  %v14463_v6 = vpop.f32.mrf.mxu1 }
 0x1ed   : > { %v11905_v59 = vld [vmem:[%s13836_s10 + $0x1be0] sm:$0xf0]  ;;  %6842 = vmatmul.bf16.vlgmr.msra.gmra.mxu2 %v14130_v38 }
 0x1ee   : > { %v13406_v61 = vld [vmem:[%s13836_s10 + $0x1dc4] sm:$0xf]  ;;  %v11908_v9 = vor.u32 %v13342_v55, %v11905_v59  ;;  %6860 = vmatpush.bf16.msrb.mxu0 %v11652_v7  ;;  %v6545_v7 = vadd.f32 %v14332_v63, %v6532_v48 }
 0x1ef   : > { %v12161_v62 = vld [vmem:[%s13836_s10 + $0x1de0] sm:$0xf0]  ;;  %6855 = vmatmul.bf16.vlgmr.msra.gmra.mxu3 %v14136_v43 }
 0x1f0   : > { %v13470_v3 = vld [vmem:[%s13836_s10 + $0x1fc4] sm:$0xf]  ;;  %v12164_v10 = vor.u32 %v13406_v61, %v12161_v62  ;;  %6873 = vmatpush.bf16.msrb.mxu1 %v11908_v9 }
 0x1f1   : > { %v12417_v5 = vld [vmem:[%s13836_s10 + $0x1fe0] sm:$0xf0] }
 0x1f2   : > { %v13270_v11 = vld [vmem:[%s13836_s10 + $0x1984] sm:$0xf]  ;;  %v12420_v14 = vor.u32 %v13470_v3, %v12417_v5  ;;  %6886 = vmatpush.bf16.msrb.mxu2 %v12164_v10 }
 0x1f3   : > { %v11617_v12 = vld [vmem:[%s13836_s10 + $0x19a0] sm:$0xf0] }
 0x1f4   : > { %v13334_v13 = vld [vmem:[%s13836_s10 + $0x1b84] sm:$0xf]  ;;  %v11620_v21 = vor.u32 %v13270_v11, %v11617_v12  ;;  %6899 = vmatpush.bf16.msrb.mxu3 %v12420_v14  ;;  %v6624_v48 = vpop.f32.mrf.mxu1 }
 0x1f5   : > { %v11873_v15 = vld [vmem:[%s13836_s10 + $0x1ba0] sm:$0xf0] }
 0x1f6   : > { %v13398_v16 = vld [vmem:[%s13836_s10 + $0x1d84] sm:$0xf]  ;;  %v11876_v23 = vor.u32 %v13334_v13, %v11873_v15  ;;  %6861 = vmatpush.bf16.msrb.mxu0 %v11620_v21 }
 0x1f7   : > { %v12129_v17 = vld [vmem:[%s13836_s10 + $0x1da0] sm:$0xf0] }
 0x1f8   : > { %v13462_v18 = vld [vmem:[%s13836_s10 + $0x1f84] sm:$0xf]  ;;  %v12132_v26 = vor.u32 %v13398_v16, %v12129_v17  ;;  %6874 = vmatpush.bf16.msrb.mxu1 %v11876_v23 }
 0x1f9   : > { %v12385_v20 = vld [vmem:[%s13836_s10 + $0x1fa0] sm:$0xf0] }
 0x1fa   : > { %v13262_v27 = vld [vmem:[%s13836_s10 + $0x1944] sm:$0xf]  ;;  %v12388_v33 = vor.u32 %v13462_v18, %v12385_v20  ;;  %6887 = vmatpush.bf16.msrb.mxu2 %v12132_v26  ;;  %v6558_v20 = vadd.f32 %v14378_v22, %v6545_v7 }
 0x1fb   : > { %v11585_v28 = vld [vmem:[%s13836_s10 + $0x1960] sm:$0xf0] }
 0x1fc   : > { %v13326_v30 = vld [vmem:[%s13836_s10 + $0x1b44] sm:$0xf]  ;;  %v11588_v47 = vor.u32 %v13262_v27, %v11585_v28  ;;  %6900 = vmatpush.bf16.msrb.mxu3 %v12388_v33 }
 0x1fd   : > { %v11841_v37 = vld [vmem:[%s13836_s10 + $0x1b60] sm:$0xf0] }
 0x1fe   : > { %v13390_v40 = vld [vmem:[%s13836_s10 + $0x1d44] sm:$0xf]  ;;  %v11844_v49 = vor.u32 %v13326_v30, %v11841_v37  ;;  %6862 = vmatpush.bf16.msrb.mxu0 %v11588_v47  ;;  %v14478_v30 = vpop.f32.mrf.mxu2 }
 0x1ff   : > { %v12097_v44 = vld [vmem:[%s13836_s10 + $0x1d60] sm:$0xf0] }
 0x200   : > { %v13454_v46 = vld [vmem:[%s13836_s10 + $0x1f44] sm:$0xf]  ;;  %v12100_v51 = vor.u32 %v13390_v40, %v12097_v44  ;;  %6875 = vmatpush.bf16.msrb.mxu1 %v11844_v49  ;;  %v14483_v44 = vpop.f32.mrf.mxu3  ;;  %v6571_v49 = vadd.f32 %v14383_v32, %v6558_v20  ;;  %v12515_v20 = vld [vmem:[%s13836_s10 + $0x1e4] sm:$0xf0] }
 0x201   : > { %v12353_v45 = vld [vmem:[%s13836_s10 + $0x1f60] sm:$0xf0] }
 0x202   : > { %v13254_v52 = vld [vmem:[%s13836_s10 + $0x1904] sm:$0xf]  ;;  %v12356_v59 = vor.u32 %v13454_v46, %v12353_v45  ;;  %6888 = vmatpush.bf16.msrb.mxu2 %v12100_v51  ;;  %v6611_v45 = vpop.f32.mrf.mxu0 }
 0x203   : > { %v11553_v55 = vld [vmem:[%s13836_s10 + $0x1920] sm:$0xf0] }
 0x204   : > { %v13318_v57 = vld [vmem:[%s13836_s10 + $0x1b04] sm:$0xf]  ;;  %v11556_v5 = vor.u32 %v13254_v52, %v11553_v55  ;;  %6901 = vmatpush.bf16.msrb.mxu3 %v12356_v59 }
 0x205   : > { %v11809_v61 = vld [vmem:[%s13836_s10 + $0x1b20] sm:$0xf0] }
 0x206   : > { %v13382_v62 = vld [vmem:[%s13836_s10 + $0x1d04] sm:$0xf]  ;;  %v11812_v8 = vor.u32 %v13318_v57, %v11809_v61  ;;  %6863 = vmatpush.bf16.msrb.mxu0 %v11556_v5 }
 0x207   : > { %v12065_v0 = vld [vmem:[%s13836_s10 + $0x1d20] sm:$0xf0] }
 0x208   : > { %v13446_v3 = vld [vmem:[%s13836_s10 + $0x1f04] sm:$0xf]  ;;  %v12068_v9 = vor.u32 %v13382_v62, %v12065_v0  ;;  %6876 = vmatpush.bf16.msrb.mxu1 %v11812_v8 }
 0x209   : > { %v12321_v60 = vld [vmem:[%s13836_s10 + $0x1f20] sm:$0xf0] }
 0x20a   : > { %v13246_v10 = vld [vmem:[%s13836_s10 + $0x18c4] sm:$0xf]  ;;  %v12324_v13 = vor.u32 %v13446_v3, %v12321_v60  ;;  %6889 = vmatpush.bf16.msrb.mxu2 %v12068_v9  ;;  %v6584_v9 = vadd.f32 %v14393_v58, %v6571_v49  ;;  %v8583_v58 = vld [vmem:[%s13836_s10 + $0x1c8] sm:$0xf] }
 0x20b   : > { %v11521_v11 = vld [vmem:[%s13836_s10 + $0x18e0] sm:$0xf0] }
 0x20c   : > { %v13310_v12 = vld [vmem:[%s13836_s10 + $0x1ac4] sm:$0xf]  ;;  %v11524_v63 = vor.u32 %v13246_v10, %v11521_v11  ;;  %6902 = vmatpush.bf16.msrb.mxu3 %v12324_v13 }
 0x20d   : > { %v11777_v14 = vld [vmem:[%s13836_s10 + $0x1ae0] sm:$0xf0] }
 0x20e   : > { %v13374_v15 = vld [vmem:[%s13836_s10 + $0x1cc4] sm:$0xf]  ;;  %v11780_v21 = vor.u32 %v13310_v12, %v11777_v14  ;;  %6864 = vmatpush.bf16.msrb.mxu0 %v11524_v63  ;;  %v6637_v63 = vpop.f32.mrf.mxu2 }
 0x20f   : > { %v12033_v16 = vld [vmem:[%s13836_s10 + $0x1ce0] sm:$0xf0]  ;;  %v12491_v63 = vld [vmem:[%s13836_s10 + $0x124] sm:$0xf0] }
 0x210   : > { %v13438_v17 = vld [vmem:[%s13836_s10 + $0x1ec4] sm:$0xf]  ;;  %v12036_v19 = vor.u32 %v13374_v15, %v12033_v16  ;;  %6877 = vmatpush.bf16.msrb.mxu1 %v11780_v21  ;;  %v8839_v21 = vld [vmem:[%s13836_s10 + $0x3c8] sm:$0xf] }
 0x211   : > { %v12289_v18 = vld [vmem:[%s13836_s10 + $0x1ee0] sm:$0xf0] }
 0x212   : > { %v13238_v23 = vld [vmem:[%s13836_s10 + $0x1884] sm:$0xf]  ;;  %v12292_v28 = vor.u32 %v13438_v17, %v12289_v18  ;;  %6890 = vmatpush.bf16.msrb.mxu2 %v12036_v19  ;;  %v6650_v19 = vpop.f32.mrf.mxu3 }
 0x213   : > { %v11489_v26 = vld [vmem:[%s13836_s10 + $0x18a0] sm:$0xf0]  ;;  %v8999_v19 = vld [vmem:[%s13836_s10 + $0x508] sm:$0xf] }
 0x214   : > { %v13302_v27 = vld [vmem:[%s13836_s10 + $0x1a84] sm:$0xf]  ;;  %v11492_v47 = vor.u32 %v13238_v23, %v11489_v26  ;;  %6903 = vmatpush.bf16.msrb.mxu3 %v12292_v28  ;;  %v12579_v26 = vld [vmem:[%s13836_s10 + $0x3e4] sm:$0xf0] }
 0x215   : > { %v11745_v33 = vld [vmem:[%s13836_s10 + $0x1aa0] sm:$0xf0]  ;;  %v12643_v28 = vld [vmem:[%s13836_s10 + $0x5e4] sm:$0xf0]  ;;  %v8840_v49 = vor.u32 %v12579_v26, %v8839_v21 }
 0x216   : > { %v13366_v37 = vld [vmem:[%s13836_s10 + $0x1c84] sm:$0xf]  ;;  %v11748_v51 = vor.u32 %v13302_v27, %v11745_v33  ;;  %6865 = vmatpush.bf16.msrb.mxu0 %v11492_v47  ;;  %v9095_v27 = vld [vmem:[%s13836_s10 + $0x5c8] sm:$0xf]  ;;  %v6597_v33 = vadd.f32 %v14398_v1, %v6584_v9  ;;  %v8584_v47 = vor.u32 %v12515_v20, %v8583_v58 }
 0x217   : > { %v12001_v40 = vld [vmem:[%s13836_s10 + $0x1ca0] sm:$0xf0]  ;;  %v12507_v1 = vld [vmem:[%s13836_s10 + $0x1a4] sm:$0xf0] }
 0x218   : > { %v13430_v22 = vld [vmem:[%s13836_s10 + $0x1e84] sm:$0xf]  ;;  %v12004_v52 = vor.u32 %v13366_v37, %v12001_v40  ;;  %6878 = vmatpush.bf16.msrb.mxu1 %v11748_v51  ;;  %v6610_v48 = vadd.f32 %v14459_v2, %v6597_v33  ;;  %v9096_v51 = vor.u32 %v12643_v28, %v9095_v27  ;;  %v8775_v9 = vld [vmem:[%s13836_s10 + $0x348] sm:$0xf]  ;;  %v6661_v27 = vpop.f32.mrf.mxu0 }
 0x219   : > { %v12257_v46 = vld [vmem:[%s13836_s10 + $0x1ea0] sm:$0xf0]  ;;  %v8743_v58 = vld [vmem:[%s13836_s10 + $0x308] sm:$0xf] }
 0x21a   : > { %v13230_v55 = vld [vmem:[%s13836_s10 + $0x1844] sm:$0xf]  ;;  %v12260_v61 = vor.u32 %v13430_v22, %v12257_v46  ;;  %6891 = vmatpush.bf16.msrb.mxu2 %v12004_v52  ;;  %v9351_v22 = vld [vmem:[%s13836_s10 + $0x7c8] sm:$0xf] }
 0x21b   : > { %v11457_v57 = vld [vmem:[%s13836_s10 + $0x1860] sm:$0xf0]  ;;  %v12707_v46 = vld [vmem:[%s13836_s10 + $0x7e4] sm:$0xf0] }
 0x21c   : > { %v13294_v59 = vld [vmem:[%s13836_s10 + $0x1a44] sm:$0xf]  ;;  %v11460_v5 = vor.u32 %v13230_v55, %v11457_v57  ;;  %6904 = vmatpush.bf16.msrb.mxu3 %v12260_v61  ;;  %v8551_v52 = vld [vmem:[%s13836_s10 + $0x188] sm:$0xf]  ;;  %v9352_v57 = vor.u32 %v12707_v46, %v9351_v22 }
 0x21d   : > { %v11713_v62 = vld [vmem:[%s13836_s10 + $0x1a60] sm:$0xf0]  ;;  %v8807_v55 = vld [vmem:[%s13836_s10 + $0x388] sm:$0xf]  ;;  %v8552_v2 = vor.u32 %v12507_v1, %v8551_v52 }
 0x21e   : > { %v13358_v0 = vld [vmem:[%s13836_s10 + $0x1c44] sm:$0xf]  ;;  %v11716_v10 = vor.u32 %v13294_v59, %v11713_v62  ;;  %6866 = vmatpush.bf16.msrb.mxu0 %v11460_v5  ;;  %v12571_v59 = vld [vmem:[%s13836_s10 + $0x3a4] sm:$0xf0] }
 0x21f   : > { %v11969_v3 = vld [vmem:[%s13836_s10 + $0x1c60] sm:$0xf0]  ;;  %v9063_v61 = vld [vmem:[%s13836_s10 + $0x588] sm:$0xf] }
 0x220   : > { %v13422_v60 = vld [vmem:[%s13836_s10 + $0x1e44] sm:$0xf]  ;;  %v11972_v11 = vor.u32 %v13358_v0, %v11969_v3  ;;  %6879 = vmatpush.bf16.msrb.mxu1 %v11716_v10  ;;  %v12635_v62 = vld [vmem:[%s13836_s10 + $0x5a4] sm:$0xf0] }
 0x221   : > { %v12225_v32 = vld [vmem:[%s13836_s10 + $0x1e60] sm:$0xf0]  ;;  %v9319_v0 = vld [vmem:[%s13836_s10 + $0x788] sm:$0xf]  ;;  %v9064_v5 = vor.u32 %v12635_v62, %v9063_v61 }
 0x222   : > { %v13222_v7 = vld [vmem:[%s13836_s10 + $0x1804] sm:$0xf]  ;;  %v12228_v15 = vor.u32 %v13422_v60, %v12225_v32  ;;  %6892 = vmatpush.bf16.msrb.mxu2 %v11972_v11  ;;  %v12699_v3 = vld [vmem:[%s13836_s10 + $0x7a4] sm:$0xf0]  ;;  %v6623_v60 = vadd.f32 %v14463_v6, %v6610_v48  ;;  %v8808_v32 = vor.u32 %v12571_v59, %v8807_v55 }
 0x223   : > { %v11425_v8 = vld [vmem:[%s13836_s10 + $0x1820] sm:$0xf0]  ;;  %v9320_v10 = vor.u32 %v12699_v3, %v9319_v0  ;;  %v12563_v11 = vld [vmem:[%s13836_s10 + $0x364] sm:$0xf0] }
 0x224   : > { %v13286_v12 = vld [vmem:[%s13836_s10 + $0x1a04] sm:$0xf]  ;;  %v11428_v23 = vor.u32 %v13222_v7, %v11425_v8  ;;  %6905 = vmatpush.bf16.msrb.mxu3 %v12228_v15  ;;  %v8519_v7 = vld [vmem:[%s13836_s10 + $0x148] sm:$0xf]  ;;  %v6636_v6 = vadd.f32 %v14478_v30, %v6623_v60 }
 0x225   : > { %v11681_v13 = vld [vmem:[%s13836_s10 + $0x1a20] sm:$0xf0]  ;;  %v12499_v8 = vld [vmem:[%s13836_s10 + $0x164] sm:$0xf0] }
 0x226   : > { %v13350_v14 = vld [vmem:[%s13836_s10 + $0x1c04] sm:$0xf]  ;;  %v11684_v37 = vor.u32 %v13286_v12, %v11681_v13  ;;  %6867 = vmatpush.bf16.msrb.mxu0 %v11428_v23  ;;  %v9031_v12 = vld [vmem:[%s13836_s10 + $0x548] sm:$0xf]  ;;  %v6649_v26 = vadd.f32 %v14483_v44, %v6636_v6  ;;  %v6663_v6 = vpop.f32.mrf.mxu0 }
 0x227   : > { %v11937_v16 = vld [vmem:[%s13836_s10 + $0x1c20] sm:$0xf0]  ;;  %v12627_v13 = vld [vmem:[%s13836_s10 + $0x564] sm:$0xf0] }
 0x228   : > { %v13414_v17 = vld [vmem:[%s13836_s10 + $0x1e04] sm:$0xf]  ;;  %v11940_v40 = vor.u32 %v13350_v14, %v11937_v16  ;;  %6880 = vmatpush.bf16.msrb.mxu1 %v11684_v37  ;;  %v9287_v14 = vld [vmem:[%s13836_s10 + $0x748] sm:$0xf]  ;;  %v8520_v16 = vor.u32 %v12499_v8, %v8519_v7  ;;  %v6662_v22 = vadd.f32 %v6661_v27, %v6649_v26 }
 0x229   : > { %v12193_v18 = vld [vmem:[%s13836_s10 + $0x1e20] sm:$0xf0]  ;;  %6868 = vmatmul.bf16.vlgmr.msrb.gmra.mxu0 %v14201_v29  ;;  %v12691_v15 = vld [vmem:[%s13836_s10 + $0x764] sm:$0xf0] }
 0x22a   : > { %v12196_v45 = vor.u32 %v13414_v17, %v12193_v18  ;;  %6893 = vmatpush.bf16.msrb.mxu2 %v11940_v40  ;;  %6912 = vmatpush.bf16.msra.mxu0 %v8584_v47  ;;  %v8776_v17 = vor.u32 %v12563_v11, %v8775_v9  ;;  %v9032_v18 = vor.u32 %v12627_v13, %v9031_v12  ;;  %v8487_v30 = vld [vmem:[%s13836_s10 + $0x108] sm:$0xf]  ;;  %v6674_v40 = vpop.f32.mrf.mxu1  ;;  %v6700_v11 = vpop.f32.mrf.mxu3 }
 0x22b   : > { %6881 = vmatmul.bf16.vlgmr.msrb.gmra.mxu1 %v14208_v36  ;;  %v9288_v20 = vor.u32 %v12691_v15, %v9287_v14  ;;  %v12555_v21 = vld [vmem:[%s13836_s10 + $0x324] sm:$0xf0]  ;;  %v8488_v37 = vor.u32 %v12491_v63, %v8487_v30  ;;  %v6675_v61 = vadd.f32 %v6674_v40, %v6662_v22 }
 0x22c   : > { %6906 = vmatpush.bf16.msrb.mxu3 %v12196_v45  ;;  %6925 = vmatpush.bf16.msra.mxu1 %v8840_v49  ;;  %v12619_v23 = vld [vmem:[%s13836_s10 + $0x524] sm:$0xf0]  ;;  %v8744_v46 = vor.u32 %v12555_v21, %v8743_v58 }
 0x22d   : > { %6894 = vmatmul.bf16.vlgmr.msrb.gmra.mxu2 %v14206_v35  ;;  %v9255_v28 = vld [vmem:[%s13836_s10 + $0x708] sm:$0xf]  ;;  %v9000_v45 = vor.u32 %v12619_v23, %v8999_v19 }
 0x22e   : > { %6938 = vmatpush.bf16.msra.mxu2 %v9096_v51  ;;  %6913 = vmatpush.bf16.msra.mxu0 %v8552_v2  ;;  %v12683_v33 = vld [vmem:[%s13836_s10 + $0x724] sm:$0xf0] }
 0x22f   : > { %6907 = vmatmul.bf16.vlgmr.msrb.gmra.mxu3 %v14212_v42  ;;  %v8455_v47 = vld [vmem:[%s13836_s10 + $0xc8] sm:$0xf]  ;;  %v9256_v49 = vor.u32 %v12683_v33, %v9255_v28 }
 0x230   : > { %6951 = vmatpush.bf16.msra.mxu3 %v9352_v57  ;;  %6926 = vmatpush.bf16.msra.mxu1 %v8808_v32  ;;  %v12483_v48 = vld [vmem:[%s13836_s10 + $0xe4] sm:$0xf0] }
 0x231   : > { %v8711_v44 = vld [vmem:[%s13836_s10 + $0x2c8] sm:$0xf]  ;;  %v8456_v59 = vor.u32 %v12483_v48, %v8455_v47 }
 0x232   : > { %6939 = vmatpush.bf16.msra.mxu2 %v9064_v5  ;;  %6914 = vmatpush.bf16.msra.mxu0 %v8520_v16  ;;  %v12547_v51 = vld [vmem:[%s13836_s10 + $0x2e4] sm:$0xf0]  ;;  %v6687_v5 = vpop.f32.mrf.mxu2  ;;  %v6676_v15 = vpop.f32.mrf.mxu1 }
 0x233   : > { %v8967_v52 = vld [vmem:[%s13836_s10 + $0x4c8] sm:$0xf]  ;;  %v8712_v62 = vor.u32 %v12547_v51, %v8711_v44 }
 0x234   : > { %6952 = vmatpush.bf16.msra.mxu3 %v9320_v10  ;;  %6927 = vmatpush.bf16.msra.mxu1 %v8776_v17  ;;  %v12611_v1 = vld [vmem:[%s13836_s10 + $0x4e4] sm:$0xf0]  ;;  %v6688_v10 = vadd.f32 %v6687_v5, %v6675_v61 }
 0x235   : > { %v9223_v55 = vld [vmem:[%s13836_s10 + $0x6c8] sm:$0xf]  ;;  %v8968_v0 = vor.u32 %v12611_v1, %v8967_v52 }
 0x236   : > { %6940 = vmatpush.bf16.msra.mxu2 %v9032_v18  ;;  %v12675_v57 = vld [vmem:[%s13836_s10 + $0x6e4] sm:$0xf0]  ;;  %6915 = vmatpush.bf16.msra.mxu0 %v8488_v37  ;;  %v6701_v16 = vadd.f32 %v6700_v11, %v6688_v10 }
 0x237   : > { %v8423_v3 = vld [vmem:[%s13836_s10 + $0x88] sm:$0xf]  ;;  %v9224_v32 = vor.u32 %v12675_v57, %v9223_v55 }
 0x238   : > { %6953 = vmatpush.bf16.msra.mxu3 %v9288_v20  ;;  %6928 = vmatpush.bf16.msra.mxu1 %v8744_v46  ;;  %v12475_v2 = vld [vmem:[%s13836_s10 + $0xa4] sm:$0xf0]  ;;  %13557 = vtanh.f32 %v6701_v16 }
 0x239   : > { %v8679_v60 = vld [vmem:[%s13836_s10 + $0x288] sm:$0xf]  ;;  %v8424_v14 = vor.u32 %v12475_v2, %v8423_v3 }
 0x23a   : > { %6941 = vmatpush.bf16.msra.mxu2 %v9000_v45  ;;  %v12539_v7 = vld [vmem:[%s13836_s10 + $0x2a4] sm:$0xf0]  ;;  %6916 = vmatpush.bf16.msra.mxu0 %v8456_v59  ;;  %v6689_v52 = vpop.f32.mrf.mxu2  ;;  %v6702_v59 = vpop.f32.mrf.mxu3 }
 0x23b   : > { %v8935_v8 = vld [vmem:[%s13836_s10 + $0x488] sm:$0xf]  ;;  %v8680_v17 = vor.u32 %v12539_v7, %v8679_v60 }
 0x23c   : > { %6954 = vmatpush.bf16.msra.mxu3 %v9256_v49  ;;  %v12603_v9 = vld [vmem:[%s13836_s10 + $0x4a4] sm:$0xf0]  ;;  %6929 = vmatpush.bf16.msra.mxu1 %v8712_v62 }
 0x23d   : > { %v9191_v12 = vld [vmem:[%s13836_s10 + $0x688] sm:$0xf]  ;;  %v8936_v18 = vor.u32 %v12603_v9, %v8935_v8 }
 0x23e   : > { %v12667_v13 = vld [vmem:[%s13836_s10 + $0x6a4] sm:$0xf0]  ;;  %6942 = vmatpush.bf16.msra.mxu2 %v8968_v0  ;;  %6917 = vmatpush.bf16.msra.mxu0 %v8424_v14  ;;  %v14587_v2 = vpop.eup %13557 }
 0x23f   : > { %v8391_v30 = vld [vmem:[%s13836_s10 + $0x48] sm:$0xf]  ;;  %v9192_v20 = vor.u32 %v12667_v13, %v9191_v12  ;;  %8173 = vst [vmem:[%s14592_s25] sm:$0xff] %v14587_v2 }
 0x240   : > { %v12467_v63 = vld [vmem:[%s13836_s10 + $0x64] sm:$0xf0]  ;;  %6955 = vmatpush.bf16.msra.mxu3 %v9224_v32  ;;  %6930 = vmatpush.bf16.msra.mxu1 %v8680_v17 }
 0x241   : > { %v8647_v58 = vld [vmem:[%s13836_s10 + $0x248] sm:$0xf]  ;;  %v8392_v28 = vor.u32 %v12467_v63, %v8391_v30 }
 0x242   : > { %v12531_v21 = vld [vmem:[%s13836_s10 + $0x264] sm:$0xf0]  ;;  %6943 = vmatpush.bf16.msra.mxu2 %v8936_v18 }
 0x243   : > { %v8903_v19 = vld [vmem:[%s13836_s10 + $0x448] sm:$0xf]  ;;  %v8648_v40 = vor.u32 %v12531_v21, %v8647_v58  ;;  %6918 = vmatpush.bf16.msra.mxu0 %v8392_v28 }
 0x244   : > { %v12595_v23 = vld [vmem:[%s13836_s10 + $0x464] sm:$0xf0]  ;;  %6956 = vmatpush.bf16.msra.mxu3 %v9192_v20 }
 0x245   : > { %v9159_v26 = vld [vmem:[%s13836_s10 + $0x648] sm:$0xf]  ;;  %v8904_v22 = vor.u32 %v12595_v23, %v8903_v19  ;;  %6931 = vmatpush.bf16.msra.mxu1 %v8648_v40 }
 0x246   : > { %v12659_v27 = vld [vmem:[%s13836_s10 + $0x664] sm:$0xf0] }
 0x247   : > { %v8359_v33 = vld [vmem:[%s13836_s10 + $0x8] sm:$0xf]  ;;  %v9160_v48 = vor.u32 %v12659_v27, %v9159_v26  ;;  %6944 = vmatpush.bf16.msra.mxu2 %v8904_v22 }
 0x248   : > { %v12459_v37 = vld [vmem:[%s13836_s10 + $0x24] sm:$0xf0] }
 0x249   : > { %v8615_v46 = vld [vmem:[%s13836_s10 + $0x208] sm:$0xf]  ;;  %v8360_v61 = vor.u32 %v12459_v37, %v8359_v33  ;;  %6957 = vmatpush.bf16.msra.mxu3 %v9160_v48 }
 0x24a   : > { %v12523_v45 = vld [vmem:[%s13836_s10 + $0x224] sm:$0xf0] }
 0x24b   : > { %v8871_v47 = vld [vmem:[%s13836_s10 + $0x408] sm:$0xf]  ;;  %v8616_v60 = vor.u32 %v12523_v45, %v8615_v46  ;;  %6919 = vmatpush.bf16.msra.mxu0 %v8360_v61 }
 0x24c   : > { %v12587_v44 = vld [vmem:[%s13836_s10 + $0x424] sm:$0xf0] }
 0x24d   : > { %v9127_v49 = vld [vmem:[%s13836_s10 + $0x608] sm:$0xf]  ;;  %v8872_v32 = vor.u32 %v12587_v44, %v8871_v47  ;;  %6932 = vmatpush.bf16.msra.mxu1 %v8616_v60 }
 0x24e   : > { %v12651_v51 = vld [vmem:[%s13836_s10 + $0x624] sm:$0xf0]  ;;  %6920 = vmatmul.bf16.vlgmr.msra.gmra.mxu0 %v13991_v25 }
 0x24f   : > { %v9607_v1 = vld [vmem:[%s13836_s10 + $0x9c8] sm:$0xf]  ;;  %v9128_v8 = vor.u32 %v12651_v51, %v9127_v49  ;;  %6945 = vmatpush.bf16.msra.mxu2 %v8872_v32  ;;  %v1361_v49 = vperm.slane %v14403_v4, 1 }
 0x250   : > { %v12771_v55 = vld [vmem:[%s13836_s10 + $0x9e4] sm:$0xf0]  ;;  %6933 = vmatmul.bf16.vlgmr.msra.gmra.mxu1 %v14006_v41 }
 0x251   : > { %v9863_v57 = vld [vmem:[%s13836_s10 + $0xbc8] sm:$0xf]  ;;  %v9608_v9 = vor.u32 %v12771_v55, %v9607_v1  ;;  %6958 = vmatpush.bf16.msra.mxu3 %v9128_v8 }
 0x252   : > { %v12835_v62 = vld [vmem:[%s13836_s10 + $0xbe4] sm:$0xf0]  ;;  %6946 = vmatmul.bf16.vlgmr.msra.gmra.mxu2 %v13989_v24 }
 0x253   : > { %v10119_v0 = vld [vmem:[%s13836_s10 + $0xdc8] sm:$0xf]  ;;  %v9864_v10 = vor.u32 %v12835_v62, %v9863_v57  ;;  %6964 = vmatpush.bf16.msrb.mxu0 %v9608_v9  ;;  %v6713_v62 = vpop.f32.mrf.mxu0 }
 0x254   : > { %v12899_v3 = vld [vmem:[%s13836_s10 + $0xde4] sm:$0xf0]  ;;  %6959 = vmatmul.bf16.vlgmr.msra.gmra.mxu3 %v13996_v31 }
 0x255   : > { %v10375_v5 = vld [vmem:[%s13836_s10 + $0xfc8] sm:$0xf]  ;;  %v10120_v11 = vor.u32 %v12899_v3, %v10119_v0  ;;  %6977 = vmatpush.bf16.msrb.mxu1 %v9864_v10 }
 0x256   : > { %v12963_v7 = vld [vmem:[%s13836_s10 + $0xfe4] sm:$0xf0] }
 0x257   : > { %v9575_v12 = vld [vmem:[%s13836_s10 + $0x988] sm:$0xf]  ;;  %v10376_v14 = vor.u32 %v12963_v7, %v10375_v5  ;;  %6990 = vmatpush.bf16.msrb.mxu2 %v10120_v11  ;;  %v6714_v5 = vadd.f32 %v6713_v62, %v1361_v49  ;;  %v6726_v7 = vpop.f32.mrf.mxu1 }
 0x258   : > { %v12763_v13 = vld [vmem:[%s13836_s10 + $0x9a4] sm:$0xf0] }
 0x259   : > { %v9831_v6 = vld [vmem:[%s13836_s10 + $0xb88] sm:$0xf]  ;;  %v9576_v63 = vor.u32 %v12763_v13, %v9575_v12  ;;  %7003 = vmatpush.bf16.msrb.mxu3 %v10376_v14 }
 0x25a   : > { %v12827_v15 = vld [vmem:[%s13836_s10 + $0xba4] sm:$0xf0] }
 0x25b   : > { %v10087_v16 = vld [vmem:[%s13836_s10 + $0xd88] sm:$0xf]  ;;  %v9832_v58 = vor.u32 %v12827_v15, %v9831_v6  ;;  %6965 = vmatpush.bf16.msrb.mxu0 %v9576_v63  ;;  %v6727_v6 = vadd.f32 %v6726_v7, %v6714_v5  ;;  %v6739_v63 = vpop.f32.mrf.mxu2 }
 0x25c   : > { %v12891_v17 = vld [vmem:[%s13836_s10 + $0xda4] sm:$0xf0] }
 0x25d   : > { %v10343_v18 = vld [vmem:[%s13836_s10 + $0xf88] sm:$0xf]  ;;  %v10088_v20 = vor.u32 %v12891_v17, %v10087_v16  ;;  %6978 = vmatpush.bf16.msrb.mxu1 %v9832_v58 }
 0x25e   : > { %v12955_v30 = vld [vmem:[%s13836_s10 + $0xfa4] sm:$0xf0] }
 0x25f   : > { %v9543_v21 = vld [vmem:[%s13836_s10 + $0x948] sm:$0xf]  ;;  %v10344_v26 = vor.u32 %v12955_v30, %v10343_v18  ;;  %6991 = vmatpush.bf16.msrb.mxu2 %v10088_v20 }
 0x260   : > { %v12755_v19 = vld [vmem:[%s13836_s10 + $0x964] sm:$0xf0] }
 0x261   : > { %v9799_v23 = vld [vmem:[%s13836_s10 + $0xb48] sm:$0xf]  ;;  %v9544_v22 = vor.u32 %v12755_v19, %v9543_v21  ;;  %7004 = vmatpush.bf16.msrb.mxu3 %v10344_v26  ;;  %v6752_v26 = vpop.f32.mrf.mxu3 }
 0x262   : > { %v12819_v27 = vld [vmem:[%s13836_s10 + $0xb64] sm:$0xf0] }
 0x263   : > { %v10055_v28 = vld [vmem:[%s13836_s10 + $0xd48] sm:$0xf]  ;;  %v9800_v45 = vor.u32 %v12819_v27, %v9799_v23  ;;  %6966 = vmatpush.bf16.msrb.mxu0 %v9544_v22  ;;  %v6740_v23 = vadd.f32 %v6739_v63, %v6727_v6  ;;  %v6741_v5 = vpop.f32.mrf.mxu2 }
 0x264   : > { %v12883_v33 = vld [vmem:[%s13836_s10 + $0xd64] sm:$0xf0] }
 0x265   : > { %v10311_v37 = vld [vmem:[%s13836_s10 + $0xf48] sm:$0xf]  ;;  %v10056_v47 = vor.u32 %v12883_v33, %v10055_v28  ;;  %6979 = vmatpush.bf16.msrb.mxu1 %v9800_v45 }
 0x266   : > { %v12947_v40 = vld [vmem:[%s13836_s10 + $0xf64] sm:$0xf0] }
 0x267   : > { %v9511_v46 = vld [vmem:[%s13836_s10 + $0x908] sm:$0xf]  ;;  %v10312_v51 = vor.u32 %v12947_v40, %v10311_v37  ;;  %6992 = vmatpush.bf16.msrb.mxu2 %v10056_v47  ;;  %v14641_v37 = vadd.f32 %v6752_v26, %v6740_v23  ;;  %v6715_v40 = vpop.f32.mrf.mxu0 }
 0x268   : > { %v12747_v48 = vld [vmem:[%s13836_s10 + $0x924] sm:$0xf0] }
 0x269   : > { %v9767_v44 = vld [vmem:[%s13836_s10 + $0xb08] sm:$0xf]  ;;  %v9512_v61 = vor.u32 %v12747_v48, %v9511_v46  ;;  %7005 = vmatpush.bf16.msrb.mxu3 %v10312_v51 }
 0x26a   : > { %v12811_v52 = vld [vmem:[%s13836_s10 + $0xb24] sm:$0xf0] }
 0x26b   : > { %v10023_v1 = vld [vmem:[%s13836_s10 + $0xd08] sm:$0xf]  ;;  %v9768_v4 = vor.u32 %v12811_v52, %v9767_v44  ;;  %6967 = vmatpush.bf16.msrb.mxu0 %v9512_v61  ;;  %v6728_v44 = vpop.f32.mrf.mxu1 }
 0x26c   : > { %v12875_v55 = vld [vmem:[%s13836_s10 + $0xd24] sm:$0xf0] }
 0x26d   : > { %v10279_v57 = vld [vmem:[%s13836_s10 + $0xf08] sm:$0xf]  ;;  %v10024_v0 = vor.u32 %v12875_v55, %v10023_v1  ;;  %6980 = vmatpush.bf16.msrb.mxu1 %v9768_v4 }
 0x26e   : > { %v12939_v59 = vld [vmem:[%s13836_s10 + $0xf24] sm:$0xf0] }
 0x26f   : > { %v9479_v3 = vld [vmem:[%s13836_s10 + $0x8c8] sm:$0xf]  ;;  %v10280_v8 = vor.u32 %v12939_v59, %v10279_v57  ;;  %6993 = vmatpush.bf16.msrb.mxu2 %v10024_v0 }
 0x270   : > { %v12739_v60 = vld [vmem:[%s13836_s10 + $0x8e4] sm:$0xf0] }
 0x271   : > { %v9735_v32 = vld [vmem:[%s13836_s10 + $0xac8] sm:$0xf]  ;;  %v9480_v14 = vor.u32 %v12739_v60, %v9479_v3  ;;  %7006 = vmatpush.bf16.msrb.mxu3 %v10280_v8 }
 0x272   : > { %v12803_v9 = vld [vmem:[%s13836_s10 + $0xae4] sm:$0xf0] }
 0x273   : > { %v9991_v10 = vld [vmem:[%s13836_s10 + $0xcc8] sm:$0xf]  ;;  %v9736_v15 = vor.u32 %v12803_v9, %v9735_v32  ;;  %6968 = vmatpush.bf16.msrb.mxu0 %v9480_v14 }
 0x274   : > { %v12867_v11 = vld [vmem:[%s13836_s10 + $0xce4] sm:$0xf0] }
 0x275   : > { %v10247_v12 = vld [vmem:[%s13836_s10 + $0xec8] sm:$0xf]  ;;  %v9992_v16 = vor.u32 %v12867_v11, %v9991_v10  ;;  %6981 = vmatpush.bf16.msrb.mxu1 %v9736_v15  ;;  %v6754_v11 = vpop.f32.mrf.mxu3 }
 0x276   : > { %v12931_v13 = vld [vmem:[%s13836_s10 + $0xee4] sm:$0xf0] }
 0x277   : > { %v9447_v17 = vld [vmem:[%s13836_s10 + $0x888] sm:$0xf]  ;;  %v10248_v58 = vor.u32 %v12931_v13, %v10247_v12  ;;  %6994 = vmatpush.bf16.msrb.mxu2 %v9992_v16 }
 0x278   : > { %v12731_v18 = vld [vmem:[%s13836_s10 + $0x8a4] sm:$0xf0] }
 0x279   : > { %v9703_v30 = vld [vmem:[%s13836_s10 + $0xa88] sm:$0xf]  ;;  %v9448_v33 = vor.u32 %v12731_v18, %v9447_v17  ;;  %7007 = vmatpush.bf16.msrb.mxu3 %v10248_v58 }
 0x27a   : > { %v12795_v20 = vld [vmem:[%s13836_s10 + $0xaa4] sm:$0xf0] }
 0x27b   : > { %v9959_v21 = vld [vmem:[%s13836_s10 + $0xc88] sm:$0xf]  ;;  %v9704_v22 = vor.u32 %v12795_v20, %v9703_v30  ;;  %6969 = vmatpush.bf16.msrb.mxu0 %v9448_v33 }
 0x27c   : > { %v12859_v19 = vld [vmem:[%s13836_s10 + $0xca4] sm:$0xf0] }
 0x27d   : > { %v10215_v27 = vld [vmem:[%s13836_s10 + $0xe88] sm:$0xf]  ;;  %v9960_v46 = vor.u32 %v12859_v19, %v9959_v21  ;;  %6982 = vmatpush.bf16.msrb.mxu1 %v9704_v22 }
 0x27e   : > { %v12923_v28 = vld [vmem:[%s13836_s10 + $0xea4] sm:$0xf0] }
 0x27f   : > { %v9415_v45 = vld [vmem:[%s13836_s10 + $0x848] sm:$0xf]  ;;  %v10216_v49 = vor.u32 %v12923_v28, %v10215_v27  ;;  %6995 = vmatpush.bf16.msrb.mxu2 %v9960_v46 }
 0x280   : > { %v12723_v47 = vld [vmem:[%s13836_s10 + $0x864] sm:$0xf0] }
 0x281   : > { %v9671_v48 = vld [vmem:[%s13836_s10 + $0xa48] sm:$0xf]  ;;  %v9416_v59 = vor.u32 %v12723_v47, %v9415_v45  ;;  %7008 = vmatpush.bf16.msrb.mxu3 %v10216_v49 }
 0x282   : > { %v12787_v51 = vld [vmem:[%s13836_s10 + $0xa64] sm:$0xf0] }
 0x283   : > { %v9927_v52 = vld [vmem:[%s13836_s10 + $0xc48] sm:$0xf]  ;;  %v9672_v4 = vor.u32 %v12787_v51, %v9671_v48  ;;  %6970 = vmatpush.bf16.msrb.mxu0 %v9416_v59 }
 0x284   : > { %v12851_v1 = vld [vmem:[%s13836_s10 + $0xc64] sm:$0xf0] }
 0x285   : > { %v10183_v55 = vld [vmem:[%s13836_s10 + $0xe48] sm:$0xf]  ;;  %v9928_v0 = vor.u32 %v12851_v1, %v9927_v52  ;;  %6983 = vmatpush.bf16.msrb.mxu1 %v9672_v4 }
 0x286   : > { %v12915_v57 = vld [vmem:[%s13836_s10 + $0xe64] sm:$0xf0] }
 0x287   : > { %v9383_v61 = vld [vmem:[%s13836_s10 + $0x808] sm:$0xf]  ;;  %v10184_v7 = vor.u32 %v12915_v57, %v10183_v55  ;;  %6996 = vmatpush.bf16.msrb.mxu2 %v9928_v0 }
 0x288   : > { %v12715_v62 = vld [vmem:[%s13836_s10 + $0x824] sm:$0xf0] }
 0x289   : > { %v9639_v3 = vld [vmem:[%s13836_s10 + $0xa08] sm:$0xf]  ;;  %v9384_v14 = vor.u32 %v12715_v62, %v9383_v61  ;;  %7009 = vmatpush.bf16.msrb.mxu3 %v10184_v7 }
 0x28a   : > { %v12779_v60 = vld [vmem:[%s13836_s10 + $0xa24] sm:$0xf0] }
 0x28b   : > { %v9895_v32 = vld [vmem:[%s13836_s10 + $0xc08] sm:$0xf]  ;;  %v9640_v18 = vor.u32 %v12779_v60, %v9639_v3  ;;  %6971 = vmatpush.bf16.msrb.mxu0 %v9384_v14  ;;  %v14695_v14 = vpop.f32.mrf.mxu0 }
 0x28c   : > { %v12843_v8 = vld [vmem:[%s13836_s10 + $0xc24] sm:$0xf0] }
 0x28d   : > { %v10151_v9 = vld [vmem:[%s13836_s10 + $0xe08] sm:$0xf]  ;;  %v9896_v30 = vor.u32 %v12843_v8, %v9895_v32  ;;  %6984 = vmatpush.bf16.msrb.mxu1 %v9640_v18 }
 0x28e   : > { %v12907_v10 = vld [vmem:[%s13836_s10 + $0xe24] sm:$0xf0]  ;;  %6972 = vmatmul.bf16.vlgmr.msrb.gmra.mxu0 %v14056_v53 }
 0x28f   : > { %v10631_v12 = vld [vmem:[%s13836_s10 + $0x11c8] sm:$0xf]  ;;  %v10152_v20 = vor.u32 %v12907_v10, %v10151_v9  ;;  %6997 = vmatpush.bf16.msrb.mxu2 %v9896_v30 }
 0x290   : > { %v13027_v13 = vld [vmem:[%s13836_s10 + $0x11e4] sm:$0xf0]  ;;  %6985 = vmatmul.bf16.vlgmr.msrb.gmra.mxu1 %v14060_v56 }
 0x291   : > { %v10887_v6 = vld [vmem:[%s13836_s10 + $0x13c8] sm:$0xf]  ;;  %v10632_v21 = vor.u32 %v13027_v13, %v10631_v12  ;;  %7010 = vmatpush.bf16.msrb.mxu3 %v10152_v20 }
 0x292   : > { %v13091_v15 = vld [vmem:[%s13836_s10 + $0x13e4] sm:$0xf0]  ;;  %6998 = vmatmul.bf16.vlgmr.msrb.gmra.mxu2 %v14052_v50 }
 0x293   : > { %v11143_v16 = vld [vmem:[%s13836_s10 + $0x15c8] sm:$0xf]  ;;  %v10888_v19 = vor.u32 %v13091_v15, %v10887_v6  ;;  %7016 = vmatpush.bf16.msra.mxu0 %v10632_v21 }
 0x294   : > { %v13155_v17 = vld [vmem:[%s13836_s10 + $0x15e4] sm:$0xf0]  ;;  %7011 = vmatmul.bf16.vlgmr.msrb.gmra.mxu3 %v14058_v54 }
 0x295   : > { %v11399_v63 = vld [vmem:[%s13836_s10 + $0x17c8] sm:$0xf]  ;;  %v11144_v23 = vor.u32 %v13155_v17, %v11143_v16  ;;  %7029 = vmatpush.bf16.msra.mxu1 %v10888_v19 }
 0x296   : > { %v13219_v58 = vld [vmem:[%s13836_s10 + $0x17e4] sm:$0xf0] }
 0x297   : > { %v10599_v26 = vld [vmem:[%s13836_s10 + $0x1188] sm:$0xf]  ;;  %v11400_v33 = vor.u32 %v13219_v58, %v11399_v63  ;;  %7042 = vmatpush.bf16.msra.mxu2 %v11144_v23  ;;  %v14700_v63 = vpop.f32.mrf.mxu1 }
 0x298   : > { %v13019_v27 = vld [vmem:[%s13836_s10 + $0x11a4] sm:$0xf0] }
 0x299   : > { %v10855_v28 = vld [vmem:[%s13836_s10 + $0x1388] sm:$0xf]  ;;  %v10600_v48 = vor.u32 %v13019_v27, %v10599_v26  ;;  %7055 = vmatpush.bf16.msra.mxu3 %v11400_v33 }
 0x29a   : > { %v13083_v40 = vld [vmem:[%s13836_s10 + $0x13a4] sm:$0xf0] }
 0x29b   : > { %v11111_v22 = vld [vmem:[%s13836_s10 + $0x1588] sm:$0xf]  ;;  %v10856_v44 = vor.u32 %v13083_v40, %v10855_v28  ;;  %7017 = vmatpush.bf16.msra.mxu0 %v10600_v48 }
 0x29c   : > { %v13147_v46 = vld [vmem:[%s13836_s10 + $0x15a4] sm:$0xf0] }
 0x29d   : > { %v11367_v45 = vld [vmem:[%s13836_s10 + $0x1788] sm:$0xf]  ;;  %v11112_v49 = vor.u32 %v13147_v46, %v11111_v22  ;;  %7030 = vmatpush.bf16.msra.mxu1 %v10856_v44 }
 0x29e   : > { %v13211_v47 = vld [vmem:[%s13836_s10 + $0x17a4] sm:$0xf0] }
 0x29f   : > { %v10567_v51 = vld [vmem:[%s13836_s10 + $0x1148] sm:$0xf]  ;;  %v11368_v55 = vor.u32 %v13211_v47, %v11367_v45  ;;  %7043 = vmatpush.bf16.msra.mxu2 %v11112_v49  ;;  %v14710_v45 = vpop.f32.mrf.mxu2 }
 0x2a0   : > { %v13011_v52 = vld [vmem:[%s13836_s10 + $0x1164] sm:$0xf0] }
 0x2a1   : > { %v10823_v1 = vld [vmem:[%s13836_s10 + $0x1348] sm:$0xf]  ;;  %v10568_v0 = vor.u32 %v13011_v52, %v10567_v51  ;;  %7056 = vmatpush.bf16.msra.mxu3 %v11368_v55  ;;  %v14715_v51 = vpop.f32.mrf.mxu3 }
 0x2a2   : > { %v13075_v57 = vld [vmem:[%s13836_s10 + $0x1364] sm:$0xf0] }
 0x2a3   : > { %v11079_v59 = vld [vmem:[%s13836_s10 + $0x1548] sm:$0xf]  ;;  %v10824_v3 = vor.u32 %v13075_v57, %v10823_v1  ;;  %7018 = vmatpush.bf16.msra.mxu0 %v10568_v0  ;;  %v6767_v57 = vpop.f32.mrf.mxu0 }
 0x2a4   : > { %v13139_v61 = vld [vmem:[%s13836_s10 + $0x1564] sm:$0xf0] }
 0x2a5   : > { %v11335_v62 = vld [vmem:[%s13836_s10 + $0x1748] sm:$0xf]  ;;  %v11080_v60 = vor.u32 %v13139_v61, %v11079_v59  ;;  %7031 = vmatpush.bf16.msra.mxu1 %v10824_v3  ;;  %v6780_v3 = vpop.f32.mrf.mxu1 }
 0x2a6   : > { %v13203_v4 = vld [vmem:[%s13836_s10 + $0x1764] sm:$0xf0] }
 0x2a7   : > { %v10535_v32 = vld [vmem:[%s13836_s10 + $0x1108] sm:$0xf]  ;;  %v11336_v8 = vor.u32 %v13203_v4, %v11335_v62  ;;  %7044 = vmatpush.bf16.msra.mxu2 %v11080_v60 }
 0x2a8   : > { %v13003_v5 = vld [vmem:[%s13836_s10 + $0x1124] sm:$0xf0] }
 0x2a9   : > { %v10791_v7 = vld [vmem:[%s13836_s10 + $0x1308] sm:$0xf]  ;;  %v10536_v6 = vor.u32 %v13003_v5, %v10535_v32  ;;  %7057 = vmatpush.bf16.msra.mxu3 %v11336_v8 }
 0x2aa   : > { %v13067_v9 = vld [vmem:[%s13836_s10 + $0x1324] sm:$0xf0] }
 0x2ab   : > { %v11047_v10 = vld [vmem:[%s13836_s10 + $0x1508] sm:$0xf]  ;;  %v10792_v15 = vor.u32 %v13067_v9, %v10791_v7  ;;  %7019 = vmatpush.bf16.msra.mxu0 %v10536_v6 }
 0x2ac   : > { %v13131_v11 = vld [vmem:[%s13836_s10 + $0x1524] sm:$0xf0] }
 0x2ad   : > { %v11303_v12 = vld [vmem:[%s13836_s10 + $0x1708] sm:$0xf]  ;;  %v11048_v16 = vor.u32 %v13131_v11, %v11047_v10  ;;  %7032 = vmatpush.bf16.msra.mxu1 %v10792_v15 }
 0x2ae   : > { %v13195_v13 = vld [vmem:[%s13836_s10 + $0x1724] sm:$0xf0] }
 0x2af   : > { %v10503_v17 = vld [vmem:[%s13836_s10 + $0x10c8] sm:$0xf]  ;;  %v11304_v58 = vor.u32 %v13195_v13, %v11303_v12  ;;  %7045 = vmatpush.bf16.msra.mxu2 %v11048_v16 }
 0x2b0   : > { %v12995_v18 = vld [vmem:[%s13836_s10 + $0x10e4] sm:$0xf0] }
 0x2b1   : > { %v10759_v30 = vld [vmem:[%s13836_s10 + $0x12c8] sm:$0xf]  ;;  %v10504_v27 = vor.u32 %v12995_v18, %v10503_v17  ;;  %7058 = vmatpush.bf16.msra.mxu3 %v11304_v58  ;;  %v6793_v18 = vpop.f32.mrf.mxu2 }
 0x2b2   : > { %v13059_v20 = vld [vmem:[%s13836_s10 + $0x12e4] sm:$0xf0] }
 0x2b3   : > { %v11015_v21 = vld [vmem:[%s13836_s10 + $0x14c8] sm:$0xf]  ;;  %v10760_v28 = vor.u32 %v13059_v20, %v10759_v30  ;;  %7020 = vmatpush.bf16.msra.mxu0 %v10504_v27 }
 0x2b4   : > { %v13123_v19 = vld [vmem:[%s13836_s10 + $0x14e4] sm:$0xf0] }
 0x2b5   : > { %v11271_v23 = vld [vmem:[%s13836_s10 + $0x16c8] sm:$0xf]  ;;  %v11016_v33 = vor.u32 %v13123_v19, %v11015_v21  ;;  %7033 = vmatpush.bf16.msra.mxu1 %v10760_v28  ;;  %v6806_v19 = vpop.f32.mrf.mxu3 }
 0x2b6   : > { %v13187_v26 = vld [vmem:[%s13836_s10 + $0x16e4] sm:$0xf0] }
 0x2b7   : > { %v10471_v40 = vld [vmem:[%s13836_s10 + $0x1088] sm:$0xf]  ;;  %v11272_v47 = vor.u32 %v13187_v26, %v11271_v23  ;;  %7046 = vmatpush.bf16.msra.mxu2 %v11016_v33 }
 0x2b8   : > { %v12987_v22 = vld [vmem:[%s13836_s10 + $0x10a4] sm:$0xf0] }
 0x2b9   : > { %v10727_v46 = vld [vmem:[%s13836_s10 + $0x1288] sm:$0xf]  ;;  %v10472_v55 = vor.u32 %v12987_v22, %v10471_v40  ;;  %7059 = vmatpush.bf16.msra.mxu3 %v11272_v47 }
 0x2ba   : > { %v13051_v48 = vld [vmem:[%s13836_s10 + $0x12a4] sm:$0xf0] }
 0x2bb   : > { %v10983_v44 = vld [vmem:[%s13836_s10 + $0x1488] sm:$0xf]  ;;  %v10728_v59 = vor.u32 %v13051_v48, %v10727_v46  ;;  %7021 = vmatpush.bf16.msra.mxu0 %v10472_v55 }
 0x2bc   : > { %v13115_v49 = vld [vmem:[%s13836_s10 + $0x14a4] sm:$0xf0] }
 0x2bd   : > { %v11239_v52 = vld [vmem:[%s13836_s10 + $0x1688] sm:$0xf]  ;;  %v10984_v61 = vor.u32 %v13115_v49, %v10983_v44  ;;  %7034 = vmatpush.bf16.msra.mxu1 %v10728_v59 }
 0x2be   : > { %v13179_v1 = vld [vmem:[%s13836_s10 + $0x16a4] sm:$0xf0] }
 0x2bf   : > { %v10439_v62 = vld [vmem:[%s13836_s10 + $0x1048] sm:$0xf]  ;;  %v11240_v60 = vor.u32 %v13179_v1, %v11239_v52  ;;  %7047 = vmatpush.bf16.msra.mxu2 %v10984_v61 }
 0x2c0   : > { %v12979_v4 = vld [vmem:[%s13836_s10 + $0x1064] sm:$0xf0] }
 0x2c1   : > { %v10695_v0 = vld [vmem:[%s13836_s10 + $0x1248] sm:$0xf]  ;;  %v10440_v10 = vor.u32 %v12979_v4, %v10439_v62  ;;  %7060 = vmatpush.bf16.msra.mxu3 %v11240_v60 }
 0x2c2   : > { %v13043_v32 = vld [vmem:[%s13836_s10 + $0x1264] sm:$0xf0] }
 0x2c3   : > { %v10951_v5 = vld [vmem:[%s13836_s10 + $0x1448] sm:$0xf]  ;;  %v10696_v13 = vor.u32 %v13043_v32, %v10695_v0  ;;  %7022 = vmatpush.bf16.msra.mxu0 %v10440_v10 }
 0x2c4   : > { %v13107_v7 = vld [vmem:[%s13836_s10 + $0x1464] sm:$0xf0] }
 0x2c5   : > { %v11207_v8 = vld [vmem:[%s13836_s10 + $0x1648] sm:$0xf]  ;;  %v10952_v6 = vor.u32 %v13107_v7, %v10951_v5  ;;  %7035 = vmatpush.bf16.msra.mxu1 %v10696_v13 }
 0x2c6   : > { %v13171_v9 = vld [vmem:[%s13836_s10 + $0x1664] sm:$0xf0] }
 0x2c7   : > { %v10407_v11 = vld [vmem:[%s13836_s10 + $0x1008] sm:$0xf]  ;;  %v11208_v30 = vor.u32 %v13171_v9, %v11207_v8  ;;  %7048 = vmatpush.bf16.msra.mxu2 %v10952_v6 }
 0x2c8   : > { %v12971_v12 = vld [vmem:[%s13836_s10 + $0x1024] sm:$0xf0] }
 0x2c9   : > { %v10663_v15 = vld [vmem:[%s13836_s10 + $0x1208] sm:$0xf]  ;;  %v10408_v28 = vor.u32 %v12971_v12, %v10407_v11  ;;  %7061 = vmatpush.bf16.msra.mxu3 %v11208_v30 }
 0x2ca   : > { %v13035_v16 = vld [vmem:[%s13836_s10 + $0x1224] sm:$0xf0] }
 0x2cb   : > { %v10919_v17 = vld [vmem:[%s13836_s10 + $0x1408] sm:$0xf]  ;;  %v10664_v46 = vor.u32 %v13035_v16, %v10663_v15  ;;  %7023 = vmatpush.bf16.msra.mxu0 %v10408_v28 }
 0x2cc   : > { %v13099_v58 = vld [vmem:[%s13836_s10 + $0x1424] sm:$0xf0] }
 0x2cd   : > { %v11175_v20 = vld [vmem:[%s13836_s10 + $0x1608] sm:$0xf]  ;;  %v10920_v47 = vor.u32 %v13099_v58, %v10919_v17  ;;  %7036 = vmatpush.bf16.msra.mxu1 %v10664_v46 }
 0x2ce   : > { %v13163_v21 = vld [vmem:[%s13836_s10 + $0x1624] sm:$0xf0]  ;;  %7024 = vmatmul.bf16.vlgmr.msra.gmra.mxu0 %v14125_v34 }
 0x2cf   : > { %v11655_v23 = vld [vmem:[%s13836_s10 + $0x19c8] sm:$0xf]  ;;  %v11176_v49 = vor.u32 %v13163_v21, %v11175_v20  ;;  %7049 = vmatpush.bf16.msra.mxu2 %v10920_v47  ;;  %v14773_v47 = vpop.f32.mrf.mxu1 }
 0x2d0   : > { %v13283_v26 = vld [vmem:[%s13836_s10 + $0x19e4] sm:$0xf0]  ;;  %7037 = vmatmul.bf16.vlgmr.msra.gmra.mxu1 %v14132_v39 }
 0x2d1   : > { %v11911_v27 = vld [vmem:[%s13836_s10 + $0x1bc8] sm:$0xf]  ;;  %v11656_v52 = vor.u32 %v13283_v26, %v11655_v23  ;;  %7062 = vmatpush.bf16.msra.mxu3 %v11176_v49 }
 0x2d2   : > { %v13347_v33 = vld [vmem:[%s13836_s10 + $0x1be4] sm:$0xf0]  ;;  %7050 = vmatmul.bf16.vlgmr.msra.gmra.mxu2 %v14130_v38 }
 0x2d3   : > { %v12167_v40 = vld [vmem:[%s13836_s10 + $0x1dc8] sm:$0xf]  ;;  %v11912_v1 = vor.u32 %v13347_v33, %v11911_v27  ;;  %7068 = vmatpush.bf16.msrb.mxu0 %v11656_v52  ;;  %v14769_v33 = vpop.f32.mrf.mxu0 }
 0x2d4   : > { %v13411_v22 = vld [vmem:[%s13836_s10 + $0x1de4] sm:$0xf0]  ;;  %7063 = vmatmul.bf16.vlgmr.msra.gmra.mxu3 %v14136_v43 }
 0x2d5   : > { %v12423_v48 = vld [vmem:[%s13836_s10 + $0x1fc8] sm:$0xf]  ;;  %v12168_v55 = vor.u32 %v13411_v22, %v12167_v40  ;;  %7081 = vmatpush.bf16.msrb.mxu1 %v11912_v1 }
 0x2d6   : > { %v13475_v44 = vld [vmem:[%s13836_s10 + $0x1fe4] sm:$0xf0] }
 0x2d7   : > { %v11623_v57 = vld [vmem:[%s13836_s10 + $0x1988] sm:$0xf]  ;;  %v12424_v62 = vor.u32 %v13475_v44, %v12423_v48  ;;  %7094 = vmatpush.bf16.msrb.mxu2 %v12168_v55 }
 0x2d8   : > { %v13275_v59 = vld [vmem:[%s13836_s10 + $0x19a4] sm:$0xf0] }
 0x2d9   : > { %v11879_v61 = vld [vmem:[%s13836_s10 + $0x1b88] sm:$0xf]  ;;  %v11624_v5 = vor.u32 %v13275_v59, %v11623_v57  ;;  %7107 = vmatpush.bf16.msrb.mxu3 %v12424_v62 }
 0x2da   : > { %v13339_v4 = vld [vmem:[%s13836_s10 + $0x1ba4] sm:$0xf0] }
 0x2db   : > { %v12135_v0 = vld [vmem:[%s13836_s10 + $0x1d88] sm:$0xf]  ;;  %v11880_v7 = vor.u32 %v13339_v4, %v11879_v61  ;;  %7069 = vmatpush.bf16.msrb.mxu0 %v11624_v5 }
 0x2dc   : > { %v13403_v3 = vld [vmem:[%s13836_s10 + $0x1da4] sm:$0xf0] }
 0x2dd   : > { %v12391_v60 = vld [vmem:[%s13836_s10 + $0x1f88] sm:$0xf]  ;;  %v12136_v8 = vor.u32 %v13403_v3, %v12135_v0  ;;  %7082 = vmatpush.bf16.msrb.mxu1 %v11880_v7  ;;  %v6766_v3 = vadd.f32 %v14695_v14, %v14641_v37 }
 0x2de   : > { %v13467_v32 = vld [vmem:[%s13836_s10 + $0x1fa4] sm:$0xf0] }
 0x2df   : > { %v11591_v9 = vld [vmem:[%s13836_s10 + $0x1948] sm:$0xf]  ;;  %v12392_v12 = vor.u32 %v13467_v32, %v12391_v60  ;;  %7095 = vmatpush.bf16.msrb.mxu2 %v12136_v8 }
 0x2e0   : > { %v13267_v10 = vld [vmem:[%s13836_s10 + $0x1964] sm:$0xf0] }
 0x2e1   : > { %v11847_v11 = vld [vmem:[%s13836_s10 + $0x1b48] sm:$0xf]  ;;  %v11592_v18 = vor.u32 %v13267_v10, %v11591_v9  ;;  %7108 = vmatpush.bf16.msrb.mxu3 %v12392_v12  ;;  %v14788_v10 = vpop.f32.mrf.mxu2 }
 0x2e2   : > { %v13331_v13 = vld [vmem:[%s13836_s10 + $0x1b64] sm:$0xf0] }
 0x2e3   : > { %v12103_v6 = vld [vmem:[%s13836_s10 + $0x1d48] sm:$0xf]  ;;  %v11848_v30 = vor.u32 %v13331_v13, %v11847_v11  ;;  %7070 = vmatpush.bf16.msrb.mxu0 %v11592_v18  ;;  %v6779_v18 = vadd.f32 %v14700_v63, %v6766_v3  ;;  %v8585_v3 = vld [vmem:[%s13836_s10 + $0x1e8] sm:$0xf0] }
 0x2e4   : > { %v13395_v15 = vld [vmem:[%s13836_s10 + $0x1d64] sm:$0xf0] }
 0x2e5   : > { %v12359_v16 = vld [vmem:[%s13836_s10 + $0x1f48] sm:$0xf]  ;;  %v12104_v58 = vor.u32 %v13395_v15, %v12103_v6  ;;  %7083 = vmatpush.bf16.msrb.mxu1 %v11848_v30  ;;  %v14793_v6 = vpop.f32.mrf.mxu3  ;;  %v6819_v15 = vpop.f32.mrf.mxu0 }
 0x2e6   : > { %v13459_v17 = vld [vmem:[%s13836_s10 + $0x1f64] sm:$0xf0] }
 0x2e7   : > { %v11559_v20 = vld [vmem:[%s13836_s10 + $0x1908] sm:$0xf]  ;;  %v12360_v23 = vor.u32 %v13459_v17, %v12359_v16  ;;  %7096 = vmatpush.bf16.msrb.mxu2 %v12104_v58  ;;  %v6832_v17 = vpop.f32.mrf.mxu1 }
 0x2e8   : > { %v13259_v21 = vld [vmem:[%s13836_s10 + $0x1924] sm:$0xf0] }
 0x2e9   : > { %v11815_v19 = vld [vmem:[%s13836_s10 + $0x1b08] sm:$0xf]  ;;  %v11560_v46 = vor.u32 %v13259_v21, %v11559_v20  ;;  %7109 = vmatpush.bf16.msrb.mxu3 %v12360_v23 }
 0x2ea   : > { %v13323_v26 = vld [vmem:[%s13836_s10 + $0x1b24] sm:$0xf0] }
 0x2eb   : > { %v12071_v27 = vld [vmem:[%s13836_s10 + $0x1d08] sm:$0xf]  ;;  %v11816_v48 = vor.u32 %v13323_v26, %v11815_v19  ;;  %7071 = vmatpush.bf16.msrb.mxu0 %v11560_v46 }
 0x2ec   : > { %v13387_v28 = vld [vmem:[%s13836_s10 + $0x1d24] sm:$0xf0] }
 0x2ed   : > { %v12327_v40 = vld [vmem:[%s13836_s10 + $0x1f08] sm:$0xf]  ;;  %v12072_v44 = vor.u32 %v13387_v28, %v12071_v27  ;;  %7084 = vmatpush.bf16.msrb.mxu1 %v11816_v48 }
 0x2ee   : > { %v13451_v22 = vld [vmem:[%s13836_s10 + $0x1f24] sm:$0xf0] }
 0x2ef   : > { %v11527_v49 = vld [vmem:[%s13836_s10 + $0x18c8] sm:$0xf]  ;;  %v12328_v55 = vor.u32 %v13451_v22, %v12327_v40  ;;  %7097 = vmatpush.bf16.msrb.mxu2 %v12072_v44  ;;  %v6792_v44 = vadd.f32 %v14710_v45, %v6779_v18  ;;  %v12511_v45 = vld [vmem:[%s13836_s10 + $0x1cc] sm:$0xf] }
 0x2f0   : > { %v13251_v52 = vld [vmem:[%s13836_s10 + $0x18e4] sm:$0xf0] }
 0x2f1   : > { %v11783_v1 = vld [vmem:[%s13836_s10 + $0x1ac8] sm:$0xf]  ;;  %v11528_v0 = vor.u32 %v13251_v52, %v11527_v49  ;;  %7110 = vmatpush.bf16.msrb.mxu3 %v12328_v55 }
 0x2f2   : > { %v13315_v57 = vld [vmem:[%s13836_s10 + $0x1ae4] sm:$0xf0] }
 0x2f3   : > { %v12039_v59 = vld [vmem:[%s13836_s10 + $0x1cc8] sm:$0xf]  ;;  %v11784_v60 = vor.u32 %v13315_v57, %v11783_v1  ;;  %7072 = vmatpush.bf16.msrb.mxu0 %v11528_v0  ;;  %v6845_v0 = vpop.f32.mrf.mxu2 }
 0x2f4   : > { %v13379_v61 = vld [vmem:[%s13836_s10 + $0x1ce4] sm:$0xf0]  ;;  %v8489_v0 = vld [vmem:[%s13836_s10 + $0x128] sm:$0xf0] }
 0x2f5   : > { %v12295_v62 = vld [vmem:[%s13836_s10 + $0x1ec8] sm:$0xf]  ;;  %v12040_v32 = vor.u32 %v13379_v61, %v12039_v59  ;;  %7085 = vmatpush.bf16.msrb.mxu1 %v11784_v60  ;;  %v12575_v60 = vld [vmem:[%s13836_s10 + $0x3cc] sm:$0xf] }
 0x2f6   : > { %v13443_v4 = vld [vmem:[%s13836_s10 + $0x1ee4] sm:$0xf0] }
 0x2f7   : > { %v11495_v5 = vld [vmem:[%s13836_s10 + $0x1888] sm:$0xf]  ;;  %v12296_v9 = vor.u32 %v13443_v4, %v12295_v62  ;;  %7098 = vmatpush.bf16.msrb.mxu2 %v12040_v32  ;;  %v6858_v32 = vpop.f32.mrf.mxu3 }
 0x2f8   : > { %v13243_v7 = vld [vmem:[%s13836_s10 + $0x18a4] sm:$0xf0]  ;;  %v12615_v32 = vld [vmem:[%s13836_s10 + $0x50c] sm:$0xf] }
 0x2f9   : > { %v11751_v8 = vld [vmem:[%s13836_s10 + $0x1a88] sm:$0xf]  ;;  %v11496_v16 = vor.u32 %v13243_v7, %v11495_v5  ;;  %7111 = vmatpush.bf16.msrb.mxu3 %v12296_v9  ;;  %v8841_v7 = vld [vmem:[%s13836_s10 + $0x3e8] sm:$0xf0] }
 0x2fa   : > { %v13307_v11 = vld [vmem:[%s13836_s10 + $0x1aa4] sm:$0xf0]  ;;  %v9097_v9 = vld [vmem:[%s13836_s10 + $0x5e8] sm:$0xf0]  ;;  %v8844_v18 = vor.u32 %v12575_v60, %v8841_v7 }
 0x2fb   : > { %v12007_v12 = vld [vmem:[%s13836_s10 + $0x1c88] sm:$0xf]  ;;  %v11752_v30 = vor.u32 %v13307_v11, %v11751_v8  ;;  %7073 = vmatpush.bf16.msrb.mxu0 %v11496_v16  ;;  %v12639_v8 = vld [vmem:[%s13836_s10 + $0x5cc] sm:$0xf]  ;;  %v6805_v11 = vadd.f32 %v14715_v51, %v6792_v44  ;;  %v8588_v16 = vor.u32 %v12511_v45, %v8585_v3 }
 0x2fc   : > { %v13371_v13 = vld [vmem:[%s13836_s10 + $0x1ca4] sm:$0xf0]  ;;  %v8553_v51 = vld [vmem:[%s13836_s10 + $0x1a8] sm:$0xf0] }
 0x2fd   : > { %v12263_v37 = vld [vmem:[%s13836_s10 + $0x1e88] sm:$0xf]  ;;  %v12008_v58 = vor.u32 %v13371_v13, %v12007_v12  ;;  %7086 = vmatpush.bf16.msrb.mxu1 %v11752_v30  ;;  %v6818_v17 = vadd.f32 %v14769_v33, %v6805_v11  ;;  %v9100_v30 = vor.u32 %v12639_v8, %v9097_v9  ;;  %v12559_v44 = vld [vmem:[%s13836_s10 + $0x34c] sm:$0xf]  ;;  %v6869_v8 = vpop.f32.mrf.mxu0 }
 0x2fe   : > { %v13435_v14 = vld [vmem:[%s13836_s10 + $0x1ea4] sm:$0xf0]  ;;  %v12551_v45 = vld [vmem:[%s13836_s10 + $0x30c] sm:$0xf] }
 0x2ff   : > { %v11463_v20 = vld [vmem:[%s13836_s10 + $0x1848] sm:$0xf]  ;;  %v12264_v23 = vor.u32 %v13435_v14, %v12263_v37  ;;  %7099 = vmatpush.bf16.msrb.mxu2 %v12008_v58  ;;  %v12703_v37 = vld [vmem:[%s13836_s10 + $0x7cc] sm:$0xf] }
 0x300   : > { %v13235_v21 = vld [vmem:[%s13836_s10 + $0x1864] sm:$0xf0]  ;;  %v9353_v14 = vld [vmem:[%s13836_s10 + $0x7e8] sm:$0xf0] }
 0x301   : > { %v11719_v19 = vld [vmem:[%s13836_s10 + $0x1a48] sm:$0xf]  ;;  %v11464_v22 = vor.u32 %v13235_v21, %v11463_v20  ;;  %7112 = vmatpush.bf16.msrb.mxu3 %v12264_v23  ;;  %v12503_v58 = vld [vmem:[%s13836_s10 + $0x18c] sm:$0xf]  ;;  %v9356_v21 = vor.u32 %v12703_v37, %v9353_v14 }
 0x302   : > { %v13299_v26 = vld [vmem:[%s13836_s10 + $0x1a64] sm:$0xf0]  ;;  %v12567_v20 = vld [vmem:[%s13836_s10 + $0x38c] sm:$0xf]  ;;  %v8556_v33 = vor.u32 %v12503_v58, %v8553_v51 }
 0x303   : > { %v11975_v27 = vld [vmem:[%s13836_s10 + $0x1c48] sm:$0xf]  ;;  %v11720_v49 = vor.u32 %v13299_v26, %v11719_v19  ;;  %7074 = vmatpush.bf16.msrb.mxu0 %v11464_v22  ;;  %v8809_v19 = vld [vmem:[%s13836_s10 + $0x3a8] sm:$0xf0] }
 0x304   : > { %v13363_v28 = vld [vmem:[%s13836_s10 + $0x1c64] sm:$0xf0]  ;;  %v12631_v23 = vld [vmem:[%s13836_s10 + $0x58c] sm:$0xf] }
 0x305   : > { %v12231_v40 = vld [vmem:[%s13836_s10 + $0x1e48] sm:$0xf]  ;;  %v11976_v52 = vor.u32 %v13363_v28, %v11975_v27  ;;  %7087 = vmatpush.bf16.msrb.mxu1 %v11720_v49  ;;  %v9065_v26 = vld [vmem:[%s13836_s10 + $0x5a8] sm:$0xf0] }
 0x306   : > { %v13427_v63 = vld [vmem:[%s13836_s10 + $0x1e64] sm:$0xf0]  ;;  %v12695_v27 = vld [vmem:[%s13836_s10 + $0x78c] sm:$0xf]  ;;  %v9068_v22 = vor.u32 %v12631_v23, %v9065_v26 }
 0x307   : > { %v11431_v46 = vld [vmem:[%s13836_s10 + $0x1808] sm:$0xf]  ;;  %v12232_v59 = vor.u32 %v13427_v63, %v12231_v40  ;;  %7100 = vmatpush.bf16.msrb.mxu2 %v11976_v52  ;;  %v9321_v28 = vld [vmem:[%s13836_s10 + $0x7a8] sm:$0xf0]  ;;  %v6831_v40 = vadd.f32 %v14773_v47, %v6818_v17  ;;  %v8812_v63 = vor.u32 %v12567_v20, %v8809_v19 }
 0x308   : > { %v13227_v48 = vld [vmem:[%s13836_s10 + $0x1824] sm:$0xf0]  ;;  %v9324_v49 = vor.u32 %v12695_v27, %v9321_v28  ;;  %v8777_v52 = vld [vmem:[%s13836_s10 + $0x368] sm:$0xf0] }
 0x309   : > { %v11687_v1 = vld [vmem:[%s13836_s10 + $0x1a08] sm:$0xf]  ;;  %v11432_v5 = vor.u32 %v13227_v48, %v11431_v46  ;;  %7113 = vmatpush.bf16.msrb.mxu3 %v12232_v59  ;;  %v12495_v46 = vld [vmem:[%s13836_s10 + $0x14c] sm:$0xf]  ;;  %v6844_v47 = vadd.f32 %v14788_v10, %v6831_v40 }
 0x30a   : > { %v13291_v55 = vld [vmem:[%s13836_s10 + $0x1a24] sm:$0xf0]  ;;  %v8521_v48 = vld [vmem:[%s13836_s10 + $0x168] sm:$0xf0] }
 0x30b   : > { %v11943_v57 = vld [vmem:[%s13836_s10 + $0x1c08] sm:$0xf]  ;;  %v11688_v12 = vor.u32 %v13291_v55, %v11687_v1  ;;  %7075 = vmatpush.bf16.msrb.mxu0 %v11432_v5  ;;  %v12623_v1 = vld [vmem:[%s13836_s10 + $0x54c] sm:$0xf]  ;;  %v6857_v7 = vadd.f32 %v14793_v6, %v6844_v47  ;;  %v6871_v47 = vpop.f32.mrf.mxu0 }
 0x30c   : > { %v13355_v61 = vld [vmem:[%s13836_s10 + $0x1c24] sm:$0xf0]  ;;  %v9033_v55 = vld [vmem:[%s13836_s10 + $0x568] sm:$0xf0] }
 0x30d   : > { %v12199_v62 = vld [vmem:[%s13836_s10 + $0x1e08] sm:$0xf]  ;;  %v11944_v13 = vor.u32 %v13355_v61, %v11943_v57  ;;  %7088 = vmatpush.bf16.msrb.mxu1 %v11688_v12  ;;  %v12687_v57 = vld [vmem:[%s13836_s10 + $0x74c] sm:$0xf]  ;;  %v8524_v61 = vor.u32 %v12495_v46, %v8521_v48  ;;  %v6870_v37 = vadd.f32 %v6869_v8, %v6857_v7 }
 0x30e   : > { %v13419_v4 = vld [vmem:[%s13836_s10 + $0x1e24] sm:$0xf0]  ;;  %7076 = vmatmul.bf16.vlgmr.msrb.gmra.mxu0 %v14201_v29  ;;  %v9289_v59 = vld [vmem:[%s13836_s10 + $0x768] sm:$0xf0] }
 0x30f   : > { %v12200_v15 = vor.u32 %v13419_v4, %v12199_v62  ;;  %7101 = vmatpush.bf16.msrb.mxu2 %v11944_v13  ;;  %7120 = vmatpush.bf16.msra.mxu0 %v8588_v16  ;;  %v8780_v62 = vor.u32 %v12559_v44, %v8777_v52  ;;  %v9036_v4 = vor.u32 %v12623_v1, %v9033_v55  ;;  %v12487_v10 = vld [vmem:[%s13836_s10 + $0x10c] sm:$0xf]  ;;  %v6882_v13 = vpop.f32.mrf.mxu1  ;;  %v6908_v52 = vpop.f32.mrf.mxu3 }
 0x310   : > { %7089 = vmatmul.bf16.vlgmr.msrb.gmra.mxu1 %v14208_v36  ;;  %v9292_v3 = vor.u32 %v12687_v57, %v9289_v59  ;;  %v8745_v60 = vld [vmem:[%s13836_s10 + $0x328] sm:$0xf0]  ;;  %v8492_v12 = vor.u32 %v12487_v10, %v8489_v0  ;;  %v6883_v23 = vadd.f32 %v6882_v13, %v6870_v37 }
 0x311   : > { %7114 = vmatpush.bf16.msrb.mxu3 %v12200_v15  ;;  %7133 = vmatpush.bf16.msra.mxu1 %v8844_v18  ;;  %v9001_v5 = vld [vmem:[%s13836_s10 + $0x528] sm:$0xf0]  ;;  %v8748_v14 = vor.u32 %v12551_v45, %v8745_v60 }
 0x312   : > { %7102 = vmatmul.bf16.vlgmr.msrb.gmra.mxu2 %v14206_v35  ;;  %v12679_v9 = vld [vmem:[%s13836_s10 + $0x70c] sm:$0xf]  ;;  %v9004_v15 = vor.u32 %v12615_v32, %v9001_v5 }
 0x313   : > { %7146 = vmatpush.bf16.msra.mxu2 %v9100_v30  ;;  %7121 = vmatpush.bf16.msra.mxu0 %v8556_v33  ;;  %v9257_v11 = vld [vmem:[%s13836_s10 + $0x728] sm:$0xf0] }
 0x314   : > { %7115 = vmatmul.bf16.vlgmr.msrb.gmra.mxu3 %v14212_v42  ;;  %v12479_v16 = vld [vmem:[%s13836_s10 + $0xcc] sm:$0xf]  ;;  %v9260_v18 = vor.u32 %v12679_v9, %v9257_v11 }
 0x315   : > { %7159 = vmatpush.bf16.msra.mxu3 %v9356_v21  ;;  %7134 = vmatpush.bf16.msra.mxu1 %v8812_v63  ;;  %v8457_v17 = vld [vmem:[%s13836_s10 + $0xe8] sm:$0xf0] }
 0x316   : > { %v12543_v6 = vld [vmem:[%s13836_s10 + $0x2cc] sm:$0xf]  ;;  %v8460_v19 = vor.u32 %v12479_v16, %v8457_v17 }
 0x317   : > { %7147 = vmatpush.bf16.msra.mxu2 %v9068_v22  ;;  %7122 = vmatpush.bf16.msra.mxu0 %v8524_v61  ;;  %v8713_v30 = vld [vmem:[%s13836_s10 + $0x2e8] sm:$0xf0]  ;;  %v6895_v22 = vpop.f32.mrf.mxu2  ;;  %v6884_v59 = vpop.f32.mrf.mxu1 }
 0x318   : > { %v12607_v58 = vld [vmem:[%s13836_s10 + $0x4cc] sm:$0xf]  ;;  %v8716_v26 = vor.u32 %v12543_v6, %v8713_v30 }
 0x319   : > { %7160 = vmatpush.bf16.msra.mxu3 %v9324_v49  ;;  %7135 = vmatpush.bf16.msra.mxu1 %v8780_v62  ;;  %v8969_v51 = vld [vmem:[%s13836_s10 + $0x4e8] sm:$0xf0]  ;;  %v6896_v49 = vadd.f32 %v6895_v22, %v6883_v23 }
 0x31a   : > { %v12671_v20 = vld [vmem:[%s13836_s10 + $0x6cc] sm:$0xf]  ;;  %v8972_v27 = vor.u32 %v12607_v58, %v8969_v51 }
 0x31b   : > { %7148 = vmatpush.bf16.msra.mxu2 %v9036_v4  ;;  %v9225_v21 = vld [vmem:[%s13836_s10 + $0x6e8] sm:$0xf0]  ;;  %7123 = vmatpush.bf16.msra.mxu0 %v8492_v12  ;;  %v6909_v61 = vadd.f32 %v6908_v52, %v6896_v49 }
 0x31c   : > { %v12471_v28 = vld [vmem:[%s13836_s10 + $0x8c] sm:$0xf]  ;;  %v9228_v63 = vor.u32 %v12671_v20, %v9225_v21 }
 0x31d   : > { %7161 = vmatpush.bf16.msra.mxu3 %v9292_v3  ;;  %7136 = vmatpush.bf16.msra.mxu1 %v8748_v14  ;;  %v8425_v33 = vld [vmem:[%s13836_s10 + $0xa8] sm:$0xf0]  ;;  %13559 = vtanh.f32 %v6909_v61 }
 0x31e   : > { %v12535_v40 = vld [vmem:[%s13836_s10 + $0x28c] sm:$0xf]  ;;  %v8428_v57 = vor.u32 %v12471_v28, %v8425_v33 }
 0x31f   : > { %7149 = vmatpush.bf16.msra.mxu2 %v9004_v15  ;;  %v8681_v46 = vld [vmem:[%s13836_s10 + $0x2a8] sm:$0xf0]  ;;  %7124 = vmatpush.bf16.msra.mxu0 %v8460_v19  ;;  %v6897_v58 = vpop.f32.mrf.mxu2  ;;  %v6910_v19 = vpop.f32.mrf.mxu3 }
 0x320   : > { %v12599_v48 = vld [vmem:[%s13836_s10 + $0x48c] sm:$0xf]  ;;  %v8684_v62 = vor.u32 %v12535_v40, %v8681_v46 }
 0x321   : > { %7162 = vmatpush.bf16.msra.mxu3 %v9260_v18  ;;  %v8937_v44 = vld [vmem:[%s13836_s10 + $0x4a8] sm:$0xf0]  ;;  %7137 = vmatpush.bf16.msra.mxu1 %v8716_v26 }
 0x322   : > { %v12663_v1 = vld [vmem:[%s13836_s10 + $0x68c] sm:$0xf]  ;;  %v8940_v4 = vor.u32 %v12599_v48, %v8937_v44 }
 0x323   : > { %v9193_v55 = vld [vmem:[%s13836_s10 + $0x6a8] sm:$0xf0]  ;;  %7150 = vmatpush.bf16.msra.mxu2 %v8972_v27  ;;  %7125 = vmatpush.bf16.msra.mxu0 %v8428_v57  ;;  %v14894_v33 = vpop.eup %13559 }
 0x324   : > { %v12463_v10 = vld [vmem:[%s13836_s10 + $0x4c] sm:$0xf]  ;;  %v9196_v3 = vor.u32 %v12663_v1, %v9193_v55  ;;  %8174 = vst [vmem:[%s14592_s25 + $0x8] sm:$0xff] %v14894_v33 }
 0x325   : > { %v8393_v0 = vld [vmem:[%s13836_s10 + $0x68] sm:$0xf0]  ;;  %7163 = vmatpush.bf16.msra.mxu3 %v9228_v63  ;;  %7138 = vmatpush.bf16.msra.mxu1 %v8684_v62 }
 0x326   : > { %v12527_v45 = vld [vmem:[%s13836_s10 + $0x24c] sm:$0xf]  ;;  %v8396_v9 = vor.u32 %v12463_v10, %v8393_v0 }
 0x327   : > { %v8649_v60 = vld [vmem:[%s13836_s10 + $0x268] sm:$0xf0]  ;;  %7151 = vmatpush.bf16.msra.mxu2 %v8940_v4 }
 0x328   : > { %v12591_v32 = vld [vmem:[%s13836_s10 + $0x44c] sm:$0xf]  ;;  %v8652_v13 = vor.u32 %v12527_v45, %v8649_v60  ;;  %7126 = vmatpush.bf16.msra.mxu0 %v8396_v9 }
 0x329   : > { %v8905_v5 = vld [vmem:[%s13836_s10 + $0x468] sm:$0xf0]  ;;  %7164 = vmatpush.bf16.msra.mxu3 %v9196_v3 }
 0x32a   : > { %v12655_v7 = vld [vmem:[%s13836_s10 + $0x64c] sm:$0xf]  ;;  %v8908_v37 = vor.u32 %v12591_v32, %v8905_v5  ;;  %7139 = vmatpush.bf16.msra.mxu1 %v8652_v13 }
 0x32b   : > { %v9161_v8 = vld [vmem:[%s13836_s10 + $0x668] sm:$0xf0] }
 0x32c   : > { %v12455_v11 = vld [vmem:[%s13836_s10 + $0xc] sm:$0xf]  ;;  %v9164_v17 = vor.u32 %v12655_v7, %v9161_v8  ;;  %7152 = vmatpush.bf16.msra.mxu2 %v8908_v37 }
 0x32d   : > { %v8361_v12 = vld [vmem:[%s13836_s10 + $0x28] sm:$0xf0] }
 0x32e   : > { %v12519_v14 = vld [vmem:[%s13836_s10 + $0x20c] sm:$0xf]  ;;  %v8364_v23 = vor.u32 %v12455_v11, %v8361_v12  ;;  %7165 = vmatpush.bf16.msra.mxu3 %v9164_v17 }
 0x32f   : > { %v8617_v15 = vld [vmem:[%s13836_s10 + $0x228] sm:$0xf0] }
 0x330   : > { %v12583_v16 = vld [vmem:[%s13836_s10 + $0x40c] sm:$0xf]  ;;  %v8620_v40 = vor.u32 %v12519_v14, %v8617_v15  ;;  %7127 = vmatpush.bf16.msra.mxu0 %v8364_v23 }
 0x331   : > { %v8873_v6 = vld [vmem:[%s13836_s10 + $0x428] sm:$0xf0] }
 0x332   : > { %v12647_v18 = vld [vmem:[%s13836_s10 + $0x60c] sm:$0xf]  ;;  %v8876_v63 = vor.u32 %v12583_v16, %v8873_v6  ;;  %7140 = vmatpush.bf16.msra.mxu1 %v8620_v40 }
 0x333   : > { %v9129_v30 = vld [vmem:[%s13836_s10 + $0x628] sm:$0xf0]  ;;  %7128 = vmatmul.bf16.vlgmr.msra.gmra.mxu0 %v13991_v25 }
 0x334   : > { %v12767_v51 = vld [vmem:[%s13836_s10 + $0x9cc] sm:$0xf]  ;;  %v9132_v48 = vor.u32 %v12647_v18, %v9129_v30  ;;  %7153 = vmatpush.bf16.msra.mxu2 %v8876_v63 }
 0x335   : > { %v9609_v20 = vld [vmem:[%s13836_s10 + $0x9e8] sm:$0xf0]  ;;  %7141 = vmatmul.bf16.vlgmr.msra.gmra.mxu1 %v14006_v41 }
 0x336   : > { %v12831_v21 = vld [vmem:[%s13836_s10 + $0xbcc] sm:$0xf]  ;;  %v9612_v44 = vor.u32 %v12767_v51, %v9609_v20  ;;  %7166 = vmatpush.bf16.msra.mxu3 %v9132_v48 }
 0x337   : > { %v9865_v26 = vld [vmem:[%s13836_s10 + $0xbe8] sm:$0xf0]  ;;  %7154 = vmatmul.bf16.vlgmr.msra.gmra.mxu2 %v13989_v24 }
 0x338   : > { %v12895_v27 = vld [vmem:[%s13836_s10 + $0xdcc] sm:$0xf]  ;;  %v9868_v49 = vor.u32 %v12831_v21, %v9865_v26  ;;  %7172 = vmatpush.bf16.msrb.mxu0 %v9612_v44  ;;  %v6934_v44 = vpop.f32.mrf.mxu1 }
 0x339   : > { %v10121_v28 = vld [vmem:[%s13836_s10 + $0xde8] sm:$0xf0]  ;;  %7167 = vmatmul.bf16.vlgmr.msra.gmra.mxu3 %v13996_v31 }
 0x33a   : > { %v12959_v22 = vld [vmem:[%s13836_s10 + $0xfcc] sm:$0xf]  ;;  %v10124_v52 = vor.u32 %v12895_v27, %v10121_v28  ;;  %7185 = vmatpush.bf16.msrb.mxu1 %v9868_v49  ;;  %v6921_v27 = vpop.f32.mrf.mxu0 }
 0x33b   : > { %v10377_v46 = vld [vmem:[%s13836_s10 + $0xfe8] sm:$0xf0] }
 0x33c   : > { %v12759_v1 = vld [vmem:[%s13836_s10 + $0x98c] sm:$0xf]  ;;  %v10380_v57 = vor.u32 %v12959_v22, %v10377_v46  ;;  %7198 = vmatpush.bf16.msrb.mxu2 %v10124_v52 }
 0x33d   : > { %v9577_v55 = vld [vmem:[%s13836_s10 + $0x9a8] sm:$0xf0] }
 0x33e   : > { %v12823_v47 = vld [vmem:[%s13836_s10 + $0xb8c] sm:$0xf]  ;;  %v9580_v0 = vor.u32 %v12759_v1, %v9577_v55  ;;  %7211 = vmatpush.bf16.msrb.mxu3 %v10380_v57 }
 0x33f   : > { %v9833_v59 = vld [vmem:[%s13836_s10 + $0xba8] sm:$0xf0] }
 0x340   : > { %v12887_v61 = vld [vmem:[%s13836_s10 + $0xd8c] sm:$0xf]  ;;  %v9836_v45 = vor.u32 %v12823_v47, %v9833_v59  ;;  %7173 = vmatpush.bf16.msrb.mxu0 %v9580_v0 }
 0x341   : > { %v10089_v62 = vld [vmem:[%s13836_s10 + $0xda8] sm:$0xf0] }
 0x342   : > { %v12951_v4 = vld [vmem:[%s13836_s10 + $0xf8c] sm:$0xf]  ;;  %v10092_v3 = vor.u32 %v12887_v61, %v10089_v62  ;;  %7186 = vmatpush.bf16.msrb.mxu1 %v9836_v45 }
 0x343   : > { %v10345_v10 = vld [vmem:[%s13836_s10 + $0xfa8] sm:$0xf0] }
 0x344   : > { %v12751_v60 = vld [vmem:[%s13836_s10 + $0x94c] sm:$0xf]  ;;  %v10348_v7 = vor.u32 %v12951_v4, %v10345_v10  ;;  %7199 = vmatpush.bf16.msrb.mxu2 %v10092_v3  ;;  %v6947_v3 = vpop.f32.mrf.mxu2 }
 0x345   : > { %v9545_v32 = vld [vmem:[%s13836_s10 + $0x968] sm:$0xf0] }
 0x346   : > { %v12815_v5 = vld [vmem:[%s13836_s10 + $0xb4c] sm:$0xf]  ;;  %v9548_v37 = vor.u32 %v12751_v60, %v9545_v32  ;;  %7212 = vmatpush.bf16.msrb.mxu3 %v10348_v7 }
 0x347   : > { %v9801_v8 = vld [vmem:[%s13836_s10 + $0xb68] sm:$0xf0] }
 0x348   : > { %v12879_v9 = vld [vmem:[%s13836_s10 + $0xd4c] sm:$0xf]  ;;  %v9804_v15 = vor.u32 %v12815_v5, %v9801_v8  ;;  %7174 = vmatpush.bf16.msrb.mxu0 %v9548_v37 }
 0x349   : > { %v10057_v11 = vld [vmem:[%s13836_s10 + $0xd68] sm:$0xf0] }
 0x34a   : > { %v12943_v12 = vld [vmem:[%s13836_s10 + $0xf4c] sm:$0xf]  ;;  %v10060_v16 = vor.u32 %v12879_v9, %v10057_v11  ;;  %7187 = vmatpush.bf16.msrb.mxu1 %v9804_v15  ;;  %v6960_v9 = vpop.f32.mrf.mxu3 }
 0x34b   : > { %v10313_v13 = vld [vmem:[%s13836_s10 + $0xf68] sm:$0xf0] }
 0x34c   : > { %v12743_v14 = vld [vmem:[%s13836_s10 + $0x90c] sm:$0xf]  ;;  %v10316_v58 = vor.u32 %v12943_v12, %v10313_v13  ;;  %7200 = vmatpush.bf16.msrb.mxu2 %v10060_v16 }
 0x34d   : > { %v9513_v17 = vld [vmem:[%s13836_s10 + $0x928] sm:$0xf0] }
 0x34e   : > { %v12807_v6 = vld [vmem:[%s13836_s10 + $0xb0c] sm:$0xf]  ;;  %v9516_v26 = vor.u32 %v12743_v14, %v9513_v17  ;;  %7213 = vmatpush.bf16.msrb.mxu3 %v10316_v58  ;;  %v6923_v14 = vpop.f32.mrf.mxu0 }
 0x34f   : > { %v13573_v18 = vld [vmem:[%s13842_s8] sm:$0xff] }
 0x350   : > { %v1362_v30 = vperm.slane %v13573_v18, 2  ;;  %v9769_v51 = vld [vmem:[%s13836_s10 + $0xb28] sm:$0xf0]  ;;  %7175 = vmatpush.bf16.msrb.mxu0 %v9516_v26 }
 0x351   : > { %v12871_v20 = vld [vmem:[%s13836_s10 + $0xd0c] sm:$0xf]  ;;  %v9772_v28 = vor.u32 %v12807_v6, %v9769_v51 }
 0x352   : > { %v10025_v21 = vld [vmem:[%s13836_s10 + $0xd28] sm:$0xf0]  ;;  %v6922_v48 = vadd.f32 %v6921_v27, %v1362_v30  ;;  %v6936_v30 = vpop.f32.mrf.mxu1 }
 0x353   : > { %v12935_v19 = vld [vmem:[%s13836_s10 + $0xf0c] sm:$0xf]  ;;  %v10028_v40 = vor.u32 %v12871_v20, %v10025_v21  ;;  %7188 = vmatpush.bf16.msrb.mxu1 %v9772_v28 }
 0x354   : > { %v10281_v23 = vld [vmem:[%s13836_s10 + $0xf28] sm:$0xf0]  ;;  %v6935_v59 = vadd.f32 %v6934_v44, %v6922_v48  ;;  %v6949_v44 = vpop.f32.mrf.mxu2 }
 0x355   : > { %v12735_v63 = vld [vmem:[%s13836_s10 + $0x8cc] sm:$0xf]  ;;  %v10284_v49 = vor.u32 %v12935_v19, %v10281_v23  ;;  %7201 = vmatpush.bf16.msrb.mxu2 %v10028_v40 }
 0x356   : > { %v9481_v22 = vld [vmem:[%s13836_s10 + $0x8e8] sm:$0xf0]  ;;  %v6948_v8 = vadd.f32 %v6947_v3, %v6935_v59 }
 0x357   : > { %v12799_v46 = vld [vmem:[%s13836_s10 + $0xacc] sm:$0xf]  ;;  %v9484_v61 = vor.u32 %v12735_v63, %v9481_v22  ;;  %7214 = vmatpush.bf16.msrb.mxu3 %v10284_v49 }
 0x358   : > { %v9737_v52 = vld [vmem:[%s13836_s10 + $0xae8] sm:$0xf0]  ;;  %v14945_v37 = vadd.f32 %v6960_v9, %v6948_v8 }
 0x359   : > { %v12863_v1 = vld [vmem:[%s13836_s10 + $0xccc] sm:$0xf]  ;;  %v9740_v62 = vor.u32 %v12799_v46, %v9737_v52  ;;  %7176 = vmatpush.bf16.msrb.mxu0 %v9484_v61 }
 0x35a   : > { %v9993_v55 = vld [vmem:[%s13836_s10 + $0xce8] sm:$0xf0] }
 0x35b   : > { %v12927_v47 = vld [vmem:[%s13836_s10 + $0xecc] sm:$0xf]  ;;  %v9996_v4 = vor.u32 %v12863_v1, %v9993_v55  ;;  %7189 = vmatpush.bf16.msrb.mxu1 %v9740_v62 }
 0x35c   : > { %v10249_v57 = vld [vmem:[%s13836_s10 + $0xee8] sm:$0xf0] }
 0x35d   : > { %v12727_v10 = vld [vmem:[%s13836_s10 + $0x88c] sm:$0xf]  ;;  %v10252_v60 = vor.u32 %v12927_v47, %v10249_v57  ;;  %7202 = vmatpush.bf16.msrb.mxu2 %v9996_v4  ;;  %v6962_v47 = vpop.f32.mrf.mxu3 }
 0x35e   : > { %v9449_v0 = vld [vmem:[%s13836_s10 + $0x8a8] sm:$0xf0] }
 0x35f   : > { %v12791_v45 = vld [vmem:[%s13836_s10 + $0xa8c] sm:$0xf]  ;;  %v9452_v13 = vor.u32 %v12727_v10, %v9449_v0  ;;  %7215 = vmatpush.bf16.msrb.mxu3 %v10252_v60 }
 0x360   : > { %v9705_v32 = vld [vmem:[%s13836_s10 + $0xaa8] sm:$0xf0] }
 0x361   : > { %v12855_v5 = vld [vmem:[%s13836_s10 + $0xc8c] sm:$0xf]  ;;  %v9708_v15 = vor.u32 %v12791_v45, %v9705_v32  ;;  %7177 = vmatpush.bf16.msrb.mxu0 %v9452_v13 }
 0x362   : > { %v9961_v7 = vld [vmem:[%s13836_s10 + $0xca8] sm:$0xf0] }
 0x363   : > { %v12919_v11 = vld [vmem:[%s13836_s10 + $0xe8c] sm:$0xf]  ;;  %v9964_v16 = vor.u32 %v12855_v5, %v9961_v7  ;;  %7190 = vmatpush.bf16.msrb.mxu1 %v9708_v15 }
 0x364   : > { %v10217_v12 = vld [vmem:[%s13836_s10 + $0xea8] sm:$0xf0] }
 0x365   : > { %v12719_v17 = vld [vmem:[%s13836_s10 + $0x84c] sm:$0xf]  ;;  %v10220_v58 = vor.u32 %v12919_v11, %v10217_v12  ;;  %7203 = vmatpush.bf16.msrb.mxu2 %v9964_v16 }
 0x366   : > { %v9417_v6 = vld [vmem:[%s13836_s10 + $0x868] sm:$0xf0] }
 0x367   : > { %v12783_v18 = vld [vmem:[%s13836_s10 + $0xa4c] sm:$0xf]  ;;  %v9420_v26 = vor.u32 %v12719_v17, %v9417_v6  ;;  %7216 = vmatpush.bf16.msrb.mxu3 %v10220_v58 }
 0x368   : > { %v9673_v51 = vld [vmem:[%s13836_s10 + $0xa68] sm:$0xf0] }
 0x369   : > { %v12847_v20 = vld [vmem:[%s13836_s10 + $0xc4c] sm:$0xf]  ;;  %v9676_v40 = vor.u32 %v12783_v18, %v9673_v51  ;;  %7178 = vmatpush.bf16.msrb.mxu0 %v9420_v26 }
 0x36a   : > { %v9929_v21 = vld [vmem:[%s13836_s10 + $0xc68] sm:$0xf0] }
 0x36b   : > { %v12911_v19 = vld [vmem:[%s13836_s10 + $0xe4c] sm:$0xf]  ;;  %v9932_v63 = vor.u32 %v12847_v20, %v9929_v21  ;;  %7191 = vmatpush.bf16.msrb.mxu1 %v9676_v40 }
 0x36c   : > { %v10185_v23 = vld [vmem:[%s13836_s10 + $0xe68] sm:$0xf0] }
 0x36d   : > { %v12711_v27 = vld [vmem:[%s13836_s10 + $0x80c] sm:$0xf]  ;;  %v10188_v49 = vor.u32 %v12911_v19, %v10185_v23  ;;  %7204 = vmatpush.bf16.msrb.mxu2 %v9932_v63 }
 0x36e   : > { %v9385_v28 = vld [vmem:[%s13836_s10 + $0x828] sm:$0xf0] }
 0x36f   : > { %v12775_v22 = vld [vmem:[%s13836_s10 + $0xa0c] sm:$0xf]  ;;  %v9388_v62 = vor.u32 %v12711_v27, %v9385_v28  ;;  %7217 = vmatpush.bf16.msrb.mxu3 %v10188_v49 }
 0x370   : > { %v9641_v46 = vld [vmem:[%s13836_s10 + $0xa28] sm:$0xf0] }
 0x371   : > { %v12839_v48 = vld [vmem:[%s13836_s10 + $0xc0c] sm:$0xf]  ;;  %v9644_v45 = vor.u32 %v12775_v22, %v9641_v46  ;;  %7179 = vmatpush.bf16.msrb.mxu0 %v9388_v62 }
 0x372   : > { %v9897_v52 = vld [vmem:[%s13836_s10 + $0xc28] sm:$0xf0] }
 0x373   : > { %v12903_v1 = vld [vmem:[%s13836_s10 + $0xe0c] sm:$0xf]  ;;  %v9900_v3 = vor.u32 %v12839_v48, %v9897_v52  ;;  %7192 = vmatpush.bf16.msrb.mxu1 %v9644_v45 }
 0x374   : > { %v10153_v55 = vld [vmem:[%s13836_s10 + $0xe28] sm:$0xf0]  ;;  %7180 = vmatmul.bf16.vlgmr.msrb.gmra.mxu0 %v14056_v53 }
 0x375   : > { %v13023_v57 = vld [vmem:[%s13836_s10 + $0x11cc] sm:$0xf]  ;;  %v10156_v5 = vor.u32 %v12903_v1, %v10153_v55  ;;  %7205 = vmatpush.bf16.msrb.mxu2 %v9900_v3 }
 0x376   : > { %v10633_v59 = vld [vmem:[%s13836_s10 + $0x11e8] sm:$0xf0]  ;;  %7193 = vmatmul.bf16.vlgmr.msrb.gmra.mxu1 %v14060_v56 }
 0x377   : > { %v13087_v61 = vld [vmem:[%s13836_s10 + $0x13cc] sm:$0xf]  ;;  %v10636_v7 = vor.u32 %v13023_v57, %v10633_v59  ;;  %7218 = vmatpush.bf16.msrb.mxu3 %v10156_v5 }
 0x378   : > { %v10889_v4 = vld [vmem:[%s13836_s10 + $0x13e8] sm:$0xf0]  ;;  %7206 = vmatmul.bf16.vlgmr.msrb.gmra.mxu2 %v14052_v50 }
 0x379   : > { %v13151_v10 = vld [vmem:[%s13836_s10 + $0x15cc] sm:$0xf]  ;;  %v10892_v8 = vor.u32 %v13087_v61, %v10889_v4  ;;  %7224 = vmatpush.bf16.msra.mxu0 %v10636_v7  ;;  %v14999_v4 = vpop.f32.mrf.mxu0 }
 0x37a   : > { %v11145_v0 = vld [vmem:[%s13836_s10 + $0x15e8] sm:$0xf0]  ;;  %7219 = vmatmul.bf16.vlgmr.msrb.gmra.mxu3 %v14058_v54 }
 0x37b   : > { %v13215_v60 = vld [vmem:[%s13836_s10 + $0x17cc] sm:$0xf]  ;;  %v11148_v9 = vor.u32 %v13151_v10, %v11145_v0  ;;  %7237 = vmatpush.bf16.msra.mxu1 %v10892_v8 }
 0x37c   : > { %v11401_v32 = vld [vmem:[%s13836_s10 + $0x17e8] sm:$0xf0] }
 0x37d   : > { %v13015_v11 = vld [vmem:[%s13836_s10 + $0x118c] sm:$0xf]  ;;  %v11404_v14 = vor.u32 %v13215_v60, %v11401_v32  ;;  %7250 = vmatpush.bf16.msra.mxu2 %v11148_v9  ;;  %v15004_v32 = vpop.f32.mrf.mxu1 }
 0x37e   : > { %v10601_v12 = vld [vmem:[%s13836_s10 + $0x11a8] sm:$0xf0] }
 0x37f   : > { %v13079_v13 = vld [vmem:[%s13836_s10 + $0x138c] sm:$0xf]  ;;  %v10604_v30 = vor.u32 %v13015_v11, %v10601_v12  ;;  %7263 = vmatpush.bf16.msra.mxu3 %v11404_v14 }
 0x380   : > { %v10857_v15 = vld [vmem:[%s13836_s10 + $0x13a8] sm:$0xf0] }
 0x381   : > { %v13143_v16 = vld [vmem:[%s13836_s10 + $0x158c] sm:$0xf]  ;;  %v10860_v58 = vor.u32 %v13079_v13, %v10857_v15  ;;  %7225 = vmatpush.bf16.msra.mxu0 %v10604_v30 }
 0x382   : > { %v11113_v17 = vld [vmem:[%s13836_s10 + $0x15a8] sm:$0xf0] }
 0x383   : > { %v13207_v6 = vld [vmem:[%s13836_s10 + $0x178c] sm:$0xf]  ;;  %v11116_v51 = vor.u32 %v13143_v16, %v11113_v17  ;;  %7238 = vmatpush.bf16.msra.mxu1 %v10860_v58 }
 0x384   : > { %v11369_v18 = vld [vmem:[%s13836_s10 + $0x17a8] sm:$0xf0] }
 0x385   : > { %v13007_v20 = vld [vmem:[%s13836_s10 + $0x114c] sm:$0xf]  ;;  %v11372_v23 = vor.u32 %v13207_v6, %v11369_v18  ;;  %7251 = vmatpush.bf16.msra.mxu2 %v11116_v51  ;;  %v15014_v18 = vpop.f32.mrf.mxu2 }
 0x386   : > { %v10569_v21 = vld [vmem:[%s13836_s10 + $0x1168] sm:$0xf0] }
 0x387   : > { %v13071_v19 = vld [vmem:[%s13836_s10 + $0x134c] sm:$0xf]  ;;  %v10572_v22 = vor.u32 %v13007_v20, %v10569_v21  ;;  %7264 = vmatpush.bf16.msra.mxu3 %v11372_v23  ;;  %v15019_v21 = vpop.f32.mrf.mxu3 }
 0x388   : > { %v10825_v26 = vld [vmem:[%s13836_s10 + $0x1368] sm:$0xf0] }
 0x389   : > { %v13135_v27 = vld [vmem:[%s13836_s10 + $0x154c] sm:$0xf]  ;;  %v10828_v46 = vor.u32 %v13071_v19, %v10825_v26  ;;  %7226 = vmatpush.bf16.msra.mxu0 %v10572_v22 }
 0x38a   : > { %v11081_v28 = vld [vmem:[%s13836_s10 + $0x1568] sm:$0xf0] }
 0x38b   : > { %v13199_v40 = vld [vmem:[%s13836_s10 + $0x174c] sm:$0xf]  ;;  %v11084_v48 = vor.u32 %v13135_v27, %v11081_v28  ;;  %7239 = vmatpush.bf16.msra.mxu1 %v10828_v46  ;;  %v6975_v27 = vpop.f32.mrf.mxu0 }
 0x38c   : > { %v11337_v63 = vld [vmem:[%s13836_s10 + $0x1768] sm:$0xf0] }
 0x38d   : > { %v12999_v44 = vld [vmem:[%s13836_s10 + $0x110c] sm:$0xf]  ;;  %v11340_v1 = vor.u32 %v13199_v40, %v11337_v63  ;;  %7252 = vmatpush.bf16.msra.mxu2 %v11084_v48  ;;  %v6988_v48 = vpop.f32.mrf.mxu1 }
 0x38e   : > { %v10537_v49 = vld [vmem:[%s13836_s10 + $0x1128] sm:$0xf0] }
 0x38f   : > { %v13063_v52 = vld [vmem:[%s13836_s10 + $0x130c] sm:$0xf]  ;;  %v10540_v62 = vor.u32 %v12999_v44, %v10537_v49  ;;  %7265 = vmatpush.bf16.msra.mxu3 %v11340_v1 }
 0x390   : > { %v10793_v55 = vld [vmem:[%s13836_s10 + $0x1328] sm:$0xf0] }
 0x391   : > { %v13127_v47 = vld [vmem:[%s13836_s10 + $0x150c] sm:$0xf]  ;;  %v10796_v10 = vor.u32 %v13063_v52, %v10793_v55  ;;  %7227 = vmatpush.bf16.msra.mxu0 %v10540_v62 }
 0x392   : > { %v11049_v57 = vld [vmem:[%s13836_s10 + $0x1528] sm:$0xf0] }
 0x393   : > { %v13191_v59 = vld [vmem:[%s13836_s10 + $0x170c] sm:$0xf]  ;;  %v11052_v0 = vor.u32 %v13127_v47, %v11049_v57  ;;  %7240 = vmatpush.bf16.msra.mxu1 %v10796_v10 }
 0x394   : > { %v11305_v61 = vld [vmem:[%s13836_s10 + $0x1728] sm:$0xf0] }
 0x395   : > { %v12991_v45 = vld [vmem:[%s13836_s10 + $0x10cc] sm:$0xf]  ;;  %v11308_v5 = vor.u32 %v13191_v59, %v11305_v61  ;;  %7253 = vmatpush.bf16.msra.mxu2 %v11052_v0 }
 0x396   : > { %v10505_v3 = vld [vmem:[%s13836_s10 + $0x10e8] sm:$0xf0] }
 0x397   : > { %v13055_v60 = vld [vmem:[%s13836_s10 + $0x12cc] sm:$0xf]  ;;  %v10508_v13 = vor.u32 %v12991_v45, %v10505_v3  ;;  %7266 = vmatpush.bf16.msra.mxu3 %v11308_v5 }
 0x398   : > { %v10761_v7 = vld [vmem:[%s13836_s10 + $0x12e8] sm:$0xf0] }
 0x399   : > { %v13119_v8 = vld [vmem:[%s13836_s10 + $0x14cc] sm:$0xf]  ;;  %v10764_v14 = vor.u32 %v13055_v60, %v10761_v7  ;;  %7228 = vmatpush.bf16.msra.mxu0 %v10508_v13  ;;  %v7001_v60 = vpop.f32.mrf.mxu2 }
 0x39a   : > { %v11017_v9 = vld [vmem:[%s13836_s10 + $0x14e8] sm:$0xf0] }
 0x39b   : > { %v13183_v11 = vld [vmem:[%s13836_s10 + $0x16cc] sm:$0xf]  ;;  %v11020_v15 = vor.u32 %v13119_v8, %v11017_v9  ;;  %7241 = vmatpush.bf16.msra.mxu1 %v10764_v14 }
 0x39c   : > { %v11273_v12 = vld [vmem:[%s13836_s10 + $0x16e8] sm:$0xf0] }
 0x39d   : > { %v12983_v16 = vld [vmem:[%s13836_s10 + $0x108c] sm:$0xf]  ;;  %v11276_v30 = vor.u32 %v13183_v11, %v11273_v12  ;;  %7254 = vmatpush.bf16.msra.mxu2 %v11020_v15  ;;  %v7014_v11 = vpop.f32.mrf.mxu3 }
 0x39e   : > { %v10473_v17 = vld [vmem:[%s13836_s10 + $0x10a8] sm:$0xf0] }
 0x39f   : > { %v13047_v6 = vld [vmem:[%s13836_s10 + $0x128c] sm:$0xf]  ;;  %v10476_v26 = vor.u32 %v12983_v16, %v10473_v17  ;;  %7267 = vmatpush.bf16.msra.mxu3 %v11276_v30 }
 0x3a0   : > { %v10729_v58 = vld [vmem:[%s13836_s10 + $0x12a8] sm:$0xf0] }
 0x3a1   : > { %v13111_v51 = vld [vmem:[%s13836_s10 + $0x148c] sm:$0xf]  ;;  %v10732_v28 = vor.u32 %v13047_v6, %v10729_v58  ;;  %7229 = vmatpush.bf16.msra.mxu0 %v10476_v26 }
 0x3a2   : > { %v10985_v20 = vld [vmem:[%s13836_s10 + $0x14a8] sm:$0xf0] }
 0x3a3   : > { %v13175_v19 = vld [vmem:[%s13836_s10 + $0x168c] sm:$0xf]  ;;  %v10988_v40 = vor.u32 %v13111_v51, %v10985_v20  ;;  %7242 = vmatpush.bf16.msra.mxu1 %v10732_v28 }
 0x3a4   : > { %v11241_v23 = vld [vmem:[%s13836_s10 + $0x16a8] sm:$0xf0] }
 0x3a5   : > { %v12975_v63 = vld [vmem:[%s13836_s10 + $0x104c] sm:$0xf]  ;;  %v11244_v44 = vor.u32 %v13175_v19, %v11241_v23  ;;  %7255 = vmatpush.bf16.msra.mxu2 %v10988_v40 }
 0x3a6   : > { %v10441_v22 = vld [vmem:[%s13836_s10 + $0x1068] sm:$0xf0] }
 0x3a7   : > { %v13039_v46 = vld [vmem:[%s13836_s10 + $0x124c] sm:$0xf]  ;;  %v10444_v57 = vor.u32 %v12975_v63, %v10441_v22  ;;  %7268 = vmatpush.bf16.msra.mxu3 %v11244_v44 }
 0x3a8   : > { %v10697_v49 = vld [vmem:[%s13836_s10 + $0x1268] sm:$0xf0] }
 0x3a9   : > { %v13103_v52 = vld [vmem:[%s13836_s10 + $0x144c] sm:$0xf]  ;;  %v10700_v62 = vor.u32 %v13039_v46, %v10697_v49  ;;  %7230 = vmatpush.bf16.msra.mxu0 %v10444_v57 }
 0x3aa   : > { %v10953_v1 = vld [vmem:[%s13836_s10 + $0x1468] sm:$0xf0] }
 0x3ab   : > { %v13167_v55 = vld [vmem:[%s13836_s10 + $0x164c] sm:$0xf]  ;;  %v10956_v10 = vor.u32 %v13103_v52, %v10953_v1  ;;  %7243 = vmatpush.bf16.msra.mxu1 %v10700_v62 }
 0x3ac   : > { %v11209_v47 = vld [vmem:[%s13836_s10 + $0x1668] sm:$0xf0] }
 0x3ad   : > { %v12967_v59 = vld [vmem:[%s13836_s10 + $0x100c] sm:$0xf]  ;;  %v11212_v5 = vor.u32 %v13167_v55, %v11209_v47  ;;  %7256 = vmatpush.bf16.msra.mxu2 %v10956_v10 }
 0x3ae   : > { %v10409_v61 = vld [vmem:[%s13836_s10 + $0x1028] sm:$0xf0] }
 0x3af   : > { %v13031_v0 = vld [vmem:[%s13836_s10 + $0x120c] sm:$0xf]  ;;  %v10412_v15 = vor.u32 %v12967_v59, %v10409_v61  ;;  %7269 = vmatpush.bf16.msra.mxu3 %v11212_v5 }
 0x3b0   : > { %v10665_v45 = vld [vmem:[%s13836_s10 + $0x1228] sm:$0xf0] }
 0x3b1   : > { %v13095_v3 = vld [vmem:[%s13836_s10 + $0x140c] sm:$0xf]  ;;  %v10668_v30 = vor.u32 %v13031_v0, %v10665_v45  ;;  %7231 = vmatpush.bf16.msra.mxu0 %v10412_v15 }
 0x3b2   : > { %v10921_v7 = vld [vmem:[%s13836_s10 + $0x1428] sm:$0xf0] }
 0x3b3   : > { %v13159_v8 = vld [vmem:[%s13836_s10 + $0x160c] sm:$0xf]  ;;  %v10924_v58 = vor.u32 %v13095_v3, %v10921_v7  ;;  %7244 = vmatpush.bf16.msra.mxu1 %v10668_v30 }
 0x3b4   : > { %v11177_v9 = vld [vmem:[%s13836_s10 + $0x1628] sm:$0xf0]  ;;  %7232 = vmatmul.bf16.vlgmr.msra.gmra.mxu0 %v14125_v34 }
 0x3b5   : > { %v13279_v12 = vld [vmem:[%s13836_s10 + $0x19cc] sm:$0xf]  ;;  %v11180_v19 = vor.u32 %v13159_v8, %v11177_v9  ;;  %7257 = vmatpush.bf16.msra.mxu2 %v10924_v58 }
 0x3b6   : > { %v11657_v13 = vld [vmem:[%s13836_s10 + $0x19e8] sm:$0xf0]  ;;  %7245 = vmatmul.bf16.vlgmr.msra.gmra.mxu1 %v14132_v39 }
 0x3b7   : > { %v13343_v14 = vld [vmem:[%s13836_s10 + $0x1bcc] sm:$0xf]  ;;  %v11660_v23 = vor.u32 %v13279_v12, %v11657_v13  ;;  %7270 = vmatpush.bf16.msra.mxu3 %v11180_v19 }
 0x3b8   : > { %v11913_v16 = vld [vmem:[%s13836_s10 + $0x1be8] sm:$0xf0]  ;;  %7258 = vmatmul.bf16.vlgmr.msra.gmra.mxu2 %v14130_v38 }
 0x3b9   : > { %v13407_v17 = vld [vmem:[%s13836_s10 + $0x1dcc] sm:$0xf]  ;;  %v11916_v26 = vor.u32 %v13343_v14, %v11913_v16  ;;  %7276 = vmatpush.bf16.msrb.mxu0 %v11660_v23 }
 0x3ba   : > { %v12169_v6 = vld [vmem:[%s13836_s10 + $0x1de8] sm:$0xf0]  ;;  %7271 = vmatmul.bf16.vlgmr.msra.gmra.mxu3 %v14136_v43 }
 0x3bb   : > { %v13471_v51 = vld [vmem:[%s13836_s10 + $0x1fcc] sm:$0xf]  ;;  %v12172_v27 = vor.u32 %v13407_v17, %v12169_v6  ;;  %7289 = vmatpush.bf16.msrb.mxu1 %v11916_v26  ;;  %v15073_v17 = vpop.f32.mrf.mxu0 }
 0x3bc   : > { %v12425_v20 = vld [vmem:[%s13836_s10 + $0x1fe8] sm:$0xf0] }
 0x3bd   : > { %v13271_v28 = vld [vmem:[%s13836_s10 + $0x198c] sm:$0xf]  ;;  %v12428_v22 = vor.u32 %v13471_v51, %v12425_v20  ;;  %7302 = vmatpush.bf16.msrb.mxu2 %v12172_v27  ;;  %v15077_v51 = vpop.f32.mrf.mxu1 }
 0x3be   : > { %v11625_v40 = vld [vmem:[%s13836_s10 + $0x19a8] sm:$0xf0] }
 0x3bf   : > { %v13335_v63 = vld [vmem:[%s13836_s10 + $0x1b8c] sm:$0xf]  ;;  %v11628_v1 = vor.u32 %v13271_v28, %v11625_v40  ;;  %7315 = vmatpush.bf16.msrb.mxu3 %v12428_v22 }
 0x3c0   : > { %v11881_v46 = vld [vmem:[%s13836_s10 + $0x1ba8] sm:$0xf0] }
 0x3c1   : > { %v13399_v48 = vld [vmem:[%s13836_s10 + $0x1d8c] sm:$0xf]  ;;  %v11884_v55 = vor.u32 %v13335_v63, %v11881_v46  ;;  %7277 = vmatpush.bf16.msrb.mxu0 %v11628_v1 }
 0x3c2   : > { %v12137_v44 = vld [vmem:[%s13836_s10 + $0x1da8] sm:$0xf0] }
 0x3c3   : > { %v13463_v49 = vld [vmem:[%s13836_s10 + $0x1f8c] sm:$0xf]  ;;  %v12140_v47 = vor.u32 %v13399_v48, %v12137_v44  ;;  %7290 = vmatpush.bf16.msrb.mxu1 %v11884_v55 }
 0x3c4   : > { %v12393_v52 = vld [vmem:[%s13836_s10 + $0x1fa8] sm:$0xf0] }
 0x3c5   : > { %v13263_v57 = vld [vmem:[%s13836_s10 + $0x194c] sm:$0xf]  ;;  %v12396_v62 = vor.u32 %v13463_v49, %v12393_v52  ;;  %7303 = vmatpush.bf16.msrb.mxu2 %v12140_v47  ;;  %v6974_v49 = vadd.f32 %v14999_v4, %v14945_v37 }
 0x3c6   : > { %v11593_v59 = vld [vmem:[%s13836_s10 + $0x1968] sm:$0xf0] }
 0x3c7   : > { %v13327_v61 = vld [vmem:[%s13836_s10 + $0x1b4c] sm:$0xf]  ;;  %v11596_v5 = vor.u32 %v13263_v57, %v11593_v59  ;;  %7316 = vmatpush.bf16.msrb.mxu3 %v12396_v62 }
 0x3c8   : > { %v11849_v10 = vld [vmem:[%s13836_s10 + $0x1b68] sm:$0xf0] }
 0x3c9   : > { %v13391_v0 = vld [vmem:[%s13836_s10 + $0x1d4c] sm:$0xf]  ;;  %v11852_v7 = vor.u32 %v13327_v61, %v11849_v10  ;;  %7278 = vmatpush.bf16.msrb.mxu0 %v11596_v5  ;;  %v15092_v61 = vpop.f32.mrf.mxu2  ;;  %v7040_v5 = vpop.f32.mrf.mxu1 }
 0x3ca   : > { %v12105_v45 = vld [vmem:[%s13836_s10 + $0x1d68] sm:$0xf0] }
 0x3cb   : > { %v13455_v3 = vld [vmem:[%s13836_s10 + $0x1f4c] sm:$0xf]  ;;  %v12108_v8 = vor.u32 %v13391_v0, %v12105_v45  ;;  %7291 = vmatpush.bf16.msrb.mxu1 %v11852_v7  ;;  %v15097_v45 = vpop.f32.mrf.mxu3  ;;  %v6987_v7 = vadd.f32 %v15004_v32, %v6974_v49 }
 0x3cc   : > { %v12361_v60 = vld [vmem:[%s13836_s10 + $0x1f68] sm:$0xf0] }
 0x3cd   : > { %v13255_v9 = vld [vmem:[%s13836_s10 + $0x190c] sm:$0xf]  ;;  %v12364_v13 = vor.u32 %v13455_v3, %v12361_v60  ;;  %7304 = vmatpush.bf16.msrb.mxu2 %v12108_v8  ;;  %v7027_v3 = vpop.f32.mrf.mxu0 }
 0x3ce   : > { %v11561_v11 = vld [vmem:[%s13836_s10 + $0x1928] sm:$0xf0]  ;;  %v12708_v3 = vld [vmem:[%s13836_s10 + $0x7ec] sm:$0xf0] }
 0x3cf   : > { %v13319_v12 = vld [vmem:[%s13836_s10 + $0x1b0c] sm:$0xf]  ;;  %v11564_v58 = vor.u32 %v13255_v9, %v11561_v11  ;;  %7317 = vmatpush.bf16.msrb.mxu3 %v12364_v13 }
 0x3d0   : > { %v11817_v14 = vld [vmem:[%s13836_s10 + $0x1b28] sm:$0xf0] }
 0x3d1   : > { %v13383_v15 = vld [vmem:[%s13836_s10 + $0x1d0c] sm:$0xf]  ;;  %v11820_v20 = vor.u32 %v13319_v12, %v11817_v14  ;;  %7279 = vmatpush.bf16.msrb.mxu0 %v11564_v58  ;;  %v7053_v49 = vpop.f32.mrf.mxu2 }
 0x3d2   : > { %v12073_v16 = vld [vmem:[%s13836_s10 + $0x1d28] sm:$0xf0] }
 0x3d3   : > { %v13447_v6 = vld [vmem:[%s13836_s10 + $0x1f0c] sm:$0xf]  ;;  %v12076_v19 = vor.u32 %v13383_v15, %v12073_v16  ;;  %7292 = vmatpush.bf16.msrb.mxu1 %v11820_v20 }
 0x3d4   : > { %v12329_v30 = vld [vmem:[%s13836_s10 + $0x1f28] sm:$0xf0] }
 0x3d5   : > { %v13247_v23 = vld [vmem:[%s13836_s10 + $0x18cc] sm:$0xf]  ;;  %v12332_v28 = vor.u32 %v13447_v6, %v12329_v30  ;;  %7305 = vmatpush.bf16.msrb.mxu2 %v12076_v19 }
 0x3d6   : > { %v11529_v26 = vld [vmem:[%s13836_s10 + $0x18e8] sm:$0xf0] }
 0x3d7   : > { %v13311_v27 = vld [vmem:[%s13836_s10 + $0x1acc] sm:$0xf]  ;;  %v11532_v44 = vor.u32 %v13247_v23, %v11529_v26  ;;  %7318 = vmatpush.bf16.msrb.mxu3 %v12332_v28  ;;  %v7000_v23 = vadd.f32 %v15014_v18, %v6987_v7  ;;  %v8591_v18 = vld [vmem:[%s13836_s10 + $0x1d0] sm:$0xf] }
 0x3d8   : > { %v11785_v40 = vld [vmem:[%s13836_s10 + $0x1ae8] sm:$0xf0] }
 0x3d9   : > { %v13375_v63 = vld [vmem:[%s13836_s10 + $0x1ccc] sm:$0xf]  ;;  %v11788_v52 = vor.u32 %v13311_v27, %v11785_v40  ;;  %7280 = vmatpush.bf16.msrb.mxu0 %v11532_v44 }
 0x3da   : > { %v12041_v22 = vld [vmem:[%s13836_s10 + $0x1ce8] sm:$0xf0] }
 0x3db   : > { %v13439_v46 = vld [vmem:[%s13836_s10 + $0x1ecc] sm:$0xf]  ;;  %v12044_v1 = vor.u32 %v13375_v63, %v12041_v22  ;;  %7293 = vmatpush.bf16.msrb.mxu1 %v11788_v52  ;;  %v12516_v52 = vld [vmem:[%s13836_s10 + $0x1ec] sm:$0xf0] }
 0x3dc   : > { %v12297_v48 = vld [vmem:[%s13836_s10 + $0x1ee8] sm:$0xf0]  ;;  %v8592_v5 = vor.u32 %v12516_v52, %v8591_v18  ;;  %v12492_v18 = vld [vmem:[%s13836_s10 + $0x12c] sm:$0xf0] }
 0x3dd   : > { %v13239_v55 = vld [vmem:[%s13836_s10 + $0x188c] sm:$0xf]  ;;  %v12300_v59 = vor.u32 %v13439_v46, %v12297_v48  ;;  %7306 = vmatpush.bf16.msrb.mxu2 %v12044_v1  ;;  %v8847_v1 = vld [vmem:[%s13836_s10 + $0x3d0] sm:$0xf] }
 0x3de   : > { %v11497_v47 = vld [vmem:[%s13836_s10 + $0x18a8] sm:$0xf0]  ;;  %v8751_v52 = vld [vmem:[%s13836_s10 + $0x310] sm:$0xf] }
 0x3df   : > { %v13303_v57 = vld [vmem:[%s13836_s10 + $0x1a8c] sm:$0xf]  ;;  %v11500_v60 = vor.u32 %v13239_v55, %v11497_v47  ;;  %7319 = vmatpush.bf16.msrb.mxu3 %v12300_v59  ;;  %v7066_v55 = vpop.f32.mrf.mxu3  ;;  %v9103_v59 = vld [vmem:[%s13836_s10 + $0x5d0] sm:$0xf] }
 0x3e0   : > { %v11753_v62 = vld [vmem:[%s13836_s10 + $0x1aa8] sm:$0xf0]  ;;  %v12556_v55 = vld [vmem:[%s13836_s10 + $0x32c] sm:$0xf0] }
 0x3e1   : > { %v13367_v10 = vld [vmem:[%s13836_s10 + $0x1c8c] sm:$0xf]  ;;  %v11756_v8 = vor.u32 %v13303_v57, %v11753_v62  ;;  %7281 = vmatpush.bf16.msrb.mxu0 %v11500_v60  ;;  %v12580_v57 = vld [vmem:[%s13836_s10 + $0x3ec] sm:$0xf0] }
 0x3e2   : > { %v12009_v0 = vld [vmem:[%s13836_s10 + $0x1ca8] sm:$0xf0]  ;;  %v12644_v62 = vld [vmem:[%s13836_s10 + $0x5ec] sm:$0xf0] }
 0x3e3   : > { %v13431_v37 = vld [vmem:[%s13836_s10 + $0x1e8c] sm:$0xf]  ;;  %v12012_v9 = vor.u32 %v13367_v10, %v12009_v0  ;;  %7294 = vmatpush.bf16.msrb.mxu1 %v11756_v8  ;;  %v7013_v10 = vadd.f32 %v15019_v21, %v7000_v23  ;;  %v8848_v8 = vor.u32 %v12580_v57, %v8847_v1  ;;  %v12508_v21 = vld [vmem:[%s13836_s10 + $0x1ac] sm:$0xf0] }
 0x3e4   : > { %v12265_v4 = vld [vmem:[%s13836_s10 + $0x1ea8] sm:$0xf0]  ;;  %v12500_v23 = vld [vmem:[%s13836_s10 + $0x16c] sm:$0xf0] }
 0x3e5   : > { %v13231_v11 = vld [vmem:[%s13836_s10 + $0x184c] sm:$0xf]  ;;  %v12268_v14 = vor.u32 %v13431_v37, %v12265_v4  ;;  %7307 = vmatpush.bf16.msrb.mxu2 %v12012_v9  ;;  %v9359_v4 = vld [vmem:[%s13836_s10 + $0x7d0] sm:$0xf]  ;;  %v7026_v7 = vadd.f32 %v15073_v17, %v7013_v10  ;;  %v9104_v9 = vor.u32 %v12644_v62, %v9103_v59  ;;  %v7077_v62 = vpop.f32.mrf.mxu0 }
 0x3e6   : > { %v11465_v12 = vld [vmem:[%s13836_s10 + $0x1868] sm:$0xf0]  ;;  %v12620_v57 = vld [vmem:[%s13836_s10 + $0x52c] sm:$0xf0] }
 0x3e7   : > { %v13295_v13 = vld [vmem:[%s13836_s10 + $0x1a4c] sm:$0xf]  ;;  %v11468_v58 = vor.u32 %v13231_v11, %v11465_v12  ;;  %7320 = vmatpush.bf16.msrb.mxu3 %v12268_v14  ;;  %v8559_v11 = vld [vmem:[%s13836_s10 + $0x190] sm:$0xf] }
 0x3e8   : > { %v11721_v15 = vld [vmem:[%s13836_s10 + $0x1a68] sm:$0xf0]  ;;  %v8815_v12 = vld [vmem:[%s13836_s10 + $0x390] sm:$0xf]  ;;  %v8560_v17 = vor.u32 %v12508_v21, %v8559_v11 }
 0x3e9   : > { %v13359_v16 = vld [vmem:[%s13836_s10 + $0x1c4c] sm:$0xf]  ;;  %v11724_v26 = vor.u32 %v13295_v13, %v11721_v15  ;;  %7282 = vmatpush.bf16.msrb.mxu0 %v11468_v58  ;;  %v9360_v13 = vor.u32 %v12708_v3, %v9359_v4  ;;  %v12572_v14 = vld [vmem:[%s13836_s10 + $0x3ac] sm:$0xf0]  ;;  %v7090_v4 = vpop.f32.mrf.mxu1 }
 0x3ea   : > { %v11977_v6 = vld [vmem:[%s13836_s10 + $0x1c68] sm:$0xf0]  ;;  %v9071_v15 = vld [vmem:[%s13836_s10 + $0x590] sm:$0xf]  ;;  %v8816_v58 = vor.u32 %v12572_v14, %v8815_v12 }
 0x3eb   : > { %v13423_v30 = vld [vmem:[%s13836_s10 + $0x1e4c] sm:$0xf]  ;;  %v11980_v27 = vor.u32 %v13359_v16, %v11977_v6  ;;  %7295 = vmatpush.bf16.msrb.mxu1 %v11724_v26  ;;  %v12636_v16 = vld [vmem:[%s13836_s10 + $0x5ac] sm:$0xf0] }
 0x3ec   : > { %v12233_v32 = vld [vmem:[%s13836_s10 + $0x1e68] sm:$0xf0]  ;;  %v9327_v6 = vld [vmem:[%s13836_s10 + $0x790] sm:$0xf] }
 0x3ed   : > { %v13223_v20 = vld [vmem:[%s13836_s10 + $0x180c] sm:$0xf]  ;;  %v12236_v22 = vor.u32 %v13423_v30, %v12233_v32  ;;  %7308 = vmatpush.bf16.msrb.mxu2 %v11980_v27  ;;  %v12700_v30 = vld [vmem:[%s13836_s10 + $0x7ac] sm:$0xf0]  ;;  %v7039_v32 = vadd.f32 %v15077_v51, %v7026_v7 }
 0x3ee   : > { %v11433_v19 = vld [vmem:[%s13836_s10 + $0x1828] sm:$0xf0]  ;;  %v8783_v26 = vld [vmem:[%s13836_s10 + $0x350] sm:$0xf]  ;;  %v9328_v27 = vor.u32 %v12700_v30, %v9327_v6 }
 0x3ef   : > { %v13287_v28 = vld [vmem:[%s13836_s10 + $0x1a0c] sm:$0xf]  ;;  %v11436_v47 = vor.u32 %v13223_v20, %v11433_v19  ;;  %7321 = vmatpush.bf16.msrb.mxu3 %v12236_v22  ;;  %v9072_v20 = vor.u32 %v12636_v16, %v9071_v15  ;;  %v8527_v19 = vld [vmem:[%s13836_s10 + $0x150] sm:$0xf]  ;;  %v7052_v51 = vadd.f32 %v15092_v61, %v7039_v32 }
 0x3f0   : > { %v11689_v40 = vld [vmem:[%s13836_s10 + $0x1a28] sm:$0xf0]  ;;  %v9295_v22 = vld [vmem:[%s13836_s10 + $0x750] sm:$0xf] }
 0x3f1   : > { %v13351_v63 = vld [vmem:[%s13836_s10 + $0x1c0c] sm:$0xf]  ;;  %v11692_v0 = vor.u32 %v13287_v28, %v11689_v40  ;;  %7283 = vmatpush.bf16.msrb.mxu0 %v11436_v47  ;;  %v12564_v28 = vld [vmem:[%s13836_s10 + $0x36c] sm:$0xf0]  ;;  %v7065_v59 = vadd.f32 %v15097_v45, %v7052_v51 }
 0x3f2   : > { %v11945_v46 = vld [vmem:[%s13836_s10 + $0x1c28] sm:$0xf0]  ;;  %v9039_v40 = vld [vmem:[%s13836_s10 + $0x550] sm:$0xf] }
 0x3f3   : > { %v13415_v48 = vld [vmem:[%s13836_s10 + $0x1e0c] sm:$0xf]  ;;  %v11948_v37 = vor.u32 %v13351_v63, %v11945_v46  ;;  %7296 = vmatpush.bf16.msrb.mxu1 %v11692_v0  ;;  %v12628_v63 = vld [vmem:[%s13836_s10 + $0x56c] sm:$0xf0]  ;;  %v7078_v3 = vadd.f32 %v7077_v62, %v7065_v59 }
 0x3f4   : > { %v12201_v44 = vld [vmem:[%s13836_s10 + $0x1e28] sm:$0xf0]  ;;  %7284 = vmatmul.bf16.vlgmr.msrb.gmra.mxu0 %v14201_v29  ;;  %v12692_v46 = vld [vmem:[%s13836_s10 + $0x76c] sm:$0xf0]  ;;  %v9040_v49 = vor.u32 %v12628_v63, %v9039_v40  ;;  %v7116_v40 = vpop.f32.mrf.mxu3 }
 0x3f5   : > { %v12204_v60 = vor.u32 %v13415_v48, %v12201_v44  ;;  %7309 = vmatpush.bf16.msrb.mxu2 %v11948_v37  ;;  %7328 = vmatpush.bf16.msra.mxu0 %v8592_v5  ;;  %v8528_v48 = vor.u32 %v12500_v23, %v8527_v19  ;;  %v8784_v44 = vor.u32 %v12564_v28, %v8783_v26  ;;  %v8495_v61 = vld [vmem:[%s13836_s10 + $0x110] sm:$0xf]  ;;  %v7103_v19 = vpop.f32.mrf.mxu2 }
 0x3f6   : > { %7297 = vmatmul.bf16.vlgmr.msrb.gmra.mxu1 %v14208_v36  ;;  %v9296_v1 = vor.u32 %v12692_v46, %v9295_v22  ;;  %v9007_v47 = vld [vmem:[%s13836_s10 + $0x510] sm:$0xf]  ;;  %v8496_v37 = vor.u32 %v12492_v18, %v8495_v61  ;;  %v7091_v16 = vadd.f32 %v7090_v4, %v7078_v3  ;;  %v7079_v22 = vpop.f32.mrf.mxu0 }
 0x3f7   : > { %7322 = vmatpush.bf16.msrb.mxu3 %v12204_v60  ;;  %7341 = vmatpush.bf16.msra.mxu1 %v8848_v8  ;;  %v9263_v10 = vld [vmem:[%s13836_s10 + $0x710] sm:$0xf]  ;;  %v8752_v60 = vor.u32 %v12556_v55, %v8751_v52  ;;  %v9008_v5 = vor.u32 %v12620_v57, %v9007_v47 }
 0x3f8   : > { %7310 = vmatmul.bf16.vlgmr.msrb.gmra.mxu2 %v14206_v35  ;;  %v12684_v0 = vld [vmem:[%s13836_s10 + $0x72c] sm:$0xf0]  ;;  %v7104_v28 = vadd.f32 %v7103_v19, %v7091_v16 }
 0x3f9   : > { %7354 = vmatpush.bf16.msra.mxu2 %v9104_v9  ;;  %7329 = vmatpush.bf16.msra.mxu0 %v8560_v17  ;;  %v8463_v7 = vld [vmem:[%s13836_s10 + $0xd0] sm:$0xf]  ;;  %v9264_v9 = vor.u32 %v12684_v0, %v9263_v10 }
 0x3fa   : > { %7323 = vmatmul.bf16.vlgmr.msrb.gmra.mxu3 %v14212_v42  ;;  %v12484_v8 = vld [vmem:[%s13836_s10 + $0xec] sm:$0xf0] }
 0x3fb   : > { %7367 = vmatpush.bf16.msra.mxu3 %v9360_v13  ;;  %7342 = vmatpush.bf16.msra.mxu1 %v8816_v58  ;;  %v8719_v45 = vld [vmem:[%s13836_s10 + $0x2d0] sm:$0xf]  ;;  %v8464_v15 = vor.u32 %v12484_v8, %v8463_v7 }
 0x3fc   : > { %v12548_v11 = vld [vmem:[%s13836_s10 + $0x2ec] sm:$0xf0]  ;;  %v7118_v16 = vpop.f32.mrf.mxu3 }
 0x3fd   : > { %7355 = vmatpush.bf16.msra.mxu2 %v9072_v20  ;;  %7330 = vmatpush.bf16.msra.mxu0 %v8528_v48  ;;  %v8975_v21 = vld [vmem:[%s13836_s10 + $0x4d0] sm:$0xf]  ;;  %v8720_v6 = vor.u32 %v12548_v11, %v8719_v45  ;;  %v7092_v48 = vpop.f32.mrf.mxu1 }
 0x3fe   : > { %v12612_v12 = vld [vmem:[%s13836_s10 + $0x4ec] sm:$0xf0] }
 0x3ff   : > { %7368 = vmatpush.bf16.msra.mxu3 %v9328_v27  ;;  %7343 = vmatpush.bf16.msra.mxu1 %v8784_v44  ;;  %v9231_v13 = vld [vmem:[%s13836_s10 + $0x6d0] sm:$0xf]  ;;  %v8976_v30 = vor.u32 %v12612_v12, %v8975_v21  ;;  %v7117_v44 = vadd.f32 %v7116_v40, %v7104_v28  ;;  %v7105_v12 = vpop.f32.mrf.mxu2 }
 0x400   : > { %v12676_v14 = vld [vmem:[%s13836_s10 + $0x6ec] sm:$0xf0] }
 0x401   : > { %7356 = vmatpush.bf16.msra.mxu2 %v9040_v49  ;;  %7331 = vmatpush.bf16.msra.mxu0 %v8496_v37  ;;  %v8431_v17 = vld [vmem:[%s13836_s10 + $0x90] sm:$0xf]  ;;  %v9232_v20 = vor.u32 %v12676_v14, %v9231_v13  ;;  %13561 = vtanh.f32 %v7117_v44 }
 0x402   : > { %v12476_v32 = vld [vmem:[%s13836_s10 + $0xac] sm:$0xf0] }
 0x403   : > { %7369 = vmatpush.bf16.msra.mxu3 %v9296_v1  ;;  %7344 = vmatpush.bf16.msra.mxu1 %v8752_v60  ;;  %v8687_v58 = vld [vmem:[%s13836_s10 + $0x290] sm:$0xf]  ;;  %v8432_v46 = vor.u32 %v12476_v32, %v8431_v17 }
 0x404   : > { %v12540_v23 = vld [vmem:[%s13836_s10 + $0x2ac] sm:$0xf0] }
 0x405   : > { %7357 = vmatpush.bf16.msra.mxu2 %v9008_v5  ;;  %v8943_v26 = vld [vmem:[%s13836_s10 + $0x490] sm:$0xf]  ;;  %7332 = vmatpush.bf16.msra.mxu0 %v8464_v15  ;;  %v8688_v49 = vor.u32 %v12540_v23, %v8687_v58 }
 0x406   : > { %v12604_v27 = vld [vmem:[%s13836_s10 + $0x4ac] sm:$0xf0] }
 0x407   : > { %7370 = vmatpush.bf16.msra.mxu3 %v9264_v9  ;;  %v9199_v63 = vld [vmem:[%s13836_s10 + $0x690] sm:$0xf]  ;;  %7345 = vmatpush.bf16.msra.mxu1 %v8720_v6  ;;  %v8944_v61 = vor.u32 %v12604_v27, %v8943_v26  ;;  %v15198_v58 = vpop.eup %13561 }
 0x408   : > { %v12668_v51 = vld [vmem:[%s13836_s10 + $0x6ac] sm:$0xf0]  ;;  %8175 = vst [vmem:[%s14592_s25 + $0x10] sm:$0xff] %v15198_v58 }
 0x409   : > { %7358 = vmatpush.bf16.msra.mxu2 %v8976_v30  ;;  %v8399_v18 = vld [vmem:[%s13836_s10 + $0x50] sm:$0xf]  ;;  %v9200_v55 = vor.u32 %v12668_v51, %v9199_v63  ;;  %7333 = vmatpush.bf16.msra.mxu0 %v8432_v46 }
 0x40a   : > { %v12468_v52 = vld [vmem:[%s13836_s10 + $0x6c] sm:$0xf0] }
 0x40b   : > { %v8655_v1 = vld [vmem:[%s13836_s10 + $0x250] sm:$0xf]  ;;  %7371 = vmatpush.bf16.msra.mxu3 %v9232_v20  ;;  %v8400_v0 = vor.u32 %v12468_v52, %v8399_v18  ;;  %7346 = vmatpush.bf16.msra.mxu1 %v8688_v49 }
 0x40c   : > { %v12532_v47 = vld [vmem:[%s13836_s10 + $0x26c] sm:$0xf0] }
 0x40d   : > { %v8911_v57 = vld [vmem:[%s13836_s10 + $0x450] sm:$0xf]  ;;  %7359 = vmatpush.bf16.msra.mxu2 %v8944_v61  ;;  %v8656_v3 = vor.u32 %v12532_v47, %v8655_v1  ;;  %7334 = vmatpush.bf16.msra.mxu0 %v8400_v0 }
 0x40e   : > { %v12596_v59 = vld [vmem:[%s13836_s10 + $0x46c] sm:$0xf0] }
 0x40f   : > { %v9167_v62 = vld [vmem:[%s13836_s10 + $0x650] sm:$0xf]  ;;  %v8912_v60 = vor.u32 %v12596_v59, %v8911_v57  ;;  %7372 = vmatpush.bf16.msra.mxu3 %v9200_v55  ;;  %7347 = vmatpush.bf16.msra.mxu1 %v8656_v3 }
 0x410   : > { %v12660_v10 = vld [vmem:[%s13836_s10 + $0x66c] sm:$0xf0] }
 0x411   : > { %v8367_v37 = vld [vmem:[%s13836_s10 + $0x10] sm:$0xf]  ;;  %v9168_v45 = vor.u32 %v12660_v10, %v9167_v62  ;;  %7360 = vmatpush.bf16.msra.mxu2 %v8912_v60 }
 0x412   : > { %v12460_v4 = vld [vmem:[%s13836_s10 + $0x2c] sm:$0xf0] }
 0x413   : > { %v8623_v5 = vld [vmem:[%s13836_s10 + $0x210] sm:$0xf]  ;;  %v8368_v6 = vor.u32 %v12460_v4, %v8367_v37  ;;  %7373 = vmatpush.bf16.msra.mxu3 %v9168_v45 }
 0x414   : > { %v12524_v7 = vld [vmem:[%s13836_s10 + $0x22c] sm:$0xf0] }
 0x415   : > { %v8879_v8 = vld [vmem:[%s13836_s10 + $0x410] sm:$0xf]  ;;  %v8624_v20 = vor.u32 %v12524_v7, %v8623_v5  ;;  %7335 = vmatpush.bf16.msra.mxu0 %v8368_v6 }
 0x416   : > { %v12588_v9 = vld [vmem:[%s13836_s10 + $0x42c] sm:$0xf0] }
 0x417   : > { %v9135_v11 = vld [vmem:[%s13836_s10 + $0x610] sm:$0xf]  ;;  %v8880_v19 = vor.u32 %v12588_v9, %v8879_v8  ;;  %7348 = vmatpush.bf16.msra.mxu1 %v8624_v20 }
 0x418   : > { %v12652_v21 = vld [vmem:[%s13836_s10 + $0x62c] sm:$0xf0]  ;;  %7336 = vmatmul.bf16.vlgmr.msra.gmra.mxu0 %v13991_v25 }
 0x419   : > { %v9615_v13 = vld [vmem:[%s13836_s10 + $0x9d0] sm:$0xf]  ;;  %v9136_v27 = vor.u32 %v12652_v21, %v9135_v11  ;;  %7361 = vmatpush.bf16.msra.mxu2 %v8880_v19  ;;  %v13574_v21 = vld [vmem:[%s13842_s8] sm:$0xff] }
 0x41a   : > { %v12772_v14 = vld [vmem:[%s13836_s10 + $0x9ec] sm:$0xf0]  ;;  %7349 = vmatmul.bf16.vlgmr.msra.gmra.mxu1 %v14006_v41  ;;  %v1363_v12 = vperm.slane %v13574_v21, 3 }
 0x41b   : > { %v9871_v15 = vld [vmem:[%s13836_s10 + $0xbd0] sm:$0xf]  ;;  %v9616_v28 = vor.u32 %v12772_v14, %v9615_v13  ;;  %7374 = vmatpush.bf16.msra.mxu3 %v9136_v27 }
 0x41c   : > { %v12836_v30 = vld [vmem:[%s13836_s10 + $0xbec] sm:$0xf0]  ;;  %7362 = vmatmul.bf16.vlgmr.msra.gmra.mxu2 %v13989_v24 }
 0x41d   : > { %v10127_v17 = vld [vmem:[%s13836_s10 + $0xdd0] sm:$0xf]  ;;  %v9872_v40 = vor.u32 %v12836_v30, %v9871_v15  ;;  %7380 = vmatpush.bf16.msrb.mxu0 %v9616_v28 }
 0x41e   : > { %v12900_v32 = vld [vmem:[%s13836_s10 + $0xdec] sm:$0xf0]  ;;  %7375 = vmatmul.bf16.vlgmr.msra.gmra.mxu3 %v13996_v31 }
 0x41f   : > { %v10383_v23 = vld [vmem:[%s13836_s10 + $0xfd0] sm:$0xf]  ;;  %v10128_v63 = vor.u32 %v12900_v32, %v10127_v17  ;;  %7393 = vmatpush.bf16.msrb.mxu1 %v9872_v40  ;;  %v7129_v32 = vpop.f32.mrf.mxu0  ;;  %v7142_v40 = vpop.f32.mrf.mxu1 }
 0x420   : > { %v12964_v26 = vld [vmem:[%s13836_s10 + $0xfec] sm:$0xf0]  ;;  %v7130_v28 = vadd.f32 %v7129_v32, %v1363_v12 }
 0x421   : > { %v9583_v51 = vld [vmem:[%s13836_s10 + $0x990] sm:$0xf]  ;;  %v10384_v48 = vor.u32 %v12964_v26, %v10383_v23  ;;  %7406 = vmatpush.bf16.msrb.mxu2 %v10128_v63 }
 0x422   : > { %v12764_v22 = vld [vmem:[%s13836_s10 + $0x9ac] sm:$0xf0] }
 0x423   : > { %v9839_v46 = vld [vmem:[%s13836_s10 + $0xb90] sm:$0xf]  ;;  %v9584_v1 = vor.u32 %v12764_v22, %v9583_v51  ;;  %7419 = vmatpush.bf16.msrb.mxu3 %v10384_v48 }
 0x424   : > { %v12828_v44 = vld [vmem:[%s13836_s10 + $0xbac] sm:$0xf0] }
 0x425   : > { %v10095_v49 = vld [vmem:[%s13836_s10 + $0xd90] sm:$0xf]  ;;  %v9840_v55 = vor.u32 %v12828_v44, %v9839_v46  ;;  %7381 = vmatpush.bf16.msrb.mxu0 %v9584_v1 }
 0x426   : > { %v12892_v61 = vld [vmem:[%s13836_s10 + $0xdac] sm:$0xf0] }
 0x427   : > { %v10351_v18 = vld [vmem:[%s13836_s10 + $0xf90] sm:$0xf]  ;;  %v10096_v47 = vor.u32 %v12892_v61, %v10095_v49  ;;  %7394 = vmatpush.bf16.msrb.mxu1 %v9840_v55  ;;  %v7143_v49 = vadd.f32 %v7142_v40, %v7130_v28 }
 0x428   : > { %v12956_v52 = vld [vmem:[%s13836_s10 + $0xfac] sm:$0xf0] }
 0x429   : > { %v9551_v57 = vld [vmem:[%s13836_s10 + $0x950] sm:$0xf]  ;;  %v10352_v10 = vor.u32 %v12956_v52, %v10351_v18  ;;  %7407 = vmatpush.bf16.msrb.mxu2 %v10096_v47 }
 0x42a   : > { %v12756_v59 = vld [vmem:[%s13836_s10 + $0x96c] sm:$0xf0] }
 0x42b   : > { %v9807_v62 = vld [vmem:[%s13836_s10 + $0xb50] sm:$0xf]  ;;  %v9552_v5 = vor.u32 %v12756_v59, %v9551_v57  ;;  %7420 = vmatpush.bf16.msrb.mxu3 %v10352_v10  ;;  %v7155_v57 = vpop.f32.mrf.mxu2 }
 0x42c   : > { %v12820_v0 = vld [vmem:[%s13836_s10 + $0xb6c] sm:$0xf0] }
 0x42d   : > { %v10063_v37 = vld [vmem:[%s13836_s10 + $0xd50] sm:$0xf]  ;;  %v9808_v8 = vor.u32 %v12820_v0, %v9807_v62  ;;  %7382 = vmatpush.bf16.msrb.mxu0 %v9552_v5 }
 0x42e   : > { %v12884_v4 = vld [vmem:[%s13836_s10 + $0xd6c] sm:$0xf0] }
 0x42f   : > { %v10319_v3 = vld [vmem:[%s13836_s10 + $0xf50] sm:$0xf]  ;;  %v10064_v45 = vor.u32 %v12884_v4, %v10063_v37  ;;  %7395 = vmatpush.bf16.msrb.mxu1 %v9808_v8  ;;  %v7156_v37 = vadd.f32 %v7155_v57, %v7143_v49  ;;  %v7168_v4 = vpop.f32.mrf.mxu3  ;;  %v7131_v8 = vpop.f32.mrf.mxu0 }
 0x430   : > { %v12948_v60 = vld [vmem:[%s13836_s10 + $0xf6c] sm:$0xf0] }
 0x431   : > { %v9519_v7 = vld [vmem:[%s13836_s10 + $0x910] sm:$0xf]  ;;  %v10320_v13 = vor.u32 %v12948_v60, %v10319_v3  ;;  %7408 = vmatpush.bf16.msrb.mxu2 %v10064_v45 }
 0x432   : > { %v12748_v9 = vld [vmem:[%s13836_s10 + $0x92c] sm:$0xf0] }
 0x433   : > { %v9775_v11 = vld [vmem:[%s13836_s10 + $0xb10] sm:$0xf]  ;;  %v9520_v17 = vor.u32 %v12748_v9, %v9519_v7  ;;  %7421 = vmatpush.bf16.msrb.mxu3 %v10320_v13  ;;  %v15249_v7 = vadd.f32 %v7168_v4, %v7156_v37  ;;  %v7144_v13 = vpop.f32.mrf.mxu1 }
 0x434   : > { %v12812_v14 = vld [vmem:[%s13836_s10 + $0xb2c] sm:$0xf0] }
 0x435   : > { %v10031_v15 = vld [vmem:[%s13836_s10 + $0xd10] sm:$0xf]  ;;  %v9776_v20 = vor.u32 %v12812_v14, %v9775_v11  ;;  %7383 = vmatpush.bf16.msrb.mxu0 %v9520_v17 }
 0x436   : > { %v12876_v16 = vld [vmem:[%s13836_s10 + $0xd2c] sm:$0xf0] }
 0x437   : > { %v10287_v6 = vld [vmem:[%s13836_s10 + $0xf10] sm:$0xf]  ;;  %v10032_v19 = vor.u32 %v12876_v16, %v10031_v15  ;;  %7396 = vmatpush.bf16.msrb.mxu1 %v9776_v20 }
 0x438   : > { %v12940_v30 = vld [vmem:[%s13836_s10 + $0xf2c] sm:$0xf0] }
 0x439   : > { %v9487_v23 = vld [vmem:[%s13836_s10 + $0x8d0] sm:$0xf]  ;;  %v10288_v63 = vor.u32 %v12940_v30, %v10287_v6  ;;  %7409 = vmatpush.bf16.msrb.mxu2 %v10032_v19 }
 0x43a   : > { %v12740_v26 = vld [vmem:[%s13836_s10 + $0x8ec] sm:$0xf0] }
 0x43b   : > { %v9743_v27 = vld [vmem:[%s13836_s10 + $0xad0] sm:$0xf]  ;;  %v9488_v61 = vor.u32 %v12740_v26, %v9487_v23  ;;  %7422 = vmatpush.bf16.msrb.mxu3 %v10288_v63  ;;  %v7157_v63 = vpop.f32.mrf.mxu2 }
 0x43c   : > { %v12804_v51 = vld [vmem:[%s13836_s10 + $0xaec] sm:$0xf0] }
 0x43d   : > { %v9999_v22 = vld [vmem:[%s13836_s10 + $0xcd0] sm:$0xf]  ;;  %v9744_v18 = vor.u32 %v12804_v51, %v9743_v27  ;;  %7384 = vmatpush.bf16.msrb.mxu0 %v9488_v61 }
 0x43e   : > { %v12868_v46 = vld [vmem:[%s13836_s10 + $0xcec] sm:$0xf0] }
 0x43f   : > { %v10255_v48 = vld [vmem:[%s13836_s10 + $0xed0] sm:$0xf]  ;;  %v10000_v52 = vor.u32 %v12868_v46, %v9999_v22  ;;  %7397 = vmatpush.bf16.msrb.mxu1 %v9744_v18 }
 0x440   : > { %v12932_v44 = vld [vmem:[%s13836_s10 + $0xeec] sm:$0xf0] }
 0x441   : > { %v9455_v1 = vld [vmem:[%s13836_s10 + $0x890] sm:$0xf]  ;;  %v10256_v59 = vor.u32 %v12932_v44, %v10255_v48  ;;  %7410 = vmatpush.bf16.msrb.mxu2 %v10000_v52  ;;  %v7170_v44 = vpop.f32.mrf.mxu3 }
 0x442   : > { %v12732_v55 = vld [vmem:[%s13836_s10 + $0x8ac] sm:$0xf0] }
 0x443   : > { %v9711_v47 = vld [vmem:[%s13836_s10 + $0xa90] sm:$0xf]  ;;  %v9456_v5 = vor.u32 %v12732_v55, %v9455_v1  ;;  %7423 = vmatpush.bf16.msrb.mxu3 %v10256_v59 }
 0x444   : > { %v12796_v62 = vld [vmem:[%s13836_s10 + $0xaac] sm:$0xf0] }
 0x445   : > { %v9967_v10 = vld [vmem:[%s13836_s10 + $0xc90] sm:$0xf]  ;;  %v9712_v45 = vor.u32 %v12796_v62, %v9711_v47  ;;  %7385 = vmatpush.bf16.msrb.mxu0 %v9456_v5 }
 0x446   : > { %v12860_v0 = vld [vmem:[%s13836_s10 + $0xcac] sm:$0xf0] }
 0x447   : > { %v10223_v3 = vld [vmem:[%s13836_s10 + $0xe90] sm:$0xf]  ;;  %v9968_v9 = vor.u32 %v12860_v0, %v9967_v10  ;;  %7398 = vmatpush.bf16.msrb.mxu1 %v9712_v45 }
 0x448   : > { %v12924_v60 = vld [vmem:[%s13836_s10 + $0xeac] sm:$0xf0] }
 0x449   : > { %v9423_v11 = vld [vmem:[%s13836_s10 + $0x850] sm:$0xf]  ;;  %v10224_v14 = vor.u32 %v12924_v60, %v10223_v3  ;;  %7411 = vmatpush.bf16.msrb.mxu2 %v9968_v9 }
 0x44a   : > { %v12724_v21 = vld [vmem:[%s13836_s10 + $0x86c] sm:$0xf0] }
 0x44b   : > { %v9679_v12 = vld [vmem:[%s13836_s10 + $0xa50] sm:$0xf]  ;;  %v9424_v32 = vor.u32 %v12724_v21, %v9423_v11  ;;  %7424 = vmatpush.bf16.msrb.mxu3 %v10224_v14 }
 0x44c   : > { %v12788_v15 = vld [vmem:[%s13836_s10 + $0xa6c] sm:$0xf0] }
 0x44d   : > { %v9935_v16 = vld [vmem:[%s13836_s10 + $0xc50] sm:$0xf]  ;;  %v9680_v23 = vor.u32 %v12788_v15, %v9679_v12  ;;  %7386 = vmatpush.bf16.msrb.mxu0 %v9424_v32 }
 0x44e   : > { %v12852_v6 = vld [vmem:[%s13836_s10 + $0xc6c] sm:$0xf0] }
 0x44f   : > { %v10191_v30 = vld [vmem:[%s13836_s10 + $0xe50] sm:$0xf]  ;;  %v9936_v26 = vor.u32 %v12852_v6, %v9935_v16  ;;  %7399 = vmatpush.bf16.msrb.mxu1 %v9680_v23 }
 0x450   : > { %v12916_v17 = vld [vmem:[%s13836_s10 + $0xe6c] sm:$0xf0] }
 0x451   : > { %v9391_v20 = vld [vmem:[%s13836_s10 + $0x810] sm:$0xf]  ;;  %v10192_v51 = vor.u32 %v12916_v17, %v10191_v30  ;;  %7412 = vmatpush.bf16.msrb.mxu2 %v9936_v26 }
 0x452   : > { %v12716_v19 = vld [vmem:[%s13836_s10 + $0x82c] sm:$0xf0] }
 0x453   : > { %v9647_v27 = vld [vmem:[%s13836_s10 + $0xa10] sm:$0xf]  ;;  %v9392_v52 = vor.u32 %v12716_v19, %v9391_v20  ;;  %7425 = vmatpush.bf16.msrb.mxu3 %v10192_v51 }
 0x454   : > { %v12780_v28 = vld [vmem:[%s13836_s10 + $0xa2c] sm:$0xf0] }
 0x455   : > { %v9903_v40 = vld [vmem:[%s13836_s10 + $0xc10] sm:$0xf]  ;;  %v9648_v57 = vor.u32 %v12780_v28, %v9647_v27  ;;  %7387 = vmatpush.bf16.msrb.mxu0 %v9392_v52 }
 0x456   : > { %v12844_v22 = vld [vmem:[%s13836_s10 + $0xc2c] sm:$0xf0] }
 0x457   : > { %v10159_v46 = vld [vmem:[%s13836_s10 + $0xe10] sm:$0xf]  ;;  %v9904_v59 = vor.u32 %v12844_v22, %v9903_v40  ;;  %7400 = vmatpush.bf16.msrb.mxu1 %v9648_v57 }
 0x458   : > { %v12908_v48 = vld [vmem:[%s13836_s10 + $0xe2c] sm:$0xf0]  ;;  %7388 = vmatmul.bf16.vlgmr.msrb.gmra.mxu0 %v14056_v53 }
 0x459   : > { %v10639_v49 = vld [vmem:[%s13836_s10 + $0x11d0] sm:$0xf]  ;;  %v10160_v0 = vor.u32 %v12908_v48, %v10159_v46  ;;  %7413 = vmatpush.bf16.msrb.mxu2 %v9904_v59 }
 0x45a   : > { %v13028_v61 = vld [vmem:[%s13836_s10 + $0x11ec] sm:$0xf0]  ;;  %7401 = vmatmul.bf16.vlgmr.msrb.gmra.mxu1 %v14060_v56 }
 0x45b   : > { %v10895_v18 = vld [vmem:[%s13836_s10 + $0x13d0] sm:$0xf]  ;;  %v10640_v37 = vor.u32 %v13028_v61, %v10639_v49  ;;  %7426 = vmatpush.bf16.msrb.mxu3 %v10160_v0  ;;  %v15308_v0 = vpop.f32.mrf.mxu1 }
 0x45c   : > { %v13092_v1 = vld [vmem:[%s13836_s10 + $0x13ec] sm:$0xf0]  ;;  %7414 = vmatmul.bf16.vlgmr.msrb.gmra.mxu2 %v14052_v50 }
 0x45d   : > { %v11151_v55 = vld [vmem:[%s13836_s10 + $0x15d0] sm:$0xf]  ;;  %v10896_v4 = vor.u32 %v13092_v1, %v10895_v18  ;;  %7432 = vmatpush.bf16.msra.mxu0 %v10640_v37 }
 0x45e   : > { %v13156_v47 = vld [vmem:[%s13836_s10 + $0x15ec] sm:$0xf0]  ;;  %7427 = vmatmul.bf16.vlgmr.msrb.gmra.mxu3 %v14058_v54 }
 0x45f   : > { %v11407_v62 = vld [vmem:[%s13836_s10 + $0x17d0] sm:$0xf]  ;;  %v11152_v3 = vor.u32 %v13156_v47, %v11151_v55  ;;  %7445 = vmatpush.bf16.msra.mxu1 %v10896_v4  ;;  %v15303_v55 = vpop.f32.mrf.mxu0 }
 0x460   : > { %v13220_v10 = vld [vmem:[%s13836_s10 + $0x17ec] sm:$0xf0] }
 0x461   : > { %v10607_v60 = vld [vmem:[%s13836_s10 + $0x1190] sm:$0xf]  ;;  %v11408_v45 = vor.u32 %v13220_v10, %v11407_v62  ;;  %7458 = vmatpush.bf16.msra.mxu2 %v11152_v3 }
 0x462   : > { %v13020_v5 = vld [vmem:[%s13836_s10 + $0x11ac] sm:$0xf0] }
 0x463   : > { %v10863_v8 = vld [vmem:[%s13836_s10 + $0x1390] sm:$0xf]  ;;  %v10608_v14 = vor.u32 %v13020_v5, %v10607_v60  ;;  %7471 = vmatpush.bf16.msra.mxu3 %v11408_v45 }
 0x464   : > { %v13084_v9 = vld [vmem:[%s13836_s10 + $0x13ac] sm:$0xf0] }
 0x465   : > { %v11119_v11 = vld [vmem:[%s13836_s10 + $0x1590] sm:$0xf]  ;;  %v10864_v15 = vor.u32 %v13084_v9, %v10863_v8  ;;  %7433 = vmatpush.bf16.msra.mxu0 %v10608_v14  ;;  %v15318_v14 = vpop.f32.mrf.mxu2 }
 0x466   : > { %v13148_v21 = vld [vmem:[%s13836_s10 + $0x15ac] sm:$0xf0] }
 0x467   : > { %v11375_v12 = vld [vmem:[%s13836_s10 + $0x1790] sm:$0xf]  ;;  %v11120_v16 = vor.u32 %v13148_v21, %v11119_v11  ;;  %7446 = vmatpush.bf16.msra.mxu1 %v10864_v15 }
 0x468   : > { %v13212_v13 = vld [vmem:[%s13836_s10 + $0x17ac] sm:$0xf0] }
 0x469   : > { %v10575_v6 = vld [vmem:[%s13836_s10 + $0x1150] sm:$0xf]  ;;  %v11376_v32 = vor.u32 %v13212_v13, %v11375_v12  ;;  %7459 = vmatpush.bf16.msra.mxu2 %v11120_v16 }
 0x46a   : > { %v13012_v30 = vld [vmem:[%s13836_s10 + $0x116c] sm:$0xf0] }
 0x46b   : > { %v10831_v17 = vld [vmem:[%s13836_s10 + $0x1350] sm:$0xf]  ;;  %v10576_v28 = vor.u32 %v13012_v30, %v10575_v6  ;;  %7472 = vmatpush.bf16.msra.mxu3 %v11376_v32 }
 0x46c   : > { %v13076_v20 = vld [vmem:[%s13836_s10 + $0x136c] sm:$0xf0] }
 0x46d   : > { %v11087_v19 = vld [vmem:[%s13836_s10 + $0x1550] sm:$0xf]  ;;  %v10832_v40 = vor.u32 %v13076_v20, %v10831_v17  ;;  %7434 = vmatpush.bf16.msra.mxu0 %v10576_v28  ;;  %v15323_v17 = vpop.f32.mrf.mxu3 }
 0x46e   : > { %v13140_v23 = vld [vmem:[%s13836_s10 + $0x156c] sm:$0xf0] }
 0x46f   : > { %v11343_v26 = vld [vmem:[%s13836_s10 + $0x1750] sm:$0xf]  ;;  %v11088_v63 = vor.u32 %v13140_v23, %v11087_v19  ;;  %7447 = vmatpush.bf16.msra.mxu1 %v10832_v40  ;;  %v7183_v23 = vpop.f32.mrf.mxu0 }
 0x470   : > { %v13204_v27 = vld [vmem:[%s13836_s10 + $0x176c] sm:$0xf0] }
 0x471   : > { %v10543_v51 = vld [vmem:[%s13836_s10 + $0x1110] sm:$0xf]  ;;  %v11344_v48 = vor.u32 %v13204_v27, %v11343_v26  ;;  %7460 = vmatpush.bf16.msra.mxu2 %v11088_v63 }
 0x472   : > { %v13004_v22 = vld [vmem:[%s13836_s10 + $0x112c] sm:$0xf0] }
 0x473   : > { %v10799_v46 = vld [vmem:[%s13836_s10 + $0x1310] sm:$0xf]  ;;  %v10544_v1 = vor.u32 %v13004_v22, %v10543_v51  ;;  %7473 = vmatpush.bf16.msra.mxu3 %v11344_v48  ;;  %v7196_v51 = vpop.f32.mrf.mxu1 }
 0x474   : > { %v13068_v44 = vld [vmem:[%s13836_s10 + $0x132c] sm:$0xf0] }
 0x475   : > { %v11055_v49 = vld [vmem:[%s13836_s10 + $0x1510] sm:$0xf]  ;;  %v10800_v47 = vor.u32 %v13068_v44, %v10799_v46  ;;  %7435 = vmatpush.bf16.msra.mxu0 %v10544_v1 }
 0x476   : > { %v13132_v61 = vld [vmem:[%s13836_s10 + $0x152c] sm:$0xf0] }
 0x477   : > { %v11311_v18 = vld [vmem:[%s13836_s10 + $0x1710] sm:$0xf]  ;;  %v11056_v57 = vor.u32 %v13132_v61, %v11055_v49  ;;  %7448 = vmatpush.bf16.msra.mxu1 %v10800_v47 }
 0x478   : > { %v13196_v52 = vld [vmem:[%s13836_s10 + $0x172c] sm:$0xf0] }
 0x479   : > { %v10511_v59 = vld [vmem:[%s13836_s10 + $0x10d0] sm:$0xf]  ;;  %v11312_v37 = vor.u32 %v13196_v52, %v11311_v18  ;;  %7461 = vmatpush.bf16.msra.mxu2 %v11056_v57 }
 0x47a   : > { %v12996_v62 = vld [vmem:[%s13836_s10 + $0x10ec] sm:$0xf0] }
 0x47b   : > { %v10767_v10 = vld [vmem:[%s13836_s10 + $0x12d0] sm:$0xf]  ;;  %v10512_v45 = vor.u32 %v12996_v62, %v10511_v59  ;;  %7474 = vmatpush.bf16.msra.mxu3 %v11312_v37  ;;  %v7209_v37 = vpop.f32.mrf.mxu2 }
 0x47c   : > { %v13060_v4 = vld [vmem:[%s13836_s10 + $0x12ec] sm:$0xf0] }
 0x47d   : > { %v11023_v3 = vld [vmem:[%s13836_s10 + $0x14d0] sm:$0xf]  ;;  %v10768_v9 = vor.u32 %v13060_v4, %v10767_v10  ;;  %7436 = vmatpush.bf16.msra.mxu0 %v10512_v45 }
 0x47e   : > { %v13124_v60 = vld [vmem:[%s13836_s10 + $0x14ec] sm:$0xf0] }
 0x47f   : > { %v11279_v5 = vld [vmem:[%s13836_s10 + $0x16d0] sm:$0xf]  ;;  %v11024_v11 = vor.u32 %v13124_v60, %v11023_v3  ;;  %7449 = vmatpush.bf16.msra.mxu1 %v10768_v9 }
 0x480   : > { %v13188_v8 = vld [vmem:[%s13836_s10 + $0x16ec] sm:$0xf0] }
 0x481   : > { %v10479_v21 = vld [vmem:[%s13836_s10 + $0x1090] sm:$0xf]  ;;  %v11280_v15 = vor.u32 %v13188_v8, %v11279_v5  ;;  %7462 = vmatpush.bf16.msra.mxu2 %v11024_v11  ;;  %v7222_v8 = vpop.f32.mrf.mxu3 }
 0x482   : > { %v12988_v12 = vld [vmem:[%s13836_s10 + $0x10ac] sm:$0xf0] }
 0x483   : > { %v10735_v13 = vld [vmem:[%s13836_s10 + $0x1290] sm:$0xf]  ;;  %v10480_v19 = vor.u32 %v12988_v12, %v10479_v21  ;;  %7475 = vmatpush.bf16.msra.mxu3 %v11280_v15 }
 0x484   : > { %v13052_v16 = vld [vmem:[%s13836_s10 + $0x12ac] sm:$0xf0] }
 0x485   : > { %v10991_v6 = vld [vmem:[%s13836_s10 + $0x1490] sm:$0xf]  ;;  %v10736_v26 = vor.u32 %v13052_v16, %v10735_v13  ;;  %7437 = vmatpush.bf16.msra.mxu0 %v10480_v19 }
 0x486   : > { %v13116_v30 = vld [vmem:[%s13836_s10 + $0x14ac] sm:$0xf0] }
 0x487   : > { %v11247_v32 = vld [vmem:[%s13836_s10 + $0x1690] sm:$0xf]  ;;  %v10992_v27 = vor.u32 %v13116_v30, %v10991_v6  ;;  %7450 = vmatpush.bf16.msra.mxu1 %v10736_v26 }
 0x488   : > { %v13180_v20 = vld [vmem:[%s13836_s10 + $0x16ac] sm:$0xf0] }
 0x489   : > { %v10447_v28 = vld [vmem:[%s13836_s10 + $0x1050] sm:$0xf]  ;;  %v11248_v22 = vor.u32 %v13180_v20, %v11247_v32  ;;  %7463 = vmatpush.bf16.msra.mxu2 %v10992_v27 }
 0x48a   : > { %v12980_v40 = vld [vmem:[%s13836_s10 + $0x106c] sm:$0xf0] }
 0x48b   : > { %v10703_v63 = vld [vmem:[%s13836_s10 + $0x1250] sm:$0xf]  ;;  %v10448_v18 = vor.u32 %v12980_v40, %v10447_v28  ;;  %7476 = vmatpush.bf16.msra.mxu3 %v11248_v22 }
 0x48c   : > { %v13044_v46 = vld [vmem:[%s13836_s10 + $0x126c] sm:$0xf0] }
 0x48d   : > { %v10959_v48 = vld [vmem:[%s13836_s10 + $0x1450] sm:$0xf]  ;;  %v10704_v47 = vor.u32 %v13044_v46, %v10703_v63  ;;  %7438 = vmatpush.bf16.msra.mxu0 %v10448_v18 }
 0x48e   : > { %v13108_v44 = vld [vmem:[%s13836_s10 + $0x146c] sm:$0xf0] }
 0x48f   : > { %v11215_v49 = vld [vmem:[%s13836_s10 + $0x1650] sm:$0xf]  ;;  %v10960_v57 = vor.u32 %v13108_v44, %v10959_v48  ;;  %7451 = vmatpush.bf16.msra.mxu1 %v10704_v47 }
 0x490   : > { %v13172_v61 = vld [vmem:[%s13836_s10 + $0x166c] sm:$0xf0] }
 0x491   : > { %v10415_v52 = vld [vmem:[%s13836_s10 + $0x1010] sm:$0xf]  ;;  %v11216_v4 = vor.u32 %v13172_v61, %v11215_v49  ;;  %7464 = vmatpush.bf16.msra.mxu2 %v10960_v57 }
 0x492   : > { %v12972_v1 = vld [vmem:[%s13836_s10 + $0x102c] sm:$0xf0] }
 0x493   : > { %v10671_v59 = vld [vmem:[%s13836_s10 + $0x1210] sm:$0xf]  ;;  %v10416_v21 = vor.u32 %v12972_v1, %v10415_v52  ;;  %7477 = vmatpush.bf16.msra.mxu3 %v11216_v4 }
 0x494   : > { %v13036_v62 = vld [vmem:[%s13836_s10 + $0x122c] sm:$0xf0] }
 0x495   : > { %v10927_v10 = vld [vmem:[%s13836_s10 + $0x1410] sm:$0xf]  ;;  %v10672_v16 = vor.u32 %v13036_v62, %v10671_v59  ;;  %7439 = vmatpush.bf16.msra.mxu0 %v10416_v21 }
 0x496   : > { %v13100_v3 = vld [vmem:[%s13836_s10 + $0x142c] sm:$0xf0] }
 0x497   : > { %v11183_v60 = vld [vmem:[%s13836_s10 + $0x1610] sm:$0xf]  ;;  %v10928_v6 = vor.u32 %v13100_v3, %v10927_v10  ;;  %7452 = vmatpush.bf16.msra.mxu1 %v10672_v16 }
 0x498   : > { %v13164_v5 = vld [vmem:[%s13836_s10 + $0x162c] sm:$0xf0]  ;;  %7440 = vmatmul.bf16.vlgmr.msra.gmra.mxu0 %v14125_v34 }
 0x499   : > { %v11663_v45 = vld [vmem:[%s13836_s10 + $0x19d0] sm:$0xf]  ;;  %v11184_v20 = vor.u32 %v13164_v5, %v11183_v60  ;;  %7465 = vmatpush.bf16.msra.mxu2 %v10928_v6 }
 0x49a   : > { %v13284_v9 = vld [vmem:[%s13836_s10 + $0x19ec] sm:$0xf0]  ;;  %7453 = vmatmul.bf16.vlgmr.msra.gmra.mxu1 %v14132_v39 }
 0x49b   : > { %v11919_v11 = vld [vmem:[%s13836_s10 + $0x1bd0] sm:$0xf]  ;;  %v11664_v19 = vor.u32 %v13284_v9, %v11663_v45  ;;  %7478 = vmatpush.bf16.msra.mxu3 %v11184_v20 }
 0x49c   : > { %v13348_v12 = vld [vmem:[%s13836_s10 + $0x1bec] sm:$0xf0]  ;;  %7466 = vmatmul.bf16.vlgmr.msra.gmra.mxu2 %v14130_v38 }
 0x49d   : > { %v12175_v13 = vld [vmem:[%s13836_s10 + $0x1dd0] sm:$0xf]  ;;  %v11920_v23 = vor.u32 %v13348_v12, %v11919_v11  ;;  %7484 = vmatpush.bf16.msrb.mxu0 %v11664_v19 }
 0x49e   : > { %v13412_v15 = vld [vmem:[%s13836_s10 + $0x1dec] sm:$0xf0]  ;;  %7479 = vmatmul.bf16.vlgmr.msra.gmra.mxu3 %v14136_v43 }
 0x49f   : > { %v12431_v30 = vld [vmem:[%s13836_s10 + $0x1fd0] sm:$0xf]  ;;  %v12176_v26 = vor.u32 %v13412_v15, %v12175_v13  ;;  %7497 = vmatpush.bf16.msrb.mxu1 %v11920_v23  ;;  %v15377_v15 = vpop.f32.mrf.mxu0 }
 0x4a0   : > { %v13476_v32 = vld [vmem:[%s13836_s10 + $0x1fec] sm:$0xf0] }
 0x4a1   : > { %v11631_v27 = vld [vmem:[%s13836_s10 + $0x1990] sm:$0xf]  ;;  %v12432_v63 = vor.u32 %v13476_v32, %v12431_v30  ;;  %7510 = vmatpush.bf16.msrb.mxu2 %v12176_v26  ;;  %v15381_v32 = vpop.f32.mrf.mxu1 }
 0x4a2   : > { %v13276_v28 = vld [vmem:[%s13836_s10 + $0x19ac] sm:$0xf0] }
 0x4a3   : > { %v11887_v40 = vld [vmem:[%s13836_s10 + $0x1b90] sm:$0xf]  ;;  %v11632_v49 = vor.u32 %v13276_v28, %v11631_v27  ;;  %7523 = vmatpush.bf16.msrb.mxu3 %v12432_v63 }
 0x4a4   : > { %v13340_v51 = vld [vmem:[%s13836_s10 + $0x1bac] sm:$0xf0] }
 0x4a5   : > { %v12143_v22 = vld [vmem:[%s13836_s10 + $0x1d90] sm:$0xf]  ;;  %v11888_v61 = vor.u32 %v13340_v51, %v11887_v40  ;;  %7485 = vmatpush.bf16.msrb.mxu0 %v11632_v49 }
 0x4a6   : > { %v13404_v46 = vld [vmem:[%s13836_s10 + $0x1dac] sm:$0xf0] }
 0x4a7   : > { %v12399_v48 = vld [vmem:[%s13836_s10 + $0x1f90] sm:$0xf]  ;;  %v12144_v18 = vor.u32 %v13404_v46, %v12143_v22  ;;  %7498 = vmatpush.bf16.msrb.mxu1 %v11888_v61 }
 0x4a8   : > { %v13468_v44 = vld [vmem:[%s13836_s10 + $0x1fac] sm:$0xf0] }
 0x4a9   : > { %v11599_v52 = vld [vmem:[%s13836_s10 + $0x1950] sm:$0xf]  ;;  %v12400_v57 = vor.u32 %v13468_v44, %v12399_v48  ;;  %7511 = vmatpush.bf16.msrb.mxu2 %v12144_v18  ;;  %v7182_v44 = vadd.f32 %v15303_v55, %v15249_v7 }
 0x4aa   : > { %v13268_v1 = vld [vmem:[%s13836_s10 + $0x196c] sm:$0xf0] }
 0x4ab   : > { %v11855_v47 = vld [vmem:[%s13836_s10 + $0x1b50] sm:$0xf]  ;;  %v11600_v3 = vor.u32 %v13268_v1, %v11599_v52  ;;  %7524 = vmatpush.bf16.msrb.mxu3 %v12400_v57  ;;  %v15396_v57 = vpop.f32.mrf.mxu2 }
 0x4ac   : > { %v13332_v59 = vld [vmem:[%s13836_s10 + $0x1b6c] sm:$0xf0] }
 0x4ad   : > { %v12111_v62 = vld [vmem:[%s13836_s10 + $0x1d50] sm:$0xf]  ;;  %v11856_v60 = vor.u32 %v13332_v59, %v11855_v47  ;;  %7486 = vmatpush.bf16.msrb.mxu0 %v11600_v3 }
 0x4ae   : > { %v13396_v10 = vld [vmem:[%s13836_s10 + $0x1d6c] sm:$0xf0] }
 0x4af   : > { %v12367_v37 = vld [vmem:[%s13836_s10 + $0x1f50] sm:$0xf]  ;;  %v12112_v5 = vor.u32 %v13396_v10, %v12111_v62  ;;  %7499 = vmatpush.bf16.msrb.mxu1 %v11856_v60  ;;  %v7248_v60 = vpop.f32.mrf.mxu1 }
 0x4b0   : > { %v13460_v4 = vld [vmem:[%s13836_s10 + $0x1f6c] sm:$0xf0] }
 0x4b1   : > { %v11567_v8 = vld [vmem:[%s13836_s10 + $0x1910] sm:$0xf]  ;;  %v12368_v11 = vor.u32 %v13460_v4, %v12367_v37  ;;  %7512 = vmatpush.bf16.msrb.mxu2 %v12112_v5  ;;  %v15401_v37 = vpop.f32.mrf.mxu3  ;;  %v7235_v4 = vpop.f32.mrf.mxu0  ;;  %v7195_v5 = vadd.f32 %v15308_v0, %v7182_v44 }
 0x4b2   : > { %v13260_v45 = vld [vmem:[%s13836_s10 + $0x192c] sm:$0xf0]  ;;  %v12704_v4 = vld [vmem:[%s13836_s10 + $0x7d4] sm:$0xf] }
 0x4b3   : > { %v11823_v9 = vld [vmem:[%s13836_s10 + $0x1b10] sm:$0xf]  ;;  %v11568_v30 = vor.u32 %v13260_v45, %v11567_v8  ;;  %7525 = vmatpush.bf16.msrb.mxu3 %v12368_v11 }
 0x4b4   : > { %v13324_v21 = vld [vmem:[%s13836_s10 + $0x1b2c] sm:$0xf0] }
 0x4b5   : > { %v12079_v12 = vld [vmem:[%s13836_s10 + $0x1d10] sm:$0xf]  ;;  %v11824_v20 = vor.u32 %v13324_v21, %v11823_v9  ;;  %7487 = vmatpush.bf16.msrb.mxu0 %v11568_v30 }
 0x4b6   : > { %v13388_v13 = vld [vmem:[%s13836_s10 + $0x1d2c] sm:$0xf0] }
 0x4b7   : > { %v12335_v16 = vld [vmem:[%s13836_s10 + $0x1f10] sm:$0xf]  ;;  %v12080_v19 = vor.u32 %v13388_v13, %v12079_v12  ;;  %7500 = vmatpush.bf16.msrb.mxu1 %v11824_v20 }
 0x4b8   : > { %v13452_v6 = vld [vmem:[%s13836_s10 + $0x1f2c] sm:$0xf0] }
 0x4b9   : > { %v11535_v23 = vld [vmem:[%s13836_s10 + $0x18d0] sm:$0xf]  ;;  %v12336_v28 = vor.u32 %v13452_v6, %v12335_v16  ;;  %7513 = vmatpush.bf16.msrb.mxu2 %v12080_v19 }
 0x4ba   : > { %v13252_v26 = vld [vmem:[%s13836_s10 + $0x18ec] sm:$0xf0] }
 0x4bb   : > { %v11791_v27 = vld [vmem:[%s13836_s10 + $0x1ad0] sm:$0xf]  ;;  %v11536_v48 = vor.u32 %v13252_v26, %v11535_v23  ;;  %7526 = vmatpush.bf16.msrb.mxu3 %v12336_v28  ;;  %v7208_v26 = vadd.f32 %v15318_v14, %v7195_v5  ;;  %v12512_v14 = vld [vmem:[%s13836_s10 + $0x1d4] sm:$0xf] }
 0x4bc   : > { %v13316_v40 = vld [vmem:[%s13836_s10 + $0x1aec] sm:$0xf0] }
 0x4bd   : > { %v12047_v63 = vld [vmem:[%s13836_s10 + $0x1cd0] sm:$0xf]  ;;  %v11792_v49 = vor.u32 %v13316_v40, %v11791_v27  ;;  %7488 = vmatpush.bf16.msrb.mxu0 %v11536_v48 }
 0x4be   : > { %v13380_v51 = vld [vmem:[%s13836_s10 + $0x1cec] sm:$0xf0] }
 0x4bf   : > { %v12303_v22 = vld [vmem:[%s13836_s10 + $0x1ed0] sm:$0xf]  ;;  %v12048_v61 = vor.u32 %v13380_v51, %v12047_v63  ;;  %7501 = vmatpush.bf16.msrb.mxu1 %v11792_v49  ;;  %v7261_v49 = vpop.f32.mrf.mxu2 }
 0x4c0   : > { %v13444_v46 = vld [vmem:[%s13836_s10 + $0x1eec] sm:$0xf0] }
 0x4c1   : > { %v11503_v18 = vld [vmem:[%s13836_s10 + $0x1890] sm:$0xf]  ;;  %v12304_v47 = vor.u32 %v13444_v46, %v12303_v22  ;;  %7514 = vmatpush.bf16.msrb.mxu2 %v12048_v61  ;;  %v8593_v61 = vld [vmem:[%s13836_s10 + $0x1f0] sm:$0xf0] }
 0x4c2   : > { %v13244_v52 = vld [vmem:[%s13836_s10 + $0x18ac] sm:$0xf0]  ;;  %v8596_v5 = vor.u32 %v12512_v14, %v8593_v61  ;;  %v8497_v61 = vld [vmem:[%s13836_s10 + $0x130] sm:$0xf0] }
 0x4c3   : > { %v11759_v1 = vld [vmem:[%s13836_s10 + $0x1a90] sm:$0xf]  ;;  %v11504_v3 = vor.u32 %v13244_v52, %v11503_v18  ;;  %7527 = vmatpush.bf16.msrb.mxu3 %v12304_v47  ;;  %v12576_v18 = vld [vmem:[%s13836_s10 + $0x3d4] sm:$0xf]  ;;  %v7274_v52 = vpop.f32.mrf.mxu3 }
 0x4c4   : > { %v13308_v59 = vld [vmem:[%s13836_s10 + $0x1aac] sm:$0xf0]  ;;  %v8849_v47 = vld [vmem:[%s13836_s10 + $0x3f0] sm:$0xf0] }
 0x4c5   : > { %v12015_v62 = vld [vmem:[%s13836_s10 + $0x1c90] sm:$0xf]  ;;  %v11760_v8 = vor.u32 %v13308_v59, %v11759_v1  ;;  %7489 = vmatpush.bf16.msrb.mxu0 %v11504_v3  ;;  %v12640_v59 = vld [vmem:[%s13836_s10 + $0x5d4] sm:$0xf] }
 0x4c6   : > { %v13372_v10 = vld [vmem:[%s13836_s10 + $0x1cac] sm:$0xf0]  ;;  %v9361_v3 = vld [vmem:[%s13836_s10 + $0x7f0] sm:$0xf0] }
 0x4c7   : > { %v12271_v7 = vld [vmem:[%s13836_s10 + $0x1e90] sm:$0xf]  ;;  %v12016_v45 = vor.u32 %v13372_v10, %v12015_v62  ;;  %7502 = vmatpush.bf16.msrb.mxu1 %v11760_v8  ;;  %v9105_v62 = vld [vmem:[%s13836_s10 + $0x5f0] sm:$0xf0]  ;;  %v7221_v10 = vadd.f32 %v15323_v17, %v7208_v26 }
 0x4c8   : > { %v13436_v55 = vld [vmem:[%s13836_s10 + $0x1eac] sm:$0xf0]  ;;  %v8561_v17 = vld [vmem:[%s13836_s10 + $0x1b0] sm:$0xf0] }
 0x4c9   : > { %v11471_v9 = vld [vmem:[%s13836_s10 + $0x1850] sm:$0xf]  ;;  %v12272_v12 = vor.u32 %v13436_v55, %v12271_v7  ;;  %7515 = vmatpush.bf16.msrb.mxu2 %v12016_v45  ;;  %v7234_v8 = vadd.f32 %v15377_v15, %v7221_v10  ;;  %v8852_v45 = vor.u32 %v12576_v18, %v8849_v47  ;;  %v12496_v26 = vld [vmem:[%s13836_s10 + $0x154] sm:$0xf]  ;;  %v7285_v10 = vpop.f32.mrf.mxu0 }
 0x4ca   : > { %v13236_v11 = vld [vmem:[%s13836_s10 + $0x186c] sm:$0xf0]  ;;  %v12552_v18 = vld [vmem:[%s13836_s10 + $0x314] sm:$0xf] }
 0x4cb   : > { %v11727_v21 = vld [vmem:[%s13836_s10 + $0x1a50] sm:$0xf]  ;;  %v11472_v20 = vor.u32 %v13236_v11, %v11471_v9  ;;  %7528 = vmatpush.bf16.msrb.mxu3 %v12272_v12  ;;  %v9108_v9 = vor.u32 %v12640_v59, %v9105_v62  ;;  %v12504_v11 = vld [vmem:[%s13836_s10 + $0x194] sm:$0xf]  ;;  %v9364_v12 = vor.u32 %v12704_v4, %v9361_v3  ;;  %v7298_v3 = vpop.f32.mrf.mxu1 }
 0x4cc   : > { %v13300_v13 = vld [vmem:[%s13836_s10 + $0x1a6c] sm:$0xf0]  ;;  %v8564_v15 = vor.u32 %v12504_v11, %v8561_v17  ;;  %v12616_v47 = vld [vmem:[%s13836_s10 + $0x514] sm:$0xf] }
 0x4cd   : > { %v11983_v16 = vld [vmem:[%s13836_s10 + $0x1c50] sm:$0xf]  ;;  %v11728_v27 = vor.u32 %v13300_v13, %v11727_v21  ;;  %7490 = vmatpush.bf16.msrb.mxu0 %v11472_v20  ;;  %v12568_v21 = vld [vmem:[%s13836_s10 + $0x394] sm:$0xf]  ;;  %v7247_v20 = vadd.f32 %v15381_v32, %v7234_v8 }
 0x4ce   : > { %v13364_v6 = vld [vmem:[%s13836_s10 + $0x1c6c] sm:$0xf0]  ;;  %v8817_v13 = vld [vmem:[%s13836_s10 + $0x3b0] sm:$0xf0] }
 0x4cf   : > { %v12239_v30 = vld [vmem:[%s13836_s10 + $0x1e50] sm:$0xf]  ;;  %v11984_v28 = vor.u32 %v13364_v6, %v11983_v16  ;;  %7503 = vmatpush.bf16.msrb.mxu1 %v11728_v27  ;;  %v12632_v16 = vld [vmem:[%s13836_s10 + $0x594] sm:$0xf]  ;;  %v7260_v32 = vadd.f32 %v15396_v57, %v7247_v20 }
 0x4d0   : > { %v13428_v0 = vld [vmem:[%s13836_s10 + $0x1e6c] sm:$0xf0]  ;;  %v9073_v6 = vld [vmem:[%s13836_s10 + $0x5b0] sm:$0xf0] }
 0x4d1   : > { %v11439_v19 = vld [vmem:[%s13836_s10 + $0x1810] sm:$0xf]  ;;  %v12240_v22 = vor.u32 %v13428_v0, %v12239_v30  ;;  %7516 = vmatpush.bf16.msrb.mxu2 %v11984_v28  ;;  %v12696_v30 = vld [vmem:[%s13836_s10 + $0x794] sm:$0xf]  ;;  %v7273_v62 = vadd.f32 %v15401_v37, %v7260_v32 }
 0x4d2   : > { %v13228_v23 = vld [vmem:[%s13836_s10 + $0x182c] sm:$0xf0]  ;;  %v9329_v0 = vld [vmem:[%s13836_s10 + $0x7b0] sm:$0xf0] }
 0x4d3   : > { %v11695_v40 = vld [vmem:[%s13836_s10 + $0x1a10] sm:$0xf]  ;;  %v11440_v1 = vor.u32 %v13228_v23, %v11439_v19  ;;  %7529 = vmatpush.bf16.msrb.mxu3 %v12240_v22  ;;  %v8820_v19 = vor.u32 %v12568_v21, %v8817_v13  ;;  %v9076_v23 = vor.u32 %v12632_v16, %v9073_v6  ;;  %v8529_v27 = vld [vmem:[%s13836_s10 + $0x170] sm:$0xf0] }
 0x4d4   : > { %v13292_v63 = vld [vmem:[%s13836_s10 + $0x1a2c] sm:$0xf0]  ;;  %v12560_v28 = vld [vmem:[%s13836_s10 + $0x354] sm:$0xf] }
 0x4d5   : > { %v11951_v51 = vld [vmem:[%s13836_s10 + $0x1c10] sm:$0xf]  ;;  %v11696_v7 = vor.u32 %v13292_v63, %v11695_v40  ;;  %7491 = vmatpush.bf16.msrb.mxu0 %v11440_v1  ;;  %v9332_v40 = vor.u32 %v12696_v30, %v9329_v0  ;;  %v8785_v63 = vld [vmem:[%s13836_s10 + $0x370] sm:$0xf0] }
 0x4d6   : > { %v13356_v46 = vld [vmem:[%s13836_s10 + $0x1c2c] sm:$0xf0]  ;;  %v9041_v22 = vld [vmem:[%s13836_s10 + $0x570] sm:$0xf0]  ;;  %v8788_v49 = vor.u32 %v12560_v28, %v8785_v63 }
 0x4d7   : > { %v12207_v48 = vld [vmem:[%s13836_s10 + $0x1e10] sm:$0xf]  ;;  %v11952_v55 = vor.u32 %v13356_v46, %v11951_v51  ;;  %7504 = vmatpush.bf16.msrb.mxu1 %v11696_v7  ;;  %v12624_v51 = vld [vmem:[%s13836_s10 + $0x554] sm:$0xf] }
 0x4d8   : > { %v13420_v44 = vld [vmem:[%s13836_s10 + $0x1e2c] sm:$0xf0]  ;;  %7492 = vmatmul.bf16.vlgmr.msrb.gmra.mxu0 %v14201_v29  ;;  %v12688_v46 = vld [vmem:[%s13836_s10 + $0x754] sm:$0xf]  ;;  %v9044_v14 = vor.u32 %v12624_v51, %v9041_v22  ;;  %v7324_v22 = vpop.f32.mrf.mxu3 }
 0x4d9   : > { %v12208_v60 = vor.u32 %v13420_v44, %v12207_v48  ;;  %7517 = vmatpush.bf16.msrb.mxu2 %v11952_v55  ;;  %7536 = vmatpush.bf16.msra.mxu0 %v8596_v5  ;;  %v9297_v48 = vld [vmem:[%s13836_s10 + $0x770] sm:$0xf0]  ;;  %v8532_v44 = vor.u32 %v12496_v26, %v8529_v27  ;;  %v7311_v27 = vpop.f32.mrf.mxu2 }
 0x4da   : > { %7505 = vmatmul.bf16.vlgmr.msrb.gmra.mxu1 %v14208_v36  ;;  %v12488_v57 = vld [vmem:[%s13836_s10 + $0x114] sm:$0xf]  ;;  %v9300_v52 = vor.u32 %v12688_v46, %v9297_v48  ;;  %v7287_v48 = vpop.f32.mrf.mxu0 }
 0x4db   : > { %7530 = vmatpush.bf16.msrb.mxu3 %v12208_v60  ;;  %7549 = vmatpush.bf16.msra.mxu1 %v8852_v45  ;;  %v8753_v1 = vld [vmem:[%s13836_s10 + $0x330] sm:$0xf0]  ;;  %v8500_v4 = vor.u32 %v12488_v57, %v8497_v61  ;;  %v7286_v60 = vadd.f32 %v7285_v10, %v7273_v62 }
 0x4dc   : > { %7518 = vmatmul.bf16.vlgmr.msrb.gmra.mxu2 %v14206_v35  ;;  %v9009_v59 = vld [vmem:[%s13836_s10 + $0x530] sm:$0xf0]  ;;  %v8756_v5 = vor.u32 %v12552_v18, %v8753_v1 }
 0x4dd   : > { %7562 = vmatpush.bf16.msra.mxu2 %v9108_v9  ;;  %7537 = vmatpush.bf16.msra.mxu0 %v8564_v15  ;;  %v12680_v7 = vld [vmem:[%s13836_s10 + $0x714] sm:$0xf]  ;;  %v9012_v8 = vor.u32 %v12616_v47, %v9009_v59  ;;  %v7299_v30 = vadd.f32 %v7298_v3, %v7286_v60 }
 0x4de   : > { %7531 = vmatmul.bf16.vlgmr.msrb.gmra.mxu3 %v14212_v42  ;;  %v9265_v55 = vld [vmem:[%s13836_s10 + $0x730] sm:$0xf0] }
 0x4df   : > { %7575 = vmatpush.bf16.msra.mxu3 %v9364_v12  ;;  %7550 = vmatpush.bf16.msra.mxu1 %v8820_v19  ;;  %v12480_v45 = vld [vmem:[%s13836_s10 + $0xd4] sm:$0xf]  ;;  %v9268_v11 = vor.u32 %v12680_v7, %v9265_v55  ;;  %v7312_v51 = vadd.f32 %v7311_v27, %v7299_v30 }
 0x4e0   : > { %v8465_v9 = vld [vmem:[%s13836_s10 + $0xf0] sm:$0xf0] }
 0x4e1   : > { %7563 = vmatpush.bf16.msra.mxu2 %v9076_v23  ;;  %7538 = vmatpush.bf16.msra.mxu0 %v8532_v44  ;;  %v12544_v37 = vld [vmem:[%s13836_s10 + $0x2d4] sm:$0xf]  ;;  %v8468_v6 = vor.u32 %v12480_v45, %v8465_v9 }
 0x4e2   : > { %v8721_v17 = vld [vmem:[%s13836_s10 + $0x2f0] sm:$0xf0] }
 0x4e3   : > { %7576 = vmatpush.bf16.msra.mxu3 %v9332_v40  ;;  %7551 = vmatpush.bf16.msra.mxu1 %v8788_v49  ;;  %v12608_v21 = vld [vmem:[%s13836_s10 + $0x4d4] sm:$0xf]  ;;  %v8724_v0 = vor.u32 %v12544_v37, %v8721_v17  ;;  %v7300_v49 = vpop.f32.mrf.mxu1 }
 0x4e4   : > { %v8977_v12 = vld [vmem:[%s13836_s10 + $0x4f0] sm:$0xf0] }
 0x4e5   : > { %7564 = vmatpush.bf16.msra.mxu2 %v9044_v14  ;;  %v12672_v13 = vld [vmem:[%s13836_s10 + $0x6d4] sm:$0xf]  ;;  %7539 = vmatpush.bf16.msra.mxu0 %v8500_v4  ;;  %v8980_v15 = vor.u32 %v12608_v21, %v8977_v12  ;;  %v7325_v14 = vadd.f32 %v7324_v22, %v7312_v51 }
 0x4e6   : > { %v9233_v16 = vld [vmem:[%s13836_s10 + $0x6f0] sm:$0xf0] }
 0x4e7   : > { %7577 = vmatpush.bf16.msra.mxu3 %v9300_v52  ;;  %7552 = vmatpush.bf16.msra.mxu1 %v8756_v5  ;;  %v12472_v20 = vld [vmem:[%s13836_s10 + $0x94] sm:$0xf]  ;;  %v9236_v26 = vor.u32 %v12672_v13, %v9233_v16  ;;  %13563 = vtanh.f32 %v7325_v14  ;;  %v7313_v13 = vpop.f32.mrf.mxu2 }
 0x4e8   : > { %v8433_v19 = vld [vmem:[%s13836_s10 + $0xb0] sm:$0xf0]  ;;  %v13575_v13 = vld [vmem:[%s13842_s8] sm:$0xff] }
 0x4e9   : > { %7565 = vmatpush.bf16.msra.mxu2 %v9012_v8  ;;  %v12536_v23 = vld [vmem:[%s13836_s10 + $0x294] sm:$0xf]  ;;  %7540 = vmatpush.bf16.msra.mxu0 %v8468_v6  ;;  %v8436_v44 = vor.u32 %v12472_v20, %v8433_v19 }
 0x4ea   : > { %v8689_v28 = vld [vmem:[%s13836_s10 + $0x2b0] sm:$0xf0] }
 0x4eb   : > { %7578 = vmatpush.bf16.msra.mxu3 %v9268_v11  ;;  %v12600_v40 = vld [vmem:[%s13836_s10 + $0x494] sm:$0xf]  ;;  %7553 = vmatpush.bf16.msra.mxu1 %v8724_v0  ;;  %v8692_v57 = vor.u32 %v12536_v23, %v8689_v28  ;;  %v7326_v0 = vpop.f32.mrf.mxu3 }
 0x4ec   : > { %v8945_v63 = vld [vmem:[%s13836_s10 + $0x4b0] sm:$0xf0] }
 0x4ed   : > { %v12664_v32 = vld [vmem:[%s13836_s10 + $0x694] sm:$0xf]  ;;  %7566 = vmatpush.bf16.msra.mxu2 %v8980_v15  ;;  %v8948_v61 = vor.u32 %v12600_v40, %v8945_v63  ;;  %7541 = vmatpush.bf16.msra.mxu0 %v8436_v44 }
 0x4ee   : > { %v9201_v46 = vld [vmem:[%s13836_s10 + $0x6b0] sm:$0xf0] }
 0x4ef   : > { %v12464_v18 = vld [vmem:[%s13836_s10 + $0x54] sm:$0xf]  ;;  %7579 = vmatpush.bf16.msra.mxu3 %v9236_v26  ;;  %v9204_v47 = vor.u32 %v12664_v32, %v9201_v46  ;;  %7554 = vmatpush.bf16.msra.mxu1 %v8692_v57  ;;  %v15502_v26 = vpop.eup %13563 }
 0x4f0   : > { %v8401_v52 = vld [vmem:[%s13836_s10 + $0x70] sm:$0xf0]  ;;  %8176 = vst [vmem:[%s14592_s25 + $0x18] sm:$0xff] %v15502_v26 }
 0x4f1   : > { %v12528_v1 = vld [vmem:[%s13836_s10 + $0x254] sm:$0xf]  ;;  %v8404_v4 = vor.u32 %v12464_v18, %v8401_v52  ;;  %7567 = vmatpush.bf16.msra.mxu2 %v8948_v61 }
 0x4f2   : > { %v8657_v59 = vld [vmem:[%s13836_s10 + $0x270] sm:$0xf0] }
 0x4f3   : > { %v12592_v62 = vld [vmem:[%s13836_s10 + $0x454] sm:$0xf]  ;;  %v8660_v5 = vor.u32 %v12528_v1, %v8657_v59  ;;  %7580 = vmatpush.bf16.msra.mxu3 %v9204_v47  ;;  %7542 = vmatpush.bf16.msra.mxu0 %v8404_v4 }
 0x4f4   : > { %v8913_v10 = vld [vmem:[%s13836_s10 + $0x470] sm:$0xf0] }
 0x4f5   : > { %v12656_v7 = vld [vmem:[%s13836_s10 + $0x654] sm:$0xf]  ;;  %v8916_v8 = vor.u32 %v12592_v62, %v8913_v10  ;;  %7555 = vmatpush.bf16.msra.mxu1 %v8660_v5 }
 0x4f6   : > { %v9169_v55 = vld [vmem:[%s13836_s10 + $0x670] sm:$0xf0] }
 0x4f7   : > { %v12456_v3 = vld [vmem:[%s13836_s10 + $0x14] sm:$0xf]  ;;  %v9172_v11 = vor.u32 %v12656_v7, %v9169_v55  ;;  %7568 = vmatpush.bf16.msra.mxu2 %v8916_v8 }
 0x4f8   : > { %v8369_v60 = vld [vmem:[%s13836_s10 + $0x30] sm:$0xf0] }
 0x4f9   : > { %v12520_v45 = vld [vmem:[%s13836_s10 + $0x214] sm:$0xf]  ;;  %v8372_v15 = vor.u32 %v12456_v3, %v8369_v60  ;;  %7581 = vmatpush.bf16.msra.mxu3 %v9172_v11 }
 0x4fa   : > { %v8625_v9 = vld [vmem:[%s13836_s10 + $0x230] sm:$0xf0] }
 0x4fb   : > { %v12584_v37 = vld [vmem:[%s13836_s10 + $0x414] sm:$0xf]  ;;  %v8628_v27 = vor.u32 %v12520_v45, %v8625_v9  ;;  %7543 = vmatpush.bf16.msra.mxu0 %v8372_v15 }
 0x4fc   : > { %v8881_v17 = vld [vmem:[%s13836_s10 + $0x430] sm:$0xf0] }
 0x4fd   : > { %v12648_v21 = vld [vmem:[%s13836_s10 + $0x614] sm:$0xf]  ;;  %v8884_v28 = vor.u32 %v12584_v37, %v8881_v17  ;;  %7556 = vmatpush.bf16.msra.mxu1 %v8628_v27  ;;  %v7337_v27 = vpop.f32.mrf.mxu0 }
 0x4fe   : > { %v9137_v12 = vld [vmem:[%s13836_s10 + $0x630] sm:$0xf0]  ;;  %7544 = vmatmul.bf16.vlgmr.msra.gmra.mxu0 %v13991_v25 }
 0x4ff   : > { %v12768_v16 = vld [vmem:[%s13836_s10 + $0x9d4] sm:$0xf]  ;;  %v9140_v51 = vor.u32 %v12648_v21, %v9137_v12  ;;  %7569 = vmatpush.bf16.msra.mxu2 %v8884_v28 }
 0x500   : > { %v9617_v6 = vld [vmem:[%s13836_s10 + $0x9f0] sm:$0xf0]  ;;  %7557 = vmatmul.bf16.vlgmr.msra.gmra.mxu1 %v14006_v41 }
 0x501   : > { %v12832_v30 = vld [vmem:[%s13836_s10 + $0xbd4] sm:$0xf]  ;;  %v9620_v22 = vor.u32 %v12768_v16, %v9617_v6  ;;  %7582 = vmatpush.bf16.msra.mxu3 %v9140_v51  ;;  %v1364_v16 = vperm.slane %v13575_v13, 4 }
 0x502   : > { %v9873_v20 = vld [vmem:[%s13836_s10 + $0xbf0] sm:$0xf0]  ;;  %7570 = vmatmul.bf16.vlgmr.msra.gmra.mxu2 %v13989_v24 }
 0x503   : > { %v12896_v19 = vld [vmem:[%s13836_s10 + $0xdd4] sm:$0xf]  ;;  %v9876_v32 = vor.u32 %v12832_v30, %v9873_v20  ;;  %7588 = vmatpush.bf16.msrb.mxu0 %v9620_v22 }
 0x504   : > { %v10129_v23 = vld [vmem:[%s13836_s10 + $0xdf0] sm:$0xf0]  ;;  %7583 = vmatmul.bf16.vlgmr.msra.gmra.mxu3 %v13996_v31 }
 0x505   : > { %v12960_v40 = vld [vmem:[%s13836_s10 + $0xfd4] sm:$0xf]  ;;  %v10132_v46 = vor.u32 %v12896_v19, %v10129_v23  ;;  %7601 = vmatpush.bf16.msrb.mxu1 %v9876_v32  ;;  %v7338_v32 = vadd.f32 %v7337_v27, %v1364_v16 }
 0x506   : > { %v10385_v63 = vld [vmem:[%s13836_s10 + $0xff0] sm:$0xf0] }
 0x507   : > { %v12760_v48 = vld [vmem:[%s13836_s10 + $0x994] sm:$0xf]  ;;  %v10388_v14 = vor.u32 %v12960_v40, %v10385_v63  ;;  %7614 = vmatpush.bf16.msrb.mxu2 %v10132_v46  ;;  %v7350_v46 = vpop.f32.mrf.mxu1 }
 0x508   : > { %v9585_v44 = vld [vmem:[%s13836_s10 + $0x9b0] sm:$0xf0] }
 0x509   : > { %v12824_v49 = vld [vmem:[%s13836_s10 + $0xb94] sm:$0xf]  ;;  %v9588_v47 = vor.u32 %v12760_v48, %v9585_v44  ;;  %7627 = vmatpush.bf16.msrb.mxu3 %v10388_v14 }
 0x50a   : > { %v9841_v57 = vld [vmem:[%s13836_s10 + $0xbb0] sm:$0xf0] }
 0x50b   : > { %v12888_v61 = vld [vmem:[%s13836_s10 + $0xd94] sm:$0xf]  ;;  %v9844_v59 = vor.u32 %v12824_v49, %v9841_v57  ;;  %7589 = vmatpush.bf16.msrb.mxu0 %v9588_v47 }
 0x50c   : > { %v10097_v18 = vld [vmem:[%s13836_s10 + $0xdb0] sm:$0xf0] }
 0x50d   : > { %v12952_v52 = vld [vmem:[%s13836_s10 + $0xf94] sm:$0xf]  ;;  %v10100_v62 = vor.u32 %v12888_v61, %v10097_v18  ;;  %7602 = vmatpush.bf16.msrb.mxu1 %v9844_v59  ;;  %v7351_v18 = vadd.f32 %v7350_v46, %v7338_v32 }
 0x50e   : > { %v10353_v1 = vld [vmem:[%s13836_s10 + $0xfb0] sm:$0xf0] }
 0x50f   : > { %v12752_v10 = vld [vmem:[%s13836_s10 + $0x954] sm:$0xf]  ;;  %v10356_v4 = vor.u32 %v12952_v52, %v10353_v1  ;;  %7615 = vmatpush.bf16.msrb.mxu2 %v10100_v62 }
 0x510   : > { %v9553_v7 = vld [vmem:[%s13836_s10 + $0x970] sm:$0xf0] }
 0x511   : > { %v12816_v55 = vld [vmem:[%s13836_s10 + $0xb54] sm:$0xf]  ;;  %v9556_v9 = vor.u32 %v12752_v10, %v9553_v7  ;;  %7628 = vmatpush.bf16.msrb.mxu3 %v10356_v4  ;;  %v7363_v7 = vpop.f32.mrf.mxu2 }
 0x512   : > { %v9809_v3 = vld [vmem:[%s13836_s10 + $0xb70] sm:$0xf0] }
 0x513   : > { %v12880_v60 = vld [vmem:[%s13836_s10 + $0xd54] sm:$0xf]  ;;  %v9812_v11 = vor.u32 %v12816_v55, %v9809_v3  ;;  %7590 = vmatpush.bf16.msrb.mxu0 %v9556_v9 }
 0x514   : > { %v10065_v5 = vld [vmem:[%s13836_s10 + $0xd70] sm:$0xf0] }
 0x515   : > { %v12944_v8 = vld [vmem:[%s13836_s10 + $0xf54] sm:$0xf]  ;;  %v10068_v17 = vor.u32 %v12880_v60, %v10065_v5  ;;  %7603 = vmatpush.bf16.msrb.mxu1 %v9812_v11  ;;  %v7364_v5 = vadd.f32 %v7363_v7, %v7351_v18 }
 0x516   : > { %v10321_v45 = vld [vmem:[%s13836_s10 + $0xf70] sm:$0xf0] }
 0x517   : > { %v12744_v37 = vld [vmem:[%s13836_s10 + $0x914] sm:$0xf]  ;;  %v10324_v6 = vor.u32 %v12944_v8, %v10321_v45  ;;  %7616 = vmatpush.bf16.msrb.mxu2 %v10068_v17  ;;  %v7376_v8 = vpop.f32.mrf.mxu3  ;;  %v7339_v17 = vpop.f32.mrf.mxu0 }
 0x518   : > { %v9521_v21 = vld [vmem:[%s13836_s10 + $0x930] sm:$0xf0]  ;;  %v15553_v11 = vadd.f32 %v7376_v8, %v7364_v5 }
 0x519   : > { %v12808_v12 = vld [vmem:[%s13836_s10 + $0xb14] sm:$0xf]  ;;  %v9524_v23 = vor.u32 %v12744_v37, %v9521_v21  ;;  %7629 = vmatpush.bf16.msrb.mxu3 %v10324_v6 }
 0x51a   : > { %v9777_v30 = vld [vmem:[%s13836_s10 + $0xb30] sm:$0xf0] }
 0x51b   : > { %v12872_v0 = vld [vmem:[%s13836_s10 + $0xd14] sm:$0xf]  ;;  %v9780_v28 = vor.u32 %v12808_v12, %v9777_v30  ;;  %7591 = vmatpush.bf16.msrb.mxu0 %v9524_v23  ;;  %v7352_v30 = vpop.f32.mrf.mxu1 }
 0x51c   : > { %v10033_v15 = vld [vmem:[%s13836_s10 + $0xd30] sm:$0xf0] }
 0x51d   : > { %v12936_v20 = vld [vmem:[%s13836_s10 + $0xf14] sm:$0xf]  ;;  %v10036_v40 = vor.u32 %v12872_v0, %v10033_v15  ;;  %7604 = vmatpush.bf16.msrb.mxu1 %v9780_v28 }
 0x51e   : > { %v10289_v19 = vld [vmem:[%s13836_s10 + $0xf30] sm:$0xf0] }
 0x51f   : > { %v12736_v63 = vld [vmem:[%s13836_s10 + $0x8d4] sm:$0xf]  ;;  %v10292_v48 = vor.u32 %v12936_v20, %v10289_v19  ;;  %7617 = vmatpush.bf16.msrb.mxu2 %v10036_v40  ;;  %v7378_v18 = vpop.f32.mrf.mxu3 }
 0x520   : > { %v9489_v51 = vld [vmem:[%s13836_s10 + $0x8f0] sm:$0xf0] }
 0x521   : > { %v12800_v22 = vld [vmem:[%s13836_s10 + $0xad4] sm:$0xf]  ;;  %v9492_v52 = vor.u32 %v12736_v63, %v9489_v51  ;;  %7630 = vmatpush.bf16.msrb.mxu3 %v10292_v48 }
 0x522   : > { %v9745_v44 = vld [vmem:[%s13836_s10 + $0xaf0] sm:$0xf0] }
 0x523   : > { %v12864_v49 = vld [vmem:[%s13836_s10 + $0xcd4] sm:$0xf]  ;;  %v9748_v1 = vor.u32 %v12800_v22, %v9745_v44  ;;  %7592 = vmatpush.bf16.msrb.mxu0 %v9492_v52  ;;  %v7365_v44 = vpop.f32.mrf.mxu2 }
 0x524   : > { %v10001_v14 = vld [vmem:[%s13836_s10 + $0xcf0] sm:$0xf0] }
 0x525   : > { %v12928_v57 = vld [vmem:[%s13836_s10 + $0xed4] sm:$0xf]  ;;  %v10004_v47 = vor.u32 %v12864_v49, %v10001_v14  ;;  %7605 = vmatpush.bf16.msrb.mxu1 %v9748_v1 }
 0x526   : > { %v10257_v61 = vld [vmem:[%s13836_s10 + $0xef0] sm:$0xf0] }
 0x527   : > { %v12728_v59 = vld [vmem:[%s13836_s10 + $0x894] sm:$0xf]  ;;  %v10260_v55 = vor.u32 %v12928_v57, %v10257_v61  ;;  %7618 = vmatpush.bf16.msrb.mxu2 %v10004_v47 }
 0x528   : > { %v9457_v62 = vld [vmem:[%s13836_s10 + $0x8b0] sm:$0xf0] }
 0x529   : > { %v12792_v10 = vld [vmem:[%s13836_s10 + $0xa94] sm:$0xf]  ;;  %v9460_v37 = vor.u32 %v12728_v59, %v9457_v62  ;;  %7631 = vmatpush.bf16.msrb.mxu3 %v10260_v55 }
 0x52a   : > { %v9713_v4 = vld [vmem:[%s13836_s10 + $0xab0] sm:$0xf0] }
 0x52b   : > { %v12856_v3 = vld [vmem:[%s13836_s10 + $0xc94] sm:$0xf]  ;;  %v9716_v21 = vor.u32 %v12792_v10, %v9713_v4  ;;  %7593 = vmatpush.bf16.msrb.mxu0 %v9460_v37 }
 0x52c   : > { %v9969_v60 = vld [vmem:[%s13836_s10 + $0xcb0] sm:$0xf0] }
 0x52d   : > { %v12920_v45 = vld [vmem:[%s13836_s10 + $0xe94] sm:$0xf]  ;;  %v9972_v12 = vor.u32 %v12856_v3, %v9969_v60  ;;  %7606 = vmatpush.bf16.msrb.mxu1 %v9716_v21 }
 0x52e   : > { %v10225_v9 = vld [vmem:[%s13836_s10 + $0xeb0] sm:$0xf0] }
 0x52f   : > { %v12720_v13 = vld [vmem:[%s13836_s10 + $0x854] sm:$0xf]  ;;  %v10228_v0 = vor.u32 %v12920_v45, %v10225_v9  ;;  %7619 = vmatpush.bf16.msrb.mxu2 %v9972_v12 }
 0x530   : > { %v9425_v16 = vld [vmem:[%s13836_s10 + $0x870] sm:$0xf0] }
 0x531   : > { %v12784_v6 = vld [vmem:[%s13836_s10 + $0xa54] sm:$0xf]  ;;  %v9428_v28 = vor.u32 %v12720_v13, %v9425_v16  ;;  %7632 = vmatpush.bf16.msrb.mxu3 %v10228_v0 }
 0x532   : > { %v9681_v15 = vld [vmem:[%s13836_s10 + $0xa70] sm:$0xf0] }
 0x533   : > { %v12848_v20 = vld [vmem:[%s13836_s10 + $0xc54] sm:$0xf]  ;;  %v9684_v51 = vor.u32 %v12784_v6, %v9681_v15  ;;  %7594 = vmatpush.bf16.msrb.mxu0 %v9428_v28 }
 0x534   : > { %v9937_v19 = vld [vmem:[%s13836_s10 + $0xc70] sm:$0xf0] }
 0x535   : > { %v12912_v23 = vld [vmem:[%s13836_s10 + $0xe54] sm:$0xf]  ;;  %v9940_v22 = vor.u32 %v12848_v20, %v9937_v19  ;;  %7607 = vmatpush.bf16.msrb.mxu1 %v9684_v51 }
 0x536   : > { %v10193_v27 = vld [vmem:[%s13836_s10 + $0xe70] sm:$0xf0] }
 0x537   : > { %v12712_v40 = vld [vmem:[%s13836_s10 + $0x814] sm:$0xf]  ;;  %v10196_v49 = vor.u32 %v12912_v23, %v10193_v27  ;;  %7620 = vmatpush.bf16.msrb.mxu2 %v9940_v22 }
 0x538   : > { %v9393_v63 = vld [vmem:[%s13836_s10 + $0x830] sm:$0xf0] }
 0x539   : > { %v12776_v32 = vld [vmem:[%s13836_s10 + $0xa14] sm:$0xf]  ;;  %v9396_v59 = vor.u32 %v12712_v40, %v9393_v63  ;;  %7633 = vmatpush.bf16.msrb.mxu3 %v10196_v49 }
 0x53a   : > { %v9649_v46 = vld [vmem:[%s13836_s10 + $0xa30] sm:$0xf0] }
 0x53b   : > { %v12840_v48 = vld [vmem:[%s13836_s10 + $0xc14] sm:$0xf]  ;;  %v9652_v55 = vor.u32 %v12776_v32, %v9649_v46  ;;  %7595 = vmatpush.bf16.msrb.mxu0 %v9396_v59 }
 0x53c   : > { %v9905_v14 = vld [vmem:[%s13836_s10 + $0xc30] sm:$0xf0] }
 0x53d   : > { %v12904_v57 = vld [vmem:[%s13836_s10 + $0xe14] sm:$0xf]  ;;  %v9908_v4 = vor.u32 %v12840_v48, %v9905_v14  ;;  %7608 = vmatpush.bf16.msrb.mxu1 %v9652_v55 }
 0x53e   : > { %v10161_v61 = vld [vmem:[%s13836_s10 + $0xe30] sm:$0xf0]  ;;  %7596 = vmatmul.bf16.vlgmr.msrb.gmra.mxu0 %v14056_v53 }
 0x53f   : > { %v13024_v52 = vld [vmem:[%s13836_s10 + $0x11d4] sm:$0xf]  ;;  %v10164_v5 = vor.u32 %v12904_v57, %v10161_v61  ;;  %7621 = vmatpush.bf16.msrb.mxu2 %v9908_v4 }
 0x540   : > { %v10641_v1 = vld [vmem:[%s13836_s10 + $0x11f0] sm:$0xf0]  ;;  %7609 = vmatmul.bf16.vlgmr.msrb.gmra.mxu1 %v14060_v56 }
 0x541   : > { %v13088_v47 = vld [vmem:[%s13836_s10 + $0x13d4] sm:$0xf]  ;;  %v10644_v8 = vor.u32 %v13024_v52, %v10641_v1  ;;  %7634 = vmatpush.bf16.msrb.mxu3 %v10164_v5 }
 0x542   : > { %v10897_v62 = vld [vmem:[%s13836_s10 + $0x13f0] sm:$0xf0]  ;;  %7622 = vmatmul.bf16.vlgmr.msrb.gmra.mxu2 %v14052_v50 }
 0x543   : > { %v13152_v10 = vld [vmem:[%s13836_s10 + $0x15d4] sm:$0xf]  ;;  %v10900_v45 = vor.u32 %v13088_v47, %v10897_v62  ;;  %7640 = vmatpush.bf16.msra.mxu0 %v10644_v8  ;;  %v15612_v8 = vpop.f32.mrf.mxu1 }
 0x544   : > { %v11153_v7 = vld [vmem:[%s13836_s10 + $0x15f0] sm:$0xf0]  ;;  %7635 = vmatmul.bf16.vlgmr.msrb.gmra.mxu3 %v14058_v54 }
 0x545   : > { %v13216_v3 = vld [vmem:[%s13836_s10 + $0x17d4] sm:$0xf]  ;;  %v11156_v9 = vor.u32 %v13152_v10, %v11153_v7  ;;  %7653 = vmatpush.bf16.msra.mxu1 %v10900_v45  ;;  %v15607_v7 = vpop.f32.mrf.mxu0 }
 0x546   : > { %v11409_v60 = vld [vmem:[%s13836_s10 + $0x17f0] sm:$0xf0] }
 0x547   : > { %v13016_v37 = vld [vmem:[%s13836_s10 + $0x1194] sm:$0xf]  ;;  %v11412_v12 = vor.u32 %v13216_v3, %v11409_v60  ;;  %7666 = vmatpush.bf16.msra.mxu2 %v11156_v9 }
 0x548   : > { %v10609_v17 = vld [vmem:[%s13836_s10 + $0x11b0] sm:$0xf0] }
 0x549   : > { %v13080_v21 = vld [vmem:[%s13836_s10 + $0x1394] sm:$0xf]  ;;  %v10612_v15 = vor.u32 %v13016_v37, %v10609_v17  ;;  %7679 = vmatpush.bf16.msra.mxu3 %v11412_v12 }
 0x54a   : > { %v10865_v13 = vld [vmem:[%s13836_s10 + $0x13b0] sm:$0xf0] }
 0x54b   : > { %v13144_v16 = vld [vmem:[%s13836_s10 + $0x1594] sm:$0xf]  ;;  %v10868_v20 = vor.u32 %v13080_v21, %v10865_v13  ;;  %7641 = vmatpush.bf16.msra.mxu0 %v10612_v15 }
 0x54c   : > { %v11121_v6 = vld [vmem:[%s13836_s10 + $0x15b0] sm:$0xf0] }
 0x54d   : > { %v13208_v30 = vld [vmem:[%s13836_s10 + $0x1794] sm:$0xf]  ;;  %v11124_v19 = vor.u32 %v13144_v16, %v11121_v6  ;;  %7654 = vmatpush.bf16.msra.mxu1 %v10868_v20  ;;  %v15622_v20 = vpop.f32.mrf.mxu2 }
 0x54e   : > { %v11377_v0 = vld [vmem:[%s13836_s10 + $0x17b0] sm:$0xf0] }
 0x54f   : > { %v13008_v23 = vld [vmem:[%s13836_s10 + $0x1154] sm:$0xf]  ;;  %v11380_v40 = vor.u32 %v13208_v30, %v11377_v0  ;;  %7667 = vmatpush.bf16.msra.mxu2 %v11124_v19 }
 0x550   : > { %v10577_v27 = vld [vmem:[%s13836_s10 + $0x1170] sm:$0xf0] }
 0x551   : > { %v13072_v28 = vld [vmem:[%s13836_s10 + $0x1354] sm:$0xf]  ;;  %v10580_v48 = vor.u32 %v13008_v23, %v10577_v27  ;;  %7680 = vmatpush.bf16.msra.mxu3 %v11380_v40  ;;  %v15627_v40 = vpop.f32.mrf.mxu3 }
 0x552   : > { %v10833_v63 = vld [vmem:[%s13836_s10 + $0x1370] sm:$0xf0] }
 0x553   : > { %v13136_v51 = vld [vmem:[%s13836_s10 + $0x1554] sm:$0xf]  ;;  %v10836_v44 = vor.u32 %v13072_v28, %v10833_v63  ;;  %7642 = vmatpush.bf16.msra.mxu0 %v10580_v48 }
 0x554   : > { %v11089_v22 = vld [vmem:[%s13836_s10 + $0x1570] sm:$0xf0] }
 0x555   : > { %v13200_v32 = vld [vmem:[%s13836_s10 + $0x1754] sm:$0xf]  ;;  %v11092_v49 = vor.u32 %v13136_v51, %v11089_v22  ;;  %7655 = vmatpush.bf16.msra.mxu1 %v10836_v44 }
 0x556   : > { %v11345_v46 = vld [vmem:[%s13836_s10 + $0x1770] sm:$0xf0] }
 0x557   : > { %v13000_v14 = vld [vmem:[%s13836_s10 + $0x1114] sm:$0xf]  ;;  %v11348_v18 = vor.u32 %v13200_v32, %v11345_v46  ;;  %7668 = vmatpush.bf16.msra.mxu2 %v11092_v49  ;;  %v7391_v32 = vpop.f32.mrf.mxu0 }
 0x558   : > { %v10545_v57 = vld [vmem:[%s13836_s10 + $0x1130] sm:$0xf0] }
 0x559   : > { %v13064_v61 = vld [vmem:[%s13836_s10 + $0x1314] sm:$0xf]  ;;  %v10548_v10 = vor.u32 %v13000_v14, %v10545_v57  ;;  %7681 = vmatpush.bf16.msra.mxu3 %v11348_v18  ;;  %v7404_v57 = vpop.f32.mrf.mxu1 }
 0x55a   : > { %v10801_v52 = vld [vmem:[%s13836_s10 + $0x1330] sm:$0xf0] }
 0x55b   : > { %v13128_v1 = vld [vmem:[%s13836_s10 + $0x1514] sm:$0xf]  ;;  %v10804_v55 = vor.u32 %v13064_v61, %v10801_v52  ;;  %7643 = vmatpush.bf16.msra.mxu0 %v10548_v10 }
 0x55c   : > { %v11057_v47 = vld [vmem:[%s13836_s10 + $0x1530] sm:$0xf0] }
 0x55d   : > { %v13192_v59 = vld [vmem:[%s13836_s10 + $0x1714] sm:$0xf]  ;;  %v11060_v4 = vor.u32 %v13128_v1, %v11057_v47  ;;  %7656 = vmatpush.bf16.msra.mxu1 %v10804_v55 }
 0x55e   : > { %v11313_v62 = vld [vmem:[%s13836_s10 + $0x1730] sm:$0xf0] }
 0x55f   : > { %v12992_v3 = vld [vmem:[%s13836_s10 + $0x10d4] sm:$0xf]  ;;  %v11316_v45 = vor.u32 %v13192_v59, %v11313_v62  ;;  %7669 = vmatpush.bf16.msra.mxu2 %v11060_v4 }
 0x560   : > { %v10513_v60 = vld [vmem:[%s13836_s10 + $0x10f0] sm:$0xf0] }
 0x561   : > { %v13056_v5 = vld [vmem:[%s13836_s10 + $0x12d4] sm:$0xf]  ;;  %v10516_v13 = vor.u32 %v12992_v3, %v10513_v60  ;;  %7682 = vmatpush.bf16.msra.mxu3 %v11316_v45 }
 0x562   : > { %v10769_v9 = vld [vmem:[%s13836_s10 + $0x12f0] sm:$0xf0] }
 0x563   : > { %v13120_v37 = vld [vmem:[%s13836_s10 + $0x14d4] sm:$0xf]  ;;  %v10772_v16 = vor.u32 %v13056_v5, %v10769_v9  ;;  %7644 = vmatpush.bf16.msra.mxu0 %v10516_v13  ;;  %v7417_v9 = vpop.f32.mrf.mxu2  ;;  %v7430_v13 = vpop.f32.mrf.mxu3 }
 0x564   : > { %v11025_v17 = vld [vmem:[%s13836_s10 + $0x14f0] sm:$0xf0] }
 0x565   : > { %v13184_v21 = vld [vmem:[%s13836_s10 + $0x16d4] sm:$0xf]  ;;  %v11028_v6 = vor.u32 %v13120_v37, %v11025_v17  ;;  %7657 = vmatpush.bf16.msra.mxu1 %v10772_v16 }
 0x566   : > { %v11281_v12 = vld [vmem:[%s13836_s10 + $0x16f0] sm:$0xf0] }
 0x567   : > { %v12984_v30 = vld [vmem:[%s13836_s10 + $0x1094] sm:$0xf]  ;;  %v11284_v19 = vor.u32 %v13184_v21, %v11281_v12  ;;  %7670 = vmatpush.bf16.msra.mxu2 %v11028_v6 }
 0x568   : > { %v10481_v0 = vld [vmem:[%s13836_s10 + $0x10b0] sm:$0xf0] }
 0x569   : > { %v13048_v15 = vld [vmem:[%s13836_s10 + $0x1294] sm:$0xf]  ;;  %v10484_v22 = vor.u32 %v12984_v30, %v10481_v0  ;;  %7683 = vmatpush.bf16.msra.mxu3 %v11284_v19 }
 0x56a   : > { %v10737_v23 = vld [vmem:[%s13836_s10 + $0x12b0] sm:$0xf0] }
 0x56b   : > { %v13112_v27 = vld [vmem:[%s13836_s10 + $0x1494] sm:$0xf]  ;;  %v10740_v46 = vor.u32 %v13048_v15, %v10737_v23  ;;  %7645 = vmatpush.bf16.msra.mxu0 %v10484_v22 }
 0x56c   : > { %v10993_v28 = vld [vmem:[%s13836_s10 + $0x14b0] sm:$0xf0] }
 0x56d   : > { %v13176_v63 = vld [vmem:[%s13836_s10 + $0x1694] sm:$0xf]  ;;  %v10996_v48 = vor.u32 %v13112_v27, %v10993_v28  ;;  %7658 = vmatpush.bf16.msra.mxu1 %v10740_v46 }
 0x56e   : > { %v11249_v51 = vld [vmem:[%s13836_s10 + $0x16b0] sm:$0xf0] }
 0x56f   : > { %v12976_v44 = vld [vmem:[%s13836_s10 + $0x1054] sm:$0xf]  ;;  %v11252_v61 = vor.u32 %v13176_v63, %v11249_v51  ;;  %7671 = vmatpush.bf16.msra.mxu2 %v10996_v48 }
 0x570   : > { %v10449_v49 = vld [vmem:[%s13836_s10 + $0x1070] sm:$0xf0] }
 0x571   : > { %v13040_v14 = vld [vmem:[%s13836_s10 + $0x1254] sm:$0xf]  ;;  %v10452_v62 = vor.u32 %v12976_v44, %v10449_v49  ;;  %7684 = vmatpush.bf16.msra.mxu3 %v11252_v61 }
 0x572   : > { %v10705_v18 = vld [vmem:[%s13836_s10 + $0x1270] sm:$0xf0] }
 0x573   : > { %v13104_v52 = vld [vmem:[%s13836_s10 + $0x1454] sm:$0xf]  ;;  %v10708_v4 = vor.u32 %v13040_v14, %v10705_v18  ;;  %7646 = vmatpush.bf16.msra.mxu0 %v10452_v62 }
 0x574   : > { %v10961_v1 = vld [vmem:[%s13836_s10 + $0x1470] sm:$0xf0] }
 0x575   : > { %v13168_v47 = vld [vmem:[%s13836_s10 + $0x1654] sm:$0xf]  ;;  %v10964_v3 = vor.u32 %v13104_v52, %v10961_v1  ;;  %7659 = vmatpush.bf16.msra.mxu1 %v10708_v4 }
 0x576   : > { %v11217_v59 = vld [vmem:[%s13836_s10 + $0x1670] sm:$0xf0] }
 0x577   : > { %v12968_v10 = vld [vmem:[%s13836_s10 + $0x1014] sm:$0xf]  ;;  %v11220_v37 = vor.u32 %v13168_v47, %v11217_v59  ;;  %7672 = vmatpush.bf16.msra.mxu2 %v10964_v3 }
 0x578   : > { %v10417_v55 = vld [vmem:[%s13836_s10 + $0x1030] sm:$0xf0] }
 0x579   : > { %v13032_v60 = vld [vmem:[%s13836_s10 + $0x1214] sm:$0xf]  ;;  %v10420_v0 = vor.u32 %v12968_v10, %v10417_v55  ;;  %7685 = vmatpush.bf16.msra.mxu3 %v11220_v37 }
 0x57a   : > { %v10673_v5 = vld [vmem:[%s13836_s10 + $0x1230] sm:$0xf0] }
 0x57b   : > { %v13096_v45 = vld [vmem:[%s13836_s10 + $0x1414] sm:$0xf]  ;;  %v10676_v27 = vor.u32 %v13032_v60, %v10673_v5  ;;  %7647 = vmatpush.bf16.msra.mxu0 %v10420_v0 }
 0x57c   : > { %v10929_v17 = vld [vmem:[%s13836_s10 + $0x1430] sm:$0xf0] }
 0x57d   : > { %v13160_v21 = vld [vmem:[%s13836_s10 + $0x1614] sm:$0xf]  ;;  %v10932_v28 = vor.u32 %v13096_v45, %v10929_v17  ;;  %7660 = vmatpush.bf16.msra.mxu1 %v10676_v27  ;;  %v15681_v27 = vpop.f32.mrf.mxu0 }
 0x57e   : > { %v11185_v12 = vld [vmem:[%s13836_s10 + $0x1630] sm:$0xf0]  ;;  %7648 = vmatmul.bf16.vlgmr.msra.gmra.mxu0 %v14125_v34 }
 0x57f   : > { %v13280_v16 = vld [vmem:[%s13836_s10 + $0x19d4] sm:$0xf]  ;;  %v11188_v22 = vor.u32 %v13160_v21, %v11185_v12  ;;  %7673 = vmatpush.bf16.msra.mxu2 %v10932_v28 }
 0x580   : > { %v11665_v6 = vld [vmem:[%s13836_s10 + $0x19f0] sm:$0xf0]  ;;  %7661 = vmatmul.bf16.vlgmr.msra.gmra.mxu1 %v14132_v39 }
 0x581   : > { %v13344_v30 = vld [vmem:[%s13836_s10 + $0x1bd4] sm:$0xf]  ;;  %v11668_v32 = vor.u32 %v13280_v16, %v11665_v6  ;;  %7686 = vmatpush.bf16.msra.mxu3 %v11188_v22  ;;  %v15685_v22 = vpop.f32.mrf.mxu1 }
 0x582   : > { %v11921_v15 = vld [vmem:[%s13836_s10 + $0x1bf0] sm:$0xf0]  ;;  %7674 = vmatmul.bf16.vlgmr.msra.gmra.mxu2 %v14130_v38 }
 0x583   : > { %v13408_v19 = vld [vmem:[%s13836_s10 + $0x1dd4] sm:$0xf]  ;;  %v11924_v46 = vor.u32 %v13344_v30, %v11921_v15  ;;  %7692 = vmatpush.bf16.msrb.mxu0 %v11668_v32 }
 0x584   : > { %v12177_v23 = vld [vmem:[%s13836_s10 + $0x1df0] sm:$0xf0]  ;;  %7687 = vmatmul.bf16.vlgmr.msra.gmra.mxu3 %v14136_v43 }
 0x585   : > { %v13472_v63 = vld [vmem:[%s13836_s10 + $0x1fd4] sm:$0xf]  ;;  %v12180_v48 = vor.u32 %v13408_v19, %v12177_v23  ;;  %7705 = vmatpush.bf16.msrb.mxu1 %v11924_v46 }
 0x586   : > { %v12433_v51 = vld [vmem:[%s13836_s10 + $0x1ff0] sm:$0xf0] }
 0x587   : > { %v13272_v44 = vld [vmem:[%s13836_s10 + $0x1994] sm:$0xf]  ;;  %v12436_v57 = vor.u32 %v13472_v63, %v12433_v51  ;;  %7718 = vmatpush.bf16.msrb.mxu2 %v12180_v48 }
 0x588   : > { %v11633_v49 = vld [vmem:[%s13836_s10 + $0x19b0] sm:$0xf0] }
 0x589   : > { %v13336_v14 = vld [vmem:[%s13836_s10 + $0x1b94] sm:$0xf]  ;;  %v11636_v59 = vor.u32 %v13272_v44, %v11633_v49  ;;  %7731 = vmatpush.bf16.msrb.mxu3 %v12436_v57 }
 0x58a   : > { %v11889_v61 = vld [vmem:[%s13836_s10 + $0x1bb0] sm:$0xf0] }
 0x58b   : > { %v13400_v18 = vld [vmem:[%s13836_s10 + $0x1d94] sm:$0xf]  ;;  %v11892_v62 = vor.u32 %v13336_v14, %v11889_v61  ;;  %7693 = vmatpush.bf16.msrb.mxu0 %v11636_v59  ;;  %v7390_v59 = vadd.f32 %v15607_v7, %v15553_v11 }
 0x58c   : > { %v12145_v52 = vld [vmem:[%s13836_s10 + $0x1db0] sm:$0xf0] }
 0x58d   : > { %v13464_v1 = vld [vmem:[%s13836_s10 + $0x1f94] sm:$0xf]  ;;  %v12148_v10 = vor.u32 %v13400_v18, %v12145_v52  ;;  %7706 = vmatpush.bf16.msrb.mxu1 %v11892_v62 }
 0x58e   : > { %v12401_v47 = vld [vmem:[%s13836_s10 + $0x1fb0] sm:$0xf0] }
 0x58f   : > { %v13264_v55 = vld [vmem:[%s13836_s10 + $0x1954] sm:$0xf]  ;;  %v12404_v60 = vor.u32 %v13464_v1, %v12401_v47  ;;  %7719 = vmatpush.bf16.msrb.mxu2 %v12148_v10 }
 0x590   : > { %v11601_v4 = vld [vmem:[%s13836_s10 + $0x1970] sm:$0xf0] }
 0x591   : > { %v13328_v3 = vld [vmem:[%s13836_s10 + $0x1b54] sm:$0xf]  ;;  %v11604_v21 = vor.u32 %v13264_v55, %v11601_v4  ;;  %7732 = vmatpush.bf16.msrb.mxu3 %v12404_v60 }
 0x592   : > { %v11857_v5 = vld [vmem:[%s13836_s10 + $0x1b70] sm:$0xf0] }
 0x593   : > { %v13392_v45 = vld [vmem:[%s13836_s10 + $0x1d54] sm:$0xf]  ;;  %v11860_v12 = vor.u32 %v13328_v3, %v11857_v5  ;;  %7694 = vmatpush.bf16.msrb.mxu0 %v11604_v21  ;;  %v15700_v5 = vpop.f32.mrf.mxu2  ;;  %v7443_v21 = vpop.f32.mrf.mxu0 }
 0x594   : > { %v12113_v9 = vld [vmem:[%s13836_s10 + $0x1d70] sm:$0xf0] }
 0x595   : > { %v13456_v37 = vld [vmem:[%s13836_s10 + $0x1f54] sm:$0xf]  ;;  %v12116_v13 = vor.u32 %v13392_v45, %v12113_v9  ;;  %7707 = vmatpush.bf16.msrb.mxu1 %v11860_v12 }
 0x596   : > { %v12369_v17 = vld [vmem:[%s13836_s10 + $0x1f70] sm:$0xf0] }
 0x597   : > { %v13256_v16 = vld [vmem:[%s13836_s10 + $0x1914] sm:$0xf]  ;;  %v12372_v0 = vor.u32 %v13456_v37, %v12369_v17  ;;  %7720 = vmatpush.bf16.msrb.mxu2 %v12116_v13  ;;  %v15705_v17 = vpop.f32.mrf.mxu3  ;;  %v7456_v13 = vpop.f32.mrf.mxu1 }
 0x598   : > { %v11569_v6 = vld [vmem:[%s13836_s10 + $0x1930] sm:$0xf0]  ;;  %v12709_v13 = vld [vmem:[%s13836_s10 + $0x7f4] sm:$0xf0] }
 0x599   : > { %v13320_v30 = vld [vmem:[%s13836_s10 + $0x1b14] sm:$0xf]  ;;  %v11572_v51 = vor.u32 %v13256_v16, %v11569_v6  ;;  %7733 = vmatpush.bf16.msrb.mxu3 %v12372_v0  ;;  %v7403_v16 = vadd.f32 %v15612_v8, %v7390_v59 }
 0x59a   : > { %v11825_v15 = vld [vmem:[%s13836_s10 + $0x1b30] sm:$0xf0] }
 0x59b   : > { %v13384_v19 = vld [vmem:[%s13836_s10 + $0x1d14] sm:$0xf]  ;;  %v11828_v32 = vor.u32 %v13320_v30, %v11825_v15  ;;  %7695 = vmatpush.bf16.msrb.mxu0 %v11572_v51 }
 0x59c   : > { %v12081_v23 = vld [vmem:[%s13836_s10 + $0x1d30] sm:$0xf0] }
 0x59d   : > { %v13448_v28 = vld [vmem:[%s13836_s10 + $0x1f14] sm:$0xf]  ;;  %v12084_v46 = vor.u32 %v13384_v19, %v12081_v23  ;;  %7708 = vmatpush.bf16.msrb.mxu1 %v11828_v32 }
 0x59e   : > { %v12337_v63 = vld [vmem:[%s13836_s10 + $0x1f30] sm:$0xf0] }
 0x59f   : > { %v13248_v48 = vld [vmem:[%s13836_s10 + $0x18d4] sm:$0xf]  ;;  %v12340_v14 = vor.u32 %v13448_v28, %v12337_v63  ;;  %7721 = vmatpush.bf16.msrb.mxu2 %v12084_v46 }
 0x5a0   : > { %v11537_v44 = vld [vmem:[%s13836_s10 + $0x18f0] sm:$0xf0] }
 0x5a1   : > { %v13312_v49 = vld [vmem:[%s13836_s10 + $0x1ad4] sm:$0xf]  ;;  %v11540_v47 = vor.u32 %v13248_v48, %v11537_v44  ;;  %7734 = vmatpush.bf16.msrb.mxu3 %v12340_v14 }
 0x5a2   : > { %v11793_v57 = vld [vmem:[%s13836_s10 + $0x1af0] sm:$0xf0] }
 0x5a3   : > { %v13376_v61 = vld [vmem:[%s13836_s10 + $0x1cd4] sm:$0xf]  ;;  %v11796_v62 = vor.u32 %v13312_v49, %v11793_v57  ;;  %7696 = vmatpush.bf16.msrb.mxu0 %v11540_v47  ;;  %v7416_v49 = vadd.f32 %v15622_v20, %v7403_v16  ;;  %v8599_v20 = vld [vmem:[%s13836_s10 + $0x1d8] sm:$0xf] }
 0x5a4   : > { %v12049_v18 = vld [vmem:[%s13836_s10 + $0x1cf0] sm:$0xf0] }
 0x5a5   : > { %v13440_v52 = vld [vmem:[%s13836_s10 + $0x1ed4] sm:$0xf]  ;;  %v12052_v10 = vor.u32 %v13376_v61, %v12049_v18  ;;  %7709 = vmatpush.bf16.msrb.mxu1 %v11796_v62 }
 0x5a6   : > { %v12305_v1 = vld [vmem:[%s13836_s10 + $0x1ef0] sm:$0xf0] }
 0x5a7   : > { %v13240_v55 = vld [vmem:[%s13836_s10 + $0x1894] sm:$0xf]  ;;  %v12308_v60 = vor.u32 %v13440_v52, %v12305_v1  ;;  %7722 = vmatpush.bf16.msrb.mxu2 %v12052_v10  ;;  %v7469_v10 = vpop.f32.mrf.mxu2 }
 0x5a8   : > { %v11505_v4 = vld [vmem:[%s13836_s10 + $0x18b0] sm:$0xf0] }
 0x5a9   : > { %v13304_v3 = vld [vmem:[%s13836_s10 + $0x1a94] sm:$0xf]  ;;  %v11508_v12 = vor.u32 %v13240_v55, %v11505_v4  ;;  %7735 = vmatpush.bf16.msrb.mxu3 %v12308_v60  ;;  %v12517_v55 = vld [vmem:[%s13836_s10 + $0x1f4] sm:$0xf0] }
 0x5aa   : > { %v11761_v45 = vld [vmem:[%s13836_s10 + $0x1ab0] sm:$0xf0]  ;;  %v8855_v4 = vld [vmem:[%s13836_s10 + $0x3d8] sm:$0xf] }
 0x5ab   : > { %v13368_v9 = vld [vmem:[%s13836_s10 + $0x1c94] sm:$0xf]  ;;  %v11764_v6 = vor.u32 %v13304_v3, %v11761_v45  ;;  %7697 = vmatpush.bf16.msrb.mxu0 %v11508_v12  ;;  %v7482_v3 = vpop.f32.mrf.mxu3  ;;  %v12581_v45 = vld [vmem:[%s13836_s10 + $0x3f4] sm:$0xf0] }
 0x5ac   : > { %v12017_v37 = vld [vmem:[%s13836_s10 + $0x1cb0] sm:$0xf0]  ;;  %v9367_v12 = vld [vmem:[%s13836_s10 + $0x7d8] sm:$0xf] }
 0x5ad   : > { %v13432_v11 = vld [vmem:[%s13836_s10 + $0x1e94] sm:$0xf]  ;;  %v12020_v30 = vor.u32 %v13368_v9, %v12017_v37  ;;  %7710 = vmatpush.bf16.msrb.mxu1 %v11764_v6  ;;  %v9111_v9 = vld [vmem:[%s13836_s10 + $0x5d8] sm:$0xf]  ;;  %v8600_v6 = vor.u32 %v12517_v55, %v8599_v20 }
 0x5ae   : > { %v12273_v7 = vld [vmem:[%s13836_s10 + $0x1eb0] sm:$0xf0]  ;;  %v12645_v37 = vld [vmem:[%s13836_s10 + $0x5f4] sm:$0xf0] }
 0x5af   : > { %v13232_v0 = vld [vmem:[%s13836_s10 + $0x1854] sm:$0xf]  ;;  %v12276_v23 = vor.u32 %v13432_v11, %v12273_v7  ;;  %7723 = vmatpush.bf16.msrb.mxu2 %v12020_v30  ;;  %v7429_v11 = vadd.f32 %v15627_v40, %v7416_v49  ;;  %v12509_v40 = vld [vmem:[%s13836_s10 + $0x1b4] sm:$0xf0] }
 0x5b0   : > { %v11473_v15 = vld [vmem:[%s13836_s10 + $0x1870] sm:$0xf0]  ;;  %v8759_v3 = vld [vmem:[%s13836_s10 + $0x318] sm:$0xf] }
 0x5b1   : > { %v13296_v19 = vld [vmem:[%s13836_s10 + $0x1a54] sm:$0xf]  ;;  %v11476_v46 = vor.u32 %v13232_v0, %v11473_v15  ;;  %7736 = vmatpush.bf16.msrb.mxu3 %v12276_v23  ;;  %v7442_v30 = vadd.f32 %v15681_v27, %v7429_v11  ;;  %v8856_v0 = vor.u32 %v12581_v45, %v8855_v4  ;;  %v9112_v15 = vor.u32 %v12645_v37, %v9111_v9  ;;  %v8823_v23 = vld [vmem:[%s13836_s10 + $0x398] sm:$0xf] }
 0x5b2   : > { %v11729_v28 = vld [vmem:[%s13836_s10 + $0x1a70] sm:$0xf0]  ;;  %v12493_v4 = vld [vmem:[%s13836_s10 + $0x134] sm:$0xf0] }
 0x5b3   : > { %v13360_v63 = vld [vmem:[%s13836_s10 + $0x1c54] sm:$0xf]  ;;  %v11732_v14 = vor.u32 %v13296_v19, %v11729_v28  ;;  %7698 = vmatpush.bf16.msrb.mxu0 %v11476_v46  ;;  %v8567_v19 = vld [vmem:[%s13836_s10 + $0x198] sm:$0xf]  ;;  %v9368_v28 = vor.u32 %v12709_v13, %v9367_v12 }
 0x5b4   : > { %v11985_v51 = vld [vmem:[%s13836_s10 + $0x1c70] sm:$0xf0]  ;;  %v12701_v46 = vld [vmem:[%s13836_s10 + $0x7b4] sm:$0xf0]  ;;  %v8568_v27 = vor.u32 %v12509_v40, %v8567_v19 }
 0x5b5   : > { %v13424_v32 = vld [vmem:[%s13836_s10 + $0x1e54] sm:$0xf]  ;;  %v11988_v57 = vor.u32 %v13360_v63, %v11985_v51  ;;  %7711 = vmatpush.bf16.msrb.mxu1 %v11732_v14  ;;  %v12573_v63 = vld [vmem:[%s13836_s10 + $0x3b4] sm:$0xf0] }
 0x5b6   : > { %v12241_v8 = vld [vmem:[%s13836_s10 + $0x1e70] sm:$0xf0]  ;;  %v9079_v51 = vld [vmem:[%s13836_s10 + $0x598] sm:$0xf] }
 0x5b7   : > { %v13224_v48 = vld [vmem:[%s13836_s10 + $0x1814] sm:$0xf]  ;;  %v12244_v1 = vor.u32 %v13424_v32, %v12241_v8  ;;  %7724 = vmatpush.bf16.msrb.mxu2 %v11988_v57  ;;  %v12637_v32 = vld [vmem:[%s13836_s10 + $0x5b4] sm:$0xf0] }
 0x5b8   : > { %v11441_v44 = vld [vmem:[%s13836_s10 + $0x1830] sm:$0xf0]  ;;  %v9335_v8 = vld [vmem:[%s13836_s10 + $0x798] sm:$0xf]  ;;  %v9080_v49 = vor.u32 %v12637_v32, %v9079_v51 }
 0x5b9   : > { %v13288_v61 = vld [vmem:[%s13836_s10 + $0x1a14] sm:$0xf]  ;;  %v11444_v60 = vor.u32 %v13224_v48, %v11441_v44  ;;  %7737 = vmatpush.bf16.msrb.mxu3 %v12244_v1  ;;  %v7455_v48 = vadd.f32 %v15685_v22, %v7442_v30  ;;  %v8824_v44 = vor.u32 %v12573_v63, %v8823_v23  ;;  %v8535_v14 = vld [vmem:[%s13836_s10 + $0x158] sm:$0xf] }
 0x5ba   : > { %v11697_v18 = vld [vmem:[%s13836_s10 + $0x1a30] sm:$0xf0]  ;;  %v12501_v57 = vld [vmem:[%s13836_s10 + $0x174] sm:$0xf0] }
 0x5bb   : > { %v13352_v52 = vld [vmem:[%s13836_s10 + $0x1c14] sm:$0xf]  ;;  %v11700_v7 = vor.u32 %v13288_v61, %v11697_v18  ;;  %7699 = vmatpush.bf16.msrb.mxu0 %v11444_v60  ;;  %v8791_v61 = vld [vmem:[%s13836_s10 + $0x358] sm:$0xf]  ;;  %v9336_v18 = vor.u32 %v12701_v46, %v9335_v8  ;;  %v7468_v22 = vadd.f32 %v15700_v5, %v7455_v48  ;;  %v8536_v10 = vor.u32 %v12501_v57, %v8535_v14 }
 0x5bc   : > { %v11953_v47 = vld [vmem:[%s13836_s10 + $0x1c30] sm:$0xf0]  ;;  %v9047_v1 = vld [vmem:[%s13836_s10 + $0x558] sm:$0xf] }
 0x5bd   : > { %v13416_v59 = vld [vmem:[%s13836_s10 + $0x1e14] sm:$0xf]  ;;  %v11956_v21 = vor.u32 %v13352_v52, %v11953_v47  ;;  %7712 = vmatpush.bf16.msrb.mxu1 %v11700_v7  ;;  %v12565_v52 = vld [vmem:[%s13836_s10 + $0x374] sm:$0xf0]  ;;  %v7481_v11 = vadd.f32 %v15705_v17, %v7468_v22  ;;  %v7493_v7 = vpop.f32.mrf.mxu0  ;;  %v7532_v22 = vpop.f32.mrf.mxu3 }
 0x5be   : > { %v12209_v62 = vld [vmem:[%s13836_s10 + $0x1e30] sm:$0xf0]  ;;  %7700 = vmatmul.bf16.vlgmr.msrb.gmra.mxu0 %v14201_v29  ;;  %v12629_v47 = vld [vmem:[%s13836_s10 + $0x574] sm:$0xf0]  ;;  %v8792_v20 = vor.u32 %v12565_v52, %v8791_v61  ;;  %v7519_v61 = vpop.f32.mrf.mxu2 }
 0x5bf   : > { %v12212_v16 = vor.u32 %v13416_v59, %v12209_v62  ;;  %7725 = vmatpush.bf16.msrb.mxu2 %v11956_v21  ;;  %7744 = vmatpush.bf16.msra.mxu0 %v8600_v6  ;;  %v9303_v59 = vld [vmem:[%s13836_s10 + $0x758] sm:$0xf]  ;;  %v9048_v55 = vor.u32 %v12629_v47, %v9047_v1  ;;  %v7494_v6 = vadd.f32 %v7493_v7, %v7481_v11 }
 0x5c0   : > { %7713 = vmatmul.bf16.vlgmr.msrb.gmra.mxu1 %v14208_v36  ;;  %v12693_v62 = vld [vmem:[%s13836_s10 + $0x774] sm:$0xf0] }
 0x5c1   : > { %7738 = vmatpush.bf16.msrb.mxu3 %v12212_v16  ;;  %7757 = vmatpush.bf16.msra.mxu1 %v8856_v0  ;;  %v8503_v5 = vld [vmem:[%s13836_s10 + $0x118] sm:$0xf]  ;;  %v9304_v60 = vor.u32 %v12693_v62, %v9303_v59  ;;  %v7506_v16 = vpop.f32.mrf.mxu1 }
 0x5c2   : > { %7726 = vmatmul.bf16.vlgmr.msrb.gmra.mxu2 %v14206_v35  ;;  %v12557_v45 = vld [vmem:[%s13836_s10 + $0x334] sm:$0xf0]  ;;  %v8504_v13 = vor.u32 %v12493_v4, %v8503_v5  ;;  %v7507_v46 = vadd.f32 %v7506_v16, %v7494_v6 }
 0x5c3   : > { %7770 = vmatpush.bf16.msra.mxu2 %v9112_v15  ;;  %7745 = vmatpush.bf16.msra.mxu0 %v8568_v27  ;;  %v9015_v9 = vld [vmem:[%s13836_s10 + $0x518] sm:$0xf]  ;;  %v8760_v30 = vor.u32 %v12557_v45, %v8759_v3 }
 0x5c4   : > { %7739 = vmatmul.bf16.vlgmr.msrb.gmra.mxu3 %v14212_v42  ;;  %v12621_v37 = vld [vmem:[%s13836_s10 + $0x534] sm:$0xf0]  ;;  %v7520_v47 = vadd.f32 %v7519_v61, %v7507_v46 }
 0x5c5   : > { %7783 = vmatpush.bf16.msra.mxu3 %v9368_v28  ;;  %7758 = vmatpush.bf16.msra.mxu1 %v8824_v44  ;;  %v9271_v21 = vld [vmem:[%s13836_s10 + $0x718] sm:$0xf]  ;;  %v9016_v0 = vor.u32 %v12621_v37, %v9015_v9 }
 0x5c6   : > { %v12685_v12 = vld [vmem:[%s13836_s10 + $0x734] sm:$0xf0]  ;;  %v7533_v5 = vadd.f32 %v7532_v22, %v7520_v47 }
 0x5c7   : > { %7771 = vmatpush.bf16.msra.mxu2 %v9080_v49  ;;  %7746 = vmatpush.bf16.msra.mxu0 %v8536_v10  ;;  %v8471_v15 = vld [vmem:[%s13836_s10 + $0xd8] sm:$0xf]  ;;  %v9272_v40 = vor.u32 %v12685_v12, %v9271_v21  ;;  %v7495_v10 = vpop.f32.mrf.mxu0 }
 0x5c8   : > { %v12485_v19 = vld [vmem:[%s13836_s10 + $0xf4] sm:$0xf0]  ;;  %13565 = vtanh.f32 %v7533_v5 }
 0x5c9   : > { %7784 = vmatpush.bf16.msra.mxu3 %v9336_v18  ;;  %7759 = vmatpush.bf16.msra.mxu1 %v8792_v20  ;;  %v8727_v17 = vld [vmem:[%s13836_s10 + $0x2d8] sm:$0xf]  ;;  %v8472_v8 = vor.u32 %v12485_v19, %v8471_v15 }
 0x5ca   : > { %v12549_v23 = vld [vmem:[%s13836_s10 + $0x2f4] sm:$0xf0] }
 0x5cb   : > { %7772 = vmatpush.bf16.msra.mxu2 %v9048_v55  ;;  %v8983_v28 = vld [vmem:[%s13836_s10 + $0x4d8] sm:$0xf]  ;;  %7747 = vmatpush.bf16.msra.mxu0 %v8504_v13  ;;  %v8728_v27 = vor.u32 %v12549_v23, %v8727_v17  ;;  %v7508_v55 = vpop.f32.mrf.mxu1 }
 0x5cc   : > { %v12613_v63 = vld [vmem:[%s13836_s10 + $0x4f4] sm:$0xf0] }
 0x5cd   : > { %7785 = vmatpush.bf16.msra.mxu3 %v9304_v60  ;;  %v9239_v51 = vld [vmem:[%s13836_s10 + $0x6d8] sm:$0xf]  ;;  %7760 = vmatpush.bf16.msra.mxu1 %v8760_v30  ;;  %v8984_v48 = vor.u32 %v12613_v63, %v8983_v28 }
 0x5ce   : > { %v12677_v32 = vld [vmem:[%s13836_s10 + $0x6f4] sm:$0xf0]  ;;  %v15806_v61 = vpop.eup %13565 }
 0x5cf   : > { %7773 = vmatpush.bf16.msra.mxu2 %v9016_v0  ;;  %v8439_v44 = vld [vmem:[%s13836_s10 + $0x98] sm:$0xf]  ;;  %v9240_v57 = vor.u32 %v12677_v32, %v9239_v51  ;;  %7748 = vmatpush.bf16.msra.mxu0 %v8472_v8  ;;  %v7521_v32 = vpop.f32.mrf.mxu2  ;;  %8177 = vst [vmem:[%s14592_s25 + $0x20] sm:$0xff] %v15806_v61 }
 0x5d0   : > { %v12477_v49 = vld [vmem:[%s13836_s10 + $0xb4] sm:$0xf0] }
 0x5d1   : > { %v8695_v14 = vld [vmem:[%s13836_s10 + $0x298] sm:$0xf]  ;;  %7786 = vmatpush.bf16.msra.mxu3 %v9272_v40  ;;  %v8440_v20 = vor.u32 %v12477_v49, %v8439_v44  ;;  %7761 = vmatpush.bf16.msra.mxu1 %v8728_v27 }
 0x5d2   : > { %v12541_v18 = vld [vmem:[%s13836_s10 + $0x2b4] sm:$0xf0] }
 0x5d3   : > { %v8951_v52 = vld [vmem:[%s13836_s10 + $0x498] sm:$0xf]  ;;  %7774 = vmatpush.bf16.msra.mxu2 %v8984_v48  ;;  %v8696_v4 = vor.u32 %v12541_v18, %v8695_v14  ;;  %7749 = vmatpush.bf16.msra.mxu0 %v8440_v20  ;;  %v7534_v48 = vpop.f32.mrf.mxu3 }
 0x5d4   : > { %v12605_v1 = vld [vmem:[%s13836_s10 + $0x4b4] sm:$0xf0] }
 0x5d5   : > { %v9207_v59 = vld [vmem:[%s13836_s10 + $0x698] sm:$0xf]  ;;  %v8952_v3 = vor.u32 %v12605_v1, %v8951_v52  ;;  %7787 = vmatpush.bf16.msra.mxu3 %v9240_v57  ;;  %7762 = vmatpush.bf16.msra.mxu1 %v8696_v4 }
 0x5d6   : > { %v12669_v62 = vld [vmem:[%s13836_s10 + $0x6b4] sm:$0xf0] }
 0x5d7   : > { %v8407_v60 = vld [vmem:[%s13836_s10 + $0x58] sm:$0xf]  ;;  %v9208_v37 = vor.u32 %v12669_v62, %v9207_v59  ;;  %7775 = vmatpush.bf16.msra.mxu2 %v8952_v3 }
 0x5d8   : > { %v12469_v45 = vld [vmem:[%s13836_s10 + $0x74] sm:$0xf0] }
 0x5d9   : > { %v8663_v9 = vld [vmem:[%s13836_s10 + $0x258] sm:$0xf]  ;;  %v8408_v16 = vor.u32 %v12469_v45, %v8407_v60  ;;  %7788 = vmatpush.bf16.msra.mxu3 %v9208_v37 }
 0x5da   : > { %v12533_v11 = vld [vmem:[%s13836_s10 + $0x274] sm:$0xf0] }
 0x5db   : > { %v8919_v7 = vld [vmem:[%s13836_s10 + $0x458] sm:$0xf]  ;;  %v8664_v0 = vor.u32 %v12533_v11, %v8663_v9  ;;  %7750 = vmatpush.bf16.msra.mxu0 %v8408_v16 }
 0x5dc   : > { %v12597_v21 = vld [vmem:[%s13836_s10 + $0x474] sm:$0xf0] }
 0x5dd   : > { %v9175_v12 = vld [vmem:[%s13836_s10 + $0x658] sm:$0xf]  ;;  %v8920_v15 = vor.u32 %v12597_v21, %v8919_v7  ;;  %7763 = vmatpush.bf16.msra.mxu1 %v8664_v0 }
 0x5de   : > { %v12661_v13 = vld [vmem:[%s13836_s10 + $0x674] sm:$0xf0] }
 0x5df   : > { %v8375_v6 = vld [vmem:[%s13836_s10 + $0x18] sm:$0xf]  ;;  %v9176_v23 = vor.u32 %v12661_v13, %v9175_v12  ;;  %7776 = vmatpush.bf16.msra.mxu2 %v8920_v15 }
 0x5e0   : > { %v12461_v30 = vld [vmem:[%s13836_s10 + $0x34] sm:$0xf0] }
 0x5e1   : > { %v8631_v19 = vld [vmem:[%s13836_s10 + $0x218] sm:$0xf]  ;;  %v8376_v44 = vor.u32 %v12461_v30, %v8375_v6  ;;  %7789 = vmatpush.bf16.msra.mxu3 %v9176_v23 }
 0x5e2   : > { %v12525_v17 = vld [vmem:[%s13836_s10 + $0x234] sm:$0xf0] }
 0x5e3   : > { %v8887_v40 = vld [vmem:[%s13836_s10 + $0x418] sm:$0xf]  ;;  %v8632_v18 = vor.u32 %v12525_v17, %v8631_v19  ;;  %7751 = vmatpush.bf16.msra.mxu0 %v8376_v44 }
 0x5e4   : > { %v12589_v28 = vld [vmem:[%s13836_s10 + $0x434] sm:$0xf0] }
 0x5e5   : > { %v9143_v63 = vld [vmem:[%s13836_s10 + $0x618] sm:$0xf]  ;;  %v8888_v52 = vor.u32 %v12589_v28, %v8887_v40  ;;  %7764 = vmatpush.bf16.msra.mxu1 %v8632_v18 }
 0x5e6   : > { %v12653_v51 = vld [vmem:[%s13836_s10 + $0x634] sm:$0xf0]  ;;  %7752 = vmatmul.bf16.vlgmr.msra.gmra.mxu0 %v13991_v25 }
 0x5e7   : > { %v9623_v8 = vld [vmem:[%s13836_s10 + $0x9d8] sm:$0xf]  ;;  %v9144_v22 = vor.u32 %v12653_v51, %v9143_v63  ;;  %7777 = vmatpush.bf16.msra.mxu2 %v8888_v52  ;;  %v7545_v52 = vpop.f32.mrf.mxu0 }
 0x5e8   : > { %v12773_v46 = vld [vmem:[%s13836_s10 + $0x9f4] sm:$0xf0]  ;;  %7765 = vmatmul.bf16.vlgmr.msra.gmra.mxu1 %v14006_v41 }
 0x5e9   : > { %v9879_v27 = vld [vmem:[%s13836_s10 + $0xbd8] sm:$0xf]  ;;  %v9624_v59 = vor.u32 %v12773_v46, %v9623_v8  ;;  %7790 = vmatpush.bf16.msra.mxu3 %v9144_v22  ;;  %v13576_v8 = vld [vmem:[%s13842_s8] sm:$0xff] }
 0x5ea   : > { %v12837_v49 = vld [vmem:[%s13836_s10 + $0xbf4] sm:$0xf0]  ;;  %7778 = vmatmul.bf16.vlgmr.msra.gmra.mxu2 %v13989_v24  ;;  %v1365_v46 = vperm.slane %v13576_v8, 5 }
 0x5eb   : > { %v10135_v14 = vld [vmem:[%s13836_s10 + $0xdd8] sm:$0xf]  ;;  %v9880_v62 = vor.u32 %v12837_v49, %v9879_v27  ;;  %7796 = vmatpush.bf16.msrb.mxu0 %v9624_v59 }
 0x5ec   : > { %v12901_v57 = vld [vmem:[%s13836_s10 + $0xdf4] sm:$0xf0]  ;;  %7791 = vmatmul.bf16.vlgmr.msra.gmra.mxu3 %v13996_v31 }
 0x5ed   : > { %v10391_v1 = vld [vmem:[%s13836_s10 + $0xfd8] sm:$0xf]  ;;  %v10136_v10 = vor.u32 %v12901_v57, %v10135_v14  ;;  %7809 = vmatpush.bf16.msrb.mxu1 %v9880_v62 }
 0x5ee   : > { %v12965_v47 = vld [vmem:[%s13836_s10 + $0xff4] sm:$0xf0] }
 0x5ef   : > { %v9591_v20 = vld [vmem:[%s13836_s10 + $0x998] sm:$0xf]  ;;  %v10392_v4 = vor.u32 %v12965_v47, %v10391_v1  ;;  %7822 = vmatpush.bf16.msrb.mxu2 %v10136_v10  ;;  %v7546_v10 = vadd.f32 %v7545_v52, %v1365_v46 }
 0x5f0   : > { %v12765_v55 = vld [vmem:[%s13836_s10 + $0x9b4] sm:$0xf0] }
 0x5f1   : > { %v9847_v5 = vld [vmem:[%s13836_s10 + $0xb98] sm:$0xf]  ;;  %v9592_v11 = vor.u32 %v12765_v55, %v9591_v20  ;;  %7835 = vmatpush.bf16.msrb.mxu3 %v10392_v4  ;;  %v7558_v20 = vpop.f32.mrf.mxu1 }
 0x5f2   : > { %v12829_v3 = vld [vmem:[%s13836_s10 + $0xbb4] sm:$0xf0] }
 0x5f3   : > { %v10103_v60 = vld [vmem:[%s13836_s10 + $0xd98] sm:$0xf]  ;;  %v9848_v7 = vor.u32 %v12829_v3, %v9847_v5  ;;  %7797 = vmatpush.bf16.msrb.mxu0 %v9592_v11 }
 0x5f4   : > { %v12893_v45 = vld [vmem:[%s13836_s10 + $0xdb4] sm:$0xf0] }
 0x5f5   : > { %v10359_v9 = vld [vmem:[%s13836_s10 + $0xf98] sm:$0xf]  ;;  %v10104_v21 = vor.u32 %v12893_v45, %v10103_v60  ;;  %7810 = vmatpush.bf16.msrb.mxu1 %v9848_v7 }
 0x5f6   : > { %v12957_v37 = vld [vmem:[%s13836_s10 + $0xfb4] sm:$0xf0] }
 0x5f7   : > { %v9559_v12 = vld [vmem:[%s13836_s10 + $0x958] sm:$0xf]  ;;  %v10360_v6 = vor.u32 %v12957_v37, %v10359_v9  ;;  %7823 = vmatpush.bf16.msrb.mxu2 %v10104_v21  ;;  %v7559_v9 = vadd.f32 %v7558_v20, %v7546_v10 }
 0x5f8   : > { %v12757_v13 = vld [vmem:[%s13836_s10 + $0x974] sm:$0xf0] }
 0x5f9   : > { %v9815_v16 = vld [vmem:[%s13836_s10 + $0xb58] sm:$0xf]  ;;  %v9560_v40 = vor.u32 %v12757_v13, %v9559_v12  ;;  %7836 = vmatpush.bf16.msrb.mxu3 %v10360_v6 }
 0x5fa   : > { %v12821_v30 = vld [vmem:[%s13836_s10 + $0xb74] sm:$0xf0] }
 0x5fb   : > { %v10071_v0 = vld [vmem:[%s13836_s10 + $0xd58] sm:$0xf]  ;;  %v9816_v28 = vor.u32 %v12821_v30, %v9815_v16  ;;  %7798 = vmatpush.bf16.msrb.mxu0 %v9560_v40  ;;  %v7571_v16 = vpop.f32.mrf.mxu2 }
 0x5fc   : > { %v12885_v15 = vld [vmem:[%s13836_s10 + $0xd74] sm:$0xf0] }
 0x5fd   : > { %v10327_v19 = vld [vmem:[%s13836_s10 + $0xf58] sm:$0xf]  ;;  %v10072_v63 = vor.u32 %v12885_v15, %v10071_v0  ;;  %7811 = vmatpush.bf16.msrb.mxu1 %v9816_v28 }
 0x5fe   : > { %v12949_v17 = vld [vmem:[%s13836_s10 + $0xf74] sm:$0xf0] }
 0x5ff   : > { %v9527_v23 = vld [vmem:[%s13836_s10 + $0x918] sm:$0xf]  ;;  %v10328_v27 = vor.u32 %v12949_v17, %v10327_v19  ;;  %7824 = vmatpush.bf16.msrb.mxu2 %v10072_v63  ;;  %v7572_v19 = vadd.f32 %v7571_v16, %v7559_v9  ;;  %v7584_v17 = vpop.f32.mrf.mxu3 }
 0x600   : > { %v12749_v51 = vld [vmem:[%s13836_s10 + $0x934] sm:$0xf0] }
 0x601   : > { %v9783_v32 = vld [vmem:[%s13836_s10 + $0xb18] sm:$0xf]  ;;  %v9528_v18 = vor.u32 %v12749_v51, %v9527_v23  ;;  %7837 = vmatpush.bf16.msrb.mxu3 %v10328_v27  ;;  %v15857_v63 = vadd.f32 %v7584_v17, %v7572_v19  ;;  %v7547_v51 = vpop.f32.mrf.mxu0 }
 0x602   : > { %v12813_v48 = vld [vmem:[%s13836_s10 + $0xb34] sm:$0xf0] }
 0x603   : > { %v10039_v44 = vld [vmem:[%s13836_s10 + $0xd18] sm:$0xf]  ;;  %v9784_v1 = vor.u32 %v12813_v48, %v9783_v32  ;;  %7799 = vmatpush.bf16.msrb.mxu0 %v9528_v18 }
 0x604   : > { %v12877_v49 = vld [vmem:[%s13836_s10 + $0xd34] sm:$0xf0] }
 0x605   : > { %v10295_v14 = vld [vmem:[%s13836_s10 + $0xf18] sm:$0xf]  ;;  %v10040_v47 = vor.u32 %v12877_v49, %v10039_v44  ;;  %7812 = vmatpush.bf16.msrb.mxu1 %v9784_v1  ;;  %v7560_v44 = vpop.f32.mrf.mxu1 }
 0x606   : > { %v12941_v57 = vld [vmem:[%s13836_s10 + $0xf34] sm:$0xf0] }
 0x607   : > { %v9495_v22 = vld [vmem:[%s13836_s10 + $0x8d8] sm:$0xf]  ;;  %v10296_v55 = vor.u32 %v12941_v57, %v10295_v14  ;;  %7825 = vmatpush.bf16.msrb.mxu2 %v10040_v47 }
 0x608   : > { %v12741_v59 = vld [vmem:[%s13836_s10 + $0x8f4] sm:$0xf0] }
 0x609   : > { %v9751_v62 = vld [vmem:[%s13836_s10 + $0xad8] sm:$0xf]  ;;  %v9496_v37 = vor.u32 %v12741_v59, %v9495_v22  ;;  %7838 = vmatpush.bf16.msrb.mxu3 %v10296_v55 }
 0x60a   : > { %v12805_v5 = vld [vmem:[%s13836_s10 + $0xaf4] sm:$0xf0] }
 0x60b   : > { %v10007_v4 = vld [vmem:[%s13836_s10 + $0xcd8] sm:$0xf]  ;;  %v9752_v11 = vor.u32 %v12805_v5, %v9751_v62  ;;  %7800 = vmatpush.bf16.msrb.mxu0 %v9496_v37  ;;  %v7586_v37 = vpop.f32.mrf.mxu3 }
 0x60c   : > { %v12869_v3 = vld [vmem:[%s13836_s10 + $0xcf4] sm:$0xf0] }
 0x60d   : > { %v10263_v60 = vld [vmem:[%s13836_s10 + $0xed8] sm:$0xf]  ;;  %v10008_v7 = vor.u32 %v12869_v3, %v10007_v4  ;;  %7813 = vmatpush.bf16.msrb.mxu1 %v9752_v11  ;;  %v7573_v4 = vpop.f32.mrf.mxu2 }
 0x60e   : > { %v12933_v45 = vld [vmem:[%s13836_s10 + $0xef4] sm:$0xf0] }
 0x60f   : > { %v9463_v21 = vld [vmem:[%s13836_s10 + $0x898] sm:$0xf]  ;;  %v10264_v6 = vor.u32 %v12933_v45, %v10263_v60  ;;  %7826 = vmatpush.bf16.msrb.mxu2 %v10008_v7 }
 0x610   : > { %v12733_v12 = vld [vmem:[%s13836_s10 + $0x8b4] sm:$0xf0] }
 0x611   : > { %v9719_v13 = vld [vmem:[%s13836_s10 + $0xa98] sm:$0xf]  ;;  %v9464_v28 = vor.u32 %v12733_v12, %v9463_v21  ;;  %7839 = vmatpush.bf16.msrb.mxu3 %v10264_v6 }
 0x612   : > { %v12797_v30 = vld [vmem:[%s13836_s10 + $0xab4] sm:$0xf0] }
 0x613   : > { %v9975_v0 = vld [vmem:[%s13836_s10 + $0xc98] sm:$0xf]  ;;  %v9720_v32 = vor.u32 %v12797_v30, %v9719_v13  ;;  %7801 = vmatpush.bf16.msrb.mxu0 %v9464_v28 }
 0x614   : > { %v12861_v15 = vld [vmem:[%s13836_s10 + $0xcb4] sm:$0xf0] }
 0x615   : > { %v10231_v40 = vld [vmem:[%s13836_s10 + $0xe98] sm:$0xf]  ;;  %v9976_v8 = vor.u32 %v12861_v15, %v9975_v0  ;;  %7814 = vmatpush.bf16.msrb.mxu1 %v9720_v32 }
 0x616   : > { %v12925_v23 = vld [vmem:[%s13836_s10 + $0xeb4] sm:$0xf0] }
 0x617   : > { %v9431_v46 = vld [vmem:[%s13836_s10 + $0x858] sm:$0xf]  ;;  %v10232_v49 = vor.u32 %v12925_v23, %v10231_v40  ;;  %7827 = vmatpush.bf16.msrb.mxu2 %v9976_v8 }
 0x618   : > { %v12725_v27 = vld [vmem:[%s13836_s10 + $0x874] sm:$0xf0] }
 0x619   : > { %v9687_v48 = vld [vmem:[%s13836_s10 + $0xa58] sm:$0xf]  ;;  %v9432_v47 = vor.u32 %v12725_v27, %v9431_v46  ;;  %7840 = vmatpush.bf16.msrb.mxu3 %v10232_v49 }
 0x61a   : > { %v12789_v14 = vld [vmem:[%s13836_s10 + $0xa74] sm:$0xf0] }
 0x61b   : > { %v9943_v57 = vld [vmem:[%s13836_s10 + $0xc58] sm:$0xf]  ;;  %v9688_v62 = vor.u32 %v12789_v14, %v9687_v48  ;;  %7802 = vmatpush.bf16.msrb.mxu0 %v9432_v47 }
 0x61c   : > { %v12853_v18 = vld [vmem:[%s13836_s10 + $0xc74] sm:$0xf0] }
 0x61d   : > { %v10199_v52 = vld [vmem:[%s13836_s10 + $0xe58] sm:$0xf]  ;;  %v9944_v10 = vor.u32 %v12853_v18, %v9943_v57  ;;  %7815 = vmatpush.bf16.msrb.mxu1 %v9688_v62 }
 0x61e   : > { %v12917_v1 = vld [vmem:[%s13836_s10 + $0xe74] sm:$0xf0] }
 0x61f   : > { %v9399_v22 = vld [vmem:[%s13836_s10 + $0x818] sm:$0xf]  ;;  %v10200_v3 = vor.u32 %v12917_v1, %v10199_v52  ;;  %7828 = vmatpush.bf16.msrb.mxu2 %v9944_v10 }
 0x620   : > { %v12717_v59 = vld [vmem:[%s13836_s10 + $0x834] sm:$0xf0] }
 0x621   : > { %v9655_v20 = vld [vmem:[%s13836_s10 + $0xa18] sm:$0xf]  ;;  %v9400_v12 = vor.u32 %v12717_v59, %v9399_v22  ;;  %7841 = vmatpush.bf16.msrb.mxu3 %v10200_v3 }
 0x622   : > { %v12781_v55 = vld [vmem:[%s13836_s10 + $0xa34] sm:$0xf0] }
 0x623   : > { %v9911_v5 = vld [vmem:[%s13836_s10 + $0xc18] sm:$0xf]  ;;  %v9656_v30 = vor.u32 %v12781_v55, %v9655_v20  ;;  %7803 = vmatpush.bf16.msrb.mxu0 %v9400_v12 }
 0x624   : > { %v12845_v60 = vld [vmem:[%s13836_s10 + $0xc34] sm:$0xf0] }
 0x625   : > { %v10167_v45 = vld [vmem:[%s13836_s10 + $0xe18] sm:$0xf]  ;;  %v9912_v0 = vor.u32 %v12845_v60, %v9911_v5  ;;  %7816 = vmatpush.bf16.msrb.mxu1 %v9656_v30  ;;  %v15911_v30 = vpop.f32.mrf.mxu0 }
 0x626   : > { %v12909_v9 = vld [vmem:[%s13836_s10 + $0xe34] sm:$0xf0]  ;;  %7804 = vmatmul.bf16.vlgmr.msrb.gmra.mxu0 %v14056_v53 }
 0x627   : > { %v10647_v11 = vld [vmem:[%s13836_s10 + $0x11d8] sm:$0xf]  ;;  %v10168_v17 = vor.u32 %v12909_v9, %v10167_v45  ;;  %7829 = vmatpush.bf16.msrb.mxu2 %v9912_v0 }
 0x628   : > { %v13029_v7 = vld [vmem:[%s13836_s10 + $0x11f4] sm:$0xf0]  ;;  %7817 = vmatmul.bf16.vlgmr.msrb.gmra.mxu1 %v14060_v56 }
 0x629   : > { %v10903_v21 = vld [vmem:[%s13836_s10 + $0x13d8] sm:$0xf]  ;;  %v10648_v40 = vor.u32 %v13029_v7, %v10647_v11  ;;  %7842 = vmatpush.bf16.msrb.mxu3 %v10168_v17 }
 0x62a   : > { %v13093_v13 = vld [vmem:[%s13836_s10 + $0x13f4] sm:$0xf0]  ;;  %7830 = vmatmul.bf16.vlgmr.msrb.gmra.mxu2 %v14052_v50 }
 0x62b   : > { %v11159_v16 = vld [vmem:[%s13836_s10 + $0x15d8] sm:$0xf]  ;;  %v10904_v23 = vor.u32 %v13093_v13, %v10903_v21  ;;  %7848 = vmatpush.bf16.msra.mxu0 %v10648_v40 }
 0x62c   : > { %v13157_v6 = vld [vmem:[%s13836_s10 + $0x15f4] sm:$0xf0]  ;;  %7843 = vmatmul.bf16.vlgmr.msrb.gmra.mxu3 %v14058_v54 }
 0x62d   : > { %v11415_v15 = vld [vmem:[%s13836_s10 + $0x17d8] sm:$0xf]  ;;  %v11160_v28 = vor.u32 %v13157_v6, %v11159_v16  ;;  %7861 = vmatpush.bf16.msra.mxu1 %v10904_v23  ;;  %v15916_v23 = vpop.f32.mrf.mxu1 }
 0x62e   : > { %v13221_v19 = vld [vmem:[%s13836_s10 + $0x17f4] sm:$0xf0] }
 0x62f   : > { %v10615_v51 = vld [vmem:[%s13836_s10 + $0x1198] sm:$0xf]  ;;  %v11416_v46 = vor.u32 %v13221_v19, %v11415_v15  ;;  %7874 = vmatpush.bf16.msra.mxu2 %v11160_v28 }
 0x630   : > { %v13021_v32 = vld [vmem:[%s13836_s10 + $0x11b4] sm:$0xf0] }
 0x631   : > { %v10871_v8 = vld [vmem:[%s13836_s10 + $0x1398] sm:$0xf]  ;;  %v10616_v57 = vor.u32 %v13021_v32, %v10615_v51  ;;  %7887 = vmatpush.bf16.msra.mxu3 %v11416_v46 }
 0x632   : > { %v13085_v27 = vld [vmem:[%s13836_s10 + $0x13b4] sm:$0xf0] }
 0x633   : > { %v11127_v48 = vld [vmem:[%s13836_s10 + $0x1598] sm:$0xf]  ;;  %v10872_v18 = vor.u32 %v13085_v27, %v10871_v8  ;;  %7849 = vmatpush.bf16.msra.mxu0 %v10616_v57 }
 0x634   : > { %v13149_v44 = vld [vmem:[%s13836_s10 + $0x15b4] sm:$0xf0] }
 0x635   : > { %v11383_v49 = vld [vmem:[%s13836_s10 + $0x1798] sm:$0xf]  ;;  %v11128_v52 = vor.u32 %v13149_v44, %v11127_v48  ;;  %7862 = vmatpush.bf16.msra.mxu1 %v10872_v18 }
 0x636   : > { %v13213_v14 = vld [vmem:[%s13836_s10 + $0x17b4] sm:$0xf0] }
 0x637   : > { %v10583_v1 = vld [vmem:[%s13836_s10 + $0x1158] sm:$0xf]  ;;  %v11384_v59 = vor.u32 %v13213_v14, %v11383_v49  ;;  %7875 = vmatpush.bf16.msra.mxu2 %v11128_v52  ;;  %v15926_v52 = vpop.f32.mrf.mxu2 }
 0x638   : > { %v13013_v47 = vld [vmem:[%s13836_s10 + $0x1174] sm:$0xf0] }
 0x639   : > { %v10839_v22 = vld [vmem:[%s13836_s10 + $0x1358] sm:$0xf]  ;;  %v10584_v4 = vor.u32 %v13013_v47, %v10583_v1  ;;  %7888 = vmatpush.bf16.msra.mxu3 %v11384_v59 }
 0x63a   : > { %v13077_v62 = vld [vmem:[%s13836_s10 + $0x1374] sm:$0xf0] }
 0x63b   : > { %v11095_v10 = vld [vmem:[%s13836_s10 + $0x1558] sm:$0xf]  ;;  %v10840_v3 = vor.u32 %v13077_v62, %v10839_v22  ;;  %7850 = vmatpush.bf16.msra.mxu0 %v10584_v4  ;;  %v15931_v62 = vpop.f32.mrf.mxu3 }
 0x63c   : > { %v13141_v20 = vld [vmem:[%s13836_s10 + $0x1574] sm:$0xf0] }
 0x63d   : > { %v11351_v55 = vld [vmem:[%s13836_s10 + $0x1758] sm:$0xf]  ;;  %v11096_v60 = vor.u32 %v13141_v20, %v11095_v10  ;;  %7863 = vmatpush.bf16.msra.mxu1 %v10840_v3 }
 0x63e   : > { %v13205_v5 = vld [vmem:[%s13836_s10 + $0x1774] sm:$0xf0] }
 0x63f   : > { %v10551_v45 = vld [vmem:[%s13836_s10 + $0x1118] sm:$0xf]  ;;  %v11352_v11 = vor.u32 %v13205_v5, %v11351_v55  ;;  %7876 = vmatpush.bf16.msra.mxu2 %v11096_v60  ;;  %v7599_v5 = vpop.f32.mrf.mxu0 }
 0x640   : > { %v13005_v9 = vld [vmem:[%s13836_s10 + $0x1134] sm:$0xf0] }
 0x641   : > { %v10807_v37 = vld [vmem:[%s13836_s10 + $0x1318] sm:$0xf]  ;;  %v10552_v6 = vor.u32 %v13005_v9, %v10551_v45  ;;  %7889 = vmatpush.bf16.msra.mxu3 %v11352_v11 }
 0x642   : > { %v13069_v7 = vld [vmem:[%s13836_s10 + $0x1334] sm:$0xf0] }
 0x643   : > { %v11063_v21 = vld [vmem:[%s13836_s10 + $0x1518] sm:$0xf]  ;;  %v10808_v0 = vor.u32 %v13069_v7, %v10807_v37  ;;  %7851 = vmatpush.bf16.msra.mxu0 %v10552_v6  ;;  %v7612_v37 = vpop.f32.mrf.mxu1 }
 0x644   : > { %v13133_v12 = vld [vmem:[%s13836_s10 + $0x1534] sm:$0xf0] }
 0x645   : > { %v11319_v13 = vld [vmem:[%s13836_s10 + $0x1718] sm:$0xf]  ;;  %v11064_v15 = vor.u32 %v13133_v12, %v11063_v21  ;;  %7864 = vmatpush.bf16.msra.mxu1 %v10808_v0 }
 0x646   : > { %v13197_v16 = vld [vmem:[%s13836_s10 + $0x1734] sm:$0xf0] }
 0x647   : > { %v10519_v19 = vld [vmem:[%s13836_s10 + $0x10d8] sm:$0xf]  ;;  %v11320_v28 = vor.u32 %v13197_v16, %v11319_v13  ;;  %7877 = vmatpush.bf16.msra.mxu2 %v11064_v15 }
 0x648   : > { %v12997_v17 = vld [vmem:[%s13836_s10 + $0x10f4] sm:$0xf0] }
 0x649   : > { %v10775_v40 = vld [vmem:[%s13836_s10 + $0x12d8] sm:$0xf]  ;;  %v10520_v48 = vor.u32 %v12997_v17, %v10519_v19  ;;  %7890 = vmatpush.bf16.msra.mxu3 %v11320_v28 }
 0x64a   : > { %v13061_v51 = vld [vmem:[%s13836_s10 + $0x12f4] sm:$0xf0] }
 0x64b   : > { %v11031_v32 = vld [vmem:[%s13836_s10 + $0x14d8] sm:$0xf]  ;;  %v10776_v44 = vor.u32 %v13061_v51, %v10775_v40  ;;  %7852 = vmatpush.bf16.msra.mxu0 %v10520_v48 }
 0x64c   : > { %v13125_v8 = vld [vmem:[%s13836_s10 + $0x14f4] sm:$0xf0] }
 0x64d   : > { %v11287_v46 = vld [vmem:[%s13836_s10 + $0x16d8] sm:$0xf]  ;;  %v11032_v49 = vor.u32 %v13125_v8, %v11031_v32  ;;  %7865 = vmatpush.bf16.msra.mxu1 %v10776_v44  ;;  %v7625_v32 = vpop.f32.mrf.mxu2  ;;  %v7638_v44 = vpop.f32.mrf.mxu3 }
 0x64e   : > { %v13189_v27 = vld [vmem:[%s13836_s10 + $0x16f4] sm:$0xf0] }
 0x64f   : > { %v10487_v14 = vld [vmem:[%s13836_s10 + $0x1098] sm:$0xf]  ;;  %v11288_v1 = vor.u32 %v13189_v27, %v11287_v46  ;;  %7878 = vmatpush.bf16.msra.mxu2 %v11032_v49 }
 0x650   : > { %v12989_v57 = vld [vmem:[%s13836_s10 + $0x10b4] sm:$0xf0] }
 0x651   : > { %v10743_v18 = vld [vmem:[%s13836_s10 + $0x1298] sm:$0xf]  ;;  %v10488_v55 = vor.u32 %v12989_v57, %v10487_v14  ;;  %7891 = vmatpush.bf16.msra.mxu3 %v11288_v1 }
 0x652   : > { %v13053_v47 = vld [vmem:[%s13836_s10 + $0x12b4] sm:$0xf0] }
 0x653   : > { %v10999_v22 = vld [vmem:[%s13836_s10 + $0x1498] sm:$0xf]  ;;  %v10744_v4 = vor.u32 %v13053_v47, %v10743_v18  ;;  %7853 = vmatpush.bf16.msra.mxu0 %v10488_v55 }
 0x654   : > { %v13117_v59 = vld [vmem:[%s13836_s10 + $0x14b4] sm:$0xf0] }
 0x655   : > { %v11255_v10 = vld [vmem:[%s13836_s10 + $0x1698] sm:$0xf]  ;;  %v11000_v3 = vor.u32 %v13117_v59, %v10999_v22  ;;  %7866 = vmatpush.bf16.msra.mxu1 %v10744_v4 }
 0x656   : > { %v13181_v20 = vld [vmem:[%s13836_s10 + $0x16b4] sm:$0xf0] }
 0x657   : > { %v10455_v60 = vld [vmem:[%s13836_s10 + $0x1058] sm:$0xf]  ;;  %v11256_v11 = vor.u32 %v13181_v20, %v11255_v10  ;;  %7879 = vmatpush.bf16.msra.mxu2 %v11000_v3 }
 0x658   : > { %v12981_v45 = vld [vmem:[%s13836_s10 + $0x1074] sm:$0xf0] }
 0x659   : > { %v10711_v9 = vld [vmem:[%s13836_s10 + $0x1258] sm:$0xf]  ;;  %v10456_v6 = vor.u32 %v12981_v45, %v10455_v60  ;;  %7892 = vmatpush.bf16.msra.mxu3 %v11256_v11 }
 0x65a   : > { %v13045_v7 = vld [vmem:[%s13836_s10 + $0x1274] sm:$0xf0] }
 0x65b   : > { %v10967_v21 = vld [vmem:[%s13836_s10 + $0x1458] sm:$0xf]  ;;  %v10712_v19 = vor.u32 %v13045_v7, %v10711_v9  ;;  %7854 = vmatpush.bf16.msra.mxu0 %v10456_v6 }
 0x65c   : > { %v13109_v12 = vld [vmem:[%s13836_s10 + $0x1474] sm:$0xf0] }
 0x65d   : > { %v11223_v13 = vld [vmem:[%s13836_s10 + $0x1658] sm:$0xf]  ;;  %v10968_v17 = vor.u32 %v13109_v12, %v10967_v21  ;;  %7867 = vmatpush.bf16.msra.mxu1 %v10712_v19 }
 0x65e   : > { %v13173_v16 = vld [vmem:[%s13836_s10 + $0x1674] sm:$0xf0] }
 0x65f   : > { %v10423_v0 = vld [vmem:[%s13836_s10 + $0x1018] sm:$0xf]  ;;  %v11224_v8 = vor.u32 %v13173_v16, %v11223_v13  ;;  %7880 = vmatpush.bf16.msra.mxu2 %v10968_v17 }
 0x660   : > { %v12973_v15 = vld [vmem:[%s13836_s10 + $0x1034] sm:$0xf0] }
 0x661   : > { %v10679_v40 = vld [vmem:[%s13836_s10 + $0x1218] sm:$0xf]  ;;  %v10424_v18 = vor.u32 %v12973_v15, %v10423_v0  ;;  %7893 = vmatpush.bf16.msra.mxu3 %v11224_v8 }
 0x662   : > { %v13037_v28 = vld [vmem:[%s13836_s10 + $0x1234] sm:$0xf0] }
 0x663   : > { %v10935_v51 = vld [vmem:[%s13836_s10 + $0x1418] sm:$0xf]  ;;  %v10680_v59 = vor.u32 %v13037_v28, %v10679_v40  ;;  %7855 = vmatpush.bf16.msra.mxu0 %v10424_v18 }
 0x664   : > { %v13101_v46 = vld [vmem:[%s13836_s10 + $0x1434] sm:$0xf0] }
 0x665   : > { %v11191_v27 = vld [vmem:[%s13836_s10 + $0x1618] sm:$0xf]  ;;  %v10936_v10 = vor.u32 %v13101_v46, %v10935_v51  ;;  %7868 = vmatpush.bf16.msra.mxu1 %v10680_v59 }
 0x666   : > { %v13165_v48 = vld [vmem:[%s13836_s10 + $0x1634] sm:$0xf0]  ;;  %7856 = vmatmul.bf16.vlgmr.msra.gmra.mxu0 %v14125_v34 }
 0x667   : > { %v11671_v49 = vld [vmem:[%s13836_s10 + $0x19d8] sm:$0xf]  ;;  %v11192_v5 = vor.u32 %v13165_v48, %v11191_v27  ;;  %7881 = vmatpush.bf16.msra.mxu2 %v10936_v10  ;;  %v15985_v10 = vpop.f32.mrf.mxu0 }
 0x668   : > { %v13285_v14 = vld [vmem:[%s13836_s10 + $0x19f4] sm:$0xf0]  ;;  %7869 = vmatmul.bf16.vlgmr.msra.gmra.mxu1 %v14132_v39 }
 0x669   : > { %v11927_v57 = vld [vmem:[%s13836_s10 + $0x1bd8] sm:$0xf]  ;;  %v11672_v4 = vor.u32 %v13285_v14, %v11671_v49  ;;  %7894 = vmatpush.bf16.msra.mxu3 %v11192_v5 }
 0x66a   : > { %v13349_v1 = vld [vmem:[%s13836_s10 + $0x1bf4] sm:$0xf0]  ;;  %7882 = vmatmul.bf16.vlgmr.msra.gmra.mxu2 %v14130_v38 }
 0x66b   : > { %v12183_v47 = vld [vmem:[%s13836_s10 + $0x1dd8] sm:$0xf]  ;;  %v11928_v3 = vor.u32 %v13349_v1, %v11927_v57  ;;  %7900 = vmatpush.bf16.msrb.mxu0 %v11672_v4  ;;  %v15989_v4 = vpop.f32.mrf.mxu1 }
 0x66c   : > { %v13413_v22 = vld [vmem:[%s13836_s10 + $0x1df4] sm:$0xf0]  ;;  %7895 = vmatmul.bf16.vlgmr.msra.gmra.mxu3 %v14136_v43 }
 0x66d   : > { %v12439_v20 = vld [vmem:[%s13836_s10 + $0x1fd8] sm:$0xf]  ;;  %v12184_v60 = vor.u32 %v13413_v22, %v12183_v47  ;;  %7913 = vmatpush.bf16.msrb.mxu1 %v11928_v3 }
 0x66e   : > { %v13477_v55 = vld [vmem:[%s13836_s10 + $0x1ff4] sm:$0xf0] }
 0x66f   : > { %v11639_v45 = vld [vmem:[%s13836_s10 + $0x1998] sm:$0xf]  ;;  %v12440_v11 = vor.u32 %v13477_v55, %v12439_v20  ;;  %7926 = vmatpush.bf16.msrb.mxu2 %v12184_v60 }
 0x670   : > { %v13277_v9 = vld [vmem:[%s13836_s10 + $0x19b4] sm:$0xf0] }
 0x671   : > { %v11895_v37 = vld [vmem:[%s13836_s10 + $0x1b98] sm:$0xf]  ;;  %v11640_v6 = vor.u32 %v13277_v9, %v11639_v45  ;;  %7939 = vmatpush.bf16.msrb.mxu3 %v12440_v11 }
 0x672   : > { %v13341_v7 = vld [vmem:[%s13836_s10 + $0x1bb4] sm:$0xf0] }
 0x673   : > { %v12151_v21 = vld [vmem:[%s13836_s10 + $0x1d98] sm:$0xf]  ;;  %v11896_v0 = vor.u32 %v13341_v7, %v11895_v37  ;;  %7901 = vmatpush.bf16.msrb.mxu0 %v11640_v6 }
 0x674   : > { %v13405_v12 = vld [vmem:[%s13836_s10 + $0x1db4] sm:$0xf0] }
 0x675   : > { %v12407_v13 = vld [vmem:[%s13836_s10 + $0x1f98] sm:$0xf]  ;;  %v12152_v15 = vor.u32 %v13405_v12, %v12151_v21  ;;  %7914 = vmatpush.bf16.msrb.mxu1 %v11896_v0  ;;  %v7598_v0 = vadd.f32 %v15911_v30, %v15857_v63 }
 0x676   : > { %v13469_v16 = vld [vmem:[%s13836_s10 + $0x1fb4] sm:$0xf0] }
 0x677   : > { %v11607_v19 = vld [vmem:[%s13836_s10 + $0x1958] sm:$0xf]  ;;  %v12408_v28 = vor.u32 %v13469_v16, %v12407_v13  ;;  %7927 = vmatpush.bf16.msrb.mxu2 %v12152_v15 }
 0x678   : > { %v13269_v17 = vld [vmem:[%s13836_s10 + $0x1974] sm:$0xf0] }
 0x679   : > { %v11863_v40 = vld [vmem:[%s13836_s10 + $0x1b58] sm:$0xf]  ;;  %v11608_v48 = vor.u32 %v13269_v17, %v11607_v19  ;;  %7940 = vmatpush.bf16.msrb.mxu3 %v12408_v28 }
 0x67a   : > { %v13333_v51 = vld [vmem:[%s13836_s10 + $0x1b74] sm:$0xf0] }
 0x67b   : > { %v12119_v32 = vld [vmem:[%s13836_s10 + $0x1d58] sm:$0xf]  ;;  %v11864_v44 = vor.u32 %v13333_v51, %v11863_v40  ;;  %7902 = vmatpush.bf16.msrb.mxu0 %v11608_v48  ;;  %v16009_v48 = vpop.f32.mrf.mxu3 }
 0x67c   : > { %v13397_v8 = vld [vmem:[%s13836_s10 + $0x1d74] sm:$0xf0] }
 0x67d   : > { %v12375_v46 = vld [vmem:[%s13836_s10 + $0x1f58] sm:$0xf]  ;;  %v12120_v49 = vor.u32 %v13397_v8, %v12119_v32  ;;  %7915 = vmatpush.bf16.msrb.mxu1 %v11864_v44  ;;  %v16004_v32 = vpop.f32.mrf.mxu2  ;;  %v7651_v44 = vpop.f32.mrf.mxu0 }
 0x67e   : > { %v13461_v27 = vld [vmem:[%s13836_s10 + $0x1f74] sm:$0xf0] }
 0x67f   : > { %v11575_v14 = vld [vmem:[%s13836_s10 + $0x1918] sm:$0xf]  ;;  %v12376_v1 = vor.u32 %v13461_v27, %v12375_v46  ;;  %7928 = vmatpush.bf16.msrb.mxu2 %v12120_v49 }
 0x680   : > { %v13261_v57 = vld [vmem:[%s13836_s10 + $0x1934] sm:$0xf0] }
 0x681   : > { %v11831_v18 = vld [vmem:[%s13836_s10 + $0x1b18] sm:$0xf]  ;;  %v11576_v5 = vor.u32 %v13261_v57, %v11575_v14  ;;  %7941 = vmatpush.bf16.msrb.mxu3 %v12376_v1  ;;  %v7664_v14 = vpop.f32.mrf.mxu1  ;;  %v7611_v57 = vadd.f32 %v15916_v23, %v7598_v0 }
 0x682   : > { %v13325_v47 = vld [vmem:[%s13836_s10 + $0x1b34] sm:$0xf0]  ;;  %v12705_v14 = vld [vmem:[%s13836_s10 + $0x7dc] sm:$0xf] }
 0x683   : > { %v12087_v22 = vld [vmem:[%s13836_s10 + $0x1d18] sm:$0xf]  ;;  %v11832_v3 = vor.u32 %v13325_v47, %v11831_v18  ;;  %7903 = vmatpush.bf16.msrb.mxu0 %v11576_v5 }
 0x684   : > { %v13389_v59 = vld [vmem:[%s13836_s10 + $0x1d34] sm:$0xf0] }
 0x685   : > { %v12343_v20 = vld [vmem:[%s13836_s10 + $0x1f18] sm:$0xf]  ;;  %v12088_v60 = vor.u32 %v13389_v59, %v12087_v22  ;;  %7916 = vmatpush.bf16.msrb.mxu1 %v11832_v3 }
 0x686   : > { %v13453_v55 = vld [vmem:[%s13836_s10 + $0x1f34] sm:$0xf0] }
 0x687   : > { %v11543_v45 = vld [vmem:[%s13836_s10 + $0x18d8] sm:$0xf]  ;;  %v12344_v11 = vor.u32 %v13453_v55, %v12343_v20  ;;  %7929 = vmatpush.bf16.msrb.mxu2 %v12088_v60 }
 0x688   : > { %v13253_v9 = vld [vmem:[%s13836_s10 + $0x18f4] sm:$0xf0] }
 0x689   : > { %v11799_v37 = vld [vmem:[%s13836_s10 + $0x1ad8] sm:$0xf]  ;;  %v11544_v6 = vor.u32 %v13253_v9, %v11543_v45  ;;  %7942 = vmatpush.bf16.msrb.mxu3 %v12344_v11  ;;  %v7624_v11 = vadd.f32 %v15926_v52, %v7611_v57  ;;  %v12513_v52 = vld [vmem:[%s13836_s10 + $0x1dc] sm:$0xf] }
 0x68a   : > { %v13317_v7 = vld [vmem:[%s13836_s10 + $0x1af4] sm:$0xf0]  ;;  %v9369_v57 = vld [vmem:[%s13836_s10 + $0x7f8] sm:$0xf0] }
 0x68b   : > { %v12055_v21 = vld [vmem:[%s13836_s10 + $0x1cd8] sm:$0xf]  ;;  %v11800_v15 = vor.u32 %v13317_v7, %v11799_v37  ;;  %7904 = vmatpush.bf16.msrb.mxu0 %v11544_v6 }
 0x68c   : > { %v13381_v12 = vld [vmem:[%s13836_s10 + $0x1cf4] sm:$0xf0] }
 0x68d   : > { %v12311_v13 = vld [vmem:[%s13836_s10 + $0x1ed8] sm:$0xf]  ;;  %v12056_v19 = vor.u32 %v13381_v12, %v12055_v21  ;;  %7917 = vmatpush.bf16.msrb.mxu1 %v11800_v15 }
 0x68e   : > { %v13445_v16 = vld [vmem:[%s13836_s10 + $0x1ef4] sm:$0xf0] }
 0x68f   : > { %v11511_v17 = vld [vmem:[%s13836_s10 + $0x1898] sm:$0xf]  ;;  %v12312_v51 = vor.u32 %v13445_v16, %v12311_v13  ;;  %7930 = vmatpush.bf16.msrb.mxu2 %v12056_v19 }
 0x690   : > { %v13245_v40 = vld [vmem:[%s13836_s10 + $0x18b4] sm:$0xf0] }
 0x691   : > { %v11767_v28 = vld [vmem:[%s13836_s10 + $0x1a98] sm:$0xf]  ;;  %v11512_v49 = vor.u32 %v13245_v40, %v11511_v17  ;;  %7943 = vmatpush.bf16.msrb.mxu3 %v12312_v51  ;;  %v7677_v17 = vpop.f32.mrf.mxu2  ;;  %v8601_v40 = vld [vmem:[%s13836_s10 + $0x1f8] sm:$0xf0]  ;;  %v7690_v51 = vpop.f32.mrf.mxu3 }
 0x692   : > { %v13309_v8 = vld [vmem:[%s13836_s10 + $0x1ab4] sm:$0xf0]  ;;  %v9305_v17 = vld [vmem:[%s13836_s10 + $0x778] sm:$0xf0] }
 0x693   : > { %v12023_v46 = vld [vmem:[%s13836_s10 + $0x1c98] sm:$0xf]  ;;  %v11768_v18 = vor.u32 %v13309_v8, %v11767_v28  ;;  %7905 = vmatpush.bf16.msrb.mxu0 %v11512_v49  ;;  %v12577_v28 = vld [vmem:[%s13836_s10 + $0x3dc] sm:$0xf] }
 0x694   : > { %v13373_v27 = vld [vmem:[%s13836_s10 + $0x1cb4] sm:$0xf0]  ;;  %v8505_v51 = vld [vmem:[%s13836_s10 + $0x138] sm:$0xf0] }
 0x695   : > { %v12279_v63 = vld [vmem:[%s13836_s10 + $0x1e98] sm:$0xf]  ;;  %v12024_v1 = vor.u32 %v13373_v27, %v12023_v46  ;;  %7918 = vmatpush.bf16.msrb.mxu1 %v11768_v18  ;;  %v8857_v46 = vld [vmem:[%s13836_s10 + $0x3f8] sm:$0xf0] }
 0x696   : > { %v13437_v30 = vld [vmem:[%s13836_s10 + $0x1eb4] sm:$0xf0]  ;;  %v12641_v27 = vld [vmem:[%s13836_s10 + $0x5dc] sm:$0xf] }
 0x697   : > { %v11479_v47 = vld [vmem:[%s13836_s10 + $0x1858] sm:$0xf]  ;;  %v12280_v20 = vor.u32 %v13437_v30, %v12279_v63  ;;  %7931 = vmatpush.bf16.msrb.mxu2 %v12024_v1  ;;  %v9113_v63 = vld [vmem:[%s13836_s10 + $0x5f8] sm:$0xf0]  ;;  %v7637_v30 = vadd.f32 %v15931_v62, %v7624_v11  ;;  %v8604_v1 = vor.u32 %v12513_v52, %v8601_v40 }
 0x698   : > { %v13237_v22 = vld [vmem:[%s13836_s10 + $0x1874] sm:$0xf0]  ;;  %v8569_v62 = vld [vmem:[%s13836_s10 + $0x1b8] sm:$0xf0] }
 0x699   : > { %v11735_v59 = vld [vmem:[%s13836_s10 + $0x1a58] sm:$0xf]  ;;  %v11480_v45 = vor.u32 %v13237_v22, %v11479_v47  ;;  %7944 = vmatpush.bf16.msrb.mxu3 %v12280_v20  ;;  %v7650_v47 = vadd.f32 %v15985_v10, %v7637_v30  ;;  %v8860_v22 = vor.u32 %v12577_v28, %v8857_v46  ;;  %v12505_v20 = vld [vmem:[%s13836_s10 + $0x19c] sm:$0xf] }
 0x69a   : > { %v13301_v55 = vld [vmem:[%s13836_s10 + $0x1a74] sm:$0xf0]  ;;  %v8572_v10 = vor.u32 %v12505_v20, %v8569_v62  ;;  %v9017_v30 = vld [vmem:[%s13836_s10 + $0x538] sm:$0xf0] }
 0x69b   : > { %v11991_v5 = vld [vmem:[%s13836_s10 + $0x1c58] sm:$0xf]  ;;  %v11736_v7 = vor.u32 %v13301_v55, %v11735_v59  ;;  %7906 = vmatpush.bf16.msrb.mxu0 %v11480_v45  ;;  %v9116_v59 = vor.u32 %v12641_v27, %v9113_v63  ;;  %v12569_v55 = vld [vmem:[%s13836_s10 + $0x39c] sm:$0xf] }
 0x69c   : > { %v13365_v3 = vld [vmem:[%s13836_s10 + $0x1c74] sm:$0xf0]  ;;  %v12697_v45 = vld [vmem:[%s13836_s10 + $0x79c] sm:$0xf] }
 0x69d   : > { %v12247_v60 = vld [vmem:[%s13836_s10 + $0x1e58] sm:$0xf]  ;;  %v11992_v21 = vor.u32 %v13365_v3, %v11991_v5  ;;  %7919 = vmatpush.bf16.msrb.mxu1 %v11736_v7  ;;  %v9372_v5 = vor.u32 %v12705_v14, %v9369_v57  ;;  %v8825_v3 = vld [vmem:[%s13836_s10 + $0x3b8] sm:$0xf0] }
 0x69e   : > { %v13429_v23 = vld [vmem:[%s13836_s10 + $0x1e74] sm:$0xf0]  ;;  %v8828_v11 = vor.u32 %v12569_v55, %v8825_v3  ;;  %v8761_v27 = vld [vmem:[%s13836_s10 + $0x338] sm:$0xf0] }
 0x69f   : > { %v11447_v9 = vld [vmem:[%s13836_s10 + $0x1818] sm:$0xf]  ;;  %v12248_v6 = vor.u32 %v13429_v23, %v12247_v60  ;;  %7932 = vmatpush.bf16.msrb.mxu2 %v11992_v21  ;;  %v12633_v60 = vld [vmem:[%s13836_s10 + $0x59c] sm:$0xf] }
 0x6a0   : > { %v13229_v37 = vld [vmem:[%s13836_s10 + $0x1834] sm:$0xf0]  ;;  %v9081_v23 = vld [vmem:[%s13836_s10 + $0x5b8] sm:$0xf0] }
 0x6a1   : > { %v11703_v12 = vld [vmem:[%s13836_s10 + $0x1a18] sm:$0xf]  ;;  %v11448_v8 = vor.u32 %v13229_v37, %v11447_v9  ;;  %7945 = vmatpush.bf16.msrb.mxu3 %v12248_v6  ;;  %v9337_v9 = vld [vmem:[%s13836_s10 + $0x7b8] sm:$0xf0]  ;;  %v7663_v37 = vadd.f32 %v15989_v4, %v7650_v47  ;;  %v9084_v7 = vor.u32 %v12633_v60, %v9081_v23 }
 0x6a2   : > { %v13293_v13 = vld [vmem:[%s13836_s10 + $0x1a34] sm:$0xf0]  ;;  %v12497_v21 = vld [vmem:[%s13836_s10 + $0x15c] sm:$0xf] }
 0x6a3   : > { %v11959_v16 = vld [vmem:[%s13836_s10 + $0x1c18] sm:$0xf]  ;;  %v11704_v44 = vor.u32 %v13293_v13, %v11703_v12  ;;  %7907 = vmatpush.bf16.msrb.mxu0 %v11448_v8  ;;  %v8537_v12 = vld [vmem:[%s13836_s10 + $0x178] sm:$0xf0]  ;;  %v7676_v4 = vadd.f32 %v16004_v32, %v7663_v37 }
 0x6a4   : > { %v13357_v0 = vld [vmem:[%s13836_s10 + $0x1c34] sm:$0xf0]  ;;  %v12561_v13 = vld [vmem:[%s13836_s10 + $0x35c] sm:$0xf]  ;;  %v8540_v52 = vor.u32 %v12497_v21, %v8537_v12 }
 0x6a5   : > { %v12215_v15 = vld [vmem:[%s13836_s10 + $0x1e18] sm:$0xf]  ;;  %v11960_v49 = vor.u32 %v13357_v0, %v11959_v16  ;;  %7920 = vmatpush.bf16.msrb.mxu1 %v11704_v44  ;;  %v9340_v16 = vor.u32 %v12697_v45, %v9337_v9  ;;  %v8793_v6 = vld [vmem:[%s13836_s10 + $0x378] sm:$0xf0]  ;;  %v7689_v44 = vadd.f32 %v16009_v48, %v7676_v4 }
 0x6a6   : > { %v13421_v19 = vld [vmem:[%s13836_s10 + $0x1e34] sm:$0xf0]  ;;  %7908 = vmatmul.bf16.vlgmr.msrb.gmra.mxu0 %v14201_v29  ;;  %v12625_v0 = vld [vmem:[%s13836_s10 + $0x55c] sm:$0xf]  ;;  %v8796_v40 = vor.u32 %v12561_v13, %v8793_v6 }
 0x6a7   : > { %v12216_v18 = vor.u32 %v13421_v19, %v12215_v15  ;;  %7933 = vmatpush.bf16.msrb.mxu2 %v11960_v49  ;;  %7952 = vmatpush.bf16.msra.mxu0 %v8604_v1  ;;  %v9049_v15 = vld [vmem:[%s13836_s10 + $0x578] sm:$0xf0]  ;;  %v7701_v49 = vpop.f32.mrf.mxu0  ;;  %v7714_v1 = vpop.f32.mrf.mxu1 }
 0x6a8   : > { %7921 = vmatmul.bf16.vlgmr.msrb.gmra.mxu1 %v14208_v36  ;;  %v12689_v19 = vld [vmem:[%s13836_s10 + $0x75c] sm:$0xf]  ;;  %v9052_v28 = vor.u32 %v12625_v0, %v9049_v15  ;;  %v7702_v47 = vadd.f32 %v7701_v49, %v7689_v44 }
 0x6a9   : > { %7946 = vmatpush.bf16.msrb.mxu3 %v12216_v18  ;;  %7965 = vmatpush.bf16.msra.mxu1 %v8860_v22  ;;  %v12489_v32 = vld [vmem:[%s13836_s10 + $0x11c] sm:$0xf]  ;;  %v9308_v46 = vor.u32 %v12689_v19, %v9305_v17  ;;  %v7740_v19 = vpop.f32.mrf.mxu3 }
 0x6aa   : > { %7934 = vmatmul.bf16.vlgmr.msrb.gmra.mxu2 %v14206_v35  ;;  %v12553_v8 = vld [vmem:[%s13836_s10 + $0x31c] sm:$0xf]  ;;  %v8508_v18 = vor.u32 %v12489_v32, %v8505_v51 }
 0x6ab   : > { %7978 = vmatpush.bf16.msra.mxu2 %v9116_v59  ;;  %7953 = vmatpush.bf16.msra.mxu0 %v8572_v10  ;;  %v12617_v63 = vld [vmem:[%s13836_s10 + $0x51c] sm:$0xf]  ;;  %v8764_v22 = vor.u32 %v12553_v8, %v8761_v27  ;;  %v7715_v10 = vadd.f32 %v7714_v1, %v7702_v47 }
 0x6ac   : > { %7947 = vmatmul.bf16.vlgmr.msrb.gmra.mxu3 %v14212_v42  ;;  %v12681_v14 = vld [vmem:[%s13836_s10 + $0x71c] sm:$0xf]  ;;  %v9020_v59 = vor.u32 %v12617_v63, %v9017_v30 }
 0x6ad   : > { %7991 = vmatpush.bf16.msra.mxu3 %v9372_v5  ;;  %7966 = vmatpush.bf16.msra.mxu1 %v8828_v11  ;;  %v9273_v57 = vld [vmem:[%s13836_s10 + $0x738] sm:$0xf0] }
 0x6ae   : > { %v12481_v20 = vld [vmem:[%s13836_s10 + $0xdc] sm:$0xf]  ;;  %v9276_v55 = vor.u32 %v12681_v14, %v9273_v57 }
 0x6af   : > { %7979 = vmatpush.bf16.msra.mxu2 %v9084_v7  ;;  %7954 = vmatpush.bf16.msra.mxu0 %v8540_v52  ;;  %v8473_v62 = vld [vmem:[%s13836_s10 + $0xf8] sm:$0xf0]  ;;  %v7716_v32 = vpop.f32.mrf.mxu1 }
 0x6b0   : > { %v12545_v48 = vld [vmem:[%s13836_s10 + $0x2dc] sm:$0xf]  ;;  %v8476_v9 = vor.u32 %v12481_v20, %v8473_v62 }
 0x6b1   : > { %7992 = vmatpush.bf16.msra.mxu3 %v9340_v16  ;;  %7967 = vmatpush.bf16.msra.mxu1 %v8796_v40  ;;  %v8729_v5 = vld [vmem:[%s13836_s10 + $0x2f8] sm:$0xf0]  ;;  %v7727_v16 = vpop.f32.mrf.mxu2  ;;  %v7703_v40 = vpop.f32.mrf.mxu0 }
 0x6b2   : > { %v12609_v3 = vld [vmem:[%s13836_s10 + $0x4dc] sm:$0xf]  ;;  %v8732_v37 = vor.u32 %v12545_v48, %v8729_v5  ;;  %v7728_v4 = vadd.f32 %v7727_v16, %v7715_v10 }
 0x6b3   : > { %7980 = vmatpush.bf16.msra.mxu2 %v9052_v28  ;;  %v8985_v60 = vld [vmem:[%s13836_s10 + $0x4f8] sm:$0xf0]  ;;  %7955 = vmatpush.bf16.msra.mxu0 %v8508_v18 }
 0x6b4   : > { %v12673_v23 = vld [vmem:[%s13836_s10 + $0x6dc] sm:$0xf]  ;;  %v8988_v11 = vor.u32 %v12609_v3, %v8985_v60  ;;  %v7741_v51 = vadd.f32 %v7740_v19, %v7728_v4 }
 0x6b5   : > { %7993 = vmatpush.bf16.msra.mxu3 %v9308_v46  ;;  %v9241_v45 = vld [vmem:[%s13836_s10 + $0x6f8] sm:$0xf0]  ;;  %7968 = vmatpush.bf16.msra.mxu1 %v8764_v22 }
 0x6b6   : > { %v12473_v7 = vld [vmem:[%s13836_s10 + $0x9c] sm:$0xf]  ;;  %v9244_v13 = vor.u32 %v12673_v23, %v9241_v45  ;;  %13567 = vtanh.f32 %v7741_v51 }
 0x6b7   : > { %7981 = vmatpush.bf16.msra.mxu2 %v9020_v59  ;;  %v8441_v21 = vld [vmem:[%s13836_s10 + $0xb8] sm:$0xf0]  ;;  %7956 = vmatpush.bf16.msra.mxu0 %v8476_v9 }
 0x6b8   : > { %v12537_v12 = vld [vmem:[%s13836_s10 + $0x29c] sm:$0xf]  ;;  %v8444_v28 = vor.u32 %v12473_v7, %v8441_v21  ;;  %v7742_v7 = vpop.f32.mrf.mxu3 }
 0x6b9   : > { %7994 = vmatpush.bf16.msra.mxu3 %v9276_v55  ;;  %v8697_v6 = vld [vmem:[%s13836_s10 + $0x2b8] sm:$0xf0]  ;;  %7969 = vmatpush.bf16.msra.mxu1 %v8732_v37  ;;  %v7729_v9 = vpop.f32.mrf.mxu2 }
 0x6ba   : > { %v12601_v0 = vld [vmem:[%s13836_s10 + $0x49c] sm:$0xf]  ;;  %v8700_v8 = vor.u32 %v12537_v12, %v8697_v6 }
 0x6bb   : > { %v8953_v15 = vld [vmem:[%s13836_s10 + $0x4b8] sm:$0xf0]  ;;  %7982 = vmatpush.bf16.msra.mxu2 %v8988_v11  ;;  %7957 = vmatpush.bf16.msra.mxu0 %v8444_v28 }
 0x6bc   : > { %v12665_v17 = vld [vmem:[%s13836_s10 + $0x69c] sm:$0xf]  ;;  %v8956_v46 = vor.u32 %v12601_v0, %v8953_v15  ;;  %v16110_v6 = vpop.eup %13567 }
 0x6bd   : > { %v9209_v52 = vld [vmem:[%s13836_s10 + $0x6b8] sm:$0xf0]  ;;  %7995 = vmatpush.bf16.msra.mxu3 %v9244_v13  ;;  %7970 = vmatpush.bf16.msra.mxu1 %v8700_v8  ;;  %8178 = vst [vmem:[%s14592_s25 + $0x28] sm:$0xff] %v16110_v6 }
 0x6be   : > { %v12465_v27 = vld [vmem:[%s13836_s10 + $0x5c] sm:$0xf]  ;;  %v9212_v44 = vor.u32 %v12665_v17, %v9209_v52 }
 0x6bf   : > { %v8409_v63 = vld [vmem:[%s13836_s10 + $0x78] sm:$0xf0]  ;;  %7983 = vmatpush.bf16.msra.mxu2 %v8956_v46 }
 0x6c0   : > { %v12529_v30 = vld [vmem:[%s13836_s10 + $0x25c] sm:$0xf]  ;;  %v8412_v47 = vor.u32 %v12465_v27, %v8409_v63 }
 0x6c1   : > { %v8665_v49 = vld [vmem:[%s13836_s10 + $0x278] sm:$0xf0]  ;;  %7996 = vmatpush.bf16.msra.mxu3 %v9212_v44 }
 0x6c2   : > { %v12593_v14 = vld [vmem:[%s13836_s10 + $0x45c] sm:$0xf]  ;;  %v8668_v20 = vor.u32 %v12529_v30, %v8665_v49  ;;  %7958 = vmatpush.bf16.msra.mxu0 %v8412_v47 }
 0x6c3   : > { %v8921_v57 = vld [vmem:[%s13836_s10 + $0x478] sm:$0xf0] }
 0x6c4   : > { %v12657_v18 = vld [vmem:[%s13836_s10 + $0x65c] sm:$0xf]  ;;  %v8924_v62 = vor.u32 %v12593_v14, %v8921_v57  ;;  %7971 = vmatpush.bf16.msra.mxu1 %v8668_v20 }
 0x6c5   : > { %v9177_v1 = vld [vmem:[%s13836_s10 + $0x678] sm:$0xf0] }
 0x6c6   : > { %v12457_v22 = vld [vmem:[%s13836_s10 + $0x1c] sm:$0xf]  ;;  %v9180_v3 = vor.u32 %v12657_v18, %v9177_v1  ;;  %7984 = vmatpush.bf16.msra.mxu2 %v8924_v62 }
 0x6c7   : > { %v8377_v59 = vld [vmem:[%s13836_s10 + $0x38] sm:$0xf0] }
 0x6c8   : > { %v12521_v48 = vld [vmem:[%s13836_s10 + $0x21c] sm:$0xf]  ;;  %v8380_v21 = vor.u32 %v12457_v22, %v8377_v59  ;;  %7997 = vmatpush.bf16.msra.mxu3 %v9180_v3 }
 0x6c9   : > { %v8633_v55 = vld [vmem:[%s13836_s10 + $0x238] sm:$0xf0] }
 0x6ca   : > { %v12585_v5 = vld [vmem:[%s13836_s10 + $0x41c] sm:$0xf]  ;;  %v8636_v0 = vor.u32 %v12521_v48, %v8633_v55  ;;  %7959 = vmatpush.bf16.msra.mxu0 %v8380_v21 }
 0x6cb   : > { %v8889_v60 = vld [vmem:[%s13836_s10 + $0x438] sm:$0xf0] }
 0x6cc   : > { %v12649_v23 = vld [vmem:[%s13836_s10 + $0x61c] sm:$0xf]  ;;  %v8892_v15 = vor.u32 %v12585_v5, %v8889_v60  ;;  %7972 = vmatpush.bf16.msra.mxu1 %v8636_v0 }
 0x6cd   : > { %v9145_v45 = vld [vmem:[%s13836_s10 + $0x638] sm:$0xf0]  ;;  %7960 = vmatmul.bf16.vlgmr.msra.gmra.mxu0 %v13991_v25 }
 0x6ce   : > { %v12769_v10 = vld [vmem:[%s13836_s10 + $0x9dc] sm:$0xf]  ;;  %v9148_v17 = vor.u32 %v12649_v23, %v9145_v45  ;;  %7985 = vmatpush.bf16.msra.mxu2 %v8892_v15 }
 0x6cf   : > { %v9625_v37 = vld [vmem:[%s13836_s10 + $0x9f8] sm:$0xf0]  ;;  %7973 = vmatmul.bf16.vlgmr.msra.gmra.mxu1 %v14006_v41 }
 0x6d0   : > { %v12833_v11 = vld [vmem:[%s13836_s10 + $0xbdc] sm:$0xf]  ;;  %v9628_v52 = vor.u32 %v12769_v10, %v9625_v37  ;;  %7998 = vmatpush.bf16.msra.mxu3 %v9148_v17  ;;  %v16140_v10 = vld [vmem:[%s13842_s8] sm:$0xff] }
 0x6d1   : > { %v9881_v12 = vld [vmem:[%s13836_s10 + $0xbf8] sm:$0xf0]  ;;  %7986 = vmatmul.bf16.vlgmr.msra.gmra.mxu2 %v13989_v24  ;;  %v1366_v25 = vperm.slane %v16140_v10, 6 }
 0x6d2   : > { %v12897_v13 = vld [vmem:[%s13836_s10 + $0xddc] sm:$0xf]  ;;  %v9884_v40 = vor.u32 %v12833_v11, %v9881_v12  ;;  %8004 = vmatpush.bf16.msrb.mxu0 %v9628_v52  ;;  %v7766_v52 = vpop.f32.mrf.mxu1 }
 0x6d3   : > { %v10137_v16 = vld [vmem:[%s13836_s10 + $0xdf8] sm:$0xf0]  ;;  %7999 = vmatmul.bf16.vlgmr.msra.gmra.mxu3 %v13996_v31 }
 0x6d4   : > { %v12961_v4 = vld [vmem:[%s13836_s10 + $0xfdc] sm:$0xf]  ;;  %v10140_v28 = vor.u32 %v12897_v13, %v10137_v16  ;;  %8017 = vmatpush.bf16.msrb.mxu1 %v9884_v40  ;;  %v7753_v13 = vpop.f32.mrf.mxu0 }
 0x6d5   : > { %v10393_v19 = vld [vmem:[%s13836_s10 + $0xff8] sm:$0xf0]  ;;  %v7754_v17 = vadd.f32 %v7753_v13, %v1366_v25 }
 0x6d6   : > { %v12761_v32 = vld [vmem:[%s13836_s10 + $0x99c] sm:$0xf]  ;;  %v10396_v46 = vor.u32 %v12961_v4, %v10393_v19  ;;  %8030 = vmatpush.bf16.msrb.mxu2 %v10140_v28 }
 0x6d7   : > { %v9593_v51 = vld [vmem:[%s13836_s10 + $0x9b8] sm:$0xf0] }
 0x6d8   : > { %v12825_v8 = vld [vmem:[%s13836_s10 + $0xb9c] sm:$0xf]  ;;  %v9596_v14 = vor.u32 %v12761_v32, %v9593_v51  ;;  %8043 = vmatpush.bf16.msrb.mxu3 %v10396_v46 }
 0x6d9   : > { %v9849_v27 = vld [vmem:[%s13836_s10 + $0xbb8] sm:$0xf0] }
 0x6da   : > { %v12889_v63 = vld [vmem:[%s13836_s10 + $0xd9c] sm:$0xf]  ;;  %v9852_v57 = vor.u32 %v12825_v8, %v9849_v27  ;;  %8005 = vmatpush.bf16.msrb.mxu0 %v9596_v14  ;;  %v7767_v27 = vadd.f32 %v7766_v52, %v7754_v17 }
 0x6db   : > { %v10105_v30 = vld [vmem:[%s13836_s10 + $0xdb8] sm:$0xf0] }
 0x6dc   : > { %v12953_v44 = vld [vmem:[%s13836_s10 + $0xf9c] sm:$0xf]  ;;  %v10108_v18 = vor.u32 %v12889_v63, %v10105_v30  ;;  %8018 = vmatpush.bf16.msrb.mxu1 %v9852_v57 }
 0x6dd   : > { %v10361_v49 = vld [vmem:[%s13836_s10 + $0xfb8] sm:$0xf0] }
 0x6de   : > { %v12753_v1 = vld [vmem:[%s13836_s10 + $0x95c] sm:$0xf]  ;;  %v10364_v59 = vor.u32 %v12953_v44, %v10361_v49  ;;  %8031 = vmatpush.bf16.msrb.mxu2 %v10108_v18  ;;  %v7779_v18 = vpop.f32.mrf.mxu2 }
 0x6df   : > { %v9561_v47 = vld [vmem:[%s13836_s10 + $0x978] sm:$0xf0] }
 0x6e0   : > { %v12817_v22 = vld [vmem:[%s13836_s10 + $0xb5c] sm:$0xf]  ;;  %v9564_v3 = vor.u32 %v12753_v1, %v9561_v47  ;;  %8044 = vmatpush.bf16.msrb.mxu3 %v10364_v59 }
 0x6e1   : > { %v9817_v20 = vld [vmem:[%s13836_s10 + $0xb78] sm:$0xf0] }
 0x6e2   : > { %v12881_v62 = vld [vmem:[%s13836_s10 + $0xd5c] sm:$0xf]  ;;  %v9820_v23 = vor.u32 %v12817_v22, %v9817_v20  ;;  %8006 = vmatpush.bf16.msrb.mxu0 %v9564_v3  ;;  %v7780_v20 = vadd.f32 %v7779_v18, %v7767_v27 }
 0x6e3   : > { %v10073_v48 = vld [vmem:[%s13836_s10 + $0xd78] sm:$0xf0] }
 0x6e4   : > { %v12945_v55 = vld [vmem:[%s13836_s10 + $0xf5c] sm:$0xf]  ;;  %v10076_v24 = vor.u32 %v12881_v62, %v10073_v48  ;;  %8019 = vmatpush.bf16.msrb.mxu1 %v9820_v23  ;;  %v7792_v62 = vpop.f32.mrf.mxu3 }
 0x6e5   : > { %v10329_v5 = vld [vmem:[%s13836_s10 + $0xf78] sm:$0xf0]  ;;  %v16164_v3 = vadd.f32 %v7792_v62, %v7780_v20 }
 0x6e6   : > { %v12745_v60 = vld [vmem:[%s13836_s10 + $0x91c] sm:$0xf]  ;;  %v10332_v31 = vor.u32 %v12945_v55, %v10329_v5  ;;  %8032 = vmatpush.bf16.msrb.mxu2 %v10076_v24 }
 0x6e7   : > { %v9529_v45 = vld [vmem:[%s13836_s10 + $0x938] sm:$0xf0] }
 0x6e8   : > { %v12809_v9 = vld [vmem:[%s13836_s10 + $0xb1c] sm:$0xf]  ;;  %v9532_v12 = vor.u32 %v12745_v60, %v9529_v45  ;;  %8045 = vmatpush.bf16.msrb.mxu3 %v10332_v31  ;;  %v7755_v60 = vpop.f32.mrf.mxu0  ;;  %v7768_v31 = vpop.f32.mrf.mxu1 }
 0x6e9   : > { %v9785_v37 = vld [vmem:[%s13836_s10 + $0xb38] sm:$0xf0] }
 0x6ea   : > { %v12873_v11 = vld [vmem:[%s13836_s10 + $0xd1c] sm:$0xf]  ;;  %v9788_v16 = vor.u32 %v12809_v9, %v9785_v37  ;;  %8007 = vmatpush.bf16.msrb.mxu0 %v9532_v12 }
 0x6eb   : > { %v10041_v7 = vld [vmem:[%s13836_s10 + $0xd38] sm:$0xf0] }
 0x6ec   : > { %v12937_v21 = vld [vmem:[%s13836_s10 + $0xf1c] sm:$0xf]  ;;  %v10044_v0 = vor.u32 %v12873_v11, %v10041_v7  ;;  %8020 = vmatpush.bf16.msrb.mxu1 %v9788_v16 }
 0x6ed   : > { %v10297_v41 = vld [vmem:[%s13836_s10 + $0xf38] sm:$0xf0] }
 0x6ee   : > { %v12737_v15 = vld [vmem:[%s13836_s10 + $0x8dc] sm:$0xf]  ;;  %v10300_v40 = vor.u32 %v12937_v21, %v10297_v41  ;;  %8033 = vmatpush.bf16.msrb.mxu2 %v10044_v0 }
 0x6ef   : > { %v9497_v4 = vld [vmem:[%s13836_s10 + $0x8f8] sm:$0xf0] }
 0x6f0   : > { %v12801_v19 = vld [vmem:[%s13836_s10 + $0xadc] sm:$0xf]  ;;  %v9500_v63 = vor.u32 %v12737_v15, %v9497_v4  ;;  %8046 = vmatpush.bf16.msrb.mxu3 %v10300_v40  ;;  %v7781_v40 = vpop.f32.mrf.mxu2 }
 0x6f1   : > { %v9753_v28 = vld [vmem:[%s13836_s10 + $0xaf8] sm:$0xf0] }
 0x6f2   : > { %v12865_v32 = vld [vmem:[%s13836_s10 + $0xcdc] sm:$0xf]  ;;  %v9756_v30 = vor.u32 %v12801_v19, %v9753_v28  ;;  %8008 = vmatpush.bf16.msrb.mxu0 %v9500_v63 }
 0x6f3   : > { %v10009_v51 = vld [vmem:[%s13836_s10 + $0xcf8] sm:$0xf0] }
 0x6f4   : > { %v12929_v8 = vld [vmem:[%s13836_s10 + $0xedc] sm:$0xf]  ;;  %v10012_v44 = vor.u32 %v12865_v32, %v10009_v51  ;;  %8021 = vmatpush.bf16.msrb.mxu1 %v9756_v30 }
 0x6f5   : > { %v10265_v46 = vld [vmem:[%s13836_s10 + $0xef8] sm:$0xf0] }
 0x6f6   : > { %v12729_v49 = vld [vmem:[%s13836_s10 + $0x89c] sm:$0xf]  ;;  %v10268_v1 = vor.u32 %v12929_v8, %v10265_v46  ;;  %8034 = vmatpush.bf16.msrb.mxu2 %v10012_v44  ;;  %v7794_v46 = vpop.f32.mrf.mxu3 }
 0x6f7   : > { %v9465_v14 = vld [vmem:[%s13836_s10 + $0x8b8] sm:$0xf0] }
 0x6f8   : > { %v12793_v57 = vld [vmem:[%s13836_s10 + $0xa9c] sm:$0xf]  ;;  %v9468_v5 = vor.u32 %v12729_v49, %v9465_v14  ;;  %8047 = vmatpush.bf16.msrb.mxu3 %v10268_v1 }
 0x6f9   : > { %v9721_v47 = vld [vmem:[%s13836_s10 + $0xab8] sm:$0xf0] }
 0x6fa   : > { %v12857_v22 = vld [vmem:[%s13836_s10 + $0xc9c] sm:$0xf]  ;;  %v9724_v23 = vor.u32 %v12793_v57, %v9721_v47  ;;  %8009 = vmatpush.bf16.msrb.mxu0 %v9468_v5 }
 0x6fb   : > { %v9977_v59 = vld [vmem:[%s13836_s10 + $0xcb8] sm:$0xf0] }
 0x6fc   : > { %v12921_v48 = vld [vmem:[%s13836_s10 + $0xe9c] sm:$0xf]  ;;  %v9980_v24 = vor.u32 %v12857_v22, %v9977_v59  ;;  %8022 = vmatpush.bf16.msrb.mxu1 %v9724_v23 }
 0x6fd   : > { %v10233_v55 = vld [vmem:[%s13836_s10 + $0xeb8] sm:$0xf0] }
 0x6fe   : > { %v12721_v45 = vld [vmem:[%s13836_s10 + $0x85c] sm:$0xf]  ;;  %v10236_v37 = vor.u32 %v12921_v48, %v10233_v55  ;;  %8035 = vmatpush.bf16.msrb.mxu2 %v9980_v24 }
 0x6ff   : > { %v9433_v9 = vld [vmem:[%s13836_s10 + $0x878] sm:$0xf0] }
 0x700   : > { %v12785_v25 = vld [vmem:[%s13836_s10 + $0xa5c] sm:$0xf]  ;;  %v9436_v13 = vor.u32 %v12721_v45, %v9433_v9  ;;  %8048 = vmatpush.bf16.msrb.mxu3 %v10236_v37 }
 0x701   : > { %v9689_v11 = vld [vmem:[%s13836_s10 + $0xa78] sm:$0xf0] }
 0x702   : > { %v12849_v7 = vld [vmem:[%s13836_s10 + $0xc5c] sm:$0xf]  ;;  %v9692_v15 = vor.u32 %v12785_v25, %v9689_v11  ;;  %8010 = vmatpush.bf16.msrb.mxu0 %v9436_v13 }
 0x703   : > { %v9945_v21 = vld [vmem:[%s13836_s10 + $0xc78] sm:$0xf0] }
 0x704   : > { %v12913_v41 = vld [vmem:[%s13836_s10 + $0xe5c] sm:$0xf]  ;;  %v9948_v4 = vor.u32 %v12849_v7, %v9945_v21  ;;  %8023 = vmatpush.bf16.msrb.mxu1 %v9692_v15 }
 0x705   : > { %v10201_v12 = vld [vmem:[%s13836_s10 + $0xe78] sm:$0xf0] }
 0x706   : > { %v12713_v16 = vld [vmem:[%s13836_s10 + $0x81c] sm:$0xf]  ;;  %v10204_v28 = vor.u32 %v12913_v41, %v10201_v12  ;;  %8036 = vmatpush.bf16.msrb.mxu2 %v9948_v4 }
 0x707   : > { %v9401_v0 = vld [vmem:[%s13836_s10 + $0x838] sm:$0xf0] }
 0x708   : > { %v12777_v19 = vld [vmem:[%s13836_s10 + $0xa1c] sm:$0xf]  ;;  %v9404_v44 = vor.u32 %v12713_v16, %v9401_v0  ;;  %8049 = vmatpush.bf16.msrb.mxu3 %v10204_v28 }
 0x709   : > { %v9657_v17 = vld [vmem:[%s13836_s10 + $0xa38] sm:$0xf0] }
 0x70a   : > { %v12841_v52 = vld [vmem:[%s13836_s10 + $0xc1c] sm:$0xf]  ;;  %v9660_v18 = vor.u32 %v12777_v19, %v9657_v17  ;;  %8011 = vmatpush.bf16.msrb.mxu0 %v9404_v44 }
 0x70b   : > { %v9913_v32 = vld [vmem:[%s13836_s10 + $0xc38] sm:$0xf0] }
 0x70c   : > { %v12905_v51 = vld [vmem:[%s13836_s10 + $0xe1c] sm:$0xf]  ;;  %v9916_v1 = vor.u32 %v12841_v52, %v9913_v32  ;;  %8024 = vmatpush.bf16.msrb.mxu1 %v9660_v18  ;;  %v16223_v18 = vpop.f32.mrf.mxu1 }
 0x70d   : > { %v10169_v8 = vld [vmem:[%s13836_s10 + $0xe38] sm:$0xf0]  ;;  %8012 = vmatmul.bf16.vlgmr.msrb.gmra.mxu0 %v14056_v53 }
 0x70e   : > { %v13025_v27 = vld [vmem:[%s13836_s10 + $0x11dc] sm:$0xf]  ;;  %v10172_v59 = vor.u32 %v12905_v51, %v10169_v8  ;;  %8037 = vmatpush.bf16.msrb.mxu2 %v9916_v1 }
 0x70f   : > { %v10649_v63 = vld [vmem:[%s13836_s10 + $0x11f8] sm:$0xf0]  ;;  %8025 = vmatmul.bf16.vlgmr.msrb.gmra.mxu1 %v14060_v56 }
 0x710   : > { %v13089_v30 = vld [vmem:[%s13836_s10 + $0x13dc] sm:$0xf]  ;;  %v10652_v20 = vor.u32 %v13025_v27, %v10649_v63  ;;  %8050 = vmatpush.bf16.msrb.mxu3 %v10172_v59  ;;  %v16218_v63 = vpop.f32.mrf.mxu0 }
 0x711   : > { %v10905_v49 = vld [vmem:[%s13836_s10 + $0x13f8] sm:$0xf0]  ;;  %8038 = vmatmul.bf16.vlgmr.msrb.gmra.mxu2 %v14052_v50 }
 0x712   : > { %v13153_v14 = vld [vmem:[%s13836_s10 + $0x15dc] sm:$0xf]  ;;  %v10908_v62 = vor.u32 %v13089_v30, %v10905_v49  ;;  %8056 = vmatpush.bf16.msra.mxu0 %v10652_v20 }
 0x713   : > { %v11161_v57 = vld [vmem:[%s13836_s10 + $0x15f8] sm:$0xf0]  ;;  %8051 = vmatmul.bf16.vlgmr.msrb.gmra.mxu3 %v14058_v54 }
 0x714   : > { %v13217_v47 = vld [vmem:[%s13836_s10 + $0x17dc] sm:$0xf]  ;;  %v11164_v48 = vor.u32 %v13153_v14, %v11161_v57  ;;  %8069 = vmatpush.bf16.msra.mxu1 %v10908_v62 }
 0x715   : > { %v11417_v22 = vld [vmem:[%s13836_s10 + $0x17f8] sm:$0xf0] }
 0x716   : > { %v13017_v55 = vld [vmem:[%s13836_s10 + $0x119c] sm:$0xf]  ;;  %v11420_v23 = vor.u32 %v13217_v47, %v11417_v22  ;;  %8082 = vmatpush.bf16.msra.mxu2 %v11164_v48 }
 0x717   : > { %v10617_v5 = vld [vmem:[%s13836_s10 + $0x11b8] sm:$0xf0] }
 0x718   : > { %v13081_v60 = vld [vmem:[%s13836_s10 + $0x139c] sm:$0xf]  ;;  %v10620_v37 = vor.u32 %v13017_v55, %v10617_v5  ;;  %8095 = vmatpush.bf16.msra.mxu3 %v11420_v23 }
 0x719   : > { %v10873_v24 = vld [vmem:[%s13836_s10 + $0x13b8] sm:$0xf0] }
 0x71a   : > { %v13145_v45 = vld [vmem:[%s13836_s10 + $0x159c] sm:$0xf]  ;;  %v10876_v11 = vor.u32 %v13081_v60, %v10873_v24  ;;  %8057 = vmatpush.bf16.msra.mxu0 %v10620_v37 }
 0x71b   : > { %v11129_v9 = vld [vmem:[%s13836_s10 + $0x15b8] sm:$0xf0] }
 0x71c   : > { %v13209_v25 = vld [vmem:[%s13836_s10 + $0x179c] sm:$0xf]  ;;  %v11132_v7 = vor.u32 %v13145_v45, %v11129_v9  ;;  %8070 = vmatpush.bf16.msra.mxu1 %v10876_v11  ;;  %v16233_v45 = vpop.f32.mrf.mxu2  ;;  %v16238_v11 = vpop.f32.mrf.mxu3 }
 0x71d   : > { %v11385_v31 = vld [vmem:[%s13836_s10 + $0x17b8] sm:$0xf0] }
 0x71e   : > { %v13009_v21 = vld [vmem:[%s13836_s10 + $0x115c] sm:$0xf]  ;;  %v11388_v13 = vor.u32 %v13209_v25, %v11385_v31  ;;  %8083 = vmatpush.bf16.msra.mxu2 %v11132_v7 }
 0x71f   : > { %v10585_v41 = vld [vmem:[%s13836_s10 + $0x1178] sm:$0xf0] }
 0x720   : > { %v13073_v12 = vld [vmem:[%s13836_s10 + $0x135c] sm:$0xf]  ;;  %v10588_v17 = vor.u32 %v13009_v21, %v10585_v41  ;;  %8096 = vmatpush.bf16.msra.mxu3 %v11388_v13 }
 0x721   : > { %v10841_v16 = vld [vmem:[%s13836_s10 + $0x1378] sm:$0xf0] }
 0x722   : > { %v13137_v0 = vld [vmem:[%s13836_s10 + $0x155c] sm:$0xf]  ;;  %v10844_v50 = vor.u32 %v13073_v12, %v10841_v16  ;;  %8058 = vmatpush.bf16.msra.mxu0 %v10588_v17  ;;  %v7807_v12 = vpop.f32.mrf.mxu0 }
 0x723   : > { %v11097_v15 = vld [vmem:[%s13836_s10 + $0x1578] sm:$0xf0] }
 0x724   : > { %v13201_v4 = vld [vmem:[%s13836_s10 + $0x175c] sm:$0xf]  ;;  %v11100_v52 = vor.u32 %v13137_v0, %v11097_v15  ;;  %8071 = vmatpush.bf16.msra.mxu1 %v10844_v50 }
 0x725   : > { %v11353_v19 = vld [vmem:[%s13836_s10 + $0x1778] sm:$0xf0] }
 0x726   : > { %v13001_v40 = vld [vmem:[%s13836_s10 + $0x111c] sm:$0xf]  ;;  %v11356_v53 = vor.u32 %v13201_v4, %v11353_v19  ;;  %8084 = vmatpush.bf16.msra.mxu2 %v11100_v52  ;;  %v7820_v19 = vpop.f32.mrf.mxu1 }
 0x727   : > { %v10553_v28 = vld [vmem:[%s13836_s10 + $0x1138] sm:$0xf0] }
 0x728   : > { %v13065_v32 = vld [vmem:[%s13836_s10 + $0x131c] sm:$0xf]  ;;  %v10556_v56 = vor.u32 %v13001_v40, %v10553_v28  ;;  %8097 = vmatpush.bf16.msra.mxu3 %v11356_v53 }
 0x729   : > { %v10809_v51 = vld [vmem:[%s13836_s10 + $0x1338] sm:$0xf0] }
 0x72a   : > { %v13129_v54 = vld [vmem:[%s13836_s10 + $0x151c] sm:$0xf]  ;;  %v10812_v30 = vor.u32 %v13065_v32, %v10809_v51  ;;  %8059 = vmatpush.bf16.msra.mxu0 %v10556_v56 }
 0x72b   : > { %v11065_v8 = vld [vmem:[%s13836_s10 + $0x1538] sm:$0xf0] }
 0x72c   : > { %v13193_v46 = vld [vmem:[%s13836_s10 + $0x171c] sm:$0xf]  ;;  %v11068_v44 = vor.u32 %v13129_v54, %v11065_v8  ;;  %8072 = vmatpush.bf16.msra.mxu1 %v10812_v30 }
 0x72d   : > { %v11321_v27 = vld [vmem:[%s13836_s10 + $0x1738] sm:$0xf0] }
 0x72e   : > { %v12993_v49 = vld [vmem:[%s13836_s10 + $0x10dc] sm:$0xf]  ;;  %v11324_v1 = vor.u32 %v13193_v46, %v11321_v27  ;;  %8085 = vmatpush.bf16.msra.mxu2 %v11068_v44  ;;  %v7833_v44 = vpop.f32.mrf.mxu2 }
 0x72f   : > { %v10521_v14 = vld [vmem:[%s13836_s10 + $0x10f8] sm:$0xf0] }
 0x730   : > { %v13057_v57 = vld [vmem:[%s13836_s10 + $0x12dc] sm:$0xf]  ;;  %v10524_v48 = vor.u32 %v12993_v49, %v10521_v14  ;;  %8098 = vmatpush.bf16.msra.mxu3 %v11324_v1 }
 0x731   : > { %v10777_v47 = vld [vmem:[%s13836_s10 + $0x12f8] sm:$0xf0] }
 0x732   : > { %v13121_v22 = vld [vmem:[%s13836_s10 + $0x14dc] sm:$0xf]  ;;  %v10780_v55 = vor.u32 %v13057_v57, %v10777_v47  ;;  %8060 = vmatpush.bf16.msra.mxu0 %v10524_v48  ;;  %v7846_v47 = vpop.f32.mrf.mxu3 }
 0x733   : > { %v11033_v59 = vld [vmem:[%s13836_s10 + $0x14f8] sm:$0xf0] }
 0x734   : > { %v13185_v20 = vld [vmem:[%s13836_s10 + $0x16dc] sm:$0xf]  ;;  %v11036_v5 = vor.u32 %v13121_v22, %v11033_v59  ;;  %8073 = vmatpush.bf16.msra.mxu1 %v10780_v55 }
 0x735   : > { %v11289_v62 = vld [vmem:[%s13836_s10 + $0x16f8] sm:$0xf0] }
 0x736   : > { %v12985_v60 = vld [vmem:[%s13836_s10 + $0x109c] sm:$0xf]  ;;  %v11292_v9 = vor.u32 %v13185_v20, %v11289_v62  ;;  %8086 = vmatpush.bf16.msra.mxu2 %v11036_v5 }
 0x737   : > { %v10489_v23 = vld [vmem:[%s13836_s10 + $0x10b8] sm:$0xf0] }
 0x738   : > { %v13049_v24 = vld [vmem:[%s13836_s10 + $0x129c] sm:$0xf]  ;;  %v10492_v41 = vor.u32 %v12985_v60, %v10489_v23  ;;  %8099 = vmatpush.bf16.msra.mxu3 %v11292_v9 }
 0x739   : > { %v10745_v25 = vld [vmem:[%s13836_s10 + $0x12b8] sm:$0xf0] }
 0x73a   : > { %v13113_v31 = vld [vmem:[%s13836_s10 + $0x149c] sm:$0xf]  ;;  %v10748_v13 = vor.u32 %v13049_v24, %v10745_v25  ;;  %8061 = vmatpush.bf16.msra.mxu0 %v10492_v41 }
 0x73b   : > { %v11001_v37 = vld [vmem:[%s13836_s10 + $0x14b8] sm:$0xf0] }
 0x73c   : > { %v13177_v7 = vld [vmem:[%s13836_s10 + $0x169c] sm:$0xf]  ;;  %v11004_v16 = vor.u32 %v13113_v31, %v11001_v37  ;;  %8074 = vmatpush.bf16.msra.mxu1 %v10748_v13 }
 0x73d   : > { %v11257_v21 = vld [vmem:[%s13836_s10 + $0x16b8] sm:$0xf0] }
 0x73e   : > { %v12977_v0 = vld [vmem:[%s13836_s10 + $0x105c] sm:$0xf]  ;;  %v11260_v17 = vor.u32 %v13177_v7, %v11257_v21  ;;  %8087 = vmatpush.bf16.msra.mxu2 %v11004_v16 }
 0x73f   : > { %v10457_v15 = vld [vmem:[%s13836_s10 + $0x1078] sm:$0xf0] }
 0x740   : > { %v13041_v4 = vld [vmem:[%s13836_s10 + $0x125c] sm:$0xf]  ;;  %v10460_v53 = vor.u32 %v12977_v0, %v10457_v15  ;;  %8100 = vmatpush.bf16.msra.mxu3 %v11260_v17 }
 0x741   : > { %v10713_v50 = vld [vmem:[%s13836_s10 + $0x1278] sm:$0xf0] }
 0x742   : > { %v13105_v52 = vld [vmem:[%s13836_s10 + $0x145c] sm:$0xf]  ;;  %v10716_v8 = vor.u32 %v13041_v4, %v10713_v50  ;;  %8062 = vmatpush.bf16.msra.mxu0 %v10460_v53 }
 0x743   : > { %v10969_v40 = vld [vmem:[%s13836_s10 + $0x1478] sm:$0xf0] }
 0x744   : > { %v13169_v28 = vld [vmem:[%s13836_s10 + $0x165c] sm:$0xf]  ;;  %v10972_v46 = vor.u32 %v13105_v52, %v10969_v40  ;;  %8075 = vmatpush.bf16.msra.mxu1 %v10716_v8 }
 0x745   : > { %v11225_v32 = vld [vmem:[%s13836_s10 + $0x1678] sm:$0xf0] }
 0x746   : > { %v12969_v51 = vld [vmem:[%s13836_s10 + $0x101c] sm:$0xf]  ;;  %v11228_v49 = vor.u32 %v13169_v28, %v11225_v32  ;;  %8088 = vmatpush.bf16.msra.mxu2 %v10972_v46 }
 0x747   : > { %v10425_v54 = vld [vmem:[%s13836_s10 + $0x1038] sm:$0xf0] }
 0x748   : > { %v13033_v27 = vld [vmem:[%s13836_s10 + $0x121c] sm:$0xf]  ;;  %v10428_v62 = vor.u32 %v12969_v51, %v10425_v54  ;;  %8101 = vmatpush.bf16.msra.mxu3 %v11228_v49 }
 0x749   : > { %v10681_v56 = vld [vmem:[%s13836_s10 + $0x1238] sm:$0xf0] }
 0x74a   : > { %v13097_v30 = vld [vmem:[%s13836_s10 + $0x141c] sm:$0xf]  ;;  %v10684_v60 = vor.u32 %v13033_v27, %v10681_v56  ;;  %8063 = vmatpush.bf16.msra.mxu0 %v10428_v62 }
 0x74b   : > { %v10937_v14 = vld [vmem:[%s13836_s10 + $0x1438] sm:$0xf0] }
 0x74c   : > { %v13161_v57 = vld [vmem:[%s13836_s10 + $0x161c] sm:$0xf]  ;;  %v10940_v23 = vor.u32 %v13097_v30, %v10937_v14  ;;  %8076 = vmatpush.bf16.msra.mxu1 %v10684_v60 }
 0x74d   : > { %v11193_v1 = vld [vmem:[%s13836_s10 + $0x1638] sm:$0xf0]  ;;  %8064 = vmatmul.bf16.vlgmr.msra.gmra.mxu0 %v14125_v34 }
 0x74e   : > { %v13281_v22 = vld [vmem:[%s13836_s10 + $0x19dc] sm:$0xf]  ;;  %v11196_v25 = vor.u32 %v13161_v57, %v11193_v1  ;;  %8089 = vmatpush.bf16.msra.mxu2 %v10940_v23 }
 0x74f   : > { %v11673_v59 = vld [vmem:[%s13836_s10 + $0x19f8] sm:$0xf0]  ;;  %8077 = vmatmul.bf16.vlgmr.msra.gmra.mxu1 %v14132_v39 }
 0x750   : > { %v13345_v20 = vld [vmem:[%s13836_s10 + $0x1bdc] sm:$0xf]  ;;  %v11676_v31 = vor.u32 %v13281_v22, %v11673_v59  ;;  %8102 = vmatpush.bf16.msra.mxu3 %v11196_v25 }
 0x751   : > { %v11929_v48 = vld [vmem:[%s13836_s10 + $0x1bf8] sm:$0xf0]  ;;  %8090 = vmatmul.bf16.vlgmr.msra.gmra.mxu2 %v14130_v38 }
 0x752   : > { %v13409_v55 = vld [vmem:[%s13836_s10 + $0x1ddc] sm:$0xf]  ;;  %v11932_v37 = vor.u32 %v13345_v20, %v11929_v48  ;;  %8108 = vmatpush.bf16.msrb.mxu0 %v11676_v31  ;;  %v16296_v20 = vpop.f32.mrf.mxu1 }
 0x753   : > { %v12185_v5 = vld [vmem:[%s13836_s10 + $0x1df8] sm:$0xf0]  ;;  %8103 = vmatmul.bf16.vlgmr.msra.gmra.mxu3 %v14136_v43  ;;  %v16292_v43 = vpop.f32.mrf.mxu0 }
 0x754   : > { %v13473_v24 = vld [vmem:[%s13836_s10 + $0x1fdc] sm:$0xf]  ;;  %v12188_v7 = vor.u32 %v13409_v55, %v12185_v5  ;;  %8121 = vmatpush.bf16.msrb.mxu1 %v11932_v37 }
 0x755   : > { %v12441_v9 = vld [vmem:[%s13836_s10 + $0x1ff8] sm:$0xf0] }
 0x756   : > { %v13273_v21 = vld [vmem:[%s13836_s10 + $0x199c] sm:$0xf]  ;;  %v12444_v13 = vor.u32 %v13473_v24, %v12441_v9  ;;  %8134 = vmatpush.bf16.msrb.mxu2 %v12188_v7 }
 0x757   : > { %v11641_v41 = vld [vmem:[%s13836_s10 + $0x19b8] sm:$0xf0] }
 0x758   : > { %v13337_v12 = vld [vmem:[%s13836_s10 + $0x1b9c] sm:$0xf]  ;;  %v11644_v17 = vor.u32 %v13273_v21, %v11641_v41  ;;  %8147 = vmatpush.bf16.msrb.mxu3 %v12444_v13  ;;  %v7806_v21 = vadd.f32 %v16218_v63, %v16164_v3 }
 0x759   : > { %v11897_v16 = vld [vmem:[%s13836_s10 + $0x1bb8] sm:$0xf0] }
 0x75a   : > { %v13401_v0 = vld [vmem:[%s13836_s10 + $0x1d9c] sm:$0xf]  ;;  %v11900_v50 = vor.u32 %v13337_v12, %v11897_v16  ;;  %8109 = vmatpush.bf16.msrb.mxu0 %v11644_v17 }
 0x75b   : > { %v12153_v15 = vld [vmem:[%s13836_s10 + $0x1db8] sm:$0xf0] }
 0x75c   : > { %v13465_v4 = vld [vmem:[%s13836_s10 + $0x1f9c] sm:$0xf]  ;;  %v12156_v52 = vor.u32 %v13401_v0, %v12153_v15  ;;  %8122 = vmatpush.bf16.msrb.mxu1 %v11900_v50 }
 0x75d   : > { %v12409_v19 = vld [vmem:[%s13836_s10 + $0x1fb8] sm:$0xf0] }
 0x75e   : > { %v13265_v40 = vld [vmem:[%s13836_s10 + $0x195c] sm:$0xf]  ;;  %v12412_v53 = vor.u32 %v13465_v4, %v12409_v19  ;;  %8135 = vmatpush.bf16.msrb.mxu2 %v12156_v52  ;;  %v16311_v4 = vpop.f32.mrf.mxu2  ;;  %v7896_v52 = vpop.f32.mrf.mxu3 }
 0x75f   : > { %v11609_v28 = vld [vmem:[%s13836_s10 + $0x1978] sm:$0xf0] }
 0x760   : > { %v13329_v32 = vld [vmem:[%s13836_s10 + $0x1b5c] sm:$0xf]  ;;  %v11612_v34 = vor.u32 %v13265_v40, %v11609_v28  ;;  %8148 = vmatpush.bf16.msrb.mxu3 %v12412_v53  ;;  %v7859_v40 = vpop.f32.mrf.mxu0  ;;  %v7819_v53 = vadd.f32 %v16223_v18, %v7806_v21 }
 0x761   : > { %v11865_v51 = vld [vmem:[%s13836_s10 + $0x1b78] sm:$0xf0] }
 0x762   : > { %v13393_v54 = vld [vmem:[%s13836_s10 + $0x1d5c] sm:$0xf]  ;;  %v11868_v56 = vor.u32 %v13329_v32, %v11865_v51  ;;  %8110 = vmatpush.bf16.msrb.mxu0 %v11612_v34  ;;  %v7872_v32 = vpop.f32.mrf.mxu1 }
 0x763   : > { %v12121_v8 = vld [vmem:[%s13836_s10 + $0x1d78] sm:$0xf0] }
 0x764   : > { %v13457_v46 = vld [vmem:[%s13836_s10 + $0x1f5c] sm:$0xf]  ;;  %v12124_v30 = vor.u32 %v13393_v54, %v12121_v8  ;;  %8123 = vmatpush.bf16.msrb.mxu1 %v11868_v56 }
 0x765   : > { %v12377_v27 = vld [vmem:[%s13836_s10 + $0x1f78] sm:$0xf0] }
 0x766   : > { %v13257_v44 = vld [vmem:[%s13836_s10 + $0x191c] sm:$0xf]  ;;  %v12380_v39 = vor.u32 %v13457_v46, %v12377_v27  ;;  %8136 = vmatpush.bf16.msrb.mxu2 %v12124_v30 }
 0x767   : > { %v11577_v49 = vld [vmem:[%s13836_s10 + $0x1938] sm:$0xf0] }
 0x768   : > { %v13321_v38 = vld [vmem:[%s13836_s10 + $0x1b1c] sm:$0xf]  ;;  %v11580_v59 = vor.u32 %v13257_v44, %v11577_v49  ;;  %8149 = vmatpush.bf16.msrb.mxu3 %v12380_v39  ;;  %v7832_v39 = vadd.f32 %v16233_v45, %v7819_v53 }
 0x769   : > { %v11833_v14 = vld [vmem:[%s13836_s10 + $0x1b38] sm:$0xf0] }
 0x76a   : > { %v13385_v57 = vld [vmem:[%s13836_s10 + $0x1d1c] sm:$0xf]  ;;  %v11836_v62 = vor.u32 %v13321_v38, %v11833_v14  ;;  %8111 = vmatpush.bf16.msrb.mxu0 %v11580_v59  ;;  %v7845_v45 = vadd.f32 %v16238_v11, %v7832_v39 }
 0x76b   : > { %v12089_v1 = vld [vmem:[%s13836_s10 + $0x1d38] sm:$0xf0] }
 0x76c   : > { %v13449_v47 = vld [vmem:[%s13836_s10 + $0x1f1c] sm:$0xf]  ;;  %v12092_v48 = vor.u32 %v13385_v57, %v12089_v1  ;;  %8124 = vmatpush.bf16.msrb.mxu1 %v11836_v62 }
 0x76d   : > { %v12345_v22 = vld [vmem:[%s13836_s10 + $0x1f38] sm:$0xf0] }
 0x76e   : > { %v13249_v55 = vld [vmem:[%s13836_s10 + $0x18dc] sm:$0xf]  ;;  %v12348_v23 = vor.u32 %v13449_v47, %v12345_v22  ;;  %8137 = vmatpush.bf16.msrb.mxu2 %v12092_v48 }
 0x76f   : > { %v11545_v5 = vld [vmem:[%s13836_s10 + $0x18f8] sm:$0xf0] }
 0x770   : > { %v13313_v60 = vld [vmem:[%s13836_s10 + $0x1adc] sm:$0xf]  ;;  %v11548_v7 = vor.u32 %v13249_v55, %v11545_v5  ;;  %8150 = vmatpush.bf16.msrb.mxu3 %v12348_v23  ;;  %v7885_v5 = vpop.f32.mrf.mxu2 }
 0x771   : > { %v11801_v24 = vld [vmem:[%s13836_s10 + $0x1af8] sm:$0xf0] }
 0x772   : > { %v13377_v9 = vld [vmem:[%s13836_s10 + $0x1cdc] sm:$0xf]  ;;  %v11804_v41 = vor.u32 %v13313_v60, %v11801_v24  ;;  %8112 = vmatpush.bf16.msrb.mxu0 %v11548_v7  ;;  %v7898_v24 = vpop.f32.mrf.mxu3  ;;  %v7858_v7 = vadd.f32 %v16292_v43, %v7845_v45  ;;  %v7922_v43 = vpop.f32.mrf.mxu1 }
 0x773   : > { %v12057_v25 = vld [vmem:[%s13836_s10 + $0x1cf8] sm:$0xf0] }
 0x774   : > { %v13441_v31 = vld [vmem:[%s13836_s10 + $0x1edc] sm:$0xf]  ;;  %v12060_v12 = vor.u32 %v13377_v9, %v12057_v25  ;;  %8125 = vmatpush.bf16.msrb.mxu1 %v11804_v41  ;;  %v7871_v21 = vadd.f32 %v16296_v20, %v7858_v7 }
 0x775   : > { %v12313_v37 = vld [vmem:[%s13836_s10 + $0x1ef8] sm:$0xf0] }
 0x776   : > { %v13241_v13 = vld [vmem:[%s13836_s10 + $0x189c] sm:$0xf]  ;;  %v12316_v15 = vor.u32 %v13441_v31, %v12313_v37  ;;  %8138 = vmatpush.bf16.msrb.mxu2 %v12060_v12  ;;  %v7884_v11 = vadd.f32 %v16311_v4, %v7871_v21  ;;  %v7909_v12 = vpop.f32.mrf.mxu0 }
 0x777   : > { %v11513_v16 = vld [vmem:[%s13836_s10 + $0x18b8] sm:$0xf0] }
 0x778   : > { %v13305_v0 = vld [vmem:[%s13836_s10 + $0x1a9c] sm:$0xf]  ;;  %v11516_v28 = vor.u32 %v13241_v13, %v11513_v16  ;;  %8151 = vmatpush.bf16.msrb.mxu3 %v12316_v15  ;;  %v7897_v41 = vadd.f32 %v7896_v52, %v7884_v11 }
 0x779   : > { %v11769_v19 = vld [vmem:[%s13836_s10 + $0x1ab8] sm:$0xf0] }
 0x77a   : > { %v13369_v17 = vld [vmem:[%s13836_s10 + $0x1c9c] sm:$0xf]  ;;  %v11772_v51 = vor.u32 %v13305_v0, %v11769_v19  ;;  %8113 = vmatpush.bf16.msrb.mxu0 %v11516_v28  ;;  %v7910_v13 = vadd.f32 %v7909_v12, %v7897_v41  ;;  %v7935_v0 = vpop.f32.mrf.mxu2  ;;  %v7948_v19 = vpop.f32.mrf.mxu3 }
 0x77b   : > { %v12025_v50 = vld [vmem:[%s13836_s10 + $0x1cb8] sm:$0xf0] }
 0x77c   : > { %v13433_v3 = vld [vmem:[%s13836_s10 + $0x1e9c] sm:$0xf]  ;;  %v12028_v54 = vor.u32 %v13369_v17, %v12025_v50  ;;  %8126 = vmatpush.bf16.msrb.mxu1 %v11772_v51  ;;  %v7923_v16 = vadd.f32 %v7922_v43, %v7910_v13  ;;  %v7924_v17 = vpop.f32.mrf.mxu1 }
 0x77d   : > { %v12281_v63 = vld [vmem:[%s13836_s10 + $0x1eb8] sm:$0xf0] }
 0x77e   : > { %v13233_v8 = vld [vmem:[%s13836_s10 + $0x185c] sm:$0xf]  ;;  %v12284_v34 = vor.u32 %v13433_v3, %v12281_v63  ;;  %8139 = vmatpush.bf16.msrb.mxu2 %v12028_v54  ;;  %v7936_v15 = vadd.f32 %v7935_v0, %v7923_v16  ;;  %v7911_v20 = vpop.f32.mrf.mxu0 }
 0x77f   : > { %v11481_v46 = vld [vmem:[%s13836_s10 + $0x1878] sm:$0xf0] }
 0x780   : > { %v13297_v27 = vld [vmem:[%s13836_s10 + $0x1a5c] sm:$0xf]  ;;  %v11484_v38 = vor.u32 %v13233_v8, %v11481_v46  ;;  %8152 = vmatpush.bf16.msrb.mxu3 %v12284_v34 }
 0x781   : > { %v11737_v56 = vld [vmem:[%s13836_s10 + $0x1a78] sm:$0xf0] }
 0x782   : > { %v13361_v30 = vld [vmem:[%s13836_s10 + $0x1c5c] sm:$0xf]  ;;  %v11740_v14 = vor.u32 %v13297_v27, %v11737_v56  ;;  %8114 = vmatpush.bf16.msrb.mxu0 %v11484_v38  ;;  %v7950_v50 = vpop.f32.mrf.mxu3 }
 0x783   : > { %v11993_v44 = vld [vmem:[%s13836_s10 + $0x1c78] sm:$0xf0] }
 0x784   : > { %v13425_v49 = vld [vmem:[%s13836_s10 + $0x1e5c] sm:$0xf]  ;;  %v11996_v57 = vor.u32 %v13361_v30, %v11993_v44  ;;  %8127 = vmatpush.bf16.msrb.mxu1 %v11740_v14  ;;  %v7974_v3 = vpop.f32.mrf.mxu1 }
 0x785   : > { %v12249_v18 = vld [vmem:[%s13836_s10 + $0x1e78] sm:$0xf0] }
 0x786   : > { %v13225_v1 = vld [vmem:[%s13836_s10 + $0x181c] sm:$0xf]  ;;  %v12252_v59 = vor.u32 %v13425_v49, %v12249_v18  ;;  %8140 = vmatpush.bf16.msrb.mxu2 %v11996_v57  ;;  %v7961_v4 = vpop.f32.mrf.mxu0 }
 0x787   : > { %v11449_v47 = vld [vmem:[%s13836_s10 + $0x1838] sm:$0xf0] }
 0x788   : > { %v13289_v22 = vld [vmem:[%s13836_s10 + $0x1a1c] sm:$0xf]  ;;  %v11452_v9 = vor.u32 %v13225_v1, %v11449_v47  ;;  %8153 = vmatpush.bf16.msrb.mxu3 %v12252_v59 }
 0x789   : > { %v11705_v62 = vld [vmem:[%s13836_s10 + $0x1a38] sm:$0xf0] }
 0x78a   : > { %v13353_v48 = vld [vmem:[%s13836_s10 + $0x1c1c] sm:$0xf]  ;;  %v11708_v25 = vor.u32 %v13289_v22, %v11705_v62  ;;  %8115 = vmatpush.bf16.msrb.mxu0 %v11452_v9  ;;  %v8000_v32 = vpop.f32.mrf.mxu3 }
 0x78b   : > { %v11961_v55 = vld [vmem:[%s13836_s10 + $0x1c38] sm:$0xf0] }
 0x78c   : > { %v13417_v60 = vld [vmem:[%s13836_s10 + $0x1e1c] sm:$0xf]  ;;  %v11964_v31 = vor.u32 %v13353_v48, %v11961_v55  ;;  %8128 = vmatpush.bf16.msrb.mxu1 %v11708_v25  ;;  %v7976_v54 = vpop.f32.mrf.mxu1 }
 0x78d   : > { %v12217_v23 = vld [vmem:[%s13836_s10 + $0x1e38] sm:$0xf0]  ;;  %8116 = vmatmul.bf16.vlgmr.msrb.gmra.mxu0 %v14201_v29  ;;  %v7949_v29 = vadd.f32 %v7948_v19, %v7936_v15 }
 0x78e   : > { %v12220_v37 = vor.u32 %v13417_v60, %v12217_v23  ;;  %8141 = vmatpush.bf16.msrb.mxu2 %v11964_v31  ;;  %v7963_v51 = vpop.f32.mrf.mxu0 }
 0x78f   : > { %8129 = vmatmul.bf16.vlgmr.msrb.gmra.mxu1 %v14208_v36  ;;  %13569 = vtanh.f32 %v7949_v29  ;;  %v7937_v36 = vpop.f32.mrf.mxu2 }
 0x790   : > { %8154 = vmatpush.bf16.msrb.mxu3 %v12220_v37 }
 0x791   : > { %8142 = vmatmul.bf16.vlgmr.msrb.gmra.mxu2 %v14206_v35 }
 0x792   : > { %v8002_v46 = vpop.f32.mrf.mxu3 }
 0x793   : > { %8155 = vmatmul.bf16.vlgmr.msrb.gmra.mxu3 %v14212_v42  ;;  %v1367_v42 = vperm.slane %v16140_v10, 7 }
 0x794   : > { %v8026_v34 = vpop.f32.mrf.mxu1 }
 0x795   : > { %v16344_v35 = vpop.eup %13569  ;;  %v7962_v52 = vadd.f32 %v7961_v4, %v1367_v42 }
 0x796   : > { %8179 = vst [vmem:[%s14592_s25 + $0x30] sm:$0xff] %v16344_v35  ;;  %v8013_v27 = vpop.f32.mrf.mxu0 }
 0x797   : > { %v7975_v63 = vadd.f32 %v7974_v3, %v7962_v52  ;;  %v7987_v40 = vpop.f32.mrf.mxu2 }
 0x799   : > { %v7988_v28 = vadd.f32 %v7987_v40, %v7975_v63 }
 0x79a   : > { %v8052_v30 = vpop.f32.mrf.mxu3 }
 0x79b   : > { %v8001_v53 = vadd.f32 %v8000_v32, %v7988_v28 }
 0x79c   : > { %v8028_v49 = vpop.f32.mrf.mxu1 }
 0x79d   : > { %v8014_v14 = vadd.f32 %v8013_v27, %v8001_v53 }
 0x79e   : > { %v8015_v44 = vpop.f32.mrf.mxu0 }
 0x79f   : > { %v7989_v8 = vpop.f32.mrf.mxu2  ;;  %v8027_v22 = vadd.f32 %v8026_v34, %v8014_v14 }
 0x7a2   : > { %v8054_v10 = vpop.f32.mrf.mxu3 }
 0x7a7   : > { %v8039_v56 = vpop.f32.mrf.mxu2 }
 0x7a8   : > { %v8040_v62 = vadd.f32 %v8039_v56, %v8027_v22 }
 0x7aa   : > { %v8053_v5 = vadd.f32 %v8052_v30, %v8040_v62 }
 0x7af   : > { %v8041_v18 = vpop.f32.mrf.mxu2 }
 0x7ca   : > { %v8065_v38 = vpop.f32.mrf.mxu0 }
 0x7cb   : > { %v8066_v60 = vadd.f32 %v8065_v38, %v8053_v5 }
 0x7cc   : > { %v8078_v39 = vpop.f32.mrf.mxu1 }
 0x7cd   : > { %v8079_v23 = vadd.f32 %v8078_v39, %v8066_v60 }
 0x7d2   : > { %v8067_v47 = vpop.f32.mrf.mxu0 }
 0x7d4   : > { %v8091_v57 = vpop.f32.mrf.mxu2  ;;  %v8080_v59 = vpop.f32.mrf.mxu1 }
 0x7d5   : > { %v8092_v24 = vadd.f32 %v8091_v57, %v8079_v23 }
 0x7d6   : > { %v8104_v1 = vpop.f32.mrf.mxu3 }
 0x7d7   : > { %v8105_v9 = vadd.f32 %v8104_v1, %v8092_v24 }
 0x7dc   : > { %v8093_v48 = vpop.f32.mrf.mxu2 }
 0x7de   : > { %v8106_v55 = vpop.f32.mrf.mxu3 }
 0x80a   : > { %v8117_v45 = vpop.f32.mrf.mxu0 }
 0x80b   : > { %v8118_v31 = vadd.f32 %v8117_v45, %v8105_v9 }
 0x80c   : > { %v8130_v25 = vpop.f32.mrf.mxu1 }
 0x80d   : > { %v8131_v37 = vadd.f32 %v8130_v25, %v8118_v31 }
 0x812   : > { %v8119_v41 = vpop.f32.mrf.mxu0 }
 0x814   : > { %v8143_v7 = vpop.f32.mrf.mxu2  ;;  %v8132_v12 = vpop.f32.mrf.mxu1 }
 0x815   : > { %v8144_v21 = vadd.f32 %v8143_v7, %v8131_v37 }
 0x816   : > { %v8156_v11 = vpop.f32.mrf.mxu3 }
 0x817   : > { %v8157_v43 = vadd.f32 %v8156_v11, %v8144_v21 }
 0x819   : > { %13571 = vtanh.f32 %v8157_v43 }
 0x81c   : > { %v8145_v13 = vpop.f32.mrf.mxu2  ;;  %8184 = sbr.rel (%p12447_p3) target bundleno = 2089 (0x829), region = 48 }
 0x81e   : > { %v8158_v16 = vpop.f32.mrf.mxu3 }
 0x81f   : > { %v13572_v0 = vpop.eup %13571 }
 0x820   : > { %8180 = vst [vmem:[%s14592_s25 + $0x38] sm:$0xff] %v13572_v0 }
 0x821   : > { %8187 = vst [vmem:[%s8186_s20] sm:$0xff] %v14587_v2 }
 0x822   : > { %8188 = vst [vmem:[%s8186_s20 + $0x8] sm:$0xff] %v14894_v33 }
 0x823   : > { %8189 = vst [vmem:[%s8186_s20 + $0x10] sm:$0xff] %v15198_v58 }
 0x824   : > { %8190 = vst [vmem:[%s8186_s20 + $0x18] sm:$0xff] %v15502_v26 }
 0x825   : > { %8191 = vst [vmem:[%s8186_s20 + $0x20] sm:$0xff] %v15806_v61 }
 0x826   : > { %8192 = vst [vmem:[%s8186_s20 + $0x28] sm:$0xff] %v16110_v6 }
 0x827   : > { %8193 = vst [vmem:[%s8186_s20 + $0x30] sm:$0xff] %v16344_v35 }
 0x828   : > { %8194 = vst [vmem:[%s8186_s20 + $0x38] sm:$0xff] %v13572_v0 }
 0x829 PF: > { %p12449_p4 = scmp.ne.s32.totalorder %s13696_s19, 4 }
 0x82a   : > { %s8200_s30 = scalar_lea.vmem (!%p12449_p4), %s16403_s4, %s14563_s1 }
 0x82b   : > { %8198 = sbr.rel (%p12449_p4) target bundleno = 2104 (0x838), region = 52 }
 0x830   : > { %8201 = vst [vmem:[%s8200_s30] sm:$0xff] %v14587_v2 }
 0x831   : > { %8202 = vst [vmem:[%s8200_s30 + $0x8] sm:$0xff] %v14894_v33 }
 0x832   : > { %8203 = vst [vmem:[%s8200_s30 + $0x10] sm:$0xff] %v15198_v58 }
 0x833   : > { %8204 = vst [vmem:[%s8200_s30 + $0x18] sm:$0xff] %v15502_v26 }
 0x834   : > { %8205 = vst [vmem:[%s8200_s30 + $0x20] sm:$0xff] %v15806_v61 }
 0x835   : > { %8206 = vst [vmem:[%s8200_s30 + $0x28] sm:$0xff] %v16110_v6 }
 0x836   : > { %8207 = vst [vmem:[%s8200_s30 + $0x30] sm:$0xff] %v16344_v35 }
 0x837   : > { %8208 = vst [vmem:[%s8200_s30 + $0x38] sm:$0xff] %v13572_v0 }
 0x838 PF: > { %p12451_p5 = scmp.ne.s32.totalorder %s13692_s18, 1 }
 0x83a   : > { %8212 = sbr.rel (%p12451_p5) target bundleno = 2128 (0x850), region = 56 }
 0x83f   : > { %v8213_v15 = vld [vmem:[#allocation3] sm:$0xff]  ;;  %v8214_v19 = vld [vmem:[#allocation3 + $0x8] sm:$0xff]  ;;  %v8215_v2 = vld [vmem:[#allocation3 + $0x10] sm:$0xff] }
 0x840   : > { %8229 = vst [vmem:[#allocation2 + $0x30] sm:$0xff] %v8213_v15  ;;  %v8216_v33 = vld [vmem:[#allocation3 + $0x18] sm:$0xff]  ;;  %v8217_v58 = vld [vmem:[#allocation3 + $0x20] sm:$0xff]  ;;  %v8218_v26 = vld [vmem:[#allocation3 + $0x28] sm:$0xff] }
 0x841   : > { %8230 = vst [vmem:[#allocation2] sm:$0xff] %v8214_v19  ;;  %v8219_v61 = vld [vmem:[#allocation3 + $0x30] sm:$0xff]  ;;  %v8220_v6 = vld [vmem:[#allocation3 + $0x38] sm:$0xff]  ;;  %v8221_v20 = vld [vmem:[#allocation3 + $0x40] sm:$0xff] }
 0x842   : > { %8231 = vst [vmem:[#allocation2 + $0x58] sm:$0xff] %v8215_v2  ;;  %v8222_v17 = vld [vmem:[#allocation3 + $0x48] sm:$0xff]  ;;  %v8223_v29 = vld [vmem:[#allocation3 + $0x50] sm:$0xff]  ;;  %v8224_v36 = vld [vmem:[#allocation3 + $0x58] sm:$0xff] }
 0x843   : > { %8232 = vst [vmem:[#allocation2 + $0x18] sm:$0xff] %v8216_v33  ;;  %v8225_v50 = vld [vmem:[#allocation3 + $0x60] sm:$0xff]  ;;  %v8226_v35 = vld [vmem:[#allocation3 + $0x68] sm:$0xff]  ;;  %v8227_v42 = vld [vmem:[#allocation3 + $0x70] sm:$0xff] }
 0x844   : > { %8233 = vst [vmem:[#allocation2 + $0x50] sm:$0xff] %v8217_v58  ;;  %v8228_v4 = vld [vmem:[#allocation3 + $0x78] sm:$0xff] }
 0x845   : > { %8234 = vst [vmem:[#allocation2 + $0x68] sm:$0xff] %v8218_v26 }
 0x846   : > { %8235 = vst [vmem:[#allocation2 + $0x8] sm:$0xff] %v8219_v61 }
 0x847   : > { %8236 = vst [vmem:[#allocation2 + $0x48] sm:$0xff] %v8220_v6 }
 0x848   : > { %8237 = vst [vmem:[#allocation2 + $0x40] sm:$0xff] %v8221_v20 }
 0x849   : > { %8238 = vst [vmem:[#allocation2 + $0x20] sm:$0xff] %v8222_v17 }
 0x84a   : > { %8239 = vst [vmem:[#allocation2 + $0x10] sm:$0xff] %v8223_v29 }
 0x84b   : > { %8240 = vst [vmem:[#allocation2 + $0x38] sm:$0xff] %v8224_v36 }
 0x84c   : > { %8241 = vst [vmem:[#allocation2 + $0x60] sm:$0xff] %v8225_v50 }
 0x84d   : > { %8242 = vst [vmem:[#allocation2 + $0x70] sm:$0xff] %v8226_v35 }
 0x84e   : > { %8243 = vst [vmem:[#allocation2 + $0x78] sm:$0xff] %v8227_v42 }
 0x84f   : > { %8244 = vst [vmem:[#allocation2 + $0x28] sm:$0xff] %v8228_v4 }
 0x850 PF: > { %s21_s22 = sadd.s32 1, %s13708_s22   ;;  %s16415_s18 = sld [smem:[#allocation10_spill]] }
 0x851   : > { %p18_p6 = scmp.ge.s32.totalorder %s21_s22, 12   ;;  %s16416_s20 = sld [smem:[#allocation11_spill]] }
 0x852   : > { %s16417_s7 = sld [smem:[#allocation12_spill]]  ;;  %s16418_s15 = smov %s13684_s16 }
 0x853   : > { %s16419_s16 = smov %s13688_s17  ;;  %s16420_s17 = smov %s13808_s9 }
 0x854   : > { %s16421_s19 = smov %s13704_s21  ;;  %20 = sbr.rel (!%p18_p6) target bundleno = 9 (0x9), region = 108 }
 0x858   : > { %s16422_s21 = smov %s16417_s7 }
 0x859   :  { %8262 = vsyncpa [#allocation5], 1 }
 0x85a   :  { %8264 = vsyncpa [#allocation5 + $0x1], 1 }
 0x85b   :  { %8265 = vsyncpa [#allocation7], 1 }
 0x85c   :  { %8267 = vsyncpa [#allocation7 + $0x1], 1 }

</bundles_post_ra>
